<compile_context>
chip_gen: v7x
topology: tpu7x:2x2x1
jax: 0.10.0
libtpu: 0.0.40
codegen_flags: <defaults>
</compile_context>

<pallas_src>
import inspect

import jax
import jax.numpy as jnp
from jax.experimental import pallas as pl
from jax.experimental.pallas import tpu as pltpu

LAYER_DIMS = [(2048, 1024), (1024, 512), (512, 256), (256, 128),
              (128, 32), (32, 16), (16, 2)]
NUM_LAYERS = len(LAYER_DIMS)
BN_EPS = 1e-5
_INV_SQRT2 = 0.7071067811865476
LANE = 128


def _round_up(n, m):
    return ((n + m - 1) // m) * m


def _gelu_exact(x):
    # PyTorch nn.GELU() default: 0.5 * x * (1 + erf(x / sqrt(2)))
    return 0.5 * x * (1.0 + jax.lax.erf(x * _INV_SQRT2))


# ---------------------------------------------------------------------------
# Kernel
# ---------------------------------------------------------------------------
def geo_mlp_kernel(x_ref, shifts_ref, *rest):
    """rest = (w0, w1, ..., w6, o_ref).

    Per layer i:  acc = (h_bf16 @ w_i_bf16) [f32 MXU acc] + shift_i ;
    exact erf-GELU (f32) on all but the last layer, then cast back to bf16
    for the next matmul.  BN scale is pre-folded into w_i, Dropout is identity.
    """
    o_ref = rest[-1]
    w_refs = rest[:-1]

    # In-kernel cast (review item 1): x streams in as f32, bf16 only in VMEM.
    h = x_ref[...].astype(jnp.bfloat16)          # (TB, 2048)

    for i in range(NUM_LAYERS):
        w_ref = w_refs[i]                        # (din_p, dout_p) bf16, BN-folded
        dout_p = w_ref.shape[1]
        acc = jnp.dot(h, w_ref[...], preferred_element_type=jnp.float32)
        acc = acc + shifts_ref[i:i + 1, 0:dout_p]   # folded bias/BN shift (f32)
        if i < NUM_LAYERS - 1:
            h = _gelu_exact(acc).astype(jnp.bfloat16)
        else:
            o_ref[...] = acc.astype(o_ref.dtype)    # (TB, 128) bf16, lane-dense


# ---------------------------------------------------------------------------
# Hardware / capability probing (explicit, no broad except around pallas_call)
# ---------------------------------------------------------------------------
def _tpu_config():
    """Returns (vmem_limit_bytes, max_batch_tile, want_two_grid_steps)."""
    kind = ""
    devs = jax.devices()
    if devs:
        kind = (getattr(devs[0], "device_kind", "") or "").lower()
    is_v7 = "v7" in kind
    big_vmem = (("v5" in kind) or ("v6" in kind)) and not is_v7  # 128 MiB parts
    vmem_limit = (96 if big_vmem else 48) * 1024 * 1024
    max_tile = 1024 if big_vmem else 512
    return vmem_limit, max_tile, is_v7


def _blockspec_supports_pipeline_mode():
    if not hasattr(pl, "Buffered"):
        return False
    try:
        if "pipeline_mode" in inspect.signature(pl.BlockSpec).parameters:
            return True
    except (TypeError, ValueError):
        pass
    return "pipeline_mode" in getattr(pl.BlockSpec, "__dataclass_fields__", {})


def _select_batch_tile(B, max_tile, want_two_steps):
    """16-row-rounded, adaptive tile that minimizes last-tile padding waste."""
    B16 = _round_up(max(B, 1), 16)
    if B16 <= max_tile:
        TB = B16
    else:
        best_tb, best_waste = None, None
        for c in (1024, 768, 512, 384, 256, 128):
            if c > max_tile:
                continue
            waste = _round_up(B, c) - B
            if (best_waste is None or waste < best_waste
                    or (waste == best_waste and c > best_tb)):
                best_tb, best_waste = c, waste
        TB = best_tb
    # v7x: make sure both TensorCores get work when the batch allows it.
    if want_two_steps and B >= 32 and _round_up(B, TB) // TB < 2:
        TB = _round_up((TB + 1) // 2, 16)
    return TB


# ---------------------------------------------------------------------------
# Wrapper
# ---------------------------------------------------------------------------
def geo_predictor_forward(x, params):
    """x: (B, 2048) float32.  params = (weights, shifts) from fold_and_pad_params."""
    weights, shifts = params
    B, din0 = x.shape
    assert din0 == LAYER_DIMS[0][0]

    vmem_limit, max_tile, is_v7 = _tpu_config()
    TB = _select_batch_tile(B, max_tile, want_two_steps=is_v7)
    B_pad = _round_up(B, TB)
    x_p = x if B_pad == B else jnp.pad(x, ((0, B_pad - B), (0, 0)))

    use_buffered = _blockspec_supports_pipeline_mode()

    def const_spec(rows, cols):
        # Grid-invariant block (weights / shifts): constant index_map,
        # single-buffered when the JAX version supports pipeline_mode.
        if use_buffered:
            return pl.BlockSpec((rows, cols), lambda i: (0, 0),
                                pipeline_mode=pl.Buffered(1))
        return pl.BlockSpec((rows, cols), lambda i: (0, 0))

    in_specs = [pl.BlockSpec((TB, din0), lambda i: (i, 0)),
                const_spec(*shifts.shape)]
    in_specs += [const_spec(*w.shape) for w in weights]

    dout_last_p = weights[-1].shape[1]          # 128 (padded)
    out = pl.pallas_call(
        geo_mlp_kernel,
        out_shape=jax.ShapeDtypeStruct((B_pad, dout_last_p), jnp.bfloat16),
        grid=(B_pad // TB,),
        in_specs=in_specs,
        out_specs=pl.BlockSpec((TB, dout_last_p), lambda i: (i, 0)),
        compiler_params=pltpu.CompilerParams(
            dimension_semantics=("parallel",),
            vmem_limit_bytes=vmem_limit,
        ),
    )(x_p, shifts, *weights)

    return out[:B, :LAYER_DIMS[-1][1]].astype(jnp.float32)


# ---------------------------------------------------------------------------
# Parameter construction / folding
# ---------------------------------------------------------------------------
def init_raw_params(key):
    """Deterministic init matching the module's __init__ shapes.

    Linear: U(-1/sqrt(fan_in), 1/sqrt(fan_in)) for W (out,in) and b (out,)
    BatchNorm1d (layers 1..6): weight=1, bias=0, running_mean=0, running_var=1.
    """
    raw = []
    for li, (din, dout) in enumerate(LAYER_DIMS):
        key, kw, kb = jax.random.split(key, 3)
        bound = 1.0 / (din ** 0.5)
        W = jax.random.uniform(kw, (dout, din), jnp.float32, -bound, bound)
        b = jax.random.uniform(kb, (dout,), jnp.float32, -bound, bound)
        if li < NUM_LAYERS - 1:
            bn = (jnp.ones((dout,), jnp.float32),   # gamma
                  jnp.zeros((dout,), jnp.float32),  # beta
                  jnp.zeros((dout,), jnp.float32),  # running_mean
                  jnp.ones((dout,), jnp.float32))   # running_var
        else:
            bn = None
        raw.append((W, b, bn))
    return raw


def fold_and_pad_params(raw):
    """Fold Linear bias + BatchNorm (eval) into (W^T * scale, shift), zero-pad
    every layer width up to a multiple of 128 lanes, cast weights to bf16, and
    pack all shift vectors into a single (8, 1024) f32 array (row = layer)."""
    weights = []
    max_dout_p = max(_round_up(dout, LANE) for _, dout in LAYER_DIMS)  # 1024
    shifts = jnp.zeros((_round_up(NUM_LAYERS, 8), max_dout_p), jnp.float32)
    for li, ((din, dout), (W, b, bn)) in enumerate(zip(LAYER_DIMS, raw)):
        if bn is not None:
            gamma, beta, mean, var = bn
            s = gamma / jnp.sqrt(var + BN_EPS)
            shift = (b - mean) * s + beta
        else:
            s = jnp.ones_like(b)
            shift = b
        wT = W.T * s[None, :]                 # fold BN scale into weight columns
        din_p = _round_up(din, LANE)
        dout_p = _round_up(dout, LANE)
        wT_p = jnp.zeros((din_p, dout_p), jnp.float32).at[:din, :dout].set(wT)
        weights.append(wT_p.astype(jnp.bfloat16))
        shifts = shifts.at[li, :dout].set(shift)   # padded lanes stay exactly 0
    return weights, shifts


# ---------------------------------------------------------------------------
# References
# ---------------------------------------------------------------------------
def ref_forward_f32(x, raw):
    """Pure-JAX f32 reference replicating the PyTorch forward (eval mode)."""
    h = x
    for (W, b, bn) in raw:
        h = h @ W.T + b
        if bn is not None:
            gamma, beta, mean, var = bn
            h = (h - mean) / jnp.sqrt(var + BN_EPS) * gamma + beta
            h = _gelu_exact(h)
    return h


def ref_forward_matched(x, weights, shifts):
    """Pure-JAX reference doing exactly what the kernel does (bf16 in/out, f32 acc)."""
    h = x.astype(jnp.bfloat16)
    out = None
    for i, wT in enumerate(weights):
        dout_p = wT.shape[1]
        acc = jnp.dot(h, wT, preferred_element_type=jnp.float32)
        acc = acc + shifts[i:i + 1, :dout_p]
        if i < NUM_LAYERS - 1:
            h = _gelu_exact(acc).astype(jnp.bfloat16)
        else:
            out = acc.astype(jnp.bfloat16)
    return out[:, :LAYER_DIMS[-1][1]].astype(jnp.float32)


if __name__ == "__main__":
    key = jax.random.PRNGKey(0)
    key, kx = jax.random.split(key)
    B = 8
    x = jax.random.normal(kx, (B, 2048), jnp.float32)

    raw = init_raw_params(key)
    weights, shifts = fold_and_pad_params(raw)

    out = geo_predictor_forward(x, (weights, shifts))
    out = jax.block_until_ready(out)
    assert out.shape == (B, 2), out.shape

    # Exact-math check against a reference mirroring the kernel's bf16/f32 path.
    ref_m = ref_forward_matched(x, weights, shifts)
    assert jnp.allclose(out, ref_m, rtol=2e-3, atol=2e-3), (
        "mismatch vs matched (bf16) reference: max abs err "
        f"{float(jnp.max(jnp.abs(out - ref_m)))}"
    )

    # Numerics check against the full-f32 PyTorch-equivalent reference
    # (tolerance loosened for bf16 weights/activations/output).
    ref32 = ref_forward_f32(x, raw)
    assert jnp.allclose(out, ref32, rtol=3e-2, atol=3e-2), (
        "mismatch vs f32 reference: max abs err "
        f"{float(jnp.max(jnp.abs(out - ref32)))}"
    )

    print("KERNEL_OK")
</pallas_src>

<mosaic_0001>
module attributes {stable_mosaic.version = 11 : i64} {
  func.func @geo_mlp_kernel(%arg0: i32, %arg1: memref<16x2048xf32, #tpu.memory_space<vmem>>, %arg2: memref<8x1024xf32, #tpu.memory_space<vmem>>, %arg3: memref<2048x1024xbf16, #tpu.memory_space<vmem>>, %arg4: memref<1024x512xbf16, #tpu.memory_space<vmem>>, %arg5: memref<512x256xbf16, #tpu.memory_space<vmem>>, %arg6: memref<256x128xbf16, #tpu.memory_space<vmem>>, %arg7: memref<128x128xbf16, #tpu.memory_space<vmem>>, %arg8: memref<128x128xbf16, #tpu.memory_space<vmem>>, %arg9: memref<128x128xbf16, #tpu.memory_space<vmem>>, %arg10: memref<16x128xbf16, #tpu.memory_space<vmem>>) attributes {dimension_semantics = [#tpu.dimension_semantics<parallel>], iteration_bounds = array<i64: 1>, scalar_prefetch = 0 : i64, scratch_operands = 0 : i64, tpu.core_type = #tpu.core_type<tc>, window_params = [{transform_indices = @transform_0, window_bounds = array<i64: 16, 2048>}, {pipeline_mode = #tpu.pipeline_mode<synchronous>, transform_indices = @transform_1, window_bounds = array<i64: 8, 1024>}, {pipeline_mode = #tpu.pipeline_mode<synchronous>, transform_indices = @transform_2, window_bounds = array<i64: 2048, 1024>}, {pipeline_mode = #tpu.pipeline_mode<synchronous>, transform_indices = @transform_3, window_bounds = array<i64: 1024, 512>}, {pipeline_mode = #tpu.pipeline_mode<synchronous>, transform_indices = @transform_4, window_bounds = array<i64: 512, 256>}, {pipeline_mode = #tpu.pipeline_mode<synchronous>, transform_indices = @transform_5, window_bounds = array<i64: 256, 128>}, {pipeline_mode = #tpu.pipeline_mode<synchronous>, transform_indices = @transform_6, window_bounds = array<i64: 128, 128>}, {pipeline_mode = #tpu.pipeline_mode<synchronous>, transform_indices = @transform_7, window_bounds = array<i64: 128, 128>}, {pipeline_mode = #tpu.pipeline_mode<synchronous>, transform_indices = @transform_8, window_bounds = array<i64: 128, 128>}, {transform_indices = @transform_9, window_bounds = array<i64: 16, 128>}]} {
    %c0 = arith.constant 0 : index
    %c0_0 = arith.constant 0 : index
    %0 = vector.load %arg1[%c0, %c0_0] : memref<16x2048xf32, #tpu.memory_space<vmem>>, vector<16x2048xf32>
    %1 = arith.truncf %0 : vector<16x2048xf32> to vector<16x2048xbf16>
    %c0_1 = arith.constant 0 : index
    %c0_2 = arith.constant 0 : index
    %2 = vector.load %arg3[%c0_1, %c0_2] : memref<2048x1024xbf16, #tpu.memory_space<vmem>>, vector<2048x1024xbf16>
    %cst = arith.constant dense<0.000000e+00> : vector<16x1024xf32>
    %3 = tpu.matmul %1, %2, %cst {dimension_numbers = #tpu.dot_dimension_numbers<[1], [0], [0], [1], [0, 0, 1, 1], [], []>} : vector<16x2048xbf16>, vector<2048x1024xbf16>, vector<16x1024xf32> -> vector<16x1024xf32>
    %c0_3 = arith.constant 0 : index
    %c0_4 = arith.constant 0 : index
    %4 = vector.load %arg2[%c0_3, %c0_4] : memref<8x1024xf32, #tpu.memory_space<vmem>>, vector<1x1024xf32>
    %5 = vector.broadcast %4 : vector<1x1024xf32> to vector<16x1024xf32>
    %6 = arith.addf %3, %5 : vector<16x1024xf32>
    %cst_5 = arith.constant 5.000000e-01 : f32
    %7 = vector.broadcast %cst_5 : f32 to vector<16x1024xf32>
    %8 = arith.mulf %7, %6 : vector<16x1024xf32>
    %cst_6 = arith.constant 0.707106769 : f32
    %9 = vector.broadcast %cst_6 : f32 to vector<16x1024xf32>
    %10 = arith.mulf %6, %9 : vector<16x1024xf32>
    %11 = math.erf %10 : vector<16x1024xf32>
    %cst_7 = arith.constant 1.000000e+00 : f32
    %12 = vector.broadcast %cst_7 : f32 to vector<16x1024xf32>
    %13 = arith.addf %12, %11 : vector<16x1024xf32>
    %14 = arith.mulf %8, %13 : vector<16x1024xf32>
    %15 = arith.truncf %14 : vector<16x1024xf32> to vector<16x1024xbf16>
    %c0_8 = arith.constant 0 : index
    %c0_9 = arith.constant 0 : index
    %16 = vector.load %arg4[%c0_8, %c0_9] : memref<1024x512xbf16, #tpu.memory_space<vmem>>, vector<1024x512xbf16>
    %cst_10 = arith.constant dense<0.000000e+00> : vector<16x512xf32>
    %17 = tpu.matmul %15, %16, %cst_10 {dimension_numbers = #tpu.dot_dimension_numbers<[1], [0], [0], [1], [0, 0, 1, 1], [], []>} : vector<16x1024xbf16>, vector<1024x512xbf16>, vector<16x512xf32> -> vector<16x512xf32>
    %c1 = arith.constant 1 : index
    %c0_11 = arith.constant 0 : index
    %18 = vector.load %arg2[%c1, %c0_11] : memref<8x1024xf32, #tpu.memory_space<vmem>>, vector<1x512xf32>
    %19 = vector.broadcast %18 : vector<1x512xf32> to vector<16x512xf32>
    %20 = arith.addf %17, %19 : vector<16x512xf32>
    %cst_12 = arith.constant 5.000000e-01 : f32
    %21 = vector.broadcast %cst_12 : f32 to vector<16x512xf32>
    %22 = arith.mulf %21, %20 : vector<16x512xf32>
    %cst_13 = arith.constant 0.707106769 : f32
    %23 = vector.broadcast %cst_13 : f32 to vector<16x512xf32>
    %24 = arith.mulf %20, %23 : vector<16x512xf32>
    %25 = math.erf %24 : vector<16x512xf32>
    %cst_14 = arith.constant 1.000000e+00 : f32
    %26 = vector.broadcast %cst_14 : f32 to vector<16x512xf32>
    %27 = arith.addf %26, %25 : vector<16x512xf32>
    %28 = arith.mulf %22, %27 : vector<16x512xf32>
    %29 = arith.truncf %28 : vector<16x512xf32> to vector<16x512xbf16>
    %c0_15 = arith.constant 0 : index
    %c0_16 = arith.constant 0 : index
    %30 = vector.load %arg5[%c0_15, %c0_16] : memref<512x256xbf16, #tpu.memory_space<vmem>>, vector<512x256xbf16>
    %cst_17 = arith.constant dense<0.000000e+00> : vector<16x256xf32>
    %31 = tpu.matmul %29, %30, %cst_17 {dimension_numbers = #tpu.dot_dimension_numbers<[1], [0], [0], [1], [0, 0, 1, 1], [], []>} : vector<16x512xbf16>, vector<512x256xbf16>, vector<16x256xf32> -> vector<16x256xf32>
    %c2 = arith.constant 2 : index
    %c0_18 = arith.constant 0 : index
    %32 = vector.load %arg2[%c2, %c0_18] : memref<8x1024xf32, #tpu.memory_space<vmem>>, vector<1x256xf32>
    %33 = vector.broadcast %32 : vector<1x256xf32> to vector<16x256xf32>
    %34 = arith.addf %31, %33 : vector<16x256xf32>
    %cst_19 = arith.constant 5.000000e-01 : f32
    %35 = vector.broadcast %cst_19 : f32 to vector<16x256xf32>
    %36 = arith.mulf %35, %34 : vector<16x256xf32>
    %cst_20 = arith.constant 0.707106769 : f32
    %37 = vector.broadcast %cst_20 : f32 to vector<16x256xf32>
    %38 = arith.mulf %34, %37 : vector<16x256xf32>
    %39 = math.erf %38 : vector<16x256xf32>
    %cst_21 = arith.constant 1.000000e+00 : f32
    %40 = vector.broadcast %cst_21 : f32 to vector<16x256xf32>
    %41 = arith.addf %40, %39 : vector<16x256xf32>
    %42 = arith.mulf %36, %41 : vector<16x256xf32>
    %43 = arith.truncf %42 : vector<16x256xf32> to vector<16x256xbf16>
    %c0_22 = arith.constant 0 : index
    %c0_23 = arith.constant 0 : index
    %44 = vector.load %arg6[%c0_22, %c0_23] : memref<256x128xbf16, #tpu.memory_space<vmem>>, vector<256x128xbf16>
    %cst_24 = arith.constant dense<0.000000e+00> : vector<16x128xf32>
    %45 = tpu.matmul %43, %44, %cst_24 {dimension_numbers = #tpu.dot_dimension_numbers<[1], [0], [0], [1], [0, 0, 1, 1], [], []>} : vector<16x256xbf16>, vector<256x128xbf16>, vector<16x128xf32> -> vector<16x128xf32>
    %c3 = arith.constant 3 : index
    %c0_25 = arith.constant 0 : index
    %46 = vector.load %arg2[%c3, %c0_25] : memref<8x1024xf32, #tpu.memory_space<vmem>>, vector<1x128xf32>
    %47 = vector.broadcast %46 : vector<1x128xf32> to vector<16x128xf32>
    %48 = arith.addf %45, %47 : vector<16x128xf32>
    %cst_26 = arith.constant 5.000000e-01 : f32
    %49 = vector.broadcast %cst_26 : f32 to vector<16x128xf32>
    %50 = arith.mulf %49, %48 : vector<16x128xf32>
    %cst_27 = arith.constant 0.707106769 : f32
    %51 = vector.broadcast %cst_27 : f32 to vector<16x128xf32>
    %52 = arith.mulf %48, %51 : vector<16x128xf32>
    %53 = math.erf %52 : vector<16x128xf32>
    %cst_28 = arith.constant 1.000000e+00 : f32
    %54 = vector.broadcast %cst_28 : f32 to vector<16x128xf32>
    %55 = arith.addf %54, %53 : vector<16x128xf32>
    %56 = arith.mulf %50, %55 : vector<16x128xf32>
    %57 = arith.truncf %56 : vector<16x128xf32> to vector<16x128xbf16>
    %c0_29 = arith.constant 0 : index
    %c0_30 = arith.constant 0 : index
    %58 = vector.load %arg7[%c0_29, %c0_30] : memref<128x128xbf16, #tpu.memory_space<vmem>>, vector<128x128xbf16>
    %cst_31 = arith.constant dense<0.000000e+00> : vector<16x128xf32>
    %59 = tpu.matmul %57, %58, %cst_31 {dimension_numbers = #tpu.dot_dimension_numbers<[1], [0], [0], [1], [0, 0, 1, 1], [], []>} : vector<16x128xbf16>, vector<128x128xbf16>, vector<16x128xf32> -> vector<16x128xf32>
    %c4 = arith.constant 4 : index
    %c0_32 = arith.constant 0 : index
    %60 = vector.load %arg2[%c4, %c0_32] : memref<8x1024xf32, #tpu.memory_space<vmem>>, vector<1x128xf32>
    %61 = vector.broadcast %60 : vector<1x128xf32> to vector<16x128xf32>
    %62 = arith.addf %59, %61 : vector<16x128xf32>
    %cst_33 = arith.constant 5.000000e-01 : f32
    %63 = vector.broadcast %cst_33 : f32 to vector<16x128xf32>
    %64 = arith.mulf %63, %62 : vector<16x128xf32>
    %cst_34 = arith.constant 0.707106769 : f32
    %65 = vector.broadcast %cst_34 : f32 to vector<16x128xf32>
    %66 = arith.mulf %62, %65 : vector<16x128xf32>
    %67 = math.erf %66 : vector<16x128xf32>
    %cst_35 = arith.constant 1.000000e+00 : f32
    %68 = vector.broadcast %cst_35 : f32 to vector<16x128xf32>
    %69 = arith.addf %68, %67 : vector<16x128xf32>
    %70 = arith.mulf %64, %69 : vector<16x128xf32>
    %71 = arith.truncf %70 : vector<16x128xf32> to vector<16x128xbf16>
    %c0_36 = arith.constant 0 : index
    %c0_37 = arith.constant 0 : index
    %72 = vector.load %arg8[%c0_36, %c0_37] : memref<128x128xbf16, #tpu.memory_space<vmem>>, vector<128x128xbf16>
    %cst_38 = arith.constant dense<0.000000e+00> : vector<16x128xf32>
    %73 = tpu.matmul %71, %72, %cst_38 {dimension_numbers = #tpu.dot_dimension_numbers<[1], [0], [0], [1], [0, 0, 1, 1], [], []>} : vector<16x128xbf16>, vector<128x128xbf16>, vector<16x128xf32> -> vector<16x128xf32>
    %c5 = arith.constant 5 : index
    %c0_39 = arith.constant 0 : index
    %74 = vector.load %arg2[%c5, %c0_39] : memref<8x1024xf32, #tpu.memory_space<vmem>>, vector<1x128xf32>
    %75 = vector.broadcast %74 : vector<1x128xf32> to vector<16x128xf32>
    %76 = arith.addf %73, %75 : vector<16x128xf32>
    %cst_40 = arith.constant 5.000000e-01 : f32
    %77 = vector.broadcast %cst_40 : f32 to vector<16x128xf32>
    %78 = arith.mulf %77, %76 : vector<16x128xf32>
    %cst_41 = arith.constant 0.707106769 : f32
    %79 = vector.broadcast %cst_41 : f32 to vector<16x128xf32>
    %80 = arith.mulf %76, %79 : vector<16x128xf32>
    %81 = math.erf %80 : vector<16x128xf32>
    %cst_42 = arith.constant 1.000000e+00 : f32
    %82 = vector.broadcast %cst_42 : f32 to vector<16x128xf32>
    %83 = arith.addf %82, %81 : vector<16x128xf32>
    %84 = arith.mulf %78, %83 : vector<16x128xf32>
    %85 = arith.truncf %84 : vector<16x128xf32> to vector<16x128xbf16>
    %c0_43 = arith.constant 0 : index
    %c0_44 = arith.constant 0 : index
    %86 = vector.load %arg9[%c0_43, %c0_44] : memref<128x128xbf16, #tpu.memory_space<vmem>>, vector<128x128xbf16>
    %cst_45 = arith.constant dense<0.000000e+00> : vector<16x128xf32>
    %87 = tpu.matmul %85, %86, %cst_45 {dimension_numbers = #tpu.dot_dimension_numbers<[1], [0], [0], [1], [0, 0, 1, 1], [], []>} : vector<16x128xbf16>, vector<128x128xbf16>, vector<16x128xf32> -> vector<16x128xf32>
    %c6 = arith.constant 6 : index
    %c0_46 = arith.constant 0 : index
    %88 = vector.load %arg2[%c6, %c0_46] : memref<8x1024xf32, #tpu.memory_space<vmem>>, vector<1x128xf32>
    %89 = vector.broadcast %88 : vector<1x128xf32> to vector<16x128xf32>
    %90 = arith.addf %87, %89 : vector<16x128xf32>
    %91 = arith.truncf %90 : vector<16x128xf32> to vector<16x128xbf16>
    %c0_47 = arith.constant 0 : index
    %c0_48 = arith.constant 0 : index
    %92 = vector.load %arg10[%c0_47, %c0_48] : memref<16x128xbf16, #tpu.memory_space<vmem>>, vector<16x128xbf16>
    tpu.vector_store %arg10[%c0_47, %c0_48], %91 {strides = array<i32>} : memref<16x128xbf16, #tpu.memory_space<vmem>>, vector<16x128xbf16>,
    return
  }
  func.func @transform_0(%arg0: i32) -> (i32, i32) {
    %c0_i32 = arith.constant 0 : i32
    %c0_i32_0 = arith.constant 0 : i32
    return %arg0, %c0_i32 : i32, i32
  }
  func.func @transform_1(%arg0: i32) -> (i32, i32) {
    %c0_i32 = arith.constant 0 : i32
    %c0_i32_0 = arith.constant 0 : i32
    %c0_i32_1 = arith.constant 0 : i32
    return %c0_i32, %c0_i32_0 : i32, i32
  }
  func.func @transform_2(%arg0: i32) -> (i32, i32) {
    %c0_i32 = arith.constant 0 : i32
    %c0_i32_0 = arith.constant 0 : i32
    %c0_i32_1 = arith.constant 0 : i32
    return %c0_i32, %c0_i32_0 : i32, i32
  }
  func.func @transform_3(%arg0: i32) -> (i32, i32) {
    %c0_i32 = arith.constant 0 : i32
    %c0_i32_0 = arith.constant 0 : i32
    %c0_i32_1 = arith.constant 0 : i32
    return %c0_i32, %c0_i32_0 : i32, i32
  }
  func.func @transform_4(%arg0: i32) -> (i32, i32) {
    %c0_i32 = arith.constant 0 : i32
    %c0_i32_0 = arith.constant 0 : i32
    %c0_i32_1 = arith.constant 0 : i32
    return %c0_i32, %c0_i32_0 : i32, i32
  }
  func.func @transform_5(%arg0: i32) -> (i32, i32) {
    %c0_i32 = arith.constant 0 : i32
    %c0_i32_0 = arith.constant 0 : i32
    %c0_i32_1 = arith.constant 0 : i32
    return %c0_i32, %c0_i32_0 : i32, i32
  }
  func.func @transform_6(%arg0: i32) -> (i32, i32) {
    %c0_i32 = arith.constant 0 : i32
    %c0_i32_0 = arith.constant 0 : i32
    %c0_i32_1 = arith.constant 0 : i32
    return %c0_i32, %c0_i32_0 : i32, i32
  }
  func.func @transform_7(%arg0: i32) -> (i32, i32) {
    %c0_i32 = arith.constant 0 : i32
    %c0_i32_0 = arith.constant 0 : i32
    %c0_i32_1 = arith.constant 0 : i32
    return %c0_i32, %c0_i32_0 : i32, i32
  }
  func.func @transform_8(%arg0: i32) -> (i32, i32) {
    %c0_i32 = arith.constant 0 : i32
    %c0_i32_0 = arith.constant 0 : i32
    %c0_i32_1 = arith.constant 0 : i32
    return %c0_i32, %c0_i32_0 : i32, i32
  }
  func.func @transform_9(%arg0: i32) -> (i32, i32) {
    %c0_i32 = arith.constant 0 : i32
    %c0_i32_0 = arith.constant 0 : i32
    return %arg0, %c0_i32 : i32, i32
  }
}

</mosaic_0001>

<bundles_post_ra>
// kernel: tpu_custom_call.1
= control target key start
LH: loop header
LB: loop body
LE: loop exit
PB: predicated region body
PF: predicated region fallthrough
CT: control target
= control target key end

     0   :  { %14 = vsyncpa [#allocation3], 0  ;;  %s13834_s0 = inlined_call_operand.hbm [shape: f32[16,2048], index: 0, kind: input, shape index: {}]   ;;  %s13835_s1 = inlined_call_operand.hbm [shape: f32[8,1024], index: 1, kind: input, shape index: {}]   ;;  %s13836_s2 = inlined_call_operand.hbm [shape: bf16[2048,1024], index: 2, kind: input, shape index: {}]   ;;  %s13837_s3 = inlined_call_operand.hbm [shape: bf16[1024,512], index: 3, kind: input, shape index: {}]   ;;  %s13838_s4 = inlined_call_operand.hbm [shape: bf16[512,256], index: 4, kind: input, shape index: {}]   ;;  %s13839_s5 = inlined_call_operand.hbm [shape: bf16[256,128], index: 5, kind: input, shape index: {}]   ;;  %s13840_s6 = inlined_call_operand.hbm [shape: bf16[128,128], index: 6, kind: input, shape index: {}]   ;;  %s13841_s7 = inlined_call_operand.hbm [shape: bf16[128,128], index: 7, kind: input, shape index: {}]   ;;  %s13842_s8 = inlined_call_operand.hbm [shape: bf16[128,128], index: 8, kind: input, shape index: {}]   ;;  %s13843_s9 = inlined_call_operand.hbm [shape: bf16[16,128], index: 9, kind: output, shape index: {}]  }
   0x1   :  { %15 = vsyncpa [#allocation6], 0 }
   0x2   :  { %16 = vsyncpa [#allocation9], 0 }
   0x3   :  { %17 = vsyncpa [#allocation12], 0 }
   0x4   :  { %18 = vsyncpa [#allocation15], 0 }
   0x5   :  { %19 = vsyncpa [#allocation4], 0  ;;  %s13369_s30 = smov [#allocation5]   ;;  %s13370_s11 = smov [#allocation8]  }
   0x6   :  { %s38_s10 = sshll.u32 %s13369_s30, 4  ;;  %s59_s12 = sshll.u32 %s13370_s11, 4  ;;  %s39_s10 = int_to_ptr.vmem [resolvable:$true] %s38_s10  ;;  %s13440_s12 = int_to_ptr.vmem [resolvable:$true] %s59_s12 }
   0x7   :  { %s13137_s15 = scalar_lea.hbm %s13835_s1, 1024 }
   0x8   :  { %p13138_p0 = scmp.ne.s32.totalorder %s13835_s1, %s13137_s15  ;;  %p13141_p1 = scmp.lt.u32.totalorder %s13137_s15, %s13835_s1 }
   0xa   :  { %p13143_p2 = pnand %p13141_p1, %p13138_p0 }
   0xc   :  { %13146 = shalt.err (!%p13143_p2)
}
   0xd   :  { %s13147_s20 = scalar_lea.vmem %s39_s10, 1024  ;;  %p13152_p4 = scmp.lt.s32.totalorder %s39_s10, %s39_s10 }
   0xe   :  { %p13148_p3 = scmp.ne.s32.totalorder %s39_s10, %s13147_s20  ;;  %p13153_p5 = scmp.lt.s32.totalorder %s13147_s20, %s13147_s20 }
  0x10   :  { %p13154_p6 = por %p13153_p5, %p13152_p4 }
  0x12   :  { %p13155_p7 = pnand %p13154_p6, %p13148_p3 }
  0x14   :  { %13158 = shalt.err (!%p13155_p7)
}
  0x15   :  { %41 = dma.hbm_to_vmem [thread:$0]  %s13835_s1, 1024, %s39_s10, [#allocation6]  }
  0x16   :  { %s13159_s25 = scalar_lea.hbm %s13837_s3, 32768 }
  0x17   :  { %p13160_p8 = scmp.ne.s32.totalorder %s13837_s3, %s13159_s25  ;;  %p13163_p9 = scmp.lt.u32.totalorder %s13159_s25, %s13837_s3 }
  0x19   :  { %p13165_p10 = pnand %p13163_p9, %p13160_p8 }
  0x1b   :  { %13168 = shalt.err (!%p13165_p10)
}
  0x1c   :  { %s13169_s30 = scalar_lea.vmem %s13440_s12, 32768  ;;  %p13174_p12 = scmp.lt.s32.totalorder %s13440_s12, %s13440_s12 }
  0x1d   :  { %p13170_p11 = scmp.ne.s32.totalorder %s13440_s12, %s13169_s30  ;;  %p13175_p13 = scmp.lt.s32.totalorder %s13169_s30, %s13169_s30 }
  0x1f   :  { %p13176_p0 = por %p13175_p13, %p13174_p12 }
  0x21   :  { %p13177_p1 = pnand %p13176_p0, %p13170_p11 }
  0x23   :  { %13180 = shalt.err (!%p13177_p1)
}
  0x24   :  { %s13371_s1 = smov 256   ;;  %s13372_s10 = smov 16  }
  0x25   :  { %65 = dma.hbm_to_vmem [thread:$0]  %s13837_s3, 32768, %s13440_s12, [#allocation9], %s13371_s1, %s13371_s1, %s13372_s10  }
  0x26   :  { %s13373_s14 = smov [#allocation11]   ;;  %s13181_s18 = scalar_lea.hbm %s13839_s5, 2048 }
  0x27   :  { %s83_s15 = sshll.u32 %s13373_s14, 4  ;;  %p13182_p2 = scmp.ne.s32.totalorder %s13839_s5, %s13181_s18  ;;  %s84_s15 = int_to_ptr.vmem [resolvable:$true] %s83_s15 }
  0x28   :  { %p13185_p3 = scmp.lt.u32.totalorder %s13181_s18, %s13839_s5 }
  0x2a   :  { %p13187_p4 = pnand %p13185_p3, %p13182_p2 }
  0x2c   :  { %13190 = shalt.err (!%p13187_p4)
}
  0x2d   :  { %s13191_s23 = scalar_lea.vmem %s84_s15, 2048  ;;  %p13196_p6 = scmp.lt.s32.totalorder %s84_s15, %s84_s15 }
  0x2e   :  { %p13192_p5 = scmp.ne.s32.totalorder %s84_s15, %s13191_s23  ;;  %p13197_p7 = scmp.lt.s32.totalorder %s13191_s23, %s13191_s23 }
  0x30   :  { %p13198_p8 = por %p13197_p7, %p13196_p6 }
  0x32   :  { %p13199_p9 = pnand %p13198_p8, %p13192_p5 }
  0x34   :  { %13202 = shalt.err (!%p13199_p9)
}
  0x35   :  { %s13374_s3 = smov 64   ;;  %s13375_s12 = smov 4  }
  0x36   :  { %89 = dma.hbm_to_vmem [thread:$0]  %s13839_s5, 2048, %s84_s15, [#allocation12], %s13374_s3, %s13374_s3, %s13375_s12  }
  0x37   :  { %s13376_s26 = smov [#allocation14]   ;;  %s13377_s28 = smov [#allocation2]  }
  0x38   :  { %s107_s27 = sshll.u32 %s13376_s26, 4  ;;  %s25_s29 = sshll.u32 %s13377_s28, 4  ;;  %s108_s27 = int_to_ptr.vmem [resolvable:$true] %s107_s27  ;;  %s26_s29 = int_to_ptr.vmem [resolvable:$true] %s25_s29 }
  0x39   :  { %s13203_s10 = scalar_lea.hbm %s13841_s7, 1024 }
  0x3a   :  { %p13204_p10 = scmp.ne.s32.totalorder %s13841_s7, %s13203_s10  ;;  %p13207_p11 = scmp.lt.u32.totalorder %s13203_s10, %s13841_s7 }
  0x3c   :  { %p13209_p12 = pnand %p13207_p11, %p13204_p10 }
  0x3e   :  { %13212 = shalt.err (!%p13209_p12)
}
  0x3f   :  { %s13213_s5 = scalar_lea.vmem %s108_s27, 1024  ;;  %p13218_p0 = scmp.lt.s32.totalorder %s108_s27, %s108_s27 }
  0x40   :  { %p13214_p13 = scmp.ne.s32.totalorder %s108_s27, %s13213_s5  ;;  %p13219_p1 = scmp.lt.s32.totalorder %s13213_s5, %s13213_s5 }
  0x42   :  { %p13220_p2 = por %p13219_p1, %p13218_p0 }
  0x44   :  { %p13221_p3 = pnand %p13220_p2, %p13214_p13 }
  0x46   :  { %13224 = shalt.err (!%p13221_p3)
}
  0x47   :  { %113 = dma.hbm_to_vmem [thread:$0]  %s13841_s7, 1024, %s108_s27, [#allocation15], %s13374_s3, %s13374_s3, %s13375_s12  }
  0x48   :  { %s13225_s20 = scalar_lea.hbm %s13834_s0, 4096 }
  0x49   :  { %p13226_p4 = scmp.ne.s32.totalorder %s13834_s0, %s13225_s20  ;;  %p13229_p5 = scmp.lt.u32.totalorder %s13225_s20, %s13834_s0 }
  0x4b   :  { %p13231_p6 = pnand %p13229_p5, %p13226_p4 }
  0x4d   :  { %13234 = shalt.err (!%p13231_p6)
}
  0x4e   :  { %s13235_s25 = scalar_lea.vmem %s26_s29, 4096  ;;  %p13240_p8 = scmp.lt.s32.totalorder %s26_s29, %s26_s29 }
  0x4f   :  { %p13236_p7 = scmp.ne.s32.totalorder %s26_s29, %s13235_s25  ;;  %p13241_p9 = scmp.lt.s32.totalorder %s13235_s25, %s13235_s25 }
  0x51   :  { %p13242_p10 = por %p13241_p9, %p13240_p8 }
  0x53   :  { %p13243_p11 = pnand %p13242_p10, %p13236_p7 }
  0x55   :  { %13246 = shalt.err (!%p13243_p11)
}
  0x56   :  { %s13378_s7 = smov 2048   ;;  %s13379_s26 = smov 128  }
  0x57   :  { %31 = dma.hbm_to_vmem [thread:$0]  %s13834_s0, 4096, %s26_s29, [#allocation3], %s13378_s7, %s13378_s7, %s13379_s26  }
  0x58   :  { %s13380_s30 = smov [#allocation7]   ;;  %s13247_s13 = scalar_lea.hbm %s13836_s2, 131072 }
  0x59   :  { %s47_s1 = sshll.u32 %s13380_s30, 4  ;;  %p13248_p12 = scmp.ne.s32.totalorder %s13836_s2, %s13247_s13  ;;  %s48_s1 = int_to_ptr.vmem [resolvable:$true] %s47_s1 }
  0x5a   :  { %p13251_p13 = scmp.lt.u32.totalorder %s13247_s13, %s13836_s2 }
  0x5c   :  { %p13253_p0 = pnand %p13251_p13, %p13248_p12 }
  0x5e   :  { %13256 = shalt.err (!%p13253_p0)
}
  0x5f   :  { %s13257_s17 = scalar_lea.vmem %s48_s1, 131072  ;;  %p13262_p2 = scmp.lt.s32.totalorder %s48_s1, %s48_s1 }
  0x60   :  { %p13258_p1 = scmp.ne.s32.totalorder %s48_s1, %s13257_s17  ;;  %p13263_p3 = scmp.lt.s32.totalorder %s13257_s17, %s13257_s17 }
  0x62   :  { %p13264_p4 = por %p13263_p3, %p13262_p2 }
  0x64   :  { %p13265_p5 = pnand %p13264_p4, %p13258_p1 }
  0x66   :  { %13268 = shalt.err (!%p13265_p5)
}
  0x67   :  { %s13381_s0 = smov 512   ;;  %s13382_s29 = smov 32  }
  0x68   :  { %53 = dma.hbm_to_vmem [thread:$0]  %s13836_s2, 131072, %s48_s1, [#allocation6], %s13381_s0, %s13381_s0, %s13382_s29  }
  0x69   :  { %s13383_s20 = smov [#allocation10]   ;;  %s13384_s22 = smov [#allocation13]  }
  0x6a   :  { %s71_s21 = sshll.u32 %s13383_s20, 4  ;;  %s95_s23 = sshll.u32 %s13384_s22, 4  ;;  %s72_s21 = int_to_ptr.vmem [resolvable:$true] %s71_s21  ;;  %s96_s23 = int_to_ptr.vmem [resolvable:$true] %s95_s23 }
  0x6b   :  { %s13269_s7 = scalar_lea.hbm %s13838_s4, 8192 }
  0x6c   :  { %p13270_p6 = scmp.ne.s32.totalorder %s13838_s4, %s13269_s7  ;;  %p13273_p7 = scmp.lt.u32.totalorder %s13269_s7, %s13838_s4 }
  0x6e   :  { %p13275_p8 = pnand %p13273_p7, %p13270_p6 }
  0x70   :  { %13278 = shalt.err (!%p13275_p8)
}
  0x71   :  { %s13279_s2 = scalar_lea.vmem %s72_s21, 8192  ;;  %p13284_p10 = scmp.lt.s32.totalorder %s72_s21, %s72_s21 }
  0x72   :  { %p13280_p9 = scmp.ne.s32.totalorder %s72_s21, %s13279_s2  ;;  %p13285_p11 = scmp.lt.s32.totalorder %s13279_s2, %s13279_s2 }
  0x74   :  { %p13286_p12 = por %p13285_p11, %p13284_p10 }
  0x76   :  { %p13287_p13 = pnand %p13286_p12, %p13280_p9 }
  0x78   :  { %13290 = shalt.err (!%p13287_p13)
}
  0x79   :  { %s13385_s1 = smov 8   ;;  %s13291_s5 = scalar_lea.hbm %s13840_s6, 1024 }
  0x7a   :  { %77 = dma.hbm_to_vmem [thread:$0]  %s13838_s4, 8192, %s72_s21, [#allocation9], %s13379_s26, %s13379_s26, %s13385_s1  }
  0x7b   :  { %p13292_p0 = scmp.ne.s32.totalorder %s13840_s6, %s13291_s5  ;;  %p13295_p1 = scmp.lt.u32.totalorder %s13291_s5, %s13840_s6 }
  0x7d   :  { %p13297_p2 = pnand %p13295_p1, %p13292_p0 }
  0x7f   :  { %13300 = shalt.err (!%p13297_p2)
}
  0x80   :  { %s13301_s18 = scalar_lea.vmem %s96_s23, 1024  ;;  %p13306_p4 = scmp.lt.s32.totalorder %s96_s23, %s96_s23 }
  0x81   :  { %p13302_p3 = scmp.ne.s32.totalorder %s96_s23, %s13301_s18  ;;  %p13307_p5 = scmp.lt.s32.totalorder %s13301_s18, %s13301_s18 }
  0x83   :  { %p13308_p6 = por %p13307_p5, %p13306_p4 }
  0x85   :  { %p13309_p7 = pnand %p13308_p6, %p13302_p3 }
  0x87   :  { %13312 = shalt.err (!%p13309_p7)
}
  0x88   :  { %101 = dma.hbm_to_vmem [thread:$0]  %s13840_s6, 1024, %s96_s23, [#allocation12], %s13374_s3, %s13374_s3, %s13375_s12  }
  0x89   :  { %s13386_s19 = smov [#allocation16]   ;;  %s13313_s24 = scalar_lea.hbm %s13842_s8, 1024 }
  0x8a   :  { %s119_s20 = sshll.u32 %s13386_s19, 4  ;;  %p13314_p8 = scmp.ne.s32.totalorder %s13842_s8, %s13313_s24  ;;  %s120_s20 = int_to_ptr.vmem [resolvable:$true] %s119_s20 }
  0x8b   :  { %p13317_p9 = scmp.lt.u32.totalorder %s13313_s24, %s13842_s8 }
  0x8d   :  { %p13319_p10 = pnand %p13317_p9, %p13314_p8 }
  0x8f   :  { %13322 = shalt.err (!%p13319_p10)
}
  0x90   :  { %s13323_s30 = scalar_lea.vmem %s120_s20, 1024  ;;  %p13328_p12 = scmp.lt.s32.totalorder %s120_s20, %s120_s20 }
  0x91   :  { %p13324_p11 = scmp.ne.s32.totalorder %s120_s20, %s13323_s30  ;;  %p13329_p13 = scmp.lt.s32.totalorder %s13323_s30, %s13323_s30 }
  0x93   :  { %p13330_p0 = por %p13329_p13, %p13328_p12 }
  0x95   :  { %p13331_p1 = pnand %p13330_p0, %p13324_p11 }
  0x97   :  { %13334 = shalt.err (!%p13331_p1)
}
  0x98   :  { %125 = dma.hbm_to_vmem [thread:$0]  %s13842_s8, 1024, %s120_s20, [#allocation15], %s13374_s3, %s13374_s3, %s13375_s12  }
  0x99   :  { %13357 = dma.done.wait [#allocation3], 4096  }
  0x9a   :  { %13358 = vsyncadd [#allocation3], 4294963200 }
  0x9b   :  { %13359 = dma.done.wait [#allocation6], 132096  }
  0x9c   :  { %13360 = vsyncadd [#allocation6], 4294835200 }
  0x9d   :  { %13361 = dma.done.wait [#allocation9], 40960  }
  0x9e   :  { %13362 = vsyncadd [#allocation9], 4294926336 }
  0x9f   :  { %13363 = dma.done.wait [#allocation12], 3072  }
  0xa0   :  { %13364 = vsyncadd [#allocation12], 4294964224 }
  0xa1   :  { %13365 = dma.done.wait [#allocation15], 2048  }
  0xa2   :  { %13366 = vsyncadd [#allocation15], 4294965248  ;;  %v202_v0 = vld [vmem:[#allocation7] sm:$0xff]  ;;  %v203_v2 = vld [vmem:[#allocation7 + $0x8] sm:$0xff]  ;;  %vm13388_vm0 = vmmov 0   ;;  %s13389_s8 = smov [#allocation17]  }
  0xa3   :  { %v206_v1 = vld [vmem:[#allocation7 + $0x20] sm:$0xff]  ;;  %v207_v4 = vld [vmem:[#allocation7 + $0x28] sm:$0xff]  ;;  %s10842_s10 = sshll.u32 %s13389_s8, 4  ;;  %s10843_s10 = int_to_ptr.vmem [resolvable:$true] %s10842_s10 }
  0xa4   :  { %v10859_v3 = vcombine.high %v202_v0, %v206_v1  ;;  %v10858_v5 = vcombine.low %v202_v0, %v206_v1  ;;  %v210_v6 = vld [vmem:[#allocation7 + $0x40] sm:$0xff]  ;;  %v10861_v8 = vcombine.high %v203_v2, %v207_v4  ;;  %v10860_v9 = vcombine.low %v203_v2, %v207_v4  ;;  %v211_v11 = vld [vmem:[#allocation7 + $0x48] sm:$0xff]  ;;  %s13335_s2 = scalar_lea.vmem %s10843_s10, 128  ;;  %p13340_p3 = scmp.lt.s32.totalorder %s10843_s10, %s10843_s10 }
  0xa5   :  { %v214_v7 = vld [vmem:[#allocation7 + $0x60] sm:$0xff]  ;;  %v215_v12 = vld [vmem:[#allocation7 + $0x68] sm:$0xff]  ;;  %p13336_p2 = scmp.ne.s32.totalorder %s10843_s10, %s13335_s2  ;;  %p13341_p4 = scmp.lt.s32.totalorder %s13335_s2, %s13335_s2 }
  0xa6   :  { %v10867_v10 = vcombine.high %v210_v6, %v214_v7  ;;  %v218_v13 = vld [vmem:[#allocation7 + $0x80] sm:$0xff]  ;;  %6390 = vmatprep.subr.bf16.mxu0 %v10859_v3  ;;  %v10869_v14 = vcombine.high %v211_v11, %v215_v12  ;;  %v219_v16 = vld [vmem:[#allocation7 + $0x88] sm:$0xff]  ;;  %6734 = vmatprep.subr.bf16.mxu1 %v10861_v8  ;;  %v10866_v18 = vcombine.low %v210_v6, %v214_v7 }
  0xa7   :  { %v222_v15 = vld [vmem:[#allocation7 + $0xa0] sm:$0xff]  ;;  %v223_v17 = vld [vmem:[#allocation7 + $0xa8] sm:$0xff]  ;;  %6391 = vmatpush1.bf16.msra.mxu0 %v10858_v5  ;;  %6735 = vmatpush1.bf16.msra.mxu1 %v10860_v9  ;;  %v10868_v19 = vcombine.low %v211_v11, %v215_v12  ;;  %p13342_p5 = por %p13341_p4, %p13340_p3 }
  0xa8   :  { %6392 = vmatprep.subr.bf16.mxu0 %v10867_v10  ;;  %v10875_v20 = vcombine.high %v218_v13, %v222_v15  ;;  %6736 = vmatprep.subr.bf16.mxu1 %v10869_v14  ;;  %v10877_v21 = vcombine.high %v219_v16, %v223_v17  ;;  %v226_v22 = vld [vmem:[#allocation7 + $0xc0] sm:$0xff]  ;;  %v227_v24 = vld [vmem:[#allocation7 + $0xc8] sm:$0xff]  ;;  %v10874_v26 = vcombine.low %v218_v13, %v222_v15 }
  0xa9   :  { %v230_v23 = vld [vmem:[#allocation7 + $0xe0] sm:$0xff]  ;;  %v231_v25 = vld [vmem:[#allocation7 + $0xe8] sm:$0xff]  ;;  %v10876_v27 = vcombine.low %v219_v16, %v223_v17  ;;  %p13343_p6 = pnand %p13342_p5, %p13336_p2 }
  0xaa   :  { %v10883_v28 = vcombine.high %v226_v22, %v230_v23  ;;  %v10885_v29 = vcombine.high %v227_v24, %v231_v25  ;;  %v234_v30 = vld [vmem:[#allocation7 + $0x100] sm:$0xff]  ;;  %v235_v32 = vld [vmem:[#allocation7 + $0x108] sm:$0xff]  ;;  %v10882_v34 = vcombine.low %v226_v22, %v230_v23  ;;  %v10884_v35 = vcombine.low %v227_v24, %v231_v25 }
  0xab   :  { %6393 = vmatpush1.bf16.msra.mxu0 %v10866_v18  ;;  %6737 = vmatpush1.bf16.msra.mxu1 %v10868_v19  ;;  %v238_v31 = vld [vmem:[#allocation7 + $0x120] sm:$0xff]  ;;  %v239_v33 = vld [vmem:[#allocation7 + $0x128] sm:$0xff] }
  0xac   :  { %6394 = vmatprep.subr.bf16.mxu0 %v10875_v20  ;;  %6738 = vmatprep.subr.bf16.mxu1 %v10877_v21  ;;  %v10891_v36 = vcombine.high %v234_v30, %v238_v31  ;;  %v10893_v37 = vcombine.high %v235_v32, %v239_v33  ;;  %v242_v38 = vld [vmem:[#allocation7 + $0x140] sm:$0xff]  ;;  %v243_v40 = vld [vmem:[#allocation7 + $0x148] sm:$0xff]  ;;  %v10890_v42 = vcombine.low %v234_v30, %v238_v31 }
  0xad   :  { %v246_v39 = vld [vmem:[#allocation7 + $0x160] sm:$0xff]  ;;  %v247_v41 = vld [vmem:[#allocation7 + $0x168] sm:$0xff]  ;;  %v10892_v43 = vcombine.low %v235_v32, %v239_v33 }
  0xae   :  { %v10899_v44 = vcombine.high %v242_v38, %v246_v39  ;;  %v10901_v45 = vcombine.high %v243_v40, %v247_v41  ;;  %v250_v46 = vld [vmem:[#allocation7 + $0x180] sm:$0xff]  ;;  %v251_v48 = vld [vmem:[#allocation7 + $0x188] sm:$0xff]  ;;  %v10898_v50 = vcombine.low %v242_v38, %v246_v39  ;;  %v10900_v51 = vcombine.low %v243_v40, %v247_v41 }
  0xaf   :  { %6395 = vmatpush1.bf16.msra.mxu0 %v10874_v26  ;;  %6739 = vmatpush1.bf16.msra.mxu1 %v10876_v27  ;;  %v254_v47 = vld [vmem:[#allocation7 + $0x1a0] sm:$0xff]  ;;  %v255_v49 = vld [vmem:[#allocation7 + $0x1a8] sm:$0xff] }
  0xb0   :  { %6396 = vmatprep.subr.bf16.mxu0 %v10883_v28  ;;  %6740 = vmatprep.subr.bf16.mxu1 %v10885_v29  ;;  %v10907_v52 = vcombine.high %v250_v46, %v254_v47  ;;  %v155_v53 = vld [vmem:[#allocation2 + $0x8] sm:$0xff]  ;;  %v10909_v55 = vcombine.high %v251_v48, %v255_v49  ;;  %v258_v56 = vld [vmem:[#allocation7 + $0x1c0] sm:$0xff]  ;;  %v10906_v61 = vcombine.low %v250_v46, %v254_v47 }
  0xb1   :  { %v171_v54 = vld [vmem:[#allocation2 + $0x88] sm:$0xff]  ;;  %v262_v57 = vld [vmem:[#allocation7 + $0x1e0] sm:$0xff]  ;;  %v10908_v62 = vcombine.low %v251_v48, %v255_v49 }
  0xb2   :  { %v13570_v58 = vpack.c.bf16 %v171_v54, %v155_v53  ;;  %v259_v59 = vld [vmem:[#allocation7 + $0x1c8] sm:$0xff]  ;;  %v10915_v63 = vcombine.high %v258_v56, %v262_v57  ;;  %v266_v1 = vld [vmem:[#allocation7 + $0x200] sm:$0xff]  ;;  %v10914_v5 = vcombine.low %v258_v56, %v262_v57 }
  0xb3   :  { %6397 = vmatpush1.bf16.msra.mxu0 %v10882_v34  ;;  %6741 = vmatpush1.bf16.msra.mxu1 %v10884_v35  ;;  %v263_v60 = vld [vmem:[#allocation7 + $0x1e8] sm:$0xff]  ;;  %v270_v2 = vld [vmem:[#allocation7 + $0x220] sm:$0xff] }
  0xb4   :  { %6398 = vmatprep.subr.bf16.mxu0 %v10891_v36  ;;  %6742 = vmatprep.subr.bf16.mxu1 %v10893_v37  ;;  %v10917_v0 = vcombine.high %v259_v59, %v263_v60  ;;  %v267_v3 = vld [vmem:[#allocation7 + $0x208] sm:$0xff]  ;;  %v10916_v6 = vcombine.low %v259_v59, %v263_v60  ;;  %v10923_v7 = vcombine.high %v266_v1, %v270_v2  ;;  %v274_v9 = vld [vmem:[#allocation7 + $0x240] sm:$0xff] }
  0xb5   :  { %6422 = vmatprep.mubr.bf16.mxu0 %v13570_v58  ;;  %6766 = vmatprep.mubr.bf16.mxu1 %v13570_v58  ;;  %v271_v4 = vld [vmem:[#allocation7 + $0x228] sm:$0xff]  ;;  %v278_v10 = vld [vmem:[#allocation7 + $0x260] sm:$0xff]  ;;  %v10922_v13 = vcombine.low %v266_v1, %v270_v2 }
  0xb6   :  { %v10925_v8 = vcombine.high %v267_v3, %v271_v4  ;;  %v275_v11 = vld [vmem:[#allocation7 + $0x248] sm:$0xff]  ;;  %v10924_v14 = vcombine.low %v267_v3, %v271_v4  ;;  %v10931_v15 = vcombine.high %v274_v9, %v278_v10  ;;  %v282_v17 = vld [vmem:[#allocation7 + $0x280] sm:$0xff]  ;;  %v10930_v21 = vcombine.low %v274_v9, %v278_v10 }
  0xb7   :  { %6399 = vmatpush1.bf16.msra.mxu0 %v10890_v42  ;;  %6743 = vmatpush1.bf16.msra.mxu1 %v10892_v43  ;;  %v279_v12 = vld [vmem:[#allocation7 + $0x268] sm:$0xff]  ;;  %v286_v18 = vld [vmem:[#allocation7 + $0x2a0] sm:$0xff] }
  0xb8   :  { %6400 = vmatprep.subr.bf16.mxu0 %v10899_v44  ;;  %6744 = vmatprep.subr.bf16.mxu1 %v10901_v45  ;;  %v10933_v16 = vcombine.high %v275_v11, %v279_v12  ;;  %v283_v19 = vld [vmem:[#allocation7 + $0x288] sm:$0xff]  ;;  %v10932_v22 = vcombine.low %v275_v11, %v279_v12  ;;  %v10939_v23 = vcombine.high %v282_v17, %v286_v18  ;;  %v290_v25 = vld [vmem:[#allocation7 + $0x2c0] sm:$0xff] }
  0xb9   :  { %v287_v20 = vld [vmem:[#allocation7 + $0x2a8] sm:$0xff]  ;;  %v294_v26 = vld [vmem:[#allocation7 + $0x2e0] sm:$0xff]  ;;  %v10938_v29 = vcombine.low %v282_v17, %v286_v18  ;;  %v157_v17 = vld [vmem:[#allocation2 + $0x18] sm:$0xff] }
  0xba   :  { %v10941_v24 = vcombine.high %v283_v19, %v287_v20  ;;  %v291_v27 = vld [vmem:[#allocation7 + $0x2c8] sm:$0xff]  ;;  %v10940_v30 = vcombine.low %v283_v19, %v287_v20  ;;  %v10947_v31 = vcombine.high %v290_v25, %v294_v26  ;;  %v298_v33 = vld [vmem:[#allocation7 + $0x300] sm:$0xff]  ;;  %v10946_v37 = vcombine.low %v290_v25, %v294_v26  ;;  %v173_v18 = vld [vmem:[#allocation2 + $0x98] sm:$0xff] }
  0xbb   :  { %6401 = vmatpush1.bf16.msra.mxu0 %v10898_v50  ;;  %6745 = vmatpush1.bf16.msra.mxu1 %v10900_v51  ;;  %v295_v28 = vld [vmem:[#allocation7 + $0x2e8] sm:$0xff]  ;;  %v302_v34 = vld [vmem:[#allocation7 + $0x320] sm:$0xff]  ;;  %v13576_v25 = vpack.c.bf16 %v173_v18, %v157_v17 }
  0xbc   :  { %6402 = vmatprep.subr.bf16.mxu0 %v10907_v52  ;;  %6746 = vmatprep.subr.bf16.mxu1 %v10909_v55  ;;  %v10949_v32 = vcombine.high %v291_v27, %v295_v28  ;;  %v299_v35 = vld [vmem:[#allocation7 + $0x308] sm:$0xff]  ;;  %v10948_v38 = vcombine.low %v291_v27, %v295_v28  ;;  %v10955_v39 = vcombine.high %v298_v33, %v302_v34  ;;  %v306_v41 = vld [vmem:[#allocation7 + $0x340] sm:$0xff] }
  0xbd   :  { %v303_v36 = vld [vmem:[#allocation7 + $0x328] sm:$0xff]  ;;  %v310_v42 = vld [vmem:[#allocation7 + $0x360] sm:$0xff]  ;;  %v10954_v45 = vcombine.low %v298_v33, %v302_v34 }
  0xbe   :  { %v10957_v40 = vcombine.high %v299_v35, %v303_v36  ;;  %v307_v43 = vld [vmem:[#allocation7 + $0x348] sm:$0xff]  ;;  %v10956_v46 = vcombine.low %v299_v35, %v303_v36  ;;  %v10963_v47 = vcombine.high %v306_v41, %v310_v42  ;;  %v314_v49 = vld [vmem:[#allocation7 + $0x380] sm:$0xff]  ;;  %v10962_v53 = vcombine.low %v306_v41, %v310_v42 }
  0xbf   :  { %6403 = vmatpush1.bf16.msra.mxu0 %v10906_v61  ;;  %6747 = vmatpush1.bf16.msra.mxu1 %v10908_v62  ;;  %v311_v44 = vld [vmem:[#allocation7 + $0x368] sm:$0xff]  ;;  %v318_v50 = vld [vmem:[#allocation7 + $0x3a0] sm:$0xff] }
  0xc0   :  { %6404 = vmatprep.subr.bf16.mxu0 %v10915_v63  ;;  %6748 = vmatprep.subr.bf16.mxu1 %v10917_v0  ;;  %v10965_v48 = vcombine.high %v307_v43, %v311_v44  ;;  %v315_v51 = vld [vmem:[#allocation7 + $0x388] sm:$0xff]  ;;  %v10964_v54 = vcombine.low %v307_v43, %v311_v44  ;;  %v10971_v55 = vcombine.high %v314_v49, %v318_v50  ;;  %v322_v57 = vld [vmem:[#allocation7 + $0x3c0] sm:$0xff] }
  0xc1   :  { %v319_v52 = vld [vmem:[#allocation7 + $0x3a8] sm:$0xff]  ;;  %v326_v59 = vld [vmem:[#allocation7 + $0x3e0] sm:$0xff]  ;;  %v10970_v62 = vcombine.low %v314_v49, %v318_v50 }
  0xc2   :  { %v10973_v56 = vcombine.high %v315_v51, %v319_v52  ;;  %v323_v60 = vld [vmem:[#allocation7 + $0x3c8] sm:$0xff]  ;;  %v10972_v63 = vcombine.low %v315_v51, %v319_v52  ;;  %v10979_v0 = vcombine.high %v322_v57, %v326_v59  ;;  %v330_v2 = vld [vmem:[#allocation7 + $0x400] sm:$0xff] }
  0xc3   :  { %6405 = vmatpush1.bf16.msra.mxu0 %v10914_v5  ;;  %6749 = vmatpush1.bf16.msra.mxu1 %v10916_v6  ;;  %v327_v61 = vld [vmem:[#allocation7 + $0x3e8] sm:$0xff]  ;;  %v334_v3 = vld [vmem:[#allocation7 + $0x420] sm:$0xff]  ;;  %v10978_v6 = vcombine.low %v322_v57, %v326_v59 }
  0xc4   :  { %6406 = vmatprep.subr.bf16.mxu0 %v10923_v7  ;;  %6750 = vmatprep.subr.bf16.mxu1 %v10925_v8  ;;  %v10981_v1 = vcombine.high %v323_v60, %v327_v61  ;;  %v331_v4 = vld [vmem:[#allocation7 + $0x408] sm:$0xff]  ;;  %v154_v7 = vld [vmem:[#allocation2] sm:$0xff]  ;;  %v10980_v9 = vcombine.low %v323_v60, %v327_v61  ;;  %v10987_v10 = vcombine.high %v330_v2, %v334_v3 }
  0xc5   :  { %v335_v5 = vld [vmem:[#allocation7 + $0x428] sm:$0xff]  ;;  %v170_v8 = vld [vmem:[#allocation2 + $0x80] sm:$0xff]  ;;  %v10986_v19 = vcombine.low %v330_v2, %v334_v3 }
  0xc6   :  { %v10989_v11 = vcombine.high %v331_v4, %v335_v5  ;;  %v338_v12 = vld [vmem:[#allocation7 + $0x440] sm:$0xff]  ;;  %v10988_v20 = vcombine.low %v331_v4, %v335_v5  ;;  %v347_v26 = vld [vmem:[#allocation7 + $0x488] sm:$0xff] }
  0xc7   :  { %6407 = vmatpush1.bf16.msra.mxu0 %v10922_v13  ;;  %6751 = vmatpush1.bf16.msra.mxu1 %v10924_v14  ;;  %v342_v13 = vld [vmem:[#allocation7 + $0x460] sm:$0xff]  ;;  %v339_v14 = vld [vmem:[#allocation7 + $0x448] sm:$0xff] }
  0xc8   :  { %6408 = vmatprep.subr.bf16.mxu0 %v10931_v15  ;;  %6752 = vmatprep.subr.bf16.mxu1 %v10933_v16  ;;  %v13574_v15 = vpack.c.bf16 %v170_v8, %v154_v7  ;;  %v343_v16 = vld [vmem:[#allocation7 + $0x468] sm:$0xff]  ;;  %v10994_v28 = vcombine.low %v338_v12, %v342_v13  ;;  %v394_v8 = vld [vmem:[#allocation7 + $0x600] sm:$0xff] }
  0xc9   :  { %v351_v27 = vld [vmem:[#allocation7 + $0x4a8] sm:$0xff]  ;;  %v402_v17 = vld [vmem:[#allocation7 + $0x640] sm:$0xff] }
  0xca   :  { %v11005_v33 = vcombine.high %v347_v26, %v351_v27  ;;  %v355_v34 = vld [vmem:[#allocation7 + $0x4c8] sm:$0xff]  ;;  %v406_v18 = vld [vmem:[#allocation7 + $0x660] sm:$0xff] }
  0xcb   :  { %6409 = vmatpush1.bf16.msra.mxu0 %v10930_v21  ;;  %6753 = vmatpush1.bf16.msra.mxu1 %v10932_v22  ;;  %v10995_v21 = vcombine.high %v338_v12, %v342_v13  ;;  %v10997_v22 = vcombine.high %v339_v14, %v343_v16  ;;  %v359_v35 = vld [vmem:[#allocation7 + $0x4e8] sm:$0xff] }
  0xcc   :  { %6410 = vmatprep.subr.bf16.mxu0 %v10939_v23  ;;  %6754 = vmatprep.subr.bf16.mxu1 %v10941_v24  ;;  %v346_v23 = vld [vmem:[#allocation7 + $0x480] sm:$0xff]  ;;  %v363_v41 = vld [vmem:[#allocation7 + $0x508] sm:$0xff]  ;;  %v11013_v42 = vcombine.high %v355_v34, %v359_v35 }
  0xcd   :  { %v350_v24 = vld [vmem:[#allocation7 + $0x4a0] sm:$0xff]  ;;  %v367_v43 = vld [vmem:[#allocation7 + $0x528] sm:$0xff] }
  0xce   :  { %v11002_v36 = vcombine.low %v346_v23, %v350_v24  ;;  %v371_v49 = vld [vmem:[#allocation7 + $0x548] sm:$0xff]  ;;  %v11021_v50 = vcombine.high %v363_v41, %v367_v43 }
  0xcf   :  { %6411 = vmatpush1.bf16.msra.mxu0 %v10938_v29  ;;  %6755 = vmatpush1.bf16.msra.mxu1 %v10940_v30  ;;  %v10996_v29 = vcombine.low %v339_v14, %v343_v16  ;;  %v11003_v30 = vcombine.high %v346_v23, %v350_v24  ;;  %v375_v51 = vld [vmem:[#allocation7 + $0x568] sm:$0xff]  ;;  %v11059_v24 = vcombine.high %v402_v17, %v406_v18 }
  0xd0   :  { %6412 = vmatprep.subr.bf16.mxu0 %v10947_v31  ;;  %6756 = vmatprep.subr.bf16.mxu1 %v10949_v32  ;;  %v354_v31 = vld [vmem:[#allocation7 + $0x4c0] sm:$0xff]  ;;  %v379_v57 = vld [vmem:[#allocation7 + $0x588] sm:$0xff]  ;;  %v11029_v59 = vcombine.high %v371_v49, %v375_v51 }
  0xd1   :  { %v358_v32 = vld [vmem:[#allocation7 + $0x4e0] sm:$0xff]  ;;  %v383_v60 = vld [vmem:[#allocation7 + $0x5a8] sm:$0xff] }
  0xd2   :  { %v11010_v44 = vcombine.low %v354_v31, %v358_v32  ;;  %v387_v2 = vld [vmem:[#allocation7 + $0x5c8] sm:$0xff]  ;;  %v11037_v3 = vcombine.high %v379_v57, %v383_v60 }
  0xd3   :  { %6413 = vmatpush1.bf16.msra.mxu0 %v10946_v37  ;;  %6757 = vmatpush1.bf16.msra.mxu1 %v10948_v38  ;;  %v11004_v37 = vcombine.low %v347_v26, %v351_v27  ;;  %v11011_v38 = vcombine.high %v354_v31, %v358_v32  ;;  %v391_v4 = vld [vmem:[#allocation7 + $0x5e8] sm:$0xff]  ;;  %v410_v26 = vld [vmem:[#allocation7 + $0x680] sm:$0xff]  ;;  %v11058_v31 = vcombine.low %v402_v17, %v406_v18  ;;  %v156_v17 = vld [vmem:[#allocation2 + $0x10] sm:$0xff] }
  0xd4   :  { %6414 = vmatprep.subr.bf16.mxu0 %v10955_v39  ;;  %6758 = vmatprep.subr.bf16.mxu1 %v10957_v40  ;;  %v362_v39 = vld [vmem:[#allocation7 + $0x500] sm:$0xff]  ;;  %v399_v12 = vld [vmem:[#allocation7 + $0x628] sm:$0xff]  ;;  %v11044_v14 = vcombine.low %v387_v2, %v391_v4  ;;  %v172_v18 = vld [vmem:[#allocation2 + $0x90] sm:$0xff] }
  0xd5   :  { %v366_v40 = vld [vmem:[#allocation7 + $0x520] sm:$0xff] }
  0xd6   :  { %v11018_v52 = vcombine.low %v362_v39, %v366_v40  ;;  %v414_v27 = vld [vmem:[#allocation7 + $0x6a0] sm:$0xff] }
  0xd7   :  { %6415 = vmatpush1.bf16.msra.mxu0 %v10954_v45  ;;  %6759 = vmatpush1.bf16.msra.mxu1 %v10956_v46  ;;  %v11012_v45 = vcombine.low %v355_v34, %v359_v35  ;;  %v11019_v46 = vcombine.high %v362_v39, %v366_v40  ;;  %v418_v34 = vld [vmem:[#allocation7 + $0x6c0] sm:$0xff]  ;;  %v11066_v39 = vcombine.low %v410_v26, %v414_v27 }
  0xd8   :  { %6416 = vmatprep.subr.bf16.mxu0 %v10963_v47  ;;  %6760 = vmatprep.subr.bf16.mxu1 %v10965_v48  ;;  %v370_v47 = vld [vmem:[#allocation7 + $0x540] sm:$0xff] }
  0xd9   :  { %v374_v48 = vld [vmem:[#allocation7 + $0x560] sm:$0xff] }
  0xda   :  { %v11026_v61 = vcombine.low %v370_v47, %v374_v48  ;;  %v422_v35 = vld [vmem:[#allocation7 + $0x6e0] sm:$0xff] }
  0xdb   :  { %6417 = vmatpush1.bf16.msra.mxu0 %v10962_v53  ;;  %6761 = vmatpush1.bf16.msra.mxu1 %v10964_v54  ;;  %v11020_v53 = vcombine.low %v363_v41, %v367_v43  ;;  %v11027_v54 = vcombine.high %v370_v47, %v374_v48  ;;  %v11075_v41 = vcombine.high %v418_v34, %v422_v35  ;;  %v430_v43 = vld [vmem:[#allocation7 + $0x720] sm:$0xff] }
  0xdc   :  { %6418 = vmatprep.subr.bf16.mxu0 %v10971_v55  ;;  %6762 = vmatprep.subr.bf16.mxu1 %v10973_v56  ;;  %v378_v55 = vld [vmem:[#allocation7 + $0x580] sm:$0xff]  ;;  %v11074_v47 = vcombine.low %v418_v34, %v422_v35 }
  0xdd   :  { %v382_v56 = vld [vmem:[#allocation7 + $0x5a0] sm:$0xff] }
  0xde   :  { %v11034_v5 = vcombine.low %v378_v55, %v382_v56  ;;  %v474_v35 = vld [vmem:[#allocation7 + $0x880] sm:$0xff] }
  0xdf   :  { %6419 = vmatpush1.bf16.msra.mxu0 %v10970_v62  ;;  %6763 = vmatpush1.bf16.msra.mxu1 %v10972_v63  ;;  %v11028_v62 = vcombine.low %v371_v49, %v375_v51  ;;  %v11035_v63 = vcombine.high %v378_v55, %v382_v56  ;;  %v438_v51 = vld [vmem:[#allocation7 + $0x760] sm:$0xff] }
  0xe0   :  { %6420 = vmatprep.subr.bf16.mxu0 %v10979_v0  ;;  %6764 = vmatprep.subr.bf16.mxu1 %v10981_v1  ;;  %v386_v0 = vld [vmem:[#allocation7 + $0x5c0] sm:$0xff] }
  0xe1   :  { %v390_v1 = vld [vmem:[#allocation7 + $0x5e0] sm:$0xff] }
  0xe2   :  { %v11043_v7 = vcombine.high %v386_v0, %v390_v1  ;;  %v11042_v13 = vcombine.low %v386_v0, %v390_v1 }
  0xe3   :  { %6421 = vmatpush1.bf16.msra.mxu0 %v10978_v6  ;;  %6765 = vmatpush1.bf16.msra.mxu1 %v10980_v9  ;;  %v11036_v6 = vcombine.low %v379_v57, %v383_v60  ;;  %v398_v9 = vld [vmem:[#allocation7 + $0x620] sm:$0xff] }
  0xe4   :  { %6433 = vmatprep.subr.bf16.mxu0 %v10987_v10  ;;  %6777 = vmatprep.subr.bf16.mxu1 %v10989_v11  ;;  %v395_v10 = vld [vmem:[#allocation7 + $0x608] sm:$0xff]  ;;  %v11045_v11 = vcombine.high %v387_v2, %v391_v4  ;;  %v11051_v16 = vcombine.high %v394_v8, %v398_v9  ;;  %v446_v60 = vld [vmem:[#allocation7 + $0x7a0] sm:$0xff] }
  0xe5   :  { %v11052_v23 = vcombine.low %v395_v10, %v399_v12  ;;  %v454_v4 = vld [vmem:[#allocation7 + $0x7e0] sm:$0xff] }
  0xe6   :  { %6423 = vmatmul.mubr.bf16.vlgmr.msra.gmra.mrb[0].mxu0 %v13574_v15  ;;  %6767 = vmatmul.mubr.bf16.vlgmr.msra.gmra.mrb[0].mxu1 %v13574_v15 }
  0xe7   :  { %6434 = vmatpush1.bf16.msra.mxu0 %v10986_v19  ;;  %6778 = vmatpush1.bf16.msra.mxu1 %v10988_v20  ;;  %v403_v19 = vld [vmem:[#allocation7 + $0x648] sm:$0xff]  ;;  %v11053_v20 = vcombine.high %v395_v10, %v399_v12  ;;  %v462_v12 = vld [vmem:[#allocation7 + $0x820] sm:$0xff] }
  0xe8   :  { %6435 = vmatprep.subr.bf16.mxu0 %v10995_v21  ;;  %6779 = vmatprep.subr.bf16.mxu1 %v10997_v22  ;;  %v407_v21 = vld [vmem:[#allocation7 + $0x668] sm:$0xff]  ;;  %v11050_v22 = vcombine.low %v394_v8, %v398_v9  ;;  %v458_v9 = vld [vmem:[#allocation7 + $0x800] sm:$0xff] }
  0xe9   :  { %6465 = vmatprep.mubr.bf16.mxu0 %v13576_v25  ;;  %6809 = vmatprep.mubr.bf16.mxu1 %v13576_v25  ;;  %v11060_v32 = vcombine.low %v403_v19, %v407_v21 }
  0xeb   :  { %6436 = vmatpush1.bf16.msra.mxu0 %v10994_v28  ;;  %6780 = vmatpush1.bf16.msra.mxu1 %v10996_v29  ;;  %v411_v28 = vld [vmem:[#allocation7 + $0x688] sm:$0xff]  ;;  %v11061_v29 = vcombine.high %v403_v19, %v407_v21  ;;  %v470_v21 = vld [vmem:[#allocation7 + $0x860] sm:$0xff] }
  0xec   :  { %6437 = vmatprep.subr.bf16.mxu0 %v11003_v30  ;;  %6781 = vmatprep.subr.bf16.mxu1 %v11005_v33  ;;  %v415_v30 = vld [vmem:[#allocation7 + $0x6a8] sm:$0xff]  ;;  %v11067_v33 = vcombine.high %v410_v26, %v414_v27 }
  0xed   :  { %v11068_v40 = vcombine.low %v411_v28, %v415_v30  ;;  %v471_v26 = vld [vmem:[#allocation7 + $0x868] sm:$0xff] }
  0xee   :  { %v159_v27 = vld [vmem:[#allocation2 + $0x28] sm:$0xff] }
  0xef   :  { %6438 = vmatpush1.bf16.msra.mxu0 %v11002_v36  ;;  %6782 = vmatpush1.bf16.msra.mxu1 %v11004_v37  ;;  %v419_v36 = vld [vmem:[#allocation7 + $0x6c8] sm:$0xff]  ;;  %v11069_v37 = vcombine.high %v411_v28, %v415_v30  ;;  %v13582_v30 = vpack.c.bf16 %v172_v18, %v156_v17 }
  0xf0   :  { %6439 = vmatprep.subr.bf16.mxu0 %v11011_v38  ;;  %6783 = vmatprep.subr.bf16.mxu1 %v11013_v42  ;;  %v423_v38 = vld [vmem:[#allocation7 + $0x6e8] sm:$0xff]  ;;  %v426_v42 = vld [vmem:[#allocation7 + $0x700] sm:$0xff] }
  0xf1   :  { %v11076_v48 = vcombine.low %v419_v36, %v423_v38  ;;  %v11083_v49 = vcombine.high %v426_v42, %v430_v43  ;;  %v11082_v55 = vcombine.low %v426_v42, %v430_v43  ;;  %v482_v43 = vld [vmem:[#allocation7 + $0x8c0] sm:$0xff]  ;;  %v519_v17 = vld [vmem:[#allocation7 + $0x9e8] sm:$0xff] }
  0xf3   :  { %6440 = vmatpush1.bf16.msra.mxu0 %v11010_v44  ;;  %6784 = vmatpush1.bf16.msra.mxu1 %v11012_v45  ;;  %v427_v44 = vld [vmem:[#allocation7 + $0x708] sm:$0xff]  ;;  %v11077_v45 = vcombine.high %v419_v36, %v423_v38  ;;  %v478_v36 = vld [vmem:[#allocation7 + $0x8a0] sm:$0xff] }
  0xf4   :  { %6441 = vmatprep.subr.bf16.mxu0 %v11019_v46  ;;  %6785 = vmatprep.subr.bf16.mxu1 %v11021_v50  ;;  %v431_v46 = vld [vmem:[#allocation7 + $0x728] sm:$0xff]  ;;  %v434_v50 = vld [vmem:[#allocation7 + $0x740] sm:$0xff]  ;;  %v11131_v42 = vcombine.high %v474_v35, %v478_v36 }
  0xf5   :  { %v11084_v56 = vcombine.low %v427_v44, %v431_v46  ;;  %v11091_v57 = vcombine.high %v434_v50, %v438_v51  ;;  %v11090_v0 = vcombine.low %v434_v50, %v438_v51  ;;  %v475_v38 = vld [vmem:[#allocation7 + $0x888] sm:$0xff]  ;;  %v490_v51 = vld [vmem:[#allocation7 + $0x900] sm:$0xff] }
  0xf7   :  { %6442 = vmatpush1.bf16.msra.mxu0 %v11018_v52  ;;  %6786 = vmatpush1.bf16.msra.mxu1 %v11020_v53  ;;  %v435_v52 = vld [vmem:[#allocation7 + $0x748] sm:$0xff]  ;;  %v11085_v53 = vcombine.high %v427_v44, %v431_v46  ;;  %v486_v44 = vld [vmem:[#allocation7 + $0x8e0] sm:$0xff] }
  0xf8   :  { %6443 = vmatprep.subr.bf16.mxu0 %v11027_v54  ;;  %6787 = vmatprep.subr.bf16.mxu1 %v11029_v59  ;;  %v439_v54 = vld [vmem:[#allocation7 + $0x768] sm:$0xff]  ;;  %v442_v59 = vld [vmem:[#allocation7 + $0x780] sm:$0xff]  ;;  %v11139_v50 = vcombine.high %v482_v43, %v486_v44 }
  0xf9   :  { %v11092_v1 = vcombine.low %v435_v52, %v439_v54  ;;  %v11099_v2 = vcombine.high %v442_v59, %v446_v60  ;;  %v11098_v8 = vcombine.low %v442_v59, %v446_v60  ;;  %v498_v60 = vld [vmem:[#allocation7 + $0x940] sm:$0xff] }
  0xfb   :  { %6444 = vmatpush1.bf16.msra.mxu0 %v11026_v61  ;;  %6788 = vmatpush1.bf16.msra.mxu1 %v11028_v62  ;;  %v443_v61 = vld [vmem:[#allocation7 + $0x788] sm:$0xff]  ;;  %v11093_v62 = vcombine.high %v435_v52, %v439_v54  ;;  %v494_v52 = vld [vmem:[#allocation7 + $0x920] sm:$0xff] }
  0xfc   :  { %6445 = vmatprep.subr.bf16.mxu0 %v11035_v63  ;;  %6789 = vmatprep.subr.bf16.mxu1 %v11037_v3  ;;  %v447_v63 = vld [vmem:[#allocation7 + $0x7a8] sm:$0xff]  ;;  %v450_v3 = vld [vmem:[#allocation7 + $0x7c0] sm:$0xff]  ;;  %v11147_v59 = vcombine.high %v490_v51, %v494_v52 }
  0xfd   :  { %v11100_v10 = vcombine.low %v443_v61, %v447_v63  ;;  %v11106_v19 = vcombine.low %v450_v3, %v454_v4 }
  0xff   :  { %6446 = vmatpush1.bf16.msra.mxu0 %v11034_v5  ;;  %6790 = vmatpush1.bf16.msra.mxu1 %v11036_v6  ;;  %v451_v5 = vld [vmem:[#allocation7 + $0x7c8] sm:$0xff]  ;;  %v11101_v6 = vcombine.high %v443_v61, %v447_v63  ;;  %v502_v61 = vld [vmem:[#allocation7 + $0x960] sm:$0xff] }
 0x100   :  { %6447 = vmatprep.subr.bf16.mxu0 %v11043_v7  ;;  %6791 = vmatprep.subr.bf16.mxu1 %v11045_v11  ;;  %v455_v7 = vld [vmem:[#allocation7 + $0x7e8] sm:$0xff]  ;;  %v11107_v11 = vcombine.high %v450_v3, %v454_v4  ;;  %v11155_v3 = vcombine.high %v498_v60, %v502_v61  ;;  %v506_v4 = vld [vmem:[#allocation7 + $0x980] sm:$0xff] }
 0x103   :  { %6448 = vmatpush1.bf16.msra.mxu0 %v11042_v13  ;;  %6792 = vmatpush1.bf16.msra.mxu1 %v11044_v14  ;;  %v459_v13 = vld [vmem:[#allocation7 + $0x808] sm:$0xff] }
 0x104   :  { %6449 = vmatprep.subr.bf16.mxu0 %v11051_v16  ;;  %6793 = vmatprep.subr.bf16.mxu1 %v11053_v20  ;;  %v463_v14 = vld [vmem:[#allocation7 + $0x828] sm:$0xff]  ;;  %v11109_v16 = vcombine.high %v451_v5, %v455_v7  ;;  %v466_v20 = vld [vmem:[#allocation7 + $0x840] sm:$0xff] }
 0x105   :  { %v11117_v28 = vcombine.high %v459_v13, %v463_v14 }
 0x107   :  { %6450 = vmatpush1.bf16.msra.mxu0 %v11050_v22  ;;  %6794 = vmatpush1.bf16.msra.mxu1 %v11052_v23  ;;  %v11108_v22 = vcombine.low %v451_v5, %v455_v7  ;;  %v11115_v23 = vcombine.high %v458_v9, %v462_v12  ;;  %v510_v5 = vld [vmem:[#allocation7 + $0x9a0] sm:$0xff] }
 0x108   :  { %6451 = vmatprep.subr.bf16.mxu0 %v11059_v24  ;;  %6795 = vmatprep.subr.bf16.mxu1 %v11061_v29  ;;  %v467_v24 = vld [vmem:[#allocation7 + $0x848] sm:$0xff]  ;;  %v11162_v18 = vcombine.low %v506_v4, %v510_v5 }
 0x109   :  { %v175_v29 = vld [vmem:[#allocation2 + $0xa8] sm:$0xff]  ;;  %v11125_v34 = vcombine.high %v467_v24, %v471_v26 }
 0x10b   :  { %6452 = vmatpush1.bf16.msra.mxu0 %v11058_v31  ;;  %6796 = vmatpush1.bf16.msra.mxu1 %v11060_v32  ;;  %v11114_v31 = vcombine.low %v458_v9, %v462_v12  ;;  %v11116_v32 = vcombine.low %v459_v13, %v463_v14  ;;  %v11154_v9 = vcombine.low %v498_v60, %v502_v61  ;;  %v514_v12 = vld [vmem:[#allocation7 + $0x9c0] sm:$0xff]  ;;  %v515_v14 = vld [vmem:[#allocation7 + $0x9c8] sm:$0xff] }
 0x10c   :  { %6453 = vmatprep.subr.bf16.mxu0 %v11067_v33  ;;  %6797 = vmatprep.subr.bf16.mxu1 %v11069_v37  ;;  %v11123_v33 = vcombine.high %v466_v20, %v470_v21  ;;  %v13584_v37 = vpack.c.bf16 %v175_v29, %v159_v27  ;;  %v518_v13 = vld [vmem:[#allocation7 + $0x9e0] sm:$0xff]  ;;  %v559_v61 = vld [vmem:[#allocation7 + $0xb28] sm:$0xff] }
 0x10d   :  { %v11170_v27 = vcombine.low %v514_v12, %v518_v13 }
 0x10f   :  { %6454 = vmatpush1.bf16.msra.mxu0 %v11066_v39  ;;  %6798 = vmatpush1.bf16.msra.mxu1 %v11068_v40  ;;  %v479_v39 = vld [vmem:[#allocation7 + $0x8a8] sm:$0xff]  ;;  %v11122_v40 = vcombine.low %v466_v20, %v470_v21  ;;  %v11171_v20 = vcombine.high %v514_v12, %v518_v13  ;;  %v522_v21 = vld [vmem:[#allocation7 + $0xa00] sm:$0xff] }
 0x110   :  { %6455 = vmatprep.subr.bf16.mxu0 %v11075_v41  ;;  %6799 = vmatprep.subr.bf16.mxu1 %v11077_v45  ;;  %v11124_v41 = vcombine.low %v467_v24, %v471_v26  ;;  %v483_v45 = vld [vmem:[#allocation7 + $0x8c8] sm:$0xff]  ;;  %v11133_v46 = vcombine.high %v475_v38, %v479_v39  ;;  %v11173_v24 = vcombine.high %v515_v14, %v519_v17 }
 0x111   :  { %v527_v26 = vld [vmem:[#allocation7 + $0xa28] sm:$0xff] }
 0x112   :  { %v575_v13 = vld [vmem:[#allocation7 + $0xba8] sm:$0xff] }
 0x113   :  { %6456 = vmatpush1.bf16.msra.mxu0 %v11074_v47  ;;  %6800 = vmatpush1.bf16.msra.mxu1 %v11076_v48  ;;  %v487_v47 = vld [vmem:[#allocation7 + $0x8e8] sm:$0xff]  ;;  %v11130_v48 = vcombine.low %v474_v35, %v478_v36 }
 0x114   :  { %6457 = vmatprep.subr.bf16.mxu0 %v11083_v49  ;;  %6801 = vmatprep.subr.bf16.mxu1 %v11085_v53  ;;  %v11132_v49 = vcombine.low %v475_v38, %v479_v39  ;;  %v491_v53 = vld [vmem:[#allocation7 + $0x908] sm:$0xff]  ;;  %v11141_v54 = vcombine.high %v483_v45, %v487_v47 }
 0x115   :  { %v535_v35 = vld [vmem:[#allocation7 + $0xa68] sm:$0xff] }
 0x117   :  { %6458 = vmatpush1.bf16.msra.mxu0 %v11082_v55  ;;  %6802 = vmatpush1.bf16.msra.mxu1 %v11084_v56  ;;  %v495_v55 = vld [vmem:[#allocation7 + $0x928] sm:$0xff]  ;;  %v11138_v56 = vcombine.low %v482_v43, %v486_v44 }
 0x118   :  { %6459 = vmatprep.subr.bf16.mxu0 %v11091_v57  ;;  %6803 = vmatprep.subr.bf16.mxu1 %v11093_v62  ;;  %v11140_v57 = vcombine.low %v483_v45, %v487_v47  ;;  %v499_v62 = vld [vmem:[#allocation7 + $0x948] sm:$0xff]  ;;  %v11149_v63 = vcombine.high %v491_v53, %v495_v55 }
 0x119   :  { %v543_v44 = vld [vmem:[#allocation7 + $0xaa8] sm:$0xff] }
 0x11b   :  { %6460 = vmatpush1.bf16.msra.mxu0 %v11090_v0  ;;  %6804 = vmatpush1.bf16.msra.mxu1 %v11092_v1  ;;  %v503_v0 = vld [vmem:[#allocation7 + $0x968] sm:$0xff]  ;;  %v11146_v1 = vcombine.low %v490_v51, %v494_v52 }
 0x11c   :  { %6461 = vmatprep.subr.bf16.mxu0 %v11099_v2  ;;  %6805 = vmatprep.subr.bf16.mxu1 %v11101_v6  ;;  %v11148_v2 = vcombine.low %v491_v53, %v495_v55  ;;  %v507_v6 = vld [vmem:[#allocation7 + $0x988] sm:$0xff]  ;;  %v11157_v7 = vcombine.high %v499_v62, %v503_v0 }
 0x11d   :  { %v551_v52 = vld [vmem:[#allocation7 + $0xae8] sm:$0xff] }
 0x11f   :  { %6462 = vmatpush1.bf16.msra.mxu0 %v11098_v8  ;;  %6806 = vmatpush1.bf16.msra.mxu1 %v11100_v10  ;;  %v511_v8 = vld [vmem:[#allocation7 + $0x9a8] sm:$0xff]  ;;  %v11156_v10 = vcombine.low %v499_v62, %v503_v0 }
 0x120   :  { %6463 = vmatprep.subr.bf16.mxu0 %v11107_v11  ;;  %6807 = vmatprep.subr.bf16.mxu1 %v11109_v16  ;;  %v11163_v11 = vcombine.high %v506_v4, %v510_v5  ;;  %v11165_v16 = vcombine.high %v507_v6, %v511_v8  ;;  %v567_v5 = vld [vmem:[#allocation7 + $0xb68] sm:$0xff] }
 0x123   :  { %6464 = vmatpush1.bf16.msra.mxu0 %v11106_v19  ;;  %6808 = vmatpush1.bf16.msra.mxu1 %v11108_v22  ;;  %v11164_v19 = vcombine.low %v507_v6, %v511_v8  ;;  %v526_v22 = vld [vmem:[#allocation7 + $0xa20] sm:$0xff] }
 0x124   :  { %6476 = vmatprep.subr.bf16.mxu0 %v11115_v23  ;;  %6820 = vmatprep.subr.bf16.mxu1 %v11117_v28  ;;  %v523_v23 = vld [vmem:[#allocation7 + $0xa08] sm:$0xff]  ;;  %v11172_v28 = vcombine.low %v515_v14, %v519_v17  ;;  %v11179_v29 = vcombine.high %v522_v21, %v526_v22  ;;  %v11178_v36 = vcombine.low %v522_v21, %v526_v22 }
 0x125   :  { %v11180_v38 = vcombine.low %v523_v23, %v527_v26  ;;  %v583_v22 = vld [vmem:[#allocation7 + $0xbe8] sm:$0xff] }
 0x126   :  { %6466 = vmatmul.mubr.bf16.vlgmr.msra.gmra.mrb[0].mxu0 %v13582_v30  ;;  %6810 = vmatmul.mubr.bf16.vlgmr.msra.gmra.mrb[0].mxu1 %v13582_v30 }
 0x127   :  { %6477 = vmatpush1.bf16.msra.mxu0 %v11114_v31  ;;  %6821 = vmatpush1.bf16.msra.mxu1 %v11116_v32  ;;  %v530_v31 = vld [vmem:[#allocation7 + $0xa40] sm:$0xff] }
 0x128   :  { %6478 = vmatprep.subr.bf16.mxu0 %v11123_v33  ;;  %6822 = vmatprep.subr.bf16.mxu1 %v11125_v34  ;;  %v534_v32 = vld [vmem:[#allocation7 + $0xa60] sm:$0xff]  ;;  %v531_v33 = vld [vmem:[#allocation7 + $0xa48] sm:$0xff]  ;;  %v11181_v34 = vcombine.high %v523_v23, %v527_v26 }
 0x129   :  { %6508 = vmatprep.mubr.bf16.mxu0 %v13584_v37  ;;  %6852 = vmatprep.mubr.bf16.mxu1 %v13584_v37  ;;  %v11187_v39 = vcombine.high %v530_v31, %v534_v32  ;;  %v11189_v43 = vcombine.high %v531_v33, %v535_v35  ;;  %v11186_v45 = vcombine.low %v530_v31, %v534_v32  ;;  %v591_v31 = vld [vmem:[#allocation7 + $0xc28] sm:$0xff] }
 0x12b   :  { %6479 = vmatpush1.bf16.msra.mxu0 %v11122_v40  ;;  %6823 = vmatpush1.bf16.msra.mxu1 %v11124_v41  ;;  %v538_v40 = vld [vmem:[#allocation7 + $0xa80] sm:$0xff] }
 0x12c   :  { %6480 = vmatprep.subr.bf16.mxu0 %v11131_v42  ;;  %6824 = vmatprep.subr.bf16.mxu1 %v11133_v46  ;;  %v542_v41 = vld [vmem:[#allocation7 + $0xaa0] sm:$0xff]  ;;  %v539_v42 = vld [vmem:[#allocation7 + $0xa88] sm:$0xff]  ;;  %v11188_v46 = vcombine.low %v531_v33, %v535_v35 }
 0x12d   :  { %v11195_v47 = vcombine.high %v538_v40, %v542_v41  ;;  %v11197_v51 = vcombine.high %v539_v42, %v543_v44  ;;  %v11194_v53 = vcombine.low %v538_v40, %v542_v41  ;;  %v158_v33 = vld [vmem:[#allocation2 + $0x20] sm:$0xff]  ;;  %v595_v41 = vld [vmem:[#allocation7 + $0xc48] sm:$0xff] }
 0x12f   :  { %6481 = vmatpush1.bf16.msra.mxu0 %v11130_v48  ;;  %6825 = vmatpush1.bf16.msra.mxu1 %v11132_v49  ;;  %v546_v48 = vld [vmem:[#allocation7 + $0xac0] sm:$0xff] }
 0x130   :  { %6482 = vmatprep.subr.bf16.mxu0 %v11139_v50  ;;  %6826 = vmatprep.subr.bf16.mxu1 %v11141_v54  ;;  %v550_v49 = vld [vmem:[#allocation7 + $0xae0] sm:$0xff]  ;;  %v547_v50 = vld [vmem:[#allocation7 + $0xac8] sm:$0xff]  ;;  %v11196_v54 = vcombine.low %v539_v42, %v543_v44 }
 0x131   :  { %v11203_v55 = vcombine.high %v546_v48, %v550_v49  ;;  %v11205_v60 = vcombine.high %v547_v50, %v551_v52  ;;  %v11202_v62 = vcombine.low %v546_v48, %v550_v49  ;;  %v599_v42 = vld [vmem:[#allocation7 + $0xc68] sm:$0xff] }
 0x133   :  { %6483 = vmatpush1.bf16.msra.mxu0 %v11138_v56  ;;  %6827 = vmatpush1.bf16.msra.mxu1 %v11140_v57  ;;  %v554_v56 = vld [vmem:[#allocation7 + $0xb00] sm:$0xff] }
 0x134   :  { %6484 = vmatprep.subr.bf16.mxu0 %v11147_v59  ;;  %6828 = vmatprep.subr.bf16.mxu1 %v11149_v63  ;;  %v558_v57 = vld [vmem:[#allocation7 + $0xb20] sm:$0xff]  ;;  %v555_v59 = vld [vmem:[#allocation7 + $0xb08] sm:$0xff]  ;;  %v11204_v63 = vcombine.low %v547_v50, %v551_v52  ;;  %v11253_v50 = vcombine.high %v595_v41, %v599_v42 }
 0x135   :  { %v11211_v0 = vcombine.high %v554_v56, %v558_v57  ;;  %v11213_v4 = vcombine.high %v555_v59, %v559_v61  ;;  %v11210_v6 = vcombine.low %v554_v56, %v558_v57  ;;  %v606_v52 = vld [vmem:[#allocation7 + $0xca0] sm:$0xff]  ;;  %v11252_v57 = vcombine.low %v595_v41, %v599_v42  ;;  %v651_v42 = vld [vmem:[#allocation7 + $0xe08] sm:$0xff] }
 0x136   :  { %v654_v41 = vld [vmem:[#allocation7 + $0xe20] sm:$0xff] }
 0x137   :  { %6485 = vmatpush1.bf16.msra.mxu0 %v11146_v1  ;;  %6829 = vmatpush1.bf16.msra.mxu1 %v11148_v2  ;;  %v562_v1 = vld [vmem:[#allocation7 + $0xb40] sm:$0xff] }
 0x138   :  { %6486 = vmatprep.subr.bf16.mxu0 %v11155_v3  ;;  %6830 = vmatprep.subr.bf16.mxu1 %v11157_v7  ;;  %v566_v2 = vld [vmem:[#allocation7 + $0xb60] sm:$0xff]  ;;  %v563_v3 = vld [vmem:[#allocation7 + $0xb48] sm:$0xff]  ;;  %v11212_v7 = vcombine.low %v555_v59, %v559_v61 }
 0x139   :  { %v11219_v8 = vcombine.high %v562_v1, %v566_v2  ;;  %v11221_v12 = vcombine.high %v563_v3, %v567_v5  ;;  %v11218_v14 = vcombine.low %v562_v1, %v566_v2  ;;  %v614_v61 = vld [vmem:[#allocation7 + $0xce0] sm:$0xff] }
 0x13b   :  { %6487 = vmatpush1.bf16.msra.mxu0 %v11154_v9  ;;  %6831 = vmatpush1.bf16.msra.mxu1 %v11156_v10  ;;  %v570_v9 = vld [vmem:[#allocation7 + $0xb80] sm:$0xff] }
 0x13c   :  { %6488 = vmatprep.subr.bf16.mxu0 %v11163_v11  ;;  %6832 = vmatprep.subr.bf16.mxu1 %v11165_v16  ;;  %v574_v10 = vld [vmem:[#allocation7 + $0xba0] sm:$0xff]  ;;  %v571_v11 = vld [vmem:[#allocation7 + $0xb88] sm:$0xff]  ;;  %v11220_v16 = vcombine.low %v563_v3, %v567_v5 }
 0x13d   :  { %v11227_v17 = vcombine.high %v570_v9, %v574_v10  ;;  %v11229_v21 = vcombine.high %v571_v11, %v575_v13  ;;  %v11226_v23 = vcombine.low %v570_v9, %v574_v10  ;;  %v11228_v26 = vcombine.low %v571_v11, %v575_v13  ;;  %v622_v5 = vld [vmem:[#allocation7 + $0xd20] sm:$0xff] }
 0x13e   :  { %v630_v13 = vld [vmem:[#allocation7 + $0xd60] sm:$0xff] }
 0x13f   :  { %6489 = vmatpush1.bf16.msra.mxu0 %v11162_v18  ;;  %6833 = vmatpush1.bf16.msra.mxu1 %v11164_v19  ;;  %v578_v18 = vld [vmem:[#allocation7 + $0xbc0] sm:$0xff] }
 0x140   :  { %6490 = vmatprep.subr.bf16.mxu0 %v11171_v20  ;;  %6834 = vmatprep.subr.bf16.mxu1 %v11173_v24  ;;  %v582_v19 = vld [vmem:[#allocation7 + $0xbe0] sm:$0xff]  ;;  %v579_v20 = vld [vmem:[#allocation7 + $0xbc8] sm:$0xff] }
 0x141   :  { %v586_v24 = vld [vmem:[#allocation7 + $0xc00] sm:$0xff]  ;;  %v11237_v32 = vcombine.high %v579_v20, %v583_v22  ;;  %v11234_v35 = vcombine.low %v578_v18, %v582_v19 }
 0x143   :  { %6491 = vmatpush1.bf16.msra.mxu0 %v11170_v27  ;;  %6835 = vmatpush1.bf16.msra.mxu1 %v11172_v28  ;;  %v11235_v27 = vcombine.high %v578_v18, %v582_v19  ;;  %v590_v28 = vld [vmem:[#allocation7 + $0xc20] sm:$0xff] }
 0x144   :  { %6492 = vmatprep.subr.bf16.mxu0 %v11179_v29  ;;  %6836 = vmatprep.subr.bf16.mxu1 %v11181_v34  ;;  %v587_v29 = vld [vmem:[#allocation7 + $0xc08] sm:$0xff]  ;;  %v174_v34 = vld [vmem:[#allocation2 + $0xa0] sm:$0xff]  ;;  %v11243_v40 = vcombine.high %v586_v24, %v590_v28 }
 0x145   :  { %v11245_v44 = vcombine.high %v587_v29, %v591_v31  ;;  %v11244_v48 = vcombine.low %v587_v29, %v591_v31  ;;  %v642_v31 = vld [vmem:[#allocation7 + $0xdc0] sm:$0xff] }
 0x147   :  { %6493 = vmatpush1.bf16.msra.mxu0 %v11178_v36  ;;  %6837 = vmatpush1.bf16.msra.mxu1 %v11180_v38  ;;  %v594_v36 = vld [vmem:[#allocation7 + $0xc40] sm:$0xff] }
 0x148   :  { %6494 = vmatprep.subr.bf16.mxu0 %v11187_v39  ;;  %6838 = vmatprep.subr.bf16.mxu1 %v11189_v43  ;;  %v598_v38 = vld [vmem:[#allocation7 + $0xc60] sm:$0xff]  ;;  %v11236_v39 = vcombine.low %v579_v20, %v583_v22  ;;  %v161_v43 = vld [vmem:[#allocation2 + $0x38] sm:$0xff] }
 0x149   :  { %v11251_v49 = vcombine.high %v594_v36, %v598_v38  ;;  %v11250_v56 = vcombine.low %v594_v36, %v598_v38  ;;  %v638_v22 = vld [vmem:[#allocation7 + $0xda0] sm:$0xff] }
 0x14b   :  { %6495 = vmatpush1.bf16.msra.mxu0 %v11186_v45  ;;  %6839 = vmatpush1.bf16.msra.mxu1 %v11188_v46  ;;  %v177_v45 = vld [vmem:[#allocation2 + $0xb8] sm:$0xff]  ;;  %v13590_v46 = vpack.c.bf16 %v174_v34, %v158_v33  ;;  %v643_v33 = vld [vmem:[#allocation7 + $0xdc8] sm:$0xff] }
 0x14c   :  { %6496 = vmatprep.subr.bf16.mxu0 %v11195_v47  ;;  %6840 = vmatprep.subr.bf16.mxu1 %v11197_v51  ;;  %v11242_v47 = vcombine.low %v586_v24, %v590_v28  ;;  %v602_v51 = vld [vmem:[#allocation7 + $0xc80] sm:$0xff] }
 0x14d   :  { %v11259_v59 = vcombine.high %v602_v51, %v606_v52  ;;  %v11258_v1 = vcombine.low %v602_v51, %v606_v52  ;;  %v659_v51 = vld [vmem:[#allocation7 + $0xe48] sm:$0xff] }
 0x14f   :  { %6497 = vmatpush1.bf16.msra.mxu0 %v11194_v53  ;;  %6841 = vmatpush1.bf16.msra.mxu1 %v11196_v54  ;;  %v13592_v53 = vpack.c.bf16 %v177_v45, %v161_v43  ;;  %v603_v54 = vld [vmem:[#allocation7 + $0xc88] sm:$0xff] }
 0x150   :  { %6498 = vmatprep.subr.bf16.mxu0 %v11203_v55  ;;  %6842 = vmatprep.subr.bf16.mxu1 %v11205_v60  ;;  %v607_v55 = vld [vmem:[#allocation7 + $0xca8] sm:$0xff]  ;;  %v610_v60 = vld [vmem:[#allocation7 + $0xcc0] sm:$0xff] }
 0x151   :  { %v11260_v2 = vcombine.low %v603_v54, %v607_v55  ;;  %v11267_v3 = vcombine.high %v610_v60, %v614_v61  ;;  %v11266_v9 = vcombine.low %v610_v60, %v614_v61  ;;  %v670_v60 = vld [vmem:[#allocation7 + $0xea0] sm:$0xff]  ;;  %v667_v61 = vld [vmem:[#allocation7 + $0xe88] sm:$0xff] }
 0x153   :  { %6499 = vmatpush1.bf16.msra.mxu0 %v11202_v62  ;;  %6843 = vmatpush1.bf16.msra.mxu1 %v11204_v63  ;;  %v611_v62 = vld [vmem:[#allocation7 + $0xcc8] sm:$0xff]  ;;  %v11261_v63 = vcombine.high %v603_v54, %v607_v55 }
 0x154   :  { %6500 = vmatprep.subr.bf16.mxu0 %v11211_v0  ;;  %6844 = vmatprep.subr.bf16.mxu1 %v11213_v4  ;;  %v615_v0 = vld [vmem:[#allocation7 + $0xce8] sm:$0xff]  ;;  %v618_v4 = vld [vmem:[#allocation7 + $0xd00] sm:$0xff] }
 0x155   :  { %v11268_v10 = vcombine.low %v611_v62, %v615_v0  ;;  %v11275_v11 = vcombine.high %v618_v4, %v622_v5  ;;  %v11274_v18 = vcombine.low %v618_v4, %v622_v5  ;;  %v663_v54 = vld [vmem:[#allocation7 + $0xe68] sm:$0xff]  ;;  %v678_v4 = vld [vmem:[#allocation7 + $0xee0] sm:$0xff] }
 0x156   :  { %v675_v5 = vld [vmem:[#allocation7 + $0xec8] sm:$0xff] }
 0x157   :  { %6501 = vmatpush1.bf16.msra.mxu0 %v11210_v6  ;;  %6845 = vmatpush1.bf16.msra.mxu1 %v11212_v7  ;;  %v619_v6 = vld [vmem:[#allocation7 + $0xd08] sm:$0xff]  ;;  %v11269_v7 = vcombine.high %v611_v62, %v615_v0  ;;  %v11317_v62 = vcombine.high %v659_v51, %v663_v54 }
 0x158   :  { %6502 = vmatprep.subr.bf16.mxu0 %v11219_v8  ;;  %6846 = vmatprep.subr.bf16.mxu1 %v11221_v12  ;;  %v623_v8 = vld [vmem:[#allocation7 + $0xd28] sm:$0xff]  ;;  %v626_v12 = vld [vmem:[#allocation7 + $0xd40] sm:$0xff] }
 0x159   :  { %v11276_v19 = vcombine.low %v619_v6, %v623_v8  ;;  %v11283_v20 = vcombine.high %v626_v12, %v630_v13 }
 0x15b   :  { %6503 = vmatpush1.bf16.msra.mxu0 %v11218_v14  ;;  %6847 = vmatpush1.bf16.msra.mxu1 %v11220_v16  ;;  %v627_v14 = vld [vmem:[#allocation7 + $0xd48] sm:$0xff]  ;;  %v11277_v16 = vcombine.high %v619_v6, %v623_v8 }
 0x15c   :  { %6504 = vmatprep.subr.bf16.mxu0 %v11227_v17  ;;  %6848 = vmatprep.subr.bf16.mxu1 %v11229_v21  ;;  %v631_v17 = vld [vmem:[#allocation7 + $0xd68] sm:$0xff]  ;;  %v634_v21 = vld [vmem:[#allocation7 + $0xd80] sm:$0xff] }
 0x15d   :  { %v11285_v24 = vcombine.high %v627_v14, %v631_v17  ;;  %v11284_v28 = vcombine.low %v627_v14, %v631_v17  ;;  %v11291_v29 = vcombine.high %v634_v21, %v638_v22  ;;  %v11290_v36 = vcombine.low %v634_v21, %v638_v22  ;;  %v694_v21 = vld [vmem:[#allocation7 + $0xf60] sm:$0xff]  ;;  %v691_v22 = vld [vmem:[#allocation7 + $0xf48] sm:$0xff] }
 0x15f   :  { %6505 = vmatpush1.bf16.msra.mxu0 %v11226_v23  ;;  %6849 = vmatpush1.bf16.msra.mxu1 %v11228_v26  ;;  %v635_v23 = vld [vmem:[#allocation7 + $0xd88] sm:$0xff] }
 0x160   :  { %6506 = vmatprep.subr.bf16.mxu0 %v11235_v27  ;;  %6850 = vmatprep.subr.bf16.mxu1 %v11237_v32  ;;  %v639_v26 = vld [vmem:[#allocation7 + $0xda8] sm:$0xff]  ;;  %v11282_v27 = vcombine.low %v626_v12, %v630_v13  ;;  %v646_v32 = vld [vmem:[#allocation7 + $0xde0] sm:$0xff] }
 0x161   :  { %v11293_v34 = vcombine.high %v635_v23, %v639_v26  ;;  %v11292_v38 = vcombine.low %v635_v23, %v639_v26  ;;  %v11298_v45 = vcombine.low %v642_v31, %v646_v32  ;;  %v686_v12 = vld [vmem:[#allocation7 + $0xf20] sm:$0xff]  ;;  %v683_v13 = vld [vmem:[#allocation7 + $0xf08] sm:$0xff] }
 0x163   :  { %6507 = vmatpush1.bf16.msra.mxu0 %v11234_v35  ;;  %6851 = vmatpush1.bf16.msra.mxu1 %v11236_v39  ;;  %v647_v35 = vld [vmem:[#allocation7 + $0xde8] sm:$0xff]  ;;  %v11299_v39 = vcombine.high %v642_v31, %v646_v32  ;;  %v702_v31 = vld [vmem:[#allocation7 + $0xfa0] sm:$0xff] }
 0x164   :  { %6519 = vmatprep.subr.bf16.mxu0 %v11243_v40  ;;  %6863 = vmatprep.subr.bf16.mxu1 %v11245_v44  ;;  %v650_v40 = vld [vmem:[#allocation7 + $0xe00] sm:$0xff]  ;;  %v11301_v43 = vcombine.high %v643_v33, %v647_v35  ;;  %v655_v44 = vld [vmem:[#allocation7 + $0xe28] sm:$0xff] }
 0x165   :  { %v11309_v52 = vcombine.high %v651_v42, %v655_v44  ;;  %v11306_v55 = vcombine.low %v650_v40, %v654_v41  ;;  %v699_v32 = vld [vmem:[#allocation7 + $0xf88] sm:$0xff] }
 0x166   :  { %6509 = vmatmul.mubr.bf16.vlgmr.msra.gmra.mrb[0].mxu0 %v13590_v46  ;;  %6853 = vmatmul.mubr.bf16.vlgmr.msra.gmra.mrb[0].mxu1 %v13590_v46 }
 0x167   :  { %6520 = vmatpush1.bf16.msra.mxu0 %v11242_v47  ;;  %6864 = vmatpush1.bf16.msra.mxu1 %v11244_v48  ;;  %v11300_v47 = vcombine.low %v643_v33, %v647_v35  ;;  %v11307_v48 = vcombine.high %v650_v40, %v654_v41  ;;  %v710_v40 = vld [vmem:[#allocation7 + $0xfe0] sm:$0xff]  ;;  %v707_v41 = vld [vmem:[#allocation7 + $0xfc8] sm:$0xff] }
 0x168   :  { %6521 = vmatprep.subr.bf16.mxu0 %v11251_v49  ;;  %6865 = vmatprep.subr.bf16.mxu1 %v11253_v50  ;;  %v658_v49 = vld [vmem:[#allocation7 + $0xe40] sm:$0xff] }
 0x169   :  { %6551 = vmatprep.mubr.bf16.mxu0 %v13592_v53  ;;  %6895 = vmatprep.mubr.bf16.mxu1 %v13592_v53  ;;  %v662_v50 = vld [vmem:[#allocation7 + $0xe60] sm:$0xff] }
 0x16a   :  { %v11314_v0 = vcombine.low %v658_v49, %v662_v50 }
 0x16b   :  { %6522 = vmatpush1.bf16.msra.mxu0 %v11250_v56  ;;  %6866 = vmatpush1.bf16.msra.mxu1 %v11252_v57  ;;  %v11308_v56 = vcombine.low %v651_v42, %v655_v44  ;;  %v11315_v57 = vcombine.high %v658_v49, %v662_v50  ;;  %v718_v49 = vld [vmem:[#allocation7 + $0x1020] sm:$0xff]  ;;  %v715_v50 = vld [vmem:[#allocation7 + $0x1008] sm:$0xff] }
 0x16c   :  { %6523 = vmatprep.subr.bf16.mxu0 %v11259_v59  ;;  %6867 = vmatprep.subr.bf16.mxu1 %v11261_v63  ;;  %v666_v59 = vld [vmem:[#allocation7 + $0xe80] sm:$0xff]  ;;  %v671_v63 = vld [vmem:[#allocation7 + $0xea8] sm:$0xff] }
 0x16d   :  { %v11325_v6 = vcombine.high %v667_v61, %v671_v63  ;;  %v11322_v8 = vcombine.low %v666_v59, %v670_v60 }
 0x16f   :  { %6524 = vmatpush1.bf16.msra.mxu0 %v11258_v1  ;;  %6868 = vmatpush1.bf16.msra.mxu1 %v11260_v2  ;;  %v11316_v1 = vcombine.low %v659_v51, %v663_v54  ;;  %v11323_v2 = vcombine.high %v666_v59, %v670_v60  ;;  %v719_v51 = vld [vmem:[#allocation7 + $0x1028] sm:$0xff]  ;;  %v160_v54 = vld [vmem:[#allocation2 + $0x30] sm:$0xff]  ;;  %v726_v59 = vld [vmem:[#allocation7 + $0x1060] sm:$0xff] }
 0x170   :  { %6525 = vmatprep.subr.bf16.mxu0 %v11267_v3  ;;  %6869 = vmatprep.subr.bf16.mxu1 %v11269_v7  ;;  %v674_v3 = vld [vmem:[#allocation7 + $0xec0] sm:$0xff]  ;;  %v679_v7 = vld [vmem:[#allocation7 + $0xee8] sm:$0xff] }
 0x171   :  { %v11333_v14 = vcombine.high %v675_v5, %v679_v7  ;;  %v11330_v17 = vcombine.low %v674_v3, %v678_v4 }
 0x173   :  { %6526 = vmatpush1.bf16.msra.mxu0 %v11266_v9  ;;  %6870 = vmatpush1.bf16.msra.mxu1 %v11268_v10  ;;  %v11324_v9 = vcombine.low %v667_v61, %v671_v63  ;;  %v11331_v10 = vcombine.high %v674_v3, %v678_v4  ;;  %v727_v63 = vld [vmem:[#allocation7 + $0x1068] sm:$0xff] }
 0x174   :  { %6527 = vmatprep.subr.bf16.mxu0 %v11275_v11  ;;  %6871 = vmatprep.subr.bf16.mxu1 %v11277_v16  ;;  %v682_v11 = vld [vmem:[#allocation7 + $0xf00] sm:$0xff]  ;;  %v687_v16 = vld [vmem:[#allocation7 + $0xf28] sm:$0xff] }
 0x175   :  { %v11341_v23 = vcombine.high %v683_v13, %v687_v16  ;;  %v11338_v26 = vcombine.low %v682_v11, %v686_v12 }
 0x177   :  { %6528 = vmatpush1.bf16.msra.mxu0 %v11274_v18  ;;  %6872 = vmatpush1.bf16.msra.mxu1 %v11276_v19  ;;  %v11332_v18 = vcombine.low %v675_v5, %v679_v7  ;;  %v11339_v19 = vcombine.high %v682_v11, %v686_v12  ;;  %v11372_v5 = vcombine.low %v715_v50, %v719_v51  ;;  %v731_v11 = vld [vmem:[#allocation7 + $0x1088] sm:$0xff] }
 0x178   :  { %6529 = vmatprep.subr.bf16.mxu0 %v11283_v20  ;;  %6873 = vmatprep.subr.bf16.mxu1 %v11285_v24  ;;  %v690_v20 = vld [vmem:[#allocation7 + $0xf40] sm:$0xff]  ;;  %v695_v24 = vld [vmem:[#allocation7 + $0xf68] sm:$0xff] }
 0x179   :  { %v11349_v33 = vcombine.high %v691_v22, %v695_v24  ;;  %v11346_v35 = vcombine.low %v690_v20, %v694_v21  ;;  %v735_v12 = vld [vmem:[#allocation7 + $0x10a8] sm:$0xff] }
 0x17b   :  { %6530 = vmatpush1.bf16.msra.mxu0 %v11282_v27  ;;  %6874 = vmatpush1.bf16.msra.mxu1 %v11284_v28  ;;  %v11340_v27 = vcombine.low %v683_v13, %v687_v16  ;;  %v11347_v28 = vcombine.high %v690_v20, %v694_v21  ;;  %v11389_v20 = vcombine.high %v731_v11, %v735_v12  ;;  %v743_v21 = vld [vmem:[#allocation7 + $0x10e8] sm:$0xff] }
 0x17c   :  { %6531 = vmatprep.subr.bf16.mxu0 %v11291_v29  ;;  %6875 = vmatprep.subr.bf16.mxu1 %v11293_v34  ;;  %v698_v29 = vld [vmem:[#allocation7 + $0xf80] sm:$0xff]  ;;  %v703_v34 = vld [vmem:[#allocation7 + $0xfa8] sm:$0xff] }
 0x17d   :  { %v11357_v42 = vcombine.high %v699_v32, %v703_v34  ;;  %v11354_v44 = vcombine.low %v698_v29, %v702_v31 }
 0x17f   :  { %6532 = vmatpush1.bf16.msra.mxu0 %v11290_v36  ;;  %6876 = vmatpush1.bf16.msra.mxu1 %v11292_v38  ;;  %v11348_v36 = vcombine.low %v691_v22, %v695_v24  ;;  %v11355_v38 = vcombine.high %v698_v29, %v702_v31  ;;  %v751_v31 = vld [vmem:[#allocation7 + $0x1128] sm:$0xff] }
 0x180   :  { %6533 = vmatprep.subr.bf16.mxu0 %v11299_v39  ;;  %6877 = vmatprep.subr.bf16.mxu1 %v11301_v43  ;;  %v706_v39 = vld [vmem:[#allocation7 + $0xfc0] sm:$0xff]  ;;  %v711_v43 = vld [vmem:[#allocation7 + $0xfe8] sm:$0xff] }
 0x181   :  { %v11364_v60 = vcombine.low %v707_v41, %v711_v43 }
 0x183   :  { %6534 = vmatpush1.bf16.msra.mxu0 %v11298_v45  ;;  %6878 = vmatpush1.bf16.msra.mxu1 %v11300_v47  ;;  %v714_v45 = vld [vmem:[#allocation7 + $0x1000] sm:$0xff]  ;;  %v11356_v47 = vcombine.low %v699_v32, %v703_v34 }
 0x184   :  { %6535 = vmatprep.subr.bf16.mxu0 %v11307_v48  ;;  %6879 = vmatprep.subr.bf16.mxu1 %v11309_v52  ;;  %v11363_v48 = vcombine.high %v706_v39, %v710_v40  ;;  %v11365_v52 = vcombine.high %v707_v41, %v711_v43  ;;  %v11371_v61 = vcombine.high %v714_v45, %v718_v49 }
 0x185   :  { %v11370_v4 = vcombine.low %v714_v45, %v718_v49  ;;  %v766_v45 = vld [vmem:[#allocation7 + $0x11a0] sm:$0xff]  ;;  %v767_v49 = vld [vmem:[#allocation7 + $0x11a8] sm:$0xff] }
 0x187   :  { %6536 = vmatpush1.bf16.msra.mxu0 %v11306_v55  ;;  %6880 = vmatpush1.bf16.msra.mxu1 %v11308_v56  ;;  %v176_v55 = vld [vmem:[#allocation2 + $0xb0] sm:$0xff]  ;;  %v11362_v56 = vcombine.low %v706_v39, %v710_v40  ;;  %v759_v40 = vld [vmem:[#allocation7 + $0x1168] sm:$0xff] }
 0x188   :  { %6537 = vmatprep.subr.bf16.mxu0 %v11315_v57  ;;  %6881 = vmatprep.subr.bf16.mxu1 %v11317_v62  ;;  %v722_v57 = vld [vmem:[#allocation7 + $0x1040] sm:$0xff]  ;;  %v723_v62 = vld [vmem:[#allocation7 + $0x1048] sm:$0xff]  ;;  %v13598_v3 = vpack.c.bf16 %v176_v55, %v160_v54 }
 0x189   :  { %v11381_v7 = vcombine.high %v723_v62, %v727_v63  ;;  %v11378_v13 = vcombine.low %v722_v57, %v726_v59  ;;  %v770_v55 = vld [vmem:[#allocation7 + $0x11c0] sm:$0xff] }
 0x18b   :  { %6538 = vmatpush1.bf16.msra.mxu0 %v11314_v0  ;;  %6882 = vmatpush1.bf16.msra.mxu1 %v11316_v1  ;;  %v163_v0 = vld [vmem:[#allocation2 + $0x48] sm:$0xff]  ;;  %v11373_v1 = vcombine.high %v715_v50, %v719_v51 }
 0x18c   :  { %6539 = vmatprep.subr.bf16.mxu0 %v11323_v2  ;;  %6883 = vmatprep.subr.bf16.mxu1 %v11325_v6  ;;  %v179_v2 = vld [vmem:[#allocation2 + $0xc8] sm:$0xff]  ;;  %v11379_v6 = vcombine.high %v722_v57, %v726_v59 }
 0x18d   :  { %v771_v57 = vld [vmem:[#allocation7 + $0x11c8] sm:$0xff] }
 0x18e   :  { %v775_v59 = vld [vmem:[#allocation7 + $0x11e8] sm:$0xff] }
 0x18f   :  { %6540 = vmatpush1.bf16.msra.mxu0 %v11322_v8  ;;  %6884 = vmatpush1.bf16.msra.mxu1 %v11324_v9  ;;  %v730_v8 = vld [vmem:[#allocation7 + $0x1080] sm:$0xff] }
 0x190   :  { %6541 = vmatprep.subr.bf16.mxu0 %v11331_v10  ;;  %6885 = vmatprep.subr.bf16.mxu1 %v11333_v14  ;;  %v734_v9 = vld [vmem:[#allocation7 + $0x10a0] sm:$0xff]  ;;  %v13600_v10 = vpack.c.bf16 %v179_v2, %v163_v0  ;;  %v11380_v14 = vcombine.low %v723_v62, %v727_v63  ;;  %v11429_v63 = vcombine.high %v771_v57, %v775_v59  ;;  %v779_v2 = vld [vmem:[#allocation7 + $0x1208] sm:$0xff] }
 0x191   :  { %v11387_v16 = vcombine.high %v730_v8, %v734_v9  ;;  %v11386_v22 = vcombine.low %v730_v8, %v734_v9  ;;  %v778_v0 = vld [vmem:[#allocation7 + $0x1200] sm:$0xff] }
 0x192   :  { %v786_v9 = vld [vmem:[#allocation7 + $0x1240] sm:$0xff] }
 0x193   :  { %6542 = vmatpush1.bf16.msra.mxu0 %v11330_v17  ;;  %6886 = vmatpush1.bf16.msra.mxu1 %v11332_v18  ;;  %v738_v17 = vld [vmem:[#allocation7 + $0x10c0] sm:$0xff] }
 0x194   :  { %6543 = vmatprep.subr.bf16.mxu0 %v11339_v19  ;;  %6887 = vmatprep.subr.bf16.mxu1 %v11341_v23  ;;  %v742_v18 = vld [vmem:[#allocation7 + $0x10e0] sm:$0xff]  ;;  %v739_v19 = vld [vmem:[#allocation7 + $0x10c8] sm:$0xff]  ;;  %v11388_v23 = vcombine.low %v731_v11, %v735_v12 }
 0x195   :  { %v11395_v24 = vcombine.high %v738_v17, %v742_v18  ;;  %v11397_v29 = vcombine.high %v739_v19, %v743_v21  ;;  %v11394_v32 = vcombine.low %v738_v17, %v742_v18  ;;  %v790_v11 = vld [vmem:[#allocation7 + $0x1260] sm:$0xff]  ;;  %v787_v12 = vld [vmem:[#allocation7 + $0x1248] sm:$0xff] }
 0x196   :  { %v11443_v17 = vcombine.high %v786_v9, %v790_v11 }
 0x197   :  { %6544 = vmatpush1.bf16.msra.mxu0 %v11338_v26  ;;  %6888 = vmatpush1.bf16.msra.mxu1 %v11340_v27  ;;  %v746_v26 = vld [vmem:[#allocation7 + $0x1100] sm:$0xff] }
 0x198   :  { %6545 = vmatprep.subr.bf16.mxu0 %v11347_v28  ;;  %6889 = vmatprep.subr.bf16.mxu1 %v11349_v33  ;;  %v750_v27 = vld [vmem:[#allocation7 + $0x1120] sm:$0xff]  ;;  %v747_v28 = vld [vmem:[#allocation7 + $0x1108] sm:$0xff]  ;;  %v11396_v33 = vcombine.low %v739_v19, %v743_v21 }
 0x199   :  { %v11403_v34 = vcombine.high %v746_v26, %v750_v27  ;;  %v11405_v39 = vcombine.high %v747_v28, %v751_v31  ;;  %v11402_v41 = vcombine.low %v746_v26, %v750_v27  ;;  %v794_v19 = vld [vmem:[#allocation7 + $0x1280] sm:$0xff]  ;;  %v795_v21 = vld [vmem:[#allocation7 + $0x1288] sm:$0xff] }
 0x19b   :  { %6546 = vmatpush1.bf16.msra.mxu0 %v11346_v35  ;;  %6890 = vmatpush1.bf16.msra.mxu1 %v11348_v36  ;;  %v754_v35 = vld [vmem:[#allocation7 + $0x1140] sm:$0xff] }
 0x19c   :  { %6547 = vmatprep.subr.bf16.mxu0 %v11355_v38  ;;  %6891 = vmatprep.subr.bf16.mxu1 %v11357_v42  ;;  %v758_v36 = vld [vmem:[#allocation7 + $0x1160] sm:$0xff]  ;;  %v755_v38 = vld [vmem:[#allocation7 + $0x1148] sm:$0xff]  ;;  %v11404_v42 = vcombine.low %v747_v28, %v751_v31 }
 0x19d   :  { %v11411_v43 = vcombine.high %v754_v35, %v758_v36  ;;  %v11410_v50 = vcombine.low %v754_v35, %v758_v36  ;;  %v11412_v51 = vcombine.low %v755_v38, %v759_v40  ;;  %v802_v28 = vld [vmem:[#allocation7 + $0x12c0] sm:$0xff]  ;;  %v803_v31 = vld [vmem:[#allocation7 + $0x12c8] sm:$0xff] }
 0x19f   :  { %6548 = vmatpush1.bf16.msra.mxu0 %v11354_v44  ;;  %6892 = vmatpush1.bf16.msra.mxu1 %v11356_v47  ;;  %v762_v44 = vld [vmem:[#allocation7 + $0x1180] sm:$0xff]  ;;  %v763_v47 = vld [vmem:[#allocation7 + $0x1188] sm:$0xff] }
 0x1a0   :  { %6549 = vmatprep.subr.bf16.mxu0 %v11363_v48  ;;  %6893 = vmatprep.subr.bf16.mxu1 %v11365_v52  ;;  %v11413_v48 = vcombine.high %v755_v38, %v759_v40  ;;  %v11419_v52 = vcombine.high %v762_v44, %v766_v45  ;;  %v11421_v54 = vcombine.high %v763_v47, %v767_v49  ;;  %v810_v38 = vld [vmem:[#allocation7 + $0x1300] sm:$0xff]  ;;  %v811_v40 = vld [vmem:[#allocation7 + $0x1308] sm:$0xff] }
 0x1a3   :  { %6550 = vmatpush1.bf16.msra.mxu0 %v11362_v56  ;;  %6894 = vmatpush1.bf16.msra.mxu1 %v11364_v60  ;;  %v774_v56 = vld [vmem:[#allocation7 + $0x11e0] sm:$0xff]  ;;  %v11418_v60 = vcombine.low %v762_v44, %v766_v45 }
 0x1a4   :  { %6562 = vmatprep.subr.bf16.mxu0 %v11371_v61  ;;  %6906 = vmatprep.subr.bf16.mxu1 %v11373_v1  ;;  %v11420_v61 = vcombine.low %v763_v47, %v767_v49  ;;  %v11427_v62 = vcombine.high %v770_v55, %v774_v56  ;;  %v782_v1 = vld [vmem:[#allocation7 + $0x1220] sm:$0xff]  ;;  %v819_v49 = vld [vmem:[#allocation7 + $0x1348] sm:$0xff] }
 0x1a5   :  { %v818_v47 = vld [vmem:[#allocation7 + $0x1340] sm:$0xff] }
 0x1a6   :  { %6552 = vmatmul.mubr.bf16.vlgmr.msra.gmra.mrb[0].mxu0 %v13598_v3  ;;  %6896 = vmatmul.mubr.bf16.vlgmr.msra.gmra.mrb[0].mxu1 %v13598_v3 }
 0x1a7   :  { %6563 = vmatpush1.bf16.msra.mxu0 %v11370_v4  ;;  %6907 = vmatpush1.bf16.msra.mxu1 %v11372_v5  ;;  %v783_v4 = vld [vmem:[#allocation7 + $0x1228] sm:$0xff]  ;;  %v11426_v5 = vcombine.low %v770_v55, %v774_v56  ;;  %v826_v56 = vld [vmem:[#allocation7 + $0x1380] sm:$0xff] }
 0x1a8   :  { %6564 = vmatprep.subr.bf16.mxu0 %v11379_v6  ;;  %6908 = vmatprep.subr.bf16.mxu1 %v11381_v7  ;;  %v11428_v6 = vcombine.low %v771_v57, %v775_v59  ;;  %v11435_v7 = vcombine.high %v778_v0, %v782_v1  ;;  %v11437_v8 = vcombine.high %v779_v2, %v783_v4  ;;  %v830_v57 = vld [vmem:[#allocation7 + $0x13a0] sm:$0xff]  ;;  %v827_v59 = vld [vmem:[#allocation7 + $0x1388] sm:$0xff] }
 0x1a9   :  { %6594 = vmatprep.mubr.bf16.mxu0 %v13600_v10  ;;  %6938 = vmatprep.mubr.bf16.mxu1 %v13600_v10 }
 0x1ab   :  { %6565 = vmatpush1.bf16.msra.mxu0 %v11378_v13  ;;  %6909 = vmatpush1.bf16.msra.mxu1 %v11380_v14  ;;  %v791_v13 = vld [vmem:[#allocation7 + $0x1268] sm:$0xff]  ;;  %v11434_v14 = vcombine.low %v778_v0, %v782_v1  ;;  %v834_v1 = vld [vmem:[#allocation7 + $0x13c0] sm:$0xff] }
 0x1ac   :  { %6566 = vmatprep.subr.bf16.mxu0 %v11387_v16  ;;  %6910 = vmatprep.subr.bf16.mxu1 %v11389_v20  ;;  %v11436_v16 = vcombine.low %v779_v2, %v783_v4  ;;  %v11445_v18 = vcombine.high %v787_v12, %v791_v13  ;;  %v798_v20 = vld [vmem:[#allocation7 + $0x12a0] sm:$0xff]  ;;  %v835_v4 = vld [vmem:[#allocation7 + $0x13c8] sm:$0xff] }
 0x1ad   :  { %v11451_v26 = vcombine.high %v794_v19, %v798_v20  ;;  %v838_v2 = vld [vmem:[#allocation7 + $0x13e0] sm:$0xff] }
 0x1af   :  { %6567 = vmatpush1.bf16.msra.mxu0 %v11386_v22  ;;  %6911 = vmatpush1.bf16.msra.mxu1 %v11388_v23  ;;  %v799_v22 = vld [vmem:[#allocation7 + $0x12a8] sm:$0xff]  ;;  %v11442_v23 = vcombine.low %v786_v9, %v790_v11  ;;  %v842_v11 = vld [vmem:[#allocation7 + $0x1400] sm:$0xff] }
 0x1b0   :  { %6568 = vmatprep.subr.bf16.mxu0 %v11395_v24  ;;  %6912 = vmatprep.subr.bf16.mxu1 %v11397_v29  ;;  %v11444_v24 = vcombine.low %v787_v12, %v791_v13  ;;  %v11453_v27 = vcombine.high %v795_v21, %v799_v22  ;;  %v806_v29 = vld [vmem:[#allocation7 + $0x12e0] sm:$0xff]  ;;  %v843_v13 = vld [vmem:[#allocation7 + $0x1408] sm:$0xff] }
 0x1b1   :  { %v11459_v35 = vcombine.high %v802_v28, %v806_v29  ;;  %v846_v12 = vld [vmem:[#allocation7 + $0x1420] sm:$0xff] }
 0x1b3   :  { %6569 = vmatpush1.bf16.msra.mxu0 %v11394_v32  ;;  %6913 = vmatpush1.bf16.msra.mxu1 %v11396_v33  ;;  %v807_v32 = vld [vmem:[#allocation7 + $0x12e8] sm:$0xff]  ;;  %v11450_v33 = vcombine.low %v794_v19, %v798_v20  ;;  %v11499_v20 = vcombine.high %v842_v11, %v846_v12 }
 0x1b4   :  { %6570 = vmatprep.subr.bf16.mxu0 %v11403_v34  ;;  %6914 = vmatprep.subr.bf16.mxu1 %v11405_v39  ;;  %v11452_v34 = vcombine.low %v795_v21, %v799_v22  ;;  %v11461_v36 = vcombine.high %v803_v31, %v807_v32  ;;  %v814_v39 = vld [vmem:[#allocation7 + $0x1320] sm:$0xff] }
 0x1b5   :  { %v11467_v44 = vcombine.high %v810_v38, %v814_v39  ;;  %v850_v22 = vld [vmem:[#allocation7 + $0x1440] sm:$0xff] }
 0x1b7   :  { %6571 = vmatpush1.bf16.msra.mxu0 %v11402_v41  ;;  %6915 = vmatpush1.bf16.msra.mxu1 %v11404_v42  ;;  %v815_v41 = vld [vmem:[#allocation7 + $0x1328] sm:$0xff]  ;;  %v11458_v42 = vcombine.low %v802_v28, %v806_v29  ;;  %v165_v28 = vld [vmem:[#allocation2 + $0x58] sm:$0xff] }
 0x1b8   :  { %6572 = vmatprep.subr.bf16.mxu0 %v11411_v43  ;;  %6916 = vmatprep.subr.bf16.mxu1 %v11413_v48  ;;  %v11460_v43 = vcombine.low %v803_v31, %v807_v32  ;;  %v11469_v45 = vcombine.high %v811_v40, %v815_v41  ;;  %v822_v48 = vld [vmem:[#allocation7 + $0x1360] sm:$0xff]  ;;  %v181_v29 = vld [vmem:[#allocation2 + $0xd8] sm:$0xff]  ;;  %v11498_v31 = vcombine.low %v842_v11, %v846_v12  ;;  %v891_v12 = vld [vmem:[#allocation7 + $0x1588] sm:$0xff] }
 0x1b9   :  { %v894_v11 = vld [vmem:[#allocation7 + $0x15a0] sm:$0xff] }
 0x1bb   :  { %6573 = vmatpush1.bf16.msra.mxu0 %v11410_v50  ;;  %6917 = vmatpush1.bf16.msra.mxu1 %v11412_v51  ;;  %v823_v50 = vld [vmem:[#allocation7 + $0x1368] sm:$0xff]  ;;  %v11466_v51 = vcombine.low %v810_v38, %v814_v39  ;;  %v13608_v38 = vpack.c.bf16 %v181_v29, %v165_v28  ;;  %v906_v29 = vld [vmem:[#allocation7 + $0x1600] sm:$0xff] }
 0x1bc   :  { %6574 = vmatprep.subr.bf16.mxu0 %v11419_v52  ;;  %6918 = vmatprep.subr.bf16.mxu1 %v11421_v54  ;;  %v11468_v52 = vcombine.low %v811_v40, %v815_v41  ;;  %v11475_v54 = vcombine.high %v818_v47, %v822_v48  ;;  %v11477_v55 = vcombine.high %v819_v49, %v823_v50  ;;  %v859_v39 = vld [vmem:[#allocation7 + $0x1488] sm:$0xff] }
 0x1bd   :  { %v863_v40 = vld [vmem:[#allocation7 + $0x14a8] sm:$0xff] }
 0x1bf   :  { %6575 = vmatpush1.bf16.msra.mxu0 %v11418_v60  ;;  %6919 = vmatpush1.bf16.msra.mxu1 %v11420_v61  ;;  %v831_v60 = vld [vmem:[#allocation7 + $0x13a8] sm:$0xff]  ;;  %v11474_v61 = vcombine.low %v818_v47, %v822_v48  ;;  %v870_v47 = vld [vmem:[#allocation7 + $0x14e0] sm:$0xff] }
 0x1c0   :  { %6576 = vmatprep.subr.bf16.mxu0 %v11427_v62  ;;  %6920 = vmatprep.subr.bf16.mxu1 %v11429_v63  ;;  %v11476_v62 = vcombine.low %v819_v49, %v823_v50  ;;  %v11483_v63 = vcombine.high %v826_v56, %v830_v57  ;;  %v11485_v0 = vcombine.high %v827_v59, %v831_v60  ;;  %v867_v48 = vld [vmem:[#allocation7 + $0x14c8] sm:$0xff] }
 0x1c1   :  { %v871_v49 = vld [vmem:[#allocation7 + $0x14e8] sm:$0xff] }
 0x1c3   :  { %6577 = vmatpush1.bf16.msra.mxu0 %v11426_v5  ;;  %6921 = vmatpush1.bf16.msra.mxu1 %v11428_v6  ;;  %v839_v5 = vld [vmem:[#allocation7 + $0x13e8] sm:$0xff]  ;;  %v11482_v6 = vcombine.low %v826_v56, %v830_v57  ;;  %v878_v56 = vld [vmem:[#allocation7 + $0x1520] sm:$0xff] }
 0x1c4   :  { %6578 = vmatprep.subr.bf16.mxu0 %v11435_v7  ;;  %6922 = vmatprep.subr.bf16.mxu1 %v11437_v8  ;;  %v11484_v7 = vcombine.low %v827_v59, %v831_v60  ;;  %v11491_v8 = vcombine.high %v834_v1, %v838_v2  ;;  %v11493_v9 = vcombine.high %v835_v4, %v839_v5  ;;  %v875_v57 = vld [vmem:[#allocation7 + $0x1508] sm:$0xff] }
 0x1c5   :  { %v11492_v19 = vcombine.low %v835_v4, %v839_v5  ;;  %v879_v59 = vld [vmem:[#allocation7 + $0x1528] sm:$0xff] }
 0x1c6   :  { %v887_v4 = vld [vmem:[#allocation7 + $0x1568] sm:$0xff] }
 0x1c7   :  { %6579 = vmatpush1.bf16.msra.mxu0 %v11434_v14  ;;  %6923 = vmatpush1.bf16.msra.mxu1 %v11436_v16  ;;  %v847_v14 = vld [vmem:[#allocation7 + $0x1428] sm:$0xff]  ;;  %v11490_v16 = vcombine.low %v834_v1, %v838_v2  ;;  %v886_v1 = vld [vmem:[#allocation7 + $0x1560] sm:$0xff] }
 0x1c8   :  { %6580 = vmatprep.subr.bf16.mxu0 %v11443_v17  ;;  %6924 = vmatprep.subr.bf16.mxu1 %v11445_v18  ;;  %v162_v17 = vld [vmem:[#allocation2 + $0x40] sm:$0xff]  ;;  %v11501_v21 = vcombine.high %v843_v13, %v847_v14  ;;  %v11500_v32 = vcombine.low %v843_v13, %v847_v14  ;;  %v883_v2 = vld [vmem:[#allocation7 + $0x1548] sm:$0xff] }
 0x1c9   :  { %v178_v18 = vld [vmem:[#allocation2 + $0xc0] sm:$0xff]  ;;  %v895_v13 = vld [vmem:[#allocation7 + $0x15a8] sm:$0xff] }
 0x1cb   :  { %6581 = vmatpush1.bf16.msra.mxu0 %v11442_v23  ;;  %6925 = vmatpush1.bf16.msra.mxu1 %v11444_v24  ;;  %v854_v23 = vld [vmem:[#allocation7 + $0x1460] sm:$0xff]  ;;  %v851_v24 = vld [vmem:[#allocation7 + $0x1448] sm:$0xff] }
 0x1cc   :  { %6582 = vmatprep.subr.bf16.mxu0 %v11451_v26  ;;  %6926 = vmatprep.subr.bf16.mxu1 %v11453_v27  ;;  %v13606_v26 = vpack.c.bf16 %v178_v18, %v162_v17  ;;  %v855_v27 = vld [vmem:[#allocation7 + $0x1468] sm:$0xff]  ;;  %v11506_v41 = vcombine.low %v850_v22, %v854_v23  ;;  %v11549_v18 = vcombine.high %v891_v12, %v895_v13 }
 0x1cf   :  { %6583 = vmatpush1.bf16.msra.mxu0 %v11450_v33  ;;  %6927 = vmatpush1.bf16.msra.mxu1 %v11452_v34  ;;  %v11507_v33 = vcombine.high %v850_v22, %v854_v23  ;;  %v11509_v34 = vcombine.high %v851_v24, %v855_v27  ;;  %v903_v22 = vld [vmem:[#allocation7 + $0x15e8] sm:$0xff] }
 0x1d0   :  { %6584 = vmatprep.subr.bf16.mxu0 %v11459_v35  ;;  %6928 = vmatprep.subr.bf16.mxu1 %v11461_v36  ;;  %v858_v35 = vld [vmem:[#allocation7 + $0x1480] sm:$0xff] }
 0x1d1   :  { %v862_v36 = vld [vmem:[#allocation7 + $0x14a0] sm:$0xff] }
 0x1d2   :  { %v11514_v50 = vcombine.low %v858_v35, %v862_v36 }
 0x1d3   :  { %6585 = vmatpush1.bf16.msra.mxu0 %v11458_v42  ;;  %6929 = vmatpush1.bf16.msra.mxu1 %v11460_v43  ;;  %v11508_v42 = vcombine.low %v851_v24, %v855_v27  ;;  %v11515_v43 = vcombine.high %v858_v35, %v862_v36  ;;  %v11548_v24 = vcombine.low %v891_v12, %v895_v13  ;;  %v946_v13 = vld [vmem:[#allocation7 + $0x1740] sm:$0xff] }
 0x1d4   :  { %6586 = vmatprep.subr.bf16.mxu0 %v11467_v44  ;;  %6930 = vmatprep.subr.bf16.mxu1 %v11469_v45  ;;  %v11517_v44 = vcombine.high %v859_v39, %v863_v40  ;;  %v866_v45 = vld [vmem:[#allocation7 + $0x14c0] sm:$0xff] }
 0x1d5   :  { %v11522_v60 = vcombine.low %v866_v45, %v870_v47 }
 0x1d7   :  { %6587 = vmatpush1.bf16.msra.mxu0 %v11466_v51  ;;  %6931 = vmatpush1.bf16.msra.mxu1 %v11468_v52  ;;  %v11516_v51 = vcombine.low %v859_v39, %v863_v40  ;;  %v11523_v52 = vcombine.high %v866_v45, %v870_v47  ;;  %v914_v40 = vld [vmem:[#allocation7 + $0x1640] sm:$0xff] }
 0x1d8   :  { %6588 = vmatprep.subr.bf16.mxu0 %v11475_v54  ;;  %6932 = vmatprep.subr.bf16.mxu1 %v11477_v55  ;;  %v11525_v54 = vcombine.high %v867_v48, %v871_v49  ;;  %v874_v55 = vld [vmem:[#allocation7 + $0x1500] sm:$0xff] }
 0x1d9   :  { %v11530_v5 = vcombine.low %v874_v55, %v878_v56 }
 0x1db   :  { %6589 = vmatpush1.bf16.msra.mxu0 %v11474_v61  ;;  %6933 = vmatpush1.bf16.msra.mxu1 %v11476_v62  ;;  %v11524_v61 = vcombine.low %v867_v48, %v871_v49  ;;  %v11531_v62 = vcombine.high %v874_v55, %v878_v56  ;;  %v922_v49 = vld [vmem:[#allocation7 + $0x1680] sm:$0xff] }
 0x1dc   :  { %6590 = vmatprep.subr.bf16.mxu0 %v11483_v63  ;;  %6934 = vmatprep.subr.bf16.mxu1 %v11485_v0  ;;  %v11533_v63 = vcombine.high %v875_v57, %v879_v59  ;;  %v882_v0 = vld [vmem:[#allocation7 + $0x1540] sm:$0xff] }
 0x1dd   :  { %v11538_v14 = vcombine.low %v882_v0, %v886_v1 }
 0x1df   :  { %6591 = vmatpush1.bf16.msra.mxu0 %v11482_v6  ;;  %6935 = vmatpush1.bf16.msra.mxu1 %v11484_v7  ;;  %v11532_v6 = vcombine.low %v875_v57, %v879_v59  ;;  %v11539_v7 = vcombine.high %v882_v0, %v886_v1  ;;  %v930_v59 = vld [vmem:[#allocation7 + $0x16c0] sm:$0xff] }
 0x1e0   :  { %6592 = vmatprep.subr.bf16.mxu0 %v11491_v8  ;;  %6936 = vmatprep.subr.bf16.mxu1 %v11493_v9  ;;  %v11541_v8 = vcombine.high %v883_v2, %v887_v4  ;;  %v890_v9 = vld [vmem:[#allocation7 + $0x1580] sm:$0xff] }
 0x1e1   :  { %v11547_v17 = vcombine.high %v890_v9, %v894_v11  ;;  %v11546_v23 = vcombine.low %v890_v9, %v894_v11 }
 0x1e3   :  { %6593 = vmatpush1.bf16.msra.mxu0 %v11490_v16  ;;  %6937 = vmatpush1.bf16.msra.mxu1 %v11492_v19  ;;  %v11540_v16 = vcombine.low %v883_v2, %v887_v4  ;;  %v898_v19 = vld [vmem:[#allocation7 + $0x15c0] sm:$0xff] }
 0x1e4   :  { %6605 = vmatprep.subr.bf16.mxu0 %v11499_v20  ;;  %6949 = vmatprep.subr.bf16.mxu1 %v11501_v21  ;;  %v902_v20 = vld [vmem:[#allocation7 + $0x15e0] sm:$0xff]  ;;  %v899_v21 = vld [vmem:[#allocation7 + $0x15c8] sm:$0xff] }
 0x1e5   :  { %v11555_v27 = vcombine.high %v898_v19, %v902_v20  ;;  %v11557_v28 = vcombine.high %v899_v21, %v903_v22  ;;  %v11556_v35 = vcombine.low %v899_v21, %v903_v22  ;;  %v938_v4 = vld [vmem:[#allocation7 + $0x1700] sm:$0xff] }
 0x1e6   :  { %6595 = vmatmul.mubr.bf16.vlgmr.msra.gmra.mrb[0].mxu0 %v13606_v26  ;;  %6939 = vmatmul.mubr.bf16.vlgmr.msra.gmra.mrb[0].mxu1 %v13606_v26  ;;  %v954_v22 = vld [vmem:[#allocation7 + $0x1780] sm:$0xff] }
 0x1e7   :  { %6606 = vmatpush1.bf16.msra.mxu0 %v11498_v31  ;;  %6950 = vmatpush1.bf16.msra.mxu1 %v11500_v32  ;;  %v910_v31 = vld [vmem:[#allocation7 + $0x1620] sm:$0xff]  ;;  %v907_v32 = vld [vmem:[#allocation7 + $0x1608] sm:$0xff] }
 0x1e8   :  { %6607 = vmatprep.subr.bf16.mxu0 %v11507_v33  ;;  %6951 = vmatprep.subr.bf16.mxu1 %v11509_v34  ;;  %v911_v33 = vld [vmem:[#allocation7 + $0x1628] sm:$0xff]  ;;  %v11554_v34 = vcombine.low %v898_v19, %v902_v20  ;;  %v11563_v36 = vcombine.high %v906_v29, %v910_v31 }
 0x1e9   :  { %6637 = vmatprep.mubr.bf16.mxu0 %v13608_v38  ;;  %6981 = vmatprep.mubr.bf16.mxu1 %v13608_v38  ;;  %v11565_v39 = vcombine.high %v907_v32, %v911_v33  ;;  %v11564_v45 = vcombine.low %v907_v32, %v911_v33  ;;  %v962_v33 = vld [vmem:[#allocation7 + $0x17c0] sm:$0xff] }
 0x1eb   :  { %6608 = vmatpush1.bf16.msra.mxu0 %v11506_v41  ;;  %6952 = vmatpush1.bf16.msra.mxu1 %v11508_v42  ;;  %v918_v41 = vld [vmem:[#allocation7 + $0x1660] sm:$0xff]  ;;  %v915_v42 = vld [vmem:[#allocation7 + $0x1648] sm:$0xff] }
 0x1ec   :  { %6609 = vmatprep.subr.bf16.mxu0 %v11515_v43  ;;  %6953 = vmatprep.subr.bf16.mxu1 %v11517_v44  ;;  %v919_v43 = vld [vmem:[#allocation7 + $0x1668] sm:$0xff]  ;;  %v11562_v44 = vcombine.low %v906_v29, %v910_v31  ;;  %v11571_v47 = vcombine.high %v914_v40, %v918_v41 }
 0x1ed   :  { %v11573_v48 = vcombine.high %v915_v42, %v919_v43  ;;  %v11572_v55 = vcombine.low %v915_v42, %v919_v43  ;;  %v970_v43 = vld [vmem:[#allocation7 + $0x1800] sm:$0xff] }
 0x1ef   :  { %6610 = vmatpush1.bf16.msra.mxu0 %v11514_v50  ;;  %6954 = vmatpush1.bf16.msra.mxu1 %v11516_v51  ;;  %v926_v50 = vld [vmem:[#allocation7 + $0x16a0] sm:$0xff]  ;;  %v923_v51 = vld [vmem:[#allocation7 + $0x1688] sm:$0xff] }
 0x1f0   :  { %6611 = vmatprep.subr.bf16.mxu0 %v11523_v52  ;;  %6955 = vmatprep.subr.bf16.mxu1 %v11525_v54  ;;  %v927_v52 = vld [vmem:[#allocation7 + $0x16a8] sm:$0xff]  ;;  %v11570_v54 = vcombine.low %v914_v40, %v918_v41  ;;  %v11579_v56 = vcombine.high %v922_v49, %v926_v50 }
 0x1f1   :  { %v11581_v57 = vcombine.high %v923_v51, %v927_v52  ;;  %v11580_v0 = vcombine.low %v923_v51, %v927_v52 }
 0x1f3   :  { %6612 = vmatpush1.bf16.msra.mxu0 %v11522_v60  ;;  %6956 = vmatpush1.bf16.msra.mxu1 %v11524_v61  ;;  %v934_v60 = vld [vmem:[#allocation7 + $0x16e0] sm:$0xff]  ;;  %v931_v61 = vld [vmem:[#allocation7 + $0x16c8] sm:$0xff] }
 0x1f4   :  { %6613 = vmatprep.subr.bf16.mxu0 %v11531_v62  ;;  %6957 = vmatprep.subr.bf16.mxu1 %v11533_v63  ;;  %v935_v62 = vld [vmem:[#allocation7 + $0x16e8] sm:$0xff]  ;;  %v11578_v63 = vcombine.low %v922_v49, %v926_v50  ;;  %v11587_v1 = vcombine.high %v930_v59, %v934_v60  ;;  %v164_v49 = vld [vmem:[#allocation2 + $0x50] sm:$0xff] }
 0x1f5   :  { %v11589_v2 = vcombine.high %v931_v61, %v935_v62  ;;  %v11588_v9 = vcombine.low %v931_v61, %v935_v62  ;;  %v180_v50 = vld [vmem:[#allocation2 + $0xd0] sm:$0xff]  ;;  %v167_v61 = vld [vmem:[#allocation2 + $0x68] sm:$0xff] }
 0x1f6   :  { %v183_v62 = vld [vmem:[#allocation2 + $0xe8] sm:$0xff] }
 0x1f7   :  { %6614 = vmatpush1.bf16.msra.mxu0 %v11530_v5  ;;  %6958 = vmatpush1.bf16.msra.mxu1 %v11532_v6  ;;  %v942_v5 = vld [vmem:[#allocation7 + $0x1720] sm:$0xff]  ;;  %v939_v6 = vld [vmem:[#allocation7 + $0x1708] sm:$0xff] }
 0x1f8   :  { %6615 = vmatprep.subr.bf16.mxu0 %v11539_v7  ;;  %6959 = vmatprep.subr.bf16.mxu1 %v11541_v8  ;;  %v943_v7 = vld [vmem:[#allocation7 + $0x1728] sm:$0xff]  ;;  %v11586_v8 = vcombine.low %v930_v59, %v934_v60  ;;  %v11595_v11 = vcombine.high %v938_v4, %v942_v5  ;;  %v13614_v59 = vpack.c.bf16 %v180_v50, %v164_v49 }
 0x1f9   :  { %v11597_v12 = vcombine.high %v939_v6, %v943_v7  ;;  %v11596_v19 = vcombine.low %v939_v6, %v943_v7  ;;  %v983_v60 = vld [vmem:[#allocation7 + $0x1868] sm:$0xff]  ;;  %v13616_v6 = vpack.c.bf16 %v183_v62, %v167_v61 }
 0x1fa   :  { %v987_v7 = vld [vmem:[#allocation7 + $0x1888] sm:$0xff] }
 0x1fb   :  { %6616 = vmatpush1.bf16.msra.mxu0 %v11538_v14  ;;  %6960 = vmatpush1.bf16.msra.mxu1 %v11540_v16  ;;  %v950_v14 = vld [vmem:[#allocation7 + $0x1760] sm:$0xff]  ;;  %v947_v16 = vld [vmem:[#allocation7 + $0x1748] sm:$0xff] }
 0x1fc   :  { %6617 = vmatprep.subr.bf16.mxu0 %v11547_v17  ;;  %6961 = vmatprep.subr.bf16.mxu1 %v11549_v18  ;;  %v951_v17 = vld [vmem:[#allocation7 + $0x1768] sm:$0xff]  ;;  %v11594_v18 = vcombine.low %v938_v4, %v942_v5  ;;  %v11603_v20 = vcombine.high %v946_v13, %v950_v14  ;;  %v986_v4 = vld [vmem:[#allocation7 + $0x1880] sm:$0xff] }
 0x1fd   :  { %v11605_v21 = vcombine.high %v947_v16, %v951_v17  ;;  %v11604_v29 = vcombine.low %v947_v16, %v951_v17  ;;  %v990_v5 = vld [vmem:[#allocation7 + $0x18a0] sm:$0xff]  ;;  %v995_v17 = vld [vmem:[#allocation7 + $0x18c8] sm:$0xff] }
 0x1fe   :  { %v998_v16 = vld [vmem:[#allocation7 + $0x18e0] sm:$0xff] }
 0x1ff   :  { %6618 = vmatpush1.bf16.msra.mxu0 %v11546_v23  ;;  %6962 = vmatpush1.bf16.msra.mxu1 %v11548_v24  ;;  %v958_v23 = vld [vmem:[#allocation7 + $0x17a0] sm:$0xff]  ;;  %v955_v24 = vld [vmem:[#allocation7 + $0x1788] sm:$0xff] }
 0x200   :  { %6619 = vmatprep.subr.bf16.mxu0 %v11555_v27  ;;  %6963 = vmatprep.subr.bf16.mxu1 %v11557_v28  ;;  %v959_v27 = vld [vmem:[#allocation7 + $0x17a8] sm:$0xff]  ;;  %v11602_v28 = vcombine.low %v946_v13, %v950_v14  ;;  %v11611_v31 = vcombine.high %v954_v22, %v958_v23  ;;  %v994_v14 = vld [vmem:[#allocation7 + $0x18c0] sm:$0xff] }
 0x201   :  { %v11613_v32 = vcombine.high %v955_v24, %v959_v27  ;;  %v11612_v40 = vcombine.low %v955_v24, %v959_v27  ;;  %v1006_v24 = vld [vmem:[#allocation7 + $0x1920] sm:$0xff]  ;;  %v1003_v27 = vld [vmem:[#allocation7 + $0x1908] sm:$0xff] }
 0x203   :  { %6620 = vmatpush1.bf16.msra.mxu0 %v11554_v34  ;;  %6964 = vmatpush1.bf16.msra.mxu1 %v11556_v35  ;;  %v966_v34 = vld [vmem:[#allocation7 + $0x17e0] sm:$0xff]  ;;  %v963_v35 = vld [vmem:[#allocation7 + $0x17c8] sm:$0xff] }
 0x204   :  { %6621 = vmatprep.subr.bf16.mxu0 %v11563_v36  ;;  %6965 = vmatprep.subr.bf16.mxu1 %v11565_v39  ;;  %v967_v36 = vld [vmem:[#allocation7 + $0x17e8] sm:$0xff]  ;;  %v11610_v39 = vcombine.low %v954_v22, %v958_v23  ;;  %v11619_v41 = vcombine.high %v962_v33, %v966_v34  ;;  %v1002_v23 = vld [vmem:[#allocation7 + $0x1900] sm:$0xff] }
 0x205   :  { %v11621_v42 = vcombine.high %v963_v35, %v967_v36  ;;  %v11620_v51 = vcombine.low %v963_v35, %v967_v36  ;;  %v1014_v35 = vld [vmem:[#allocation7 + $0x1960] sm:$0xff]  ;;  %v1011_v36 = vld [vmem:[#allocation7 + $0x1948] sm:$0xff] }
 0x207   :  { %6622 = vmatpush1.bf16.msra.mxu0 %v11562_v44  ;;  %6966 = vmatpush1.bf16.msra.mxu1 %v11564_v45  ;;  %v974_v44 = vld [vmem:[#allocation7 + $0x1820] sm:$0xff]  ;;  %v971_v45 = vld [vmem:[#allocation7 + $0x1808] sm:$0xff] }
 0x208   :  { %6623 = vmatprep.subr.bf16.mxu0 %v11571_v47  ;;  %6967 = vmatprep.subr.bf16.mxu1 %v11573_v48  ;;  %v975_v47 = vld [vmem:[#allocation7 + $0x1828] sm:$0xff]  ;;  %v11618_v48 = vcombine.low %v962_v33, %v966_v34  ;;  %v11627_v52 = vcombine.high %v970_v43, %v974_v44  ;;  %v1010_v34 = vld [vmem:[#allocation7 + $0x1940] sm:$0xff] }
 0x209   :  { %v11666_v49 = vcombine.low %v1010_v34, %v1014_v35 }
 0x20b   :  { %6624 = vmatpush1.bf16.msra.mxu0 %v11570_v54  ;;  %6968 = vmatpush1.bf16.msra.mxu1 %v11572_v55  ;;  %v11629_v54 = vcombine.high %v971_v45, %v975_v47  ;;  %v978_v55 = vld [vmem:[#allocation7 + $0x1840] sm:$0xff] }
 0x20c   :  { %6625 = vmatprep.subr.bf16.mxu0 %v11579_v56  ;;  %6969 = vmatprep.subr.bf16.mxu1 %v11581_v57  ;;  %v982_v56 = vld [vmem:[#allocation7 + $0x1860] sm:$0xff]  ;;  %v979_v57 = vld [vmem:[#allocation7 + $0x1848] sm:$0xff] }
 0x20f   :  { %6626 = vmatpush1.bf16.msra.mxu0 %v11578_v63  ;;  %6970 = vmatpush1.bf16.msra.mxu1 %v11580_v0  ;;  %v11626_v63 = vcombine.low %v970_v43, %v974_v44  ;;  %v11628_v0 = vcombine.low %v971_v45, %v975_v47  ;;  %v1018_v44 = vld [vmem:[#allocation7 + $0x1980] sm:$0xff]  ;;  %v1019_v47 = vld [vmem:[#allocation7 + $0x1988] sm:$0xff] }
 0x210   :  { %6627 = vmatprep.subr.bf16.mxu0 %v11587_v1  ;;  %6971 = vmatprep.subr.bf16.mxu1 %v11589_v2  ;;  %v11635_v1 = vcombine.high %v978_v55, %v982_v56  ;;  %v11637_v2 = vcombine.high %v979_v57, %v983_v60  ;;  %v1022_v45 = vld [vmem:[#allocation7 + $0x19a0] sm:$0xff] }
 0x213   :  { %6628 = vmatpush1.bf16.msra.mxu0 %v11586_v8  ;;  %6972 = vmatpush1.bf16.msra.mxu1 %v11588_v9  ;;  %v991_v8 = vld [vmem:[#allocation7 + $0x18a8] sm:$0xff]  ;;  %v11634_v9 = vcombine.low %v978_v55, %v982_v56  ;;  %v1030_v55 = vld [vmem:[#allocation7 + $0x19e0] sm:$0xff] }
 0x214   :  { %6629 = vmatprep.subr.bf16.mxu0 %v11595_v11  ;;  %6973 = vmatprep.subr.bf16.mxu1 %v11597_v12  ;;  %v11636_v11 = vcombine.low %v979_v57, %v983_v60  ;;  %v11643_v12 = vcombine.high %v986_v4, %v990_v5  ;;  %v11645_v13 = vcombine.high %v987_v7, %v991_v8  ;;  %v1027_v56 = vld [vmem:[#allocation7 + $0x19c8] sm:$0xff] }
 0x215   :  { %v1031_v57 = vld [vmem:[#allocation7 + $0x19e8] sm:$0xff]  ;;  %v11674_v60 = vcombine.low %v1018_v44, %v1022_v45 }
 0x217   :  { %6630 = vmatpush1.bf16.msra.mxu0 %v11594_v18  ;;  %6974 = vmatpush1.bf16.msra.mxu1 %v11596_v19  ;;  %v999_v18 = vld [vmem:[#allocation7 + $0x18e8] sm:$0xff]  ;;  %v11642_v19 = vcombine.low %v986_v4, %v990_v5 }
 0x218   :  { %6631 = vmatprep.subr.bf16.mxu0 %v11603_v20  ;;  %6975 = vmatprep.subr.bf16.mxu1 %v11605_v21  ;;  %v11644_v20 = vcombine.low %v987_v7, %v991_v8  ;;  %v11651_v21 = vcombine.high %v994_v14, %v998_v16  ;;  %v11653_v22 = vcombine.high %v995_v17, %v999_v18  ;;  %v1039_v4 = vld [vmem:[#allocation7 + $0x1a28] sm:$0xff] }
 0x219   :  { %v11684_v7 = vcombine.low %v1027_v56, %v1031_v57 }
 0x21b   :  { %6632 = vmatpush1.bf16.msra.mxu0 %v11602_v28  ;;  %6976 = vmatpush1.bf16.msra.mxu1 %v11604_v29  ;;  %v1007_v28 = vld [vmem:[#allocation7 + $0x1928] sm:$0xff]  ;;  %v11650_v29 = vcombine.low %v994_v14, %v998_v16 }
 0x21c   :  { %6633 = vmatprep.subr.bf16.mxu0 %v11611_v31  ;;  %6977 = vmatprep.subr.bf16.mxu1 %v11613_v32  ;;  %v11652_v31 = vcombine.low %v995_v17, %v999_v18  ;;  %v11659_v32 = vcombine.high %v1002_v23, %v1006_v24  ;;  %v11661_v33 = vcombine.high %v1003_v27, %v1007_v28  ;;  %v1047_v14 = vld [vmem:[#allocation7 + $0x1a68] sm:$0xff] }
 0x21f   :  { %6634 = vmatpush1.bf16.msra.mxu0 %v11610_v39  ;;  %6978 = vmatpush1.bf16.msra.mxu1 %v11612_v40  ;;  %v1015_v39 = vld [vmem:[#allocation7 + $0x1968] sm:$0xff]  ;;  %v11658_v40 = vcombine.low %v1002_v23, %v1006_v24 }
 0x220   :  { %6635 = vmatprep.subr.bf16.mxu0 %v11619_v41  ;;  %6979 = vmatprep.subr.bf16.mxu1 %v11621_v42  ;;  %v11660_v41 = vcombine.low %v1003_v27, %v1007_v28  ;;  %v11667_v42 = vcombine.high %v1010_v34, %v1014_v35  ;;  %v11669_v43 = vcombine.high %v1011_v36, %v1015_v39  ;;  %v1055_v23 = vld [vmem:[#allocation7 + $0x1aa8] sm:$0xff] }
 0x221   :  { %v11668_v50 = vcombine.low %v1011_v36, %v1015_v39  ;;  %v1063_v34 = vld [vmem:[#allocation7 + $0x1ae8] sm:$0xff] }
 0x223   :  { %6636 = vmatpush1.bf16.msra.mxu0 %v11618_v48  ;;  %6980 = vmatpush1.bf16.msra.mxu1 %v11620_v51  ;;  %v1023_v48 = vld [vmem:[#allocation7 + $0x19a8] sm:$0xff]  ;;  %v11675_v51 = vcombine.high %v1018_v44, %v1022_v45 }
 0x224   :  { %6648 = vmatprep.subr.bf16.mxu0 %v11627_v52  ;;  %6992 = vmatprep.subr.bf16.mxu1 %v11629_v54  ;;  %v11677_v52 = vcombine.high %v1019_v47, %v1023_v48  ;;  %v1026_v54 = vld [vmem:[#allocation7 + $0x19c0] sm:$0xff]  ;;  %v11676_v61 = vcombine.low %v1019_v47, %v1023_v48  ;;  %v1071_v44 = vld [vmem:[#allocation7 + $0x1b28] sm:$0xff] }
 0x225   :  { %v11683_v62 = vcombine.high %v1026_v54, %v1030_v55  ;;  %v11682_v5 = vcombine.low %v1026_v54, %v1030_v55  ;;  %v1079_v54 = vld [vmem:[#allocation7 + $0x1b68] sm:$0xff] }
 0x226   :  { %6638 = vmatmul.mubr.bf16.vlgmr.msra.gmra.mrb[0].mxu0 %v13614_v59  ;;  %6982 = vmatmul.mubr.bf16.vlgmr.msra.gmra.mrb[0].mxu1 %v13614_v59 }
 0x227   :  { %6649 = vmatpush1.bf16.msra.mxu0 %v11626_v63  ;;  %6993 = vmatpush1.bf16.msra.mxu1 %v11628_v0  ;;  %v11685_v63 = vcombine.high %v1027_v56, %v1031_v57  ;;  %v1034_v0 = vld [vmem:[#allocation7 + $0x1a00] sm:$0xff] }
 0x228   :  { %6650 = vmatprep.subr.bf16.mxu0 %v11635_v1  ;;  %6994 = vmatprep.subr.bf16.mxu1 %v11637_v2  ;;  %v1038_v1 = vld [vmem:[#allocation7 + $0x1a20] sm:$0xff]  ;;  %v1035_v2 = vld [vmem:[#allocation7 + $0x1a08] sm:$0xff] }
 0x229   :  { %6680 = vmatprep.mubr.bf16.mxu0 %v13616_v6  ;;  %7024 = vmatprep.mubr.bf16.mxu1 %v13616_v6  ;;  %v11691_v8 = vcombine.high %v1034_v0, %v1038_v1  ;;  %v11690_v16 = vcombine.low %v1034_v0, %v1038_v1  ;;  %v11692_v17 = vcombine.low %v1035_v2, %v1039_v4  ;;  %v1087_v0 = vld [vmem:[#allocation7 + $0x1ba8] sm:$0xff] }
 0x22b   :  { %6651 = vmatpush1.bf16.msra.mxu0 %v11634_v9  ;;  %6995 = vmatpush1.bf16.msra.mxu1 %v11636_v11  ;;  %v11693_v9 = vcombine.high %v1035_v2, %v1039_v4  ;;  %v1042_v11 = vld [vmem:[#allocation7 + $0x1a40] sm:$0xff] }
 0x22c   :  { %6652 = vmatprep.subr.bf16.mxu0 %v11643_v12  ;;  %6996 = vmatprep.subr.bf16.mxu1 %v11645_v13  ;;  %v1046_v12 = vld [vmem:[#allocation7 + $0x1a60] sm:$0xff]  ;;  %v1043_v13 = vld [vmem:[#allocation7 + $0x1a48] sm:$0xff] }
 0x22d   :  { %v11699_v18 = vcombine.high %v1042_v11, %v1046_v12  ;;  %v11698_v24 = vcombine.low %v1042_v11, %v1046_v12  ;;  %v11700_v27 = vcombine.low %v1043_v13, %v1047_v14  ;;  %v1095_v11 = vld [vmem:[#allocation7 + $0x1be8] sm:$0xff] }
 0x22f   :  { %6653 = vmatpush1.bf16.msra.mxu0 %v11642_v19  ;;  %6997 = vmatpush1.bf16.msra.mxu1 %v11644_v20  ;;  %v11701_v19 = vcombine.high %v1043_v13, %v1047_v14  ;;  %v1050_v20 = vld [vmem:[#allocation7 + $0x1a80] sm:$0xff] }
 0x230   :  { %6654 = vmatprep.subr.bf16.mxu0 %v11651_v21  ;;  %6998 = vmatprep.subr.bf16.mxu1 %v11653_v22  ;;  %v1054_v21 = vld [vmem:[#allocation7 + $0x1aa0] sm:$0xff]  ;;  %v1051_v22 = vld [vmem:[#allocation7 + $0x1a88] sm:$0xff] }
 0x231   :  { %v11707_v28 = vcombine.high %v1050_v20, %v1054_v21  ;;  %v11706_v35 = vcombine.low %v1050_v20, %v1054_v21  ;;  %v11708_v36 = vcombine.low %v1051_v22, %v1055_v23  ;;  %v1103_v20 = vld [vmem:[#allocation7 + $0x1c28] sm:$0xff] }
 0x233   :  { %6655 = vmatpush1.bf16.msra.mxu0 %v11650_v29  ;;  %6999 = vmatpush1.bf16.msra.mxu1 %v11652_v31  ;;  %v11709_v29 = vcombine.high %v1051_v22, %v1055_v23  ;;  %v1058_v31 = vld [vmem:[#allocation7 + $0x1ac0] sm:$0xff] }
 0x234   :  { %6656 = vmatprep.subr.bf16.mxu0 %v11659_v32  ;;  %7000 = vmatprep.subr.bf16.mxu1 %v11661_v33  ;;  %v1062_v32 = vld [vmem:[#allocation7 + $0x1ae0] sm:$0xff]  ;;  %v1059_v33 = vld [vmem:[#allocation7 + $0x1ac8] sm:$0xff] }
 0x235   :  { %v11715_v39 = vcombine.high %v1058_v31, %v1062_v32  ;;  %v11714_v45 = vcombine.low %v1058_v31, %v1062_v32  ;;  %v11716_v47 = vcombine.low %v1059_v33, %v1063_v34  ;;  %v166_v22 = vld [vmem:[#allocation2 + $0x60] sm:$0xff]  ;;  %v1107_v32 = vld [vmem:[#allocation7 + $0x1c48] sm:$0xff] }
 0x236   :  { %v182_v23 = vld [vmem:[#allocation2 + $0xe0] sm:$0xff] }
 0x237   :  { %6657 = vmatpush1.bf16.msra.mxu0 %v11658_v40  ;;  %7001 = vmatpush1.bf16.msra.mxu1 %v11660_v41  ;;  %v11717_v40 = vcombine.high %v1059_v33, %v1063_v34  ;;  %v1066_v41 = vld [vmem:[#allocation7 + $0x1b00] sm:$0xff]  ;;  %v13622_v33 = vpack.c.bf16 %v182_v23, %v166_v22  ;;  %v1111_v34 = vld [vmem:[#allocation7 + $0x1c68] sm:$0xff] }
 0x238   :  { %6658 = vmatprep.subr.bf16.mxu0 %v11667_v42  ;;  %7002 = vmatprep.subr.bf16.mxu1 %v11669_v43  ;;  %v1070_v42 = vld [vmem:[#allocation7 + $0x1b20] sm:$0xff]  ;;  %v1067_v43 = vld [vmem:[#allocation7 + $0x1b08] sm:$0xff] }
 0x239   :  { %v11723_v48 = vcombine.high %v1066_v41, %v1070_v42  ;;  %v11722_v55 = vcombine.low %v1066_v41, %v1070_v42  ;;  %v11724_v56 = vcombine.low %v1067_v43, %v1071_v44  ;;  %v1110_v31 = vld [vmem:[#allocation7 + $0x1c60] sm:$0xff]  ;;  %v11765_v42 = vcombine.high %v1107_v32, %v1111_v34  ;;  %v1147_v22 = vld [vmem:[#allocation7 + $0x1d88] sm:$0xff] }
 0x23a   :  { %v1151_v23 = vld [vmem:[#allocation7 + $0x1da8] sm:$0xff] }
 0x23b   :  { %6659 = vmatpush1.bf16.msra.mxu0 %v11666_v49  ;;  %7003 = vmatpush1.bf16.msra.mxu1 %v11668_v50  ;;  %v11725_v49 = vcombine.high %v1067_v43, %v1071_v44  ;;  %v1074_v50 = vld [vmem:[#allocation7 + $0x1b40] sm:$0xff] }
 0x23c   :  { %6660 = vmatprep.subr.bf16.mxu0 %v11675_v51  ;;  %7004 = vmatprep.subr.bf16.mxu1 %v11677_v52  ;;  %v1078_v51 = vld [vmem:[#allocation7 + $0x1b60] sm:$0xff]  ;;  %v1075_v52 = vld [vmem:[#allocation7 + $0x1b48] sm:$0xff] }
 0x23d   :  { %v11731_v57 = vcombine.high %v1074_v50, %v1078_v51  ;;  %v11730_v1 = vcombine.low %v1074_v50, %v1078_v51  ;;  %v11732_v2 = vcombine.low %v1075_v52, %v1079_v54  ;;  %v1114_v43 = vld [vmem:[#allocation7 + $0x1c80] sm:$0xff]  ;;  %v11764_v50 = vcombine.low %v1107_v32, %v1111_v34  ;;  %v1155_v34 = vld [vmem:[#allocation7 + $0x1dc8] sm:$0xff] }
 0x23e   :  { %v1118_v44 = vld [vmem:[#allocation7 + $0x1ca0] sm:$0xff] }
 0x23f   :  { %6661 = vmatpush1.bf16.msra.mxu0 %v11674_v60  ;;  %7005 = vmatpush1.bf16.msra.mxu1 %v11676_v61  ;;  %v11733_v60 = vcombine.high %v1075_v52, %v1079_v54  ;;  %v1082_v61 = vld [vmem:[#allocation7 + $0x1b80] sm:$0xff]  ;;  %v11771_v51 = vcombine.high %v1114_v43, %v1118_v44 }
 0x240   :  { %6662 = vmatprep.subr.bf16.mxu0 %v11683_v62  ;;  %7006 = vmatprep.subr.bf16.mxu1 %v11685_v63  ;;  %v1086_v62 = vld [vmem:[#allocation7 + $0x1ba0] sm:$0xff]  ;;  %v1083_v63 = vld [vmem:[#allocation7 + $0x1b88] sm:$0xff] }
 0x241   :  { %v11739_v4 = vcombine.high %v1082_v61, %v1086_v62  ;;  %v11738_v12 = vcombine.low %v1082_v61, %v1086_v62  ;;  %v11740_v13 = vcombine.low %v1083_v63, %v1087_v0  ;;  %v1122_v54 = vld [vmem:[#allocation7 + $0x1cc0] sm:$0xff] }
 0x242   :  { %v1158_v32 = vld [vmem:[#allocation7 + $0x1de0] sm:$0xff] }
 0x243   :  { %6663 = vmatpush1.bf16.msra.mxu0 %v11682_v5  ;;  %7007 = vmatpush1.bf16.msra.mxu1 %v11684_v7  ;;  %v11741_v5 = vcombine.high %v1083_v63, %v1087_v0  ;;  %v1090_v7 = vld [vmem:[#allocation7 + $0x1bc0] sm:$0xff] }
 0x244   :  { %6664 = vmatprep.subr.bf16.mxu0 %v11691_v8  ;;  %7008 = vmatprep.subr.bf16.mxu1 %v11693_v9  ;;  %v1094_v8 = vld [vmem:[#allocation7 + $0x1be0] sm:$0xff]  ;;  %v1091_v9 = vld [vmem:[#allocation7 + $0x1bc8] sm:$0xff] }
 0x245   :  { %v11747_v14 = vcombine.high %v1090_v7, %v1094_v8  ;;  %v11746_v21 = vcombine.low %v1090_v7, %v1094_v8  ;;  %v1130_v0 = vld [vmem:[#allocation7 + $0x1d00] sm:$0xff] }
 0x247   :  { %6665 = vmatpush1.bf16.msra.mxu0 %v11690_v16  ;;  %7009 = vmatpush1.bf16.msra.mxu1 %v11692_v17  ;;  %v11749_v16 = vcombine.high %v1091_v9, %v1095_v11  ;;  %v1098_v17 = vld [vmem:[#allocation7 + $0x1c00] sm:$0xff] }
 0x248   :  { %6666 = vmatprep.subr.bf16.mxu0 %v11699_v18  ;;  %7010 = vmatprep.subr.bf16.mxu1 %v11701_v19  ;;  %v1102_v18 = vld [vmem:[#allocation7 + $0x1c20] sm:$0xff]  ;;  %v1099_v19 = vld [vmem:[#allocation7 + $0x1c08] sm:$0xff] }
 0x24b   :  { %6667 = vmatpush1.bf16.msra.mxu0 %v11698_v24  ;;  %7011 = vmatpush1.bf16.msra.mxu1 %v11700_v27  ;;  %v11748_v24 = vcombine.low %v1091_v9, %v1095_v11  ;;  %v11755_v27 = vcombine.high %v1098_v17, %v1102_v18  ;;  %v1138_v11 = vld [vmem:[#allocation7 + $0x1d40] sm:$0xff] }
 0x24c   :  { %6668 = vmatprep.subr.bf16.mxu0 %v11707_v28  ;;  %7012 = vmatprep.subr.bf16.mxu1 %v11709_v29  ;;  %v11757_v28 = vcombine.high %v1099_v19, %v1103_v20  ;;  %v1106_v29 = vld [vmem:[#allocation7 + $0x1c40] sm:$0xff] }
 0x24d   :  { %v11763_v41 = vcombine.high %v1106_v29, %v1110_v31 }
 0x24f   :  { %6669 = vmatpush1.bf16.msra.mxu0 %v11706_v35  ;;  %7013 = vmatpush1.bf16.msra.mxu1 %v11708_v36  ;;  %v169_v35 = vld [vmem:[#allocation2 + $0x78] sm:$0xff] }
 0x250   :  { %6670 = vmatprep.subr.bf16.mxu0 %v11715_v39  ;;  %7014 = vmatprep.subr.bf16.mxu1 %v11717_v40  ;;  %v185_v36 = vld [vmem:[#allocation2 + $0xf8] sm:$0xff]  ;;  %v11754_v39 = vcombine.low %v1098_v17, %v1102_v18  ;;  %v11756_v40 = vcombine.low %v1099_v19, %v1103_v20  ;;  %v1146_v20 = vld [vmem:[#allocation7 + $0x1d80] sm:$0xff] }
 0x253   :  { %6671 = vmatpush1.bf16.msra.mxu0 %v11714_v45  ;;  %7015 = vmatpush1.bf16.msra.mxu1 %v11716_v47  ;;  %v13624_v45 = vpack.c.bf16 %v185_v36, %v169_v35  ;;  %v1115_v47 = vld [vmem:[#allocation7 + $0x1c88] sm:$0xff] }
 0x254   :  { %6672 = vmatprep.subr.bf16.mxu0 %v11723_v48  ;;  %7016 = vmatprep.subr.bf16.mxu1 %v11725_v49  ;;  %v1119_v48 = vld [vmem:[#allocation7 + $0x1ca8] sm:$0xff]  ;;  %v11762_v49 = vcombine.low %v1106_v29, %v1110_v31  ;;  %v11805_v29 = vcombine.high %v1147_v22, %v1151_v23  ;;  %v1154_v31 = vld [vmem:[#allocation7 + $0x1dc0] sm:$0xff] }
 0x255   :  { %v11773_v52 = vcombine.high %v1115_v47, %v1119_v48  ;;  %v11772_v61 = vcombine.low %v1115_v47, %v1119_v48  ;;  %v1159_v35 = vld [vmem:[#allocation7 + $0x1de8] sm:$0xff]  ;;  %v11810_v48 = vcombine.low %v1154_v31, %v1158_v32 }
 0x256   :  { %v1167_v47 = vld [vmem:[#allocation7 + $0x1e28] sm:$0xff] }
 0x257   :  { %6673 = vmatpush1.bf16.msra.mxu0 %v11722_v55  ;;  %7017 = vmatpush1.bf16.msra.mxu1 %v11724_v56  ;;  %v1126_v55 = vld [vmem:[#allocation7 + $0x1ce0] sm:$0xff]  ;;  %v1123_v56 = vld [vmem:[#allocation7 + $0x1cc8] sm:$0xff] }
 0x258   :  { %6674 = vmatprep.subr.bf16.mxu0 %v11731_v57  ;;  %7018 = vmatprep.subr.bf16.mxu1 %v11733_v60  ;;  %v1127_v57 = vld [vmem:[#allocation7 + $0x1ce8] sm:$0xff]  ;;  %v11770_v60 = vcombine.low %v1114_v43, %v1118_v44  ;;  %v11779_v62 = vcombine.high %v1122_v54, %v1126_v55  ;;  %v1166_v43 = vld [vmem:[#allocation7 + $0x1e20] sm:$0xff] }
 0x259   :  { %v11781_v63 = vcombine.high %v1123_v56, %v1127_v57  ;;  %v11780_v7 = vcombine.low %v1123_v56, %v1127_v57  ;;  %v1163_v44 = vld [vmem:[#allocation7 + $0x1e08] sm:$0xff] }
 0x25a   :  { %v1175_v56 = vld [vmem:[#allocation7 + $0x1e68] sm:$0xff] }
 0x25b   :  { %6675 = vmatpush1.bf16.msra.mxu0 %v11730_v1  ;;  %7019 = vmatpush1.bf16.msra.mxu1 %v11732_v2  ;;  %v1134_v1 = vld [vmem:[#allocation7 + $0x1d20] sm:$0xff]  ;;  %v1131_v2 = vld [vmem:[#allocation7 + $0x1d08] sm:$0xff] }
 0x25c   :  { %6676 = vmatprep.subr.bf16.mxu0 %v11739_v4  ;;  %7020 = vmatprep.subr.bf16.mxu1 %v11741_v5  ;;  %v1135_v4 = vld [vmem:[#allocation7 + $0x1d28] sm:$0xff]  ;;  %v11778_v5 = vcombine.low %v1122_v54, %v1126_v55  ;;  %v11787_v8 = vcombine.high %v1130_v0, %v1134_v1  ;;  %v1174_v54 = vld [vmem:[#allocation7 + $0x1e60] sm:$0xff] }
 0x25d   :  { %v11789_v9 = vcombine.high %v1131_v2, %v1135_v4  ;;  %v11788_v17 = vcombine.low %v1131_v2, %v1135_v4  ;;  %v1171_v55 = vld [vmem:[#allocation7 + $0x1e48] sm:$0xff] }
 0x25e   :  { %v1183_v2 = vld [vmem:[#allocation7 + $0x1ea8] sm:$0xff] }
 0x25f   :  { %6677 = vmatpush1.bf16.msra.mxu0 %v11738_v12  ;;  %7021 = vmatpush1.bf16.msra.mxu1 %v11740_v13  ;;  %v1142_v12 = vld [vmem:[#allocation7 + $0x1d60] sm:$0xff]  ;;  %v1139_v13 = vld [vmem:[#allocation7 + $0x1d48] sm:$0xff] }
 0x260   :  { %6678 = vmatprep.subr.bf16.mxu0 %v11747_v14  ;;  %7022 = vmatprep.subr.bf16.mxu1 %v11749_v16  ;;  %v1143_v14 = vld [vmem:[#allocation7 + $0x1d68] sm:$0xff]  ;;  %v11786_v16 = vcombine.low %v1130_v0, %v1134_v1  ;;  %v11795_v18 = vcombine.high %v1138_v11, %v1142_v12  ;;  %v1182_v0 = vld [vmem:[#allocation7 + $0x1ea0] sm:$0xff] }
 0x261   :  { %v11797_v19 = vcombine.high %v1139_v13, %v1143_v14  ;;  %v1179_v1 = vld [vmem:[#allocation7 + $0x1e88] sm:$0xff] }
 0x263   :  { %6679 = vmatpush1.bf16.msra.mxu0 %v11746_v21  ;;  %7023 = vmatpush1.bf16.msra.mxu1 %v11748_v24  ;;  %v1150_v21 = vld [vmem:[#allocation7 + $0x1da0] sm:$0xff]  ;;  %v11794_v24 = vcombine.low %v1138_v11, %v1142_v12  ;;  %v1187_v12 = vld [vmem:[#allocation7 + $0x1ec8] sm:$0xff] }
 0x264   :  { %6691 = vmatprep.subr.bf16.mxu0 %v11755_v27  ;;  %7035 = vmatprep.subr.bf16.mxu1 %v11757_v28  ;;  %v11796_v27 = vcombine.low %v1139_v13, %v1143_v14  ;;  %v11803_v28 = vcombine.high %v1146_v20, %v1150_v21  ;;  %v11802_v36 = vcombine.low %v1146_v20, %v1150_v21  ;;  %v1190_v11 = vld [vmem:[#allocation7 + $0x1ee0] sm:$0xff]  ;;  %v1191_v13 = vld [vmem:[#allocation7 + $0x1ee8] sm:$0xff] }
 0x265   :  { %v1198_v20 = vld [vmem:[#allocation7 + $0x1f20] sm:$0xff]  ;;  %v1195_v21 = vld [vmem:[#allocation7 + $0x1f08] sm:$0xff] }
 0x266   :  { %6681 = vmatmul.mubr.bf16.vlgmr.msra.gmra.mrb[0].mxu0 %v13622_v33  ;;  %7025 = vmatmul.mubr.bf16.vlgmr.msra.gmra.mrb[0].mxu1 %v13622_v33 }
 0x267   :  { %6692 = vmatpush1.bf16.msra.mxu0 %v11754_v39  ;;  %7036 = vmatpush1.bf16.msra.mxu1 %v11756_v40  ;;  %v11804_v39 = vcombine.low %v1147_v22, %v1151_v23  ;;  %v11811_v40 = vcombine.high %v1154_v31, %v1158_v32  ;;  %v1199_v22 = vld [vmem:[#allocation7 + $0x1f28] sm:$0xff]  ;;  %v1206_v31 = vld [vmem:[#allocation7 + $0x1f60] sm:$0xff] }
 0x268   :  { %6693 = vmatprep.subr.bf16.mxu0 %v11763_v41  ;;  %7037 = vmatprep.subr.bf16.mxu1 %v11765_v42  ;;  %v11813_v41 = vcombine.high %v1155_v34, %v1159_v35  ;;  %v1162_v42 = vld [vmem:[#allocation7 + $0x1e00] sm:$0xff]  ;;  %v1203_v32 = vld [vmem:[#allocation7 + $0x1f48] sm:$0xff] }
 0x269   :  { %6723 = vmatprep.mubr.bf16.mxu0 %v13624_v45  ;;  %7067 = vmatprep.mubr.bf16.mxu1 %v13624_v45  ;;  %v11818_v57 = vcombine.low %v1162_v42, %v1166_v43 }
 0x26b   :  { %6694 = vmatpush1.bf16.msra.mxu0 %v11762_v49  ;;  %7038 = vmatpush1.bf16.msra.mxu1 %v11764_v50  ;;  %v11812_v49 = vcombine.low %v1155_v34, %v1159_v35  ;;  %v11819_v50 = vcombine.high %v1162_v42, %v1166_v43  ;;  %v1207_v34 = vld [vmem:[#allocation7 + $0x1f68] sm:$0xff]  ;;  %v1214_v42 = vld [vmem:[#allocation7 + $0x1fa0] sm:$0xff] }
 0x26c   :  { %6695 = vmatprep.subr.bf16.mxu0 %v11771_v51  ;;  %7039 = vmatprep.subr.bf16.mxu1 %v11773_v52  ;;  %v11821_v51 = vcombine.high %v1163_v44, %v1167_v47  ;;  %v1170_v52 = vld [vmem:[#allocation7 + $0x1e40] sm:$0xff]  ;;  %v1211_v43 = vld [vmem:[#allocation7 + $0x1f88] sm:$0xff] }
 0x26d   :  { %v11826_v4 = vcombine.low %v1170_v52, %v1174_v54 }
 0x26f   :  { %6696 = vmatpush1.bf16.msra.mxu0 %v11770_v60  ;;  %7040 = vmatpush1.bf16.msra.mxu1 %v11772_v61  ;;  %v11820_v60 = vcombine.low %v1163_v44, %v1167_v47  ;;  %v11827_v61 = vcombine.high %v1170_v52, %v1174_v54  ;;  %v1215_v44 = vld [vmem:[#allocation7 + $0x1fa8] sm:$0xff]  ;;  %v1222_v52 = vld [vmem:[#allocation7 + $0x1fe0] sm:$0xff] }
 0x270   :  { %6697 = vmatprep.subr.bf16.mxu0 %v11779_v62  ;;  %7041 = vmatprep.subr.bf16.mxu1 %v11781_v63  ;;  %v11829_v62 = vcombine.high %v1171_v55, %v1175_v56  ;;  %v1178_v63 = vld [vmem:[#allocation7 + $0x1e80] sm:$0xff]  ;;  %v1219_v54 = vld [vmem:[#allocation7 + $0x1fc8] sm:$0xff] }
 0x271   :  { %v11834_v14 = vcombine.low %v1178_v63, %v1182_v0 }
 0x273   :  { %6698 = vmatpush1.bf16.msra.mxu0 %v11778_v5  ;;  %7042 = vmatpush1.bf16.msra.mxu1 %v11780_v7  ;;  %v11828_v5 = vcombine.low %v1171_v55, %v1175_v56  ;;  %v11835_v7 = vcombine.high %v1178_v63, %v1182_v0  ;;  %v1223_v55 = vld [vmem:[#allocation7 + $0x1fe8] sm:$0xff]  ;;  %v208_v63 = vld [vmem:[#allocation7 + $0x30] sm:$0xff]  ;;  %v205_v0 = vld [vmem:[#allocation7 + $0x18] sm:$0xff] }
 0x274   :  { %6699 = vmatprep.subr.bf16.mxu0 %v11787_v8  ;;  %7043 = vmatprep.subr.bf16.mxu1 %v11789_v9  ;;  %v11837_v8 = vcombine.high %v1179_v1, %v1183_v2  ;;  %v1186_v9 = vld [vmem:[#allocation7 + $0x1ec0] sm:$0xff] }
 0x275   :  { %v11842_v23 = vcombine.low %v1186_v9, %v1190_v11 }
 0x277   :  { %6700 = vmatpush1.bf16.msra.mxu0 %v11786_v16  ;;  %7044 = vmatpush1.bf16.msra.mxu1 %v11788_v17  ;;  %v11836_v16 = vcombine.low %v1179_v1, %v1183_v2  ;;  %v11843_v17 = vcombine.high %v1186_v9, %v1190_v11  ;;  %v209_v1 = vld [vmem:[#allocation7 + $0x38] sm:$0xff]  ;;  %v212_v11 = vld [vmem:[#allocation7 + $0x50] sm:$0xff] }
 0x278   :  { %6701 = vmatprep.subr.bf16.mxu0 %v11795_v18  ;;  %7045 = vmatprep.subr.bf16.mxu1 %v11797_v19  ;;  %v11845_v18 = vcombine.high %v1187_v12, %v1191_v13  ;;  %v1194_v19 = vld [vmem:[#allocation7 + $0x1f00] sm:$0xff]  ;;  %v10865_v9 = vcombine.high %v205_v0, %v209_v1 }
 0x279   :  { %v11850_v35 = vcombine.low %v1194_v19, %v1198_v20 }
 0x27b   :  { %6702 = vmatpush1.bf16.msra.mxu0 %v11794_v24  ;;  %7046 = vmatpush1.bf16.msra.mxu1 %v11796_v27  ;;  %v11844_v24 = vcombine.low %v1187_v12, %v1191_v13  ;;  %v11851_v27 = vcombine.high %v1194_v19, %v1198_v20  ;;  %v216_v12 = vld [vmem:[#allocation7 + $0x70] sm:$0xff] }
 0x27c   :  { %6703 = vmatprep.subr.bf16.mxu0 %v11803_v28  ;;  %7047 = vmatprep.subr.bf16.mxu1 %v11805_v29  ;;  %v11853_v28 = vcombine.high %v1195_v21, %v1199_v22  ;;  %v1202_v29 = vld [vmem:[#allocation7 + $0x1f40] sm:$0xff]  ;;  %v10871_v19 = vcombine.high %v212_v11, %v216_v12 }
 0x27d   :  { %v11858_v47 = vcombine.low %v1202_v29, %v1206_v31 }
 0x27f   :  { %6704 = vmatpush1.bf16.msra.mxu0 %v11802_v36  ;;  %7048 = vmatpush1.bf16.msra.mxu1 %v11804_v39  ;;  %v11852_v36 = vcombine.low %v1195_v21, %v1199_v22  ;;  %v11859_v39 = vcombine.high %v1202_v29, %v1206_v31  ;;  %v220_v21 = vld [vmem:[#allocation7 + $0x90] sm:$0xff] }
 0x280   :  { %6705 = vmatprep.subr.bf16.mxu0 %v11811_v40  ;;  %7049 = vmatprep.subr.bf16.mxu1 %v11813_v41  ;;  %v11861_v40 = vcombine.high %v1203_v32, %v1207_v34  ;;  %v1210_v41 = vld [vmem:[#allocation7 + $0x1f80] sm:$0xff]  ;;  %v224_v22 = vld [vmem:[#allocation7 + $0xb0] sm:$0xff] }
 0x281   :  { %v11866_v56 = vcombine.low %v1210_v41, %v1214_v42  ;;  %v10879_v29 = vcombine.high %v220_v21, %v224_v22 }
 0x283   :  { %6706 = vmatpush1.bf16.msra.mxu0 %v11810_v48  ;;  %7050 = vmatpush1.bf16.msra.mxu1 %v11812_v49  ;;  %v11860_v48 = vcombine.low %v1203_v32, %v1207_v34  ;;  %v11867_v49 = vcombine.high %v1210_v41, %v1214_v42  ;;  %v228_v32 = vld [vmem:[#allocation7 + $0xd0] sm:$0xff] }
 0x284   :  { %6707 = vmatprep.subr.bf16.mxu0 %v11819_v50  ;;  %7051 = vmatprep.subr.bf16.mxu1 %v11821_v51  ;;  %v11869_v50 = vcombine.high %v1211_v43, %v1215_v44  ;;  %v1218_v51 = vld [vmem:[#allocation7 + $0x1fc0] sm:$0xff]  ;;  %v232_v34 = vld [vmem:[#allocation7 + $0xf0] sm:$0xff] }
 0x285   :  { %v11874_v2 = vcombine.low %v1218_v51, %v1222_v52  ;;  %v10887_v41 = vcombine.high %v228_v32, %v232_v34 }
 0x287   :  { %6708 = vmatpush1.bf16.msra.mxu0 %v11818_v57  ;;  %7052 = vmatpush1.bf16.msra.mxu1 %v11820_v60  ;;  %v11868_v57 = vcombine.low %v1211_v43, %v1215_v44  ;;  %v11875_v60 = vcombine.high %v1218_v51, %v1222_v52  ;;  %v236_v43 = vld [vmem:[#allocation7 + $0x110] sm:$0xff] }
 0x288   :  { %6709 = vmatprep.subr.bf16.mxu0 %v11827_v61  ;;  %7053 = vmatprep.subr.bf16.mxu1 %v11829_v62  ;;  %v11877_v61 = vcombine.high %v1219_v54, %v1223_v55  ;;  %v204_v62 = vld [vmem:[#allocation7 + $0x10] sm:$0xff] }
 0x289   :  { %v240_v44 = vld [vmem:[#allocation7 + $0x130] sm:$0xff] }
 0x28a   :  { %v10895_v51 = vcombine.high %v236_v43, %v240_v44  ;;  %v244_v52 = vld [vmem:[#allocation7 + $0x150] sm:$0xff] }
 0x28b   :  { %6710 = vmatpush1.bf16.msra.mxu0 %v11826_v4  ;;  %7054 = vmatpush1.bf16.msra.mxu1 %v11828_v5  ;;  %v168_v4 = vld [vmem:[#allocation2 + $0x70] sm:$0xff] }
 0x28c   :  { %6711 = vmatprep.subr.bf16.mxu0 %v11835_v7  ;;  %7055 = vmatprep.subr.bf16.mxu1 %v11837_v8  ;;  %v184_v5 = vld [vmem:[#allocation2 + $0xf0] sm:$0xff]  ;;  %v11876_v7 = vcombine.low %v1219_v54, %v1223_v55  ;;  %v10863_v8 = vcombine.high %v204_v62, %v208_v63  ;;  %v245_v55 = vld [vmem:[#allocation7 + $0x158] sm:$0xff] }
 0x28d   :  { %v13630_v13 = vpack.c.bf16 %v184_v5, %v168_v4  ;;  %v248_v54 = vld [vmem:[#allocation7 + $0x170] sm:$0xff] }
 0x28e   :  { %v10902_v4 = vcombine.low %v244_v52, %v248_v54 }
 0x28f   :  { %6712 = vmatpush1.bf16.msra.mxu0 %v11834_v14  ;;  %7056 = vmatpush1.bf16.msra.mxu1 %v11836_v16  ;;  %v213_v14 = vld [vmem:[#allocation7 + $0x58] sm:$0xff] }
 0x290   :  { %6713 = vmatprep.subr.bf16.mxu0 %v11843_v17  ;;  %7057 = vmatprep.subr.bf16.mxu1 %v11845_v18  ;;  %v217_v16 = vld [vmem:[#allocation7 + $0x78] sm:$0xff]  ;;  %v10862_v17 = vcombine.low %v204_v62, %v208_v63  ;;  %v10864_v18 = vcombine.low %v205_v0, %v209_v1  ;;  %v252_v63 = vld [vmem:[#allocation7 + $0x190] sm:$0xff] }
 0x291   :  { %v10873_v20 = vcombine.high %v213_v14, %v217_v16  ;;  %v256_v0 = vld [vmem:[#allocation7 + $0x1b0] sm:$0xff]  ;;  %v253_v1 = vld [vmem:[#allocation7 + $0x198] sm:$0xff] }
 0x293   :  { %6714 = vmatpush1.bf16.msra.mxu0 %v11842_v23  ;;  %7058 = vmatpush1.bf16.msra.mxu1 %v11844_v24  ;;  %v221_v23 = vld [vmem:[#allocation7 + $0x98] sm:$0xff] }
 0x294   :  { %6715 = vmatprep.subr.bf16.mxu0 %v11851_v27  ;;  %7059 = vmatprep.subr.bf16.mxu1 %v11853_v28  ;;  %v225_v24 = vld [vmem:[#allocation7 + $0xb8] sm:$0xff]  ;;  %v10870_v27 = vcombine.low %v212_v11, %v216_v12  ;;  %v10872_v28 = vcombine.low %v213_v14, %v217_v16  ;;  %v264_v11 = vld [vmem:[#allocation7 + $0x1f0] sm:$0xff]  ;;  %v10910_v16 = vcombine.low %v252_v63, %v256_v0 }
 0x295   :  { %v10881_v31 = vcombine.high %v221_v23, %v225_v24  ;;  %v261_v12 = vld [vmem:[#allocation7 + $0x1d8] sm:$0xff] }
 0x296   :  { %v265_v14 = vld [vmem:[#allocation7 + $0x1f8] sm:$0xff] }
 0x297   :  { %6716 = vmatpush1.bf16.msra.mxu0 %v11850_v35  ;;  %7060 = vmatpush1.bf16.msra.mxu1 %v11852_v36  ;;  %v229_v35 = vld [vmem:[#allocation7 + $0xd8] sm:$0xff] }
 0x298   :  { %6717 = vmatprep.subr.bf16.mxu0 %v11859_v39  ;;  %7061 = vmatprep.subr.bf16.mxu1 %v11861_v40  ;;  %v233_v36 = vld [vmem:[#allocation7 + $0xf8] sm:$0xff]  ;;  %v10878_v39 = vcombine.low %v220_v21, %v224_v22  ;;  %v10880_v40 = vcombine.low %v221_v23, %v225_v24  ;;  %v272_v21 = vld [vmem:[#allocation7 + $0x230] sm:$0xff] }
 0x299   :  { %v10889_v42 = vcombine.high %v229_v35, %v233_v36  ;;  %v269_v22 = vld [vmem:[#allocation7 + $0x218] sm:$0xff] }
 0x29a   :  { %v273_v23 = vld [vmem:[#allocation7 + $0x238] sm:$0xff] }
 0x29b   :  { %6718 = vmatpush1.bf16.msra.mxu0 %v11858_v47  ;;  %7062 = vmatpush1.bf16.msra.mxu1 %v11860_v48  ;;  %v237_v47 = vld [vmem:[#allocation7 + $0x118] sm:$0xff] }
 0x29c   :  { %6719 = vmatprep.subr.bf16.mxu0 %v11867_v49  ;;  %7063 = vmatprep.subr.bf16.mxu1 %v11869_v50  ;;  %v241_v48 = vld [vmem:[#allocation7 + $0x138] sm:$0xff]  ;;  %v10886_v49 = vcombine.low %v228_v32, %v232_v34  ;;  %v10888_v50 = vcombine.low %v229_v35, %v233_v36  ;;  %v280_v32 = vld [vmem:[#allocation7 + $0x270] sm:$0xff] }
 0x29d   :  { %v277_v34 = vld [vmem:[#allocation7 + $0x258] sm:$0xff] }
 0x29e   :  { %v281_v35 = vld [vmem:[#allocation7 + $0x278] sm:$0xff] }
 0x29f   :  { %6720 = vmatpush1.bf16.msra.mxu0 %v11866_v56  ;;  %7064 = vmatpush1.bf16.msra.mxu1 %v11868_v57  ;;  %v249_v56 = vld [vmem:[#allocation7 + $0x178] sm:$0xff]  ;;  %v10894_v57 = vcombine.low %v236_v43, %v240_v44  ;;  %v288_v43 = vld [vmem:[#allocation7 + $0x2b0] sm:$0xff] }
 0x2a0   :  { %6721 = vmatprep.subr.bf16.mxu0 %v11875_v60  ;;  %7065 = vmatprep.subr.bf16.mxu1 %v11877_v61  ;;  %v10896_v60 = vcombine.low %v237_v47, %v241_v48  ;;  %v10903_v61 = vcombine.high %v244_v52, %v248_v54  ;;  %v10905_v62 = vcombine.high %v245_v55, %v249_v56  ;;  %v285_v44 = vld [vmem:[#allocation7 + $0x298] sm:$0xff]  ;;  %v296_v52 = vld [vmem:[#allocation7 + $0x2f0] sm:$0xff] }
 0x2a1   :  { %v10904_v5 = vcombine.low %v245_v55, %v249_v56  ;;  %v293_v54 = vld [vmem:[#allocation7 + $0x2d8] sm:$0xff] }
 0x2a2   :  { %v297_v55 = vld [vmem:[#allocation7 + $0x2f8] sm:$0xff] }
 0x2a3   :  { %6722 = vmatpush1.bf16.msra.mxu0 %v11874_v2  ;;  %7066 = vmatpush1.bf16.msra.mxu1 %v11876_v7  ;;  %v257_v2 = vld [vmem:[#allocation7 + $0x1b8] sm:$0xff]  ;;  %v10911_v7 = vcombine.high %v252_v63, %v256_v0  ;;  %v304_v63 = vld [vmem:[#allocation7 + $0x330] sm:$0xff] }
 0x2a4   :  { %7078 = vmatprep.subr.bf16.mxu0 %v10863_v8  ;;  %7422 = vmatprep.subr.bf16.mxu1 %v10865_v9  ;;  %v10913_v8 = vcombine.high %v253_v1, %v257_v2  ;;  %v260_v9 = vld [vmem:[#allocation7 + $0x1d0] sm:$0xff]  ;;  %v301_v0 = vld [vmem:[#allocation7 + $0x318] sm:$0xff] }
 0x2a5   :  { %v10918_v24 = vcombine.low %v260_v9, %v264_v11 }
 0x2a6   :  { %6724 = vmatmul.mubr.bf16.vlgmr.msra.gmra.mrb[0].mxu0 %v13630_v13  ;;  %7068 = vmatmul.mubr.bf16.vlgmr.msra.gmra.mrb[0].mxu1 %v13630_v13 }
 0x2a7   :  { %7079 = vmatpush1.bf16.msra.mxu0 %v10862_v17  ;;  %7423 = vmatpush1.bf16.msra.mxu1 %v10864_v18  ;;  %v10912_v17 = vcombine.low %v253_v1, %v257_v2  ;;  %v10919_v18 = vcombine.high %v260_v9, %v264_v11  ;;  %v305_v1 = vld [vmem:[#allocation7 + $0x338] sm:$0xff]  ;;  %v312_v9 = vld [vmem:[#allocation7 + $0x370] sm:$0xff] }
 0x2a8   :  { %7080 = vmatprep.subr.bf16.mxu0 %v10871_v19  ;;  %7424 = vmatprep.subr.bf16.mxu1 %v10873_v20  ;;  %v10921_v19 = vcombine.high %v261_v12, %v265_v14  ;;  %v268_v20 = vld [vmem:[#allocation7 + $0x210] sm:$0xff]  ;;  %v309_v11 = vld [vmem:[#allocation7 + $0x358] sm:$0xff] }
 0x2a9   :  { %7110 = vmatprep.mubr.bf16.mxu0 %v13570_v58  ;;  %7454 = vmatprep.mubr.bf16.mxu1 %v13570_v58  ;;  %v10897_v58 = vcombine.high %v237_v47, %v241_v48  ;;  %v10926_v36 = vcombine.low %v268_v20, %v272_v21  ;;  %v289_v47 = vld [vmem:[#allocation7 + $0x2b8] sm:$0xff] }
 0x2ab   :  { %7081 = vmatpush1.bf16.msra.mxu0 %v10870_v27  ;;  %7425 = vmatpush1.bf16.msra.mxu1 %v10872_v28  ;;  %v10920_v27 = vcombine.low %v261_v12, %v265_v14  ;;  %v10927_v28 = vcombine.high %v268_v20, %v272_v21  ;;  %v313_v12 = vld [vmem:[#allocation7 + $0x378] sm:$0xff]  ;;  %v320_v20 = vld [vmem:[#allocation7 + $0x3b0] sm:$0xff] }
 0x2ac   :  { %7082 = vmatprep.subr.bf16.mxu0 %v10879_v29  ;;  %7426 = vmatprep.subr.bf16.mxu1 %v10881_v31  ;;  %v10929_v29 = vcombine.high %v269_v22, %v273_v23  ;;  %v276_v31 = vld [vmem:[#allocation7 + $0x250] sm:$0xff]  ;;  %v317_v21 = vld [vmem:[#allocation7 + $0x398] sm:$0xff] }
 0x2ad   :  { %v10934_v48 = vcombine.low %v276_v31, %v280_v32 }
 0x2af   :  { %7083 = vmatpush1.bf16.msra.mxu0 %v10878_v39  ;;  %7427 = vmatpush1.bf16.msra.mxu1 %v10880_v40  ;;  %v10928_v39 = vcombine.low %v269_v22, %v273_v23  ;;  %v10935_v40 = vcombine.high %v276_v31, %v280_v32  ;;  %v321_v22 = vld [vmem:[#allocation7 + $0x3b8] sm:$0xff]  ;;  %v328_v31 = vld [vmem:[#allocation7 + $0x3f0] sm:$0xff] }
 0x2b0   :  { %7084 = vmatprep.subr.bf16.mxu0 %v10887_v41  ;;  %7428 = vmatprep.subr.bf16.mxu1 %v10889_v42  ;;  %v10937_v41 = vcombine.high %v277_v34, %v281_v35  ;;  %v284_v42 = vld [vmem:[#allocation7 + $0x290] sm:$0xff]  ;;  %v325_v32 = vld [vmem:[#allocation7 + $0x3d8] sm:$0xff] }
 0x2b1   :  { %v10942_v56 = vcombine.low %v284_v42, %v288_v43 }
 0x2b3   :  { %7085 = vmatpush1.bf16.msra.mxu0 %v10886_v49  ;;  %7429 = vmatpush1.bf16.msra.mxu1 %v10888_v50  ;;  %v10936_v49 = vcombine.low %v277_v34, %v281_v35  ;;  %v10943_v50 = vcombine.high %v284_v42, %v288_v43  ;;  %v329_v34 = vld [vmem:[#allocation7 + $0x3f8] sm:$0xff]  ;;  %v336_v42 = vld [vmem:[#allocation7 + $0x430] sm:$0xff] }
 0x2b4   :  { %7086 = vmatprep.subr.bf16.mxu0 %v10895_v51  ;;  %7430 = vmatprep.subr.bf16.mxu1 %v10897_v58  ;;  %v10945_v51 = vcombine.high %v285_v44, %v289_v47  ;;  %v292_v58 = vld [vmem:[#allocation7 + $0x2d0] sm:$0xff]  ;;  %v333_v43 = vld [vmem:[#allocation7 + $0x418] sm:$0xff] }
 0x2b5   :  { %v10950_v2 = vcombine.low %v292_v58, %v296_v52 }
 0x2b7   :  { %7087 = vmatpush1.bf16.msra.mxu0 %v10894_v57  ;;  %7431 = vmatpush1.bf16.msra.mxu1 %v10896_v60  ;;  %v10944_v57 = vcombine.low %v285_v44, %v289_v47  ;;  %v10951_v60 = vcombine.high %v292_v58, %v296_v52  ;;  %v337_v44 = vld [vmem:[#allocation7 + $0x438] sm:$0xff]  ;;  %v344_v58 = vld [vmem:[#allocation7 + $0x470] sm:$0xff] }
 0x2b8   :  { %7088 = vmatprep.subr.bf16.mxu0 %v10903_v61  ;;  %7432 = vmatprep.subr.bf16.mxu1 %v10905_v62  ;;  %v10953_v61 = vcombine.high %v293_v54, %v297_v55  ;;  %v300_v62 = vld [vmem:[#allocation7 + $0x310] sm:$0xff]  ;;  %v341_v52 = vld [vmem:[#allocation7 + $0x458] sm:$0xff] }
 0x2b9   :  { %v10958_v14 = vcombine.low %v300_v62, %v304_v63 }
 0x2bb   :  { %7089 = vmatpush1.bf16.msra.mxu0 %v10902_v4  ;;  %7433 = vmatpush1.bf16.msra.mxu1 %v10904_v5  ;;  %v10952_v4 = vcombine.low %v293_v54, %v297_v55  ;;  %v10959_v5 = vcombine.high %v300_v62, %v304_v63  ;;  %v345_v54 = vld [vmem:[#allocation7 + $0x478] sm:$0xff]  ;;  %v352_v62 = vld [vmem:[#allocation7 + $0x4b0] sm:$0xff] }
 0x2bc   :  { %7090 = vmatprep.subr.bf16.mxu0 %v10911_v7  ;;  %7434 = vmatprep.subr.bf16.mxu1 %v10913_v8  ;;  %v10961_v7 = vcombine.high %v301_v0, %v305_v1  ;;  %v308_v8 = vld [vmem:[#allocation7 + $0x350] sm:$0xff]  ;;  %v349_v63 = vld [vmem:[#allocation7 + $0x498] sm:$0xff] }
 0x2bd   :  { %v10966_v23 = vcombine.low %v308_v8, %v312_v9 }
 0x2bf   :  { %7091 = vmatpush1.bf16.msra.mxu0 %v10910_v16  ;;  %7435 = vmatpush1.bf16.msra.mxu1 %v10912_v17  ;;  %v10960_v16 = vcombine.low %v301_v0, %v305_v1  ;;  %v10967_v17 = vcombine.high %v308_v8, %v312_v9  ;;  %v353_v0 = vld [vmem:[#allocation7 + $0x4b8] sm:$0xff]  ;;  %v360_v8 = vld [vmem:[#allocation7 + $0x4f0] sm:$0xff] }
 0x2c0   :  { %7092 = vmatprep.subr.bf16.mxu0 %v10919_v18  ;;  %7436 = vmatprep.subr.bf16.mxu1 %v10921_v19  ;;  %v10969_v18 = vcombine.high %v309_v11, %v313_v12  ;;  %v316_v19 = vld [vmem:[#allocation7 + $0x390] sm:$0xff]  ;;  %v357_v9 = vld [vmem:[#allocation7 + $0x4d8] sm:$0xff] }
 0x2c1   :  { %v10974_v35 = vcombine.low %v316_v19, %v320_v20 }
 0x2c3   :  { %7093 = vmatpush1.bf16.msra.mxu0 %v10918_v24  ;;  %7437 = vmatpush1.bf16.msra.mxu1 %v10920_v27  ;;  %v10968_v24 = vcombine.low %v309_v11, %v313_v12  ;;  %v10975_v27 = vcombine.high %v316_v19, %v320_v20  ;;  %v361_v11 = vld [vmem:[#allocation7 + $0x4f8] sm:$0xff] }
 0x2c4   :  { %7094 = vmatprep.subr.bf16.mxu0 %v10927_v28  ;;  %7438 = vmatprep.subr.bf16.mxu1 %v10929_v29  ;;  %v10977_v28 = vcombine.high %v317_v21, %v321_v22  ;;  %v324_v29 = vld [vmem:[#allocation7 + $0x3d0] sm:$0xff]  ;;  %v365_v19 = vld [vmem:[#allocation7 + $0x518] sm:$0xff] }
 0x2c5   :  { %v10982_v47 = vcombine.low %v324_v29, %v328_v31  ;;  %v369_v20 = vld [vmem:[#allocation7 + $0x538] sm:$0xff] }
 0x2c7   :  { %7095 = vmatpush1.bf16.msra.mxu0 %v10926_v36  ;;  %7439 = vmatpush1.bf16.msra.mxu1 %v10928_v39  ;;  %v10976_v36 = vcombine.low %v317_v21, %v321_v22  ;;  %v10983_v39 = vcombine.high %v324_v29, %v328_v31  ;;  %v11016_v22 = vcombine.low %v357_v9, %v361_v11  ;;  %v377_v29 = vld [vmem:[#allocation7 + $0x578] sm:$0xff] }
 0x2c8   :  { %7096 = vmatprep.subr.bf16.mxu0 %v10935_v40  ;;  %7440 = vmatprep.subr.bf16.mxu1 %v10937_v41  ;;  %v10985_v40 = vcombine.high %v325_v32, %v329_v34  ;;  %v332_v41 = vld [vmem:[#allocation7 + $0x410] sm:$0xff] }
 0x2c9   :  { %v10990_v55 = vcombine.low %v332_v41, %v336_v42 }
 0x2cb   :  { %7097 = vmatpush1.bf16.msra.mxu0 %v10934_v48  ;;  %7441 = vmatpush1.bf16.msra.mxu1 %v10936_v49  ;;  %v10984_v48 = vcombine.low %v325_v32, %v329_v34  ;;  %v10991_v49 = vcombine.high %v332_v41, %v336_v42  ;;  %v11024_v32 = vcombine.low %v365_v19, %v369_v20  ;;  %v385_v41 = vld [vmem:[#allocation7 + $0x5b8] sm:$0xff] }
 0x2cc   :  { %7098 = vmatprep.subr.bf16.mxu0 %v10943_v50  ;;  %7442 = vmatprep.subr.bf16.mxu1 %v10945_v51  ;;  %v10993_v50 = vcombine.high %v333_v43, %v337_v44  ;;  %v340_v51 = vld [vmem:[#allocation7 + $0x450] sm:$0xff] }
 0x2cd   :  { %v10998_v1 = vcombine.low %v340_v51, %v344_v58 }
 0x2cf   :  { %7099 = vmatpush1.bf16.msra.mxu0 %v10942_v56  ;;  %7443 = vmatpush1.bf16.msra.mxu1 %v10944_v57  ;;  %v10992_v56 = vcombine.low %v333_v43, %v337_v44  ;;  %v10999_v57 = vcombine.high %v340_v51, %v344_v58  ;;  %v393_v51 = vld [vmem:[#allocation7 + $0x5f8] sm:$0xff] }
 0x2d0   :  { %7100 = vmatprep.subr.bf16.mxu0 %v10951_v60  ;;  %7444 = vmatprep.subr.bf16.mxu1 %v10953_v61  ;;  %v11001_v60 = vcombine.high %v341_v52, %v345_v54  ;;  %v348_v61 = vld [vmem:[#allocation7 + $0x490] sm:$0xff] }
 0x2d1   :  { %v11006_v12 = vcombine.low %v348_v61, %v352_v62 }
 0x2d3   :  { %7101 = vmatpush1.bf16.msra.mxu0 %v10950_v2  ;;  %7445 = vmatpush1.bf16.msra.mxu1 %v10952_v4  ;;  %v11000_v2 = vcombine.low %v341_v52, %v345_v54  ;;  %v11007_v4 = vcombine.high %v348_v61, %v352_v62  ;;  %v401_v61 = vld [vmem:[#allocation7 + $0x638] sm:$0xff] }
 0x2d4   :  { %7102 = vmatprep.subr.bf16.mxu0 %v10959_v5  ;;  %7446 = vmatprep.subr.bf16.mxu1 %v10961_v7  ;;  %v11009_v5 = vcombine.high %v349_v63, %v353_v0  ;;  %v356_v7 = vld [vmem:[#allocation7 + $0x4d0] sm:$0xff] }
 0x2d5   :  { %v11014_v21 = vcombine.low %v356_v7, %v360_v8 }
 0x2d7   :  { %7103 = vmatpush1.bf16.msra.mxu0 %v10958_v14  ;;  %7447 = vmatpush1.bf16.msra.mxu1 %v10960_v16  ;;  %v11015_v14 = vcombine.high %v356_v7, %v360_v8  ;;  %v11017_v16 = vcombine.high %v357_v9, %v361_v11  ;;  %v409_v7 = vld [vmem:[#allocation7 + $0x678] sm:$0xff] }
 0x2d8   :  { %7104 = vmatprep.subr.bf16.mxu0 %v10967_v17  ;;  %7448 = vmatprep.subr.bf16.mxu1 %v10969_v18  ;;  %v364_v17 = vld [vmem:[#allocation7 + $0x510] sm:$0xff] }
 0x2d9   :  { %v368_v18 = vld [vmem:[#allocation7 + $0x530] sm:$0xff] }
 0x2da   :  { %v11022_v31 = vcombine.low %v364_v17, %v368_v18 }
 0x2db   :  { %7105 = vmatpush1.bf16.msra.mxu0 %v10966_v23  ;;  %7449 = vmatpush1.bf16.msra.mxu1 %v10968_v24  ;;  %v11023_v23 = vcombine.high %v364_v17, %v368_v18  ;;  %v372_v24 = vld [vmem:[#allocation7 + $0x550] sm:$0xff]  ;;  %v417_v17 = vld [vmem:[#allocation7 + $0x6b8] sm:$0xff] }
 0x2dc   :  { %7106 = vmatprep.subr.bf16.mxu0 %v10975_v27  ;;  %7450 = vmatprep.subr.bf16.mxu1 %v10977_v28  ;;  %v376_v27 = vld [vmem:[#allocation7 + $0x570] sm:$0xff]  ;;  %v373_v28 = vld [vmem:[#allocation7 + $0x558] sm:$0xff] }
 0x2dd   :  { %v11031_v34 = vcombine.high %v372_v24, %v376_v27  ;;  %v11030_v42 = vcombine.low %v372_v24, %v376_v27  ;;  %v11032_v43 = vcombine.low %v373_v28, %v377_v29  ;;  %v425_v24 = vld [vmem:[#allocation7 + $0x6f8] sm:$0xff] }
 0x2df   :  { %7107 = vmatpush1.bf16.msra.mxu0 %v10974_v35  ;;  %7451 = vmatpush1.bf16.msra.mxu1 %v10976_v36  ;;  %v11033_v35 = vcombine.high %v373_v28, %v377_v29  ;;  %v380_v36 = vld [vmem:[#allocation7 + $0x590] sm:$0xff] }
 0x2e0   :  { %7108 = vmatprep.subr.bf16.mxu0 %v10983_v39  ;;  %7452 = vmatprep.subr.bf16.mxu1 %v10985_v40  ;;  %v384_v39 = vld [vmem:[#allocation7 + $0x5b0] sm:$0xff]  ;;  %v381_v40 = vld [vmem:[#allocation7 + $0x598] sm:$0xff] }
 0x2e1   :  { %v11039_v44 = vcombine.high %v380_v36, %v384_v39  ;;  %v11038_v58 = vcombine.low %v380_v36, %v384_v39  ;;  %v11040_v52 = vcombine.low %v381_v40, %v385_v41  ;;  %v433_v36 = vld [vmem:[#allocation7 + $0x738] sm:$0xff] }
 0x2e3   :  { %7109 = vmatpush1.bf16.msra.mxu0 %v10982_v47  ;;  %7453 = vmatpush1.bf16.msra.mxu1 %v10984_v48  ;;  %v11041_v47 = vcombine.high %v381_v40, %v385_v41  ;;  %v388_v48 = vld [vmem:[#allocation7 + $0x5d0] sm:$0xff] }
 0x2e4   :  { %7121 = vmatprep.subr.bf16.mxu0 %v10991_v49  ;;  %7465 = vmatprep.subr.bf16.mxu1 %v10993_v50  ;;  %v392_v49 = vld [vmem:[#allocation7 + $0x5f0] sm:$0xff]  ;;  %v389_v50 = vld [vmem:[#allocation7 + $0x5d8] sm:$0xff] }
 0x2e5   :  { %v11047_v54 = vcombine.high %v388_v48, %v392_v49  ;;  %v11046_v62 = vcombine.low %v388_v48, %v392_v49  ;;  %v441_v48 = vld [vmem:[#allocation7 + $0x778] sm:$0xff] }
 0x2e6   :  { %7111 = vmatmul.mubr.bf16.vlgmr.msra.gmra.mrb[4].mxu0 %v13574_v15  ;;  %7455 = vmatmul.mubr.bf16.vlgmr.msra.gmra.mrb[4].mxu1 %v13574_v15  ;;  %v11008_v15 = vcombine.low %v349_v63, %v353_v0  ;;  %v11048_v63 = vcombine.low %v389_v50, %v393_v51 }
 0x2e7   :  { %7122 = vmatpush1.bf16.msra.mxu0 %v10990_v55  ;;  %7466 = vmatpush1.bf16.msra.mxu1 %v10992_v56  ;;  %v11049_v55 = vcombine.high %v389_v50, %v393_v51  ;;  %v396_v56 = vld [vmem:[#allocation7 + $0x610] sm:$0xff] }
 0x2e8   :  { %7123 = vmatprep.subr.bf16.mxu0 %v10999_v57  ;;  %7467 = vmatprep.subr.bf16.mxu1 %v11001_v60  ;;  %v400_v57 = vld [vmem:[#allocation7 + $0x630] sm:$0xff]  ;;  %v397_v60 = vld [vmem:[#allocation7 + $0x618] sm:$0xff] }
 0x2e9   :  { %7153 = vmatprep.mubr.bf16.mxu0 %v13576_v25  ;;  %7497 = vmatprep.mubr.bf16.mxu1 %v13576_v25  ;;  %v11025_v25 = vcombine.high %v365_v19, %v369_v20  ;;  %v11055_v0 = vcombine.high %v396_v56, %v400_v57  ;;  %v11054_v8 = vcombine.low %v396_v56, %v400_v57  ;;  %v449_v56 = vld [vmem:[#allocation7 + $0x7b8] sm:$0xff] }
 0x2ea   :  { %v11056_v9 = vcombine.low %v397_v60, %v401_v61 }
 0x2eb   :  { %7124 = vmatpush1.bf16.msra.mxu0 %v10998_v1  ;;  %7468 = vmatpush1.bf16.msra.mxu1 %v11000_v2  ;;  %v11057_v1 = vcombine.high %v397_v60, %v401_v61  ;;  %v404_v2 = vld [vmem:[#allocation7 + $0x650] sm:$0xff] }
 0x2ec   :  { %7125 = vmatprep.subr.bf16.mxu0 %v11007_v4  ;;  %7469 = vmatprep.subr.bf16.mxu1 %v11009_v5  ;;  %v408_v4 = vld [vmem:[#allocation7 + $0x670] sm:$0xff]  ;;  %v405_v5 = vld [vmem:[#allocation7 + $0x658] sm:$0xff] }
 0x2ed   :  { %v11063_v11 = vcombine.high %v404_v2, %v408_v4  ;;  %v11062_v18 = vcombine.low %v404_v2, %v408_v4  ;;  %v11064_v19 = vcombine.low %v405_v5, %v409_v7  ;;  %v457_v2 = vld [vmem:[#allocation7 + $0x7f8] sm:$0xff] }
 0x2ef   :  { %7126 = vmatpush1.bf16.msra.mxu0 %v11006_v12  ;;  %7470 = vmatpush1.bf16.msra.mxu1 %v11008_v15  ;;  %v11065_v12 = vcombine.high %v405_v5, %v409_v7  ;;  %v412_v15 = vld [vmem:[#allocation7 + $0x690] sm:$0xff] }
 0x2f0   :  { %7127 = vmatprep.subr.bf16.mxu0 %v11015_v14  ;;  %7471 = vmatprep.subr.bf16.mxu1 %v11017_v16  ;;  %v416_v14 = vld [vmem:[#allocation7 + $0x6b0] sm:$0xff]  ;;  %v413_v16 = vld [vmem:[#allocation7 + $0x698] sm:$0xff] }
 0x2f1   :  { %v11071_v20 = vcombine.high %v412_v15, %v416_v14  ;;  %v11070_v27 = vcombine.low %v412_v15, %v416_v14  ;;  %v11072_v28 = vcombine.low %v413_v16, %v417_v17  ;;  %v465_v15 = vld [vmem:[#allocation7 + $0x838] sm:$0xff] }
 0x2f3   :  { %7128 = vmatpush1.bf16.msra.mxu0 %v11014_v21  ;;  %7472 = vmatpush1.bf16.msra.mxu1 %v11016_v22  ;;  %v11073_v21 = vcombine.high %v413_v16, %v417_v17  ;;  %v420_v22 = vld [vmem:[#allocation7 + $0x6d0] sm:$0xff] }
 0x2f4   :  { %7129 = vmatprep.subr.bf16.mxu0 %v11023_v23  ;;  %7473 = vmatprep.subr.bf16.mxu1 %v11025_v25  ;;  %v424_v23 = vld [vmem:[#allocation7 + $0x6f0] sm:$0xff]  ;;  %v421_v25 = vld [vmem:[#allocation7 + $0x6d8] sm:$0xff] }
 0x2f5   :  { %v11079_v29 = vcombine.high %v420_v22, %v424_v23  ;;  %v11078_v39 = vcombine.low %v420_v22, %v424_v23  ;;  %v11080_v40 = vcombine.low %v421_v25, %v425_v24  ;;  %v473_v22 = vld [vmem:[#allocation7 + $0x878] sm:$0xff] }
 0x2f7   :  { %7130 = vmatpush1.bf16.msra.mxu0 %v11022_v31  ;;  %7474 = vmatpush1.bf16.msra.mxu1 %v11024_v32  ;;  %v11081_v31 = vcombine.high %v421_v25, %v425_v24  ;;  %v428_v32 = vld [vmem:[#allocation7 + $0x710] sm:$0xff] }
 0x2f8   :  { %7131 = vmatprep.subr.bf16.mxu0 %v11031_v34  ;;  %7475 = vmatprep.subr.bf16.mxu1 %v11033_v35  ;;  %v432_v34 = vld [vmem:[#allocation7 + $0x730] sm:$0xff]  ;;  %v429_v35 = vld [vmem:[#allocation7 + $0x718] sm:$0xff] }
 0x2f9   :  { %v11087_v41 = vcombine.high %v428_v32, %v432_v34  ;;  %v11086_v49 = vcombine.low %v428_v32, %v432_v34  ;;  %v11088_v50 = vcombine.low %v429_v35, %v433_v36  ;;  %v481_v32 = vld [vmem:[#allocation7 + $0x8b8] sm:$0xff] }
 0x2fb   :  { %7132 = vmatpush1.bf16.msra.mxu0 %v11030_v42  ;;  %7476 = vmatpush1.bf16.msra.mxu1 %v11032_v43  ;;  %v11089_v42 = vcombine.high %v429_v35, %v433_v36  ;;  %v436_v43 = vld [vmem:[#allocation7 + $0x750] sm:$0xff] }
 0x2fc   :  { %7133 = vmatprep.subr.bf16.mxu0 %v11039_v44  ;;  %7477 = vmatprep.subr.bf16.mxu1 %v11041_v47  ;;  %v440_v44 = vld [vmem:[#allocation7 + $0x770] sm:$0xff]  ;;  %v437_v47 = vld [vmem:[#allocation7 + $0x758] sm:$0xff] }
 0x2fd   :  { %v11095_v51 = vcombine.high %v436_v43, %v440_v44  ;;  %v11094_v57 = vcombine.low %v436_v43, %v440_v44  ;;  %v11096_v60 = vcombine.low %v437_v47, %v441_v48  ;;  %v489_v43 = vld [vmem:[#allocation7 + $0x8f8] sm:$0xff] }
 0x2ff   :  { %7134 = vmatpush1.bf16.msra.mxu0 %v11038_v58  ;;  %7478 = vmatpush1.bf16.msra.mxu1 %v11040_v52  ;;  %v11097_v58 = vcombine.high %v437_v47, %v441_v48  ;;  %v444_v52 = vld [vmem:[#allocation7 + $0x790] sm:$0xff] }
 0x300   :  { %7135 = vmatprep.subr.bf16.mxu0 %v11047_v54  ;;  %7479 = vmatprep.subr.bf16.mxu1 %v11049_v55  ;;  %v448_v54 = vld [vmem:[#allocation7 + $0x7b0] sm:$0xff]  ;;  %v445_v55 = vld [vmem:[#allocation7 + $0x798] sm:$0xff] }
 0x301   :  { %v11103_v61 = vcombine.high %v444_v52, %v448_v54  ;;  %v11102_v4 = vcombine.low %v444_v52, %v448_v54  ;;  %v11104_v5 = vcombine.low %v445_v55, %v449_v56 }
 0x303   :  { %7136 = vmatpush1.bf16.msra.mxu0 %v11046_v62  ;;  %7480 = vmatpush1.bf16.msra.mxu1 %v11048_v63  ;;  %v11105_v62 = vcombine.high %v445_v55, %v449_v56  ;;  %v452_v63 = vld [vmem:[#allocation7 + $0x7d0] sm:$0xff] }
 0x304   :  { %7137 = vmatprep.subr.bf16.mxu0 %v11055_v0  ;;  %7481 = vmatprep.subr.bf16.mxu1 %v11057_v1  ;;  %v456_v0 = vld [vmem:[#allocation7 + $0x7f0] sm:$0xff]  ;;  %v453_v1 = vld [vmem:[#allocation7 + $0x7d8] sm:$0xff] }
 0x305   :  { %v11111_v7 = vcombine.high %v452_v63, %v456_v0  ;;  %v11110_v14 = vcombine.low %v452_v63, %v456_v0  ;;  %v11112_v16 = vcombine.low %v453_v1, %v457_v2  ;;  %v500_v56 = vld [vmem:[#allocation7 + $0x950] sm:$0xff] }
 0x307   :  { %7138 = vmatpush1.bf16.msra.mxu0 %v11054_v8  ;;  %7482 = vmatpush1.bf16.msra.mxu1 %v11056_v9  ;;  %v11113_v8 = vcombine.high %v453_v1, %v457_v2  ;;  %v460_v9 = vld [vmem:[#allocation7 + $0x810] sm:$0xff] }
 0x308   :  { %7139 = vmatprep.subr.bf16.mxu0 %v11063_v11  ;;  %7483 = vmatprep.subr.bf16.mxu1 %v11065_v12  ;;  %v464_v11 = vld [vmem:[#allocation7 + $0x830] sm:$0xff]  ;;  %v461_v12 = vld [vmem:[#allocation7 + $0x818] sm:$0xff] }
 0x309   :  { %v11119_v17 = vcombine.high %v460_v9, %v464_v11  ;;  %v11118_v23 = vcombine.low %v460_v9, %v464_v11  ;;  %v11120_v25 = vcombine.low %v461_v12, %v465_v15  ;;  %v508_v2 = vld [vmem:[#allocation7 + $0x990] sm:$0xff] }
 0x30b   :  { %7140 = vmatpush1.bf16.msra.mxu0 %v11062_v18  ;;  %7484 = vmatpush1.bf16.msra.mxu1 %v11064_v19  ;;  %v11121_v18 = vcombine.high %v461_v12, %v465_v15  ;;  %v468_v19 = vld [vmem:[#allocation7 + $0x850] sm:$0xff] }
 0x30c   :  { %7141 = vmatprep.subr.bf16.mxu0 %v11071_v20  ;;  %7485 = vmatprep.subr.bf16.mxu1 %v11073_v21  ;;  %v472_v20 = vld [vmem:[#allocation7 + $0x870] sm:$0xff]  ;;  %v469_v21 = vld [vmem:[#allocation7 + $0x858] sm:$0xff] }
 0x30d   :  { %v11127_v24 = vcombine.high %v468_v19, %v472_v20  ;;  %v11126_v34 = vcombine.low %v468_v19, %v472_v20  ;;  %v11128_v35 = vcombine.low %v469_v21, %v473_v22  ;;  %v516_v15 = vld [vmem:[#allocation7 + $0x9d0] sm:$0xff] }
 0x30f   :  { %7142 = vmatpush1.bf16.msra.mxu0 %v11070_v27  ;;  %7486 = vmatpush1.bf16.msra.mxu1 %v11072_v28  ;;  %v11129_v27 = vcombine.high %v469_v21, %v473_v22  ;;  %v476_v28 = vld [vmem:[#allocation7 + $0x890] sm:$0xff] }
 0x310   :  { %7143 = vmatprep.subr.bf16.mxu0 %v11079_v29  ;;  %7487 = vmatprep.subr.bf16.mxu1 %v11081_v31  ;;  %v480_v29 = vld [vmem:[#allocation7 + $0x8b0] sm:$0xff]  ;;  %v477_v31 = vld [vmem:[#allocation7 + $0x898] sm:$0xff] }
 0x311   :  { %v11135_v36 = vcombine.high %v476_v28, %v480_v29  ;;  %v11134_v44 = vcombine.low %v476_v28, %v480_v29  ;;  %v524_v22 = vld [vmem:[#allocation7 + $0xa10] sm:$0xff] }
 0x313   :  { %7144 = vmatpush1.bf16.msra.mxu0 %v11078_v39  ;;  %7488 = vmatpush1.bf16.msra.mxu1 %v11080_v40  ;;  %v11137_v39 = vcombine.high %v477_v31, %v481_v32  ;;  %v484_v40 = vld [vmem:[#allocation7 + $0x8d0] sm:$0xff] }
 0x314   :  { %7145 = vmatprep.subr.bf16.mxu0 %v11087_v41  ;;  %7489 = vmatprep.subr.bf16.mxu1 %v11089_v42  ;;  %v488_v41 = vld [vmem:[#allocation7 + $0x8f0] sm:$0xff]  ;;  %v485_v42 = vld [vmem:[#allocation7 + $0x8d8] sm:$0xff] }
 0x315   :  { %v11143_v47 = vcombine.high %v484_v40, %v488_v41  ;;  %v11145_v48 = vcombine.high %v485_v42, %v489_v43  ;;  %v11142_v52 = vcombine.low %v484_v40, %v488_v41  ;;  %v11144_v54 = vcombine.low %v485_v42, %v489_v43  ;;  %v540_v43 = vld [vmem:[#allocation7 + $0xa90] sm:$0xff] }
 0x317   :  { %7146 = vmatpush1.bf16.msra.mxu0 %v11086_v49  ;;  %7490 = vmatpush1.bf16.msra.mxu1 %v11088_v50  ;;  %v492_v49 = vld [vmem:[#allocation7 + $0x910] sm:$0xff] }
 0x318   :  { %7147 = vmatprep.subr.bf16.mxu0 %v11095_v51  ;;  %7491 = vmatprep.subr.bf16.mxu1 %v11097_v58  ;;  %v496_v50 = vld [vmem:[#allocation7 + $0x930] sm:$0xff]  ;;  %v493_v51 = vld [vmem:[#allocation7 + $0x918] sm:$0xff] }
 0x319   :  { %v497_v58 = vld [vmem:[#allocation7 + $0x938] sm:$0xff]  ;;  %v11151_v55 = vcombine.high %v492_v49, %v496_v50 }
 0x31a   :  { %v11152_v63 = vcombine.low %v493_v51, %v497_v58 }
 0x31b   :  { %7148 = vmatpush1.bf16.msra.mxu0 %v11094_v57  ;;  %7492 = vmatpush1.bf16.msra.mxu1 %v11096_v60  ;;  %v504_v57 = vld [vmem:[#allocation7 + $0x970] sm:$0xff]  ;;  %v501_v60 = vld [vmem:[#allocation7 + $0x958] sm:$0xff] }
 0x31c   :  { %7149 = vmatprep.subr.bf16.mxu0 %v11103_v61  ;;  %7493 = vmatprep.subr.bf16.mxu1 %v11105_v62  ;;  %v505_v61 = vld [vmem:[#allocation7 + $0x978] sm:$0xff]  ;;  %v11150_v62 = vcombine.low %v492_v49, %v496_v50  ;;  %v11159_v0 = vcombine.high %v500_v56, %v504_v57 }
 0x31d   :  { %v11161_v1 = vcombine.high %v501_v60, %v505_v61  ;;  %v11160_v9 = vcombine.low %v501_v60, %v505_v61  ;;  %v556_v61 = vld [vmem:[#allocation7 + $0xb10] sm:$0xff] }
 0x31f   :  { %7150 = vmatpush1.bf16.msra.mxu0 %v11102_v4  ;;  %7494 = vmatpush1.bf16.msra.mxu1 %v11104_v5  ;;  %v512_v4 = vld [vmem:[#allocation7 + $0x9b0] sm:$0xff]  ;;  %v509_v5 = vld [vmem:[#allocation7 + $0x998] sm:$0xff] }
 0x320   :  { %7151 = vmatprep.subr.bf16.mxu0 %v11111_v7  ;;  %7495 = vmatprep.subr.bf16.mxu1 %v11113_v8  ;;  %v513_v7 = vld [vmem:[#allocation7 + $0x9b8] sm:$0xff]  ;;  %v11158_v8 = vcombine.low %v500_v56, %v504_v57  ;;  %v11167_v11 = vcombine.high %v508_v2, %v512_v4 }
 0x321   :  { %v11169_v12 = vcombine.high %v509_v5, %v513_v7  ;;  %v11168_v19 = vcombine.low %v509_v5, %v513_v7  ;;  %v564_v7 = vld [vmem:[#allocation7 + $0xb50] sm:$0xff] }
 0x323   :  { %7152 = vmatpush1.bf16.msra.mxu0 %v11110_v14  ;;  %7496 = vmatpush1.bf16.msra.mxu1 %v11112_v16  ;;  %v520_v14 = vld [vmem:[#allocation7 + $0x9f0] sm:$0xff]  ;;  %v517_v16 = vld [vmem:[#allocation7 + $0x9d8] sm:$0xff] }
 0x324   :  { %7164 = vmatprep.subr.bf16.mxu0 %v11119_v17  ;;  %7508 = vmatprep.subr.bf16.mxu1 %v11121_v18  ;;  %v521_v17 = vld [vmem:[#allocation7 + $0x9f8] sm:$0xff]  ;;  %v11166_v18 = vcombine.low %v508_v2, %v512_v4  ;;  %v11175_v20 = vcombine.high %v516_v15, %v520_v14 }
 0x325   :  { %v11177_v21 = vcombine.high %v517_v16, %v521_v17  ;;  %v11176_v28 = vcombine.low %v517_v16, %v521_v17  ;;  %v572_v17 = vld [vmem:[#allocation7 + $0xb90] sm:$0xff] }
 0x326   :  { %7154 = vmatmul.mubr.bf16.vlgmr.msra.gmra.mrb[4].mxu0 %v13582_v30  ;;  %7498 = vmatmul.mubr.bf16.vlgmr.msra.gmra.mrb[4].mxu1 %v13582_v30  ;;  %v11136_v30 = vcombine.low %v477_v31, %v481_v32  ;;  %v532_v32 = vld [vmem:[#allocation7 + $0xa50] sm:$0xff] }
 0x327   :  { %7165 = vmatpush1.bf16.msra.mxu0 %v11118_v23  ;;  %7509 = vmatpush1.bf16.msra.mxu1 %v11120_v25  ;;  %v528_v23 = vld [vmem:[#allocation7 + $0xa30] sm:$0xff]  ;;  %v525_v25 = vld [vmem:[#allocation7 + $0xa18] sm:$0xff] }
 0x328   :  { %7166 = vmatprep.subr.bf16.mxu0 %v11127_v24  ;;  %7510 = vmatprep.subr.bf16.mxu1 %v11129_v27  ;;  %v529_v24 = vld [vmem:[#allocation7 + $0xa38] sm:$0xff]  ;;  %v11174_v27 = vcombine.low %v516_v15, %v520_v14  ;;  %v11183_v29 = vcombine.high %v524_v22, %v528_v23 }
 0x329   :  { %7196 = vmatprep.mubr.bf16.mxu0 %v13584_v37  ;;  %7540 = vmatprep.mubr.bf16.mxu1 %v13584_v37  ;;  %v11153_v37 = vcombine.high %v493_v51, %v497_v58  ;;  %v11185_v31 = vcombine.high %v525_v25, %v529_v24  ;;  %v11184_v40 = vcombine.low %v525_v25, %v529_v24  ;;  %v548_v58 = vld [vmem:[#allocation7 + $0xad0] sm:$0xff] }
 0x32a   :  { %v580_v24 = vld [vmem:[#allocation7 + $0xbd0] sm:$0xff] }
 0x32b   :  { %7167 = vmatpush1.bf16.msra.mxu0 %v11126_v34  ;;  %7511 = vmatpush1.bf16.msra.mxu1 %v11128_v35  ;;  %v536_v34 = vld [vmem:[#allocation7 + $0xa70] sm:$0xff]  ;;  %v533_v35 = vld [vmem:[#allocation7 + $0xa58] sm:$0xff] }
 0x32c   :  { %7168 = vmatprep.subr.bf16.mxu0 %v11135_v36  ;;  %7512 = vmatprep.subr.bf16.mxu1 %v11137_v39  ;;  %v537_v36 = vld [vmem:[#allocation7 + $0xa78] sm:$0xff]  ;;  %v11182_v39 = vcombine.low %v524_v22, %v528_v23  ;;  %v11191_v41 = vcombine.high %v532_v32, %v536_v34 }
 0x32d   :  { %v11193_v42 = vcombine.high %v533_v35, %v537_v36  ;;  %v11192_v49 = vcombine.low %v533_v35, %v537_v36  ;;  %v588_v36 = vld [vmem:[#allocation7 + $0xc10] sm:$0xff] }
 0x32f   :  { %7169 = vmatpush1.bf16.msra.mxu0 %v11134_v44  ;;  %7513 = vmatpush1.bf16.msra.mxu1 %v11136_v30  ;;  %v544_v44 = vld [vmem:[#allocation7 + $0xab0] sm:$0xff]  ;;  %v541_v30 = vld [vmem:[#allocation7 + $0xa98] sm:$0xff] }
 0x330   :  { %7170 = vmatprep.subr.bf16.mxu0 %v11143_v47  ;;  %7514 = vmatprep.subr.bf16.mxu1 %v11145_v48  ;;  %v545_v47 = vld [vmem:[#allocation7 + $0xab8] sm:$0xff]  ;;  %v11190_v48 = vcombine.low %v532_v32, %v536_v34  ;;  %v11199_v50 = vcombine.high %v540_v43, %v544_v44 }
 0x331   :  { %v11201_v51 = vcombine.high %v541_v30, %v545_v47  ;;  %v11200_v56 = vcombine.low %v541_v30, %v545_v47  ;;  %v596_v47 = vld [vmem:[#allocation7 + $0xc50] sm:$0xff] }
 0x333   :  { %7171 = vmatpush1.bf16.msra.mxu0 %v11142_v52  ;;  %7515 = vmatpush1.bf16.msra.mxu1 %v11144_v54  ;;  %v552_v52 = vld [vmem:[#allocation7 + $0xaf0] sm:$0xff]  ;;  %v549_v54 = vld [vmem:[#allocation7 + $0xad8] sm:$0xff] }
 0x334   :  { %7172 = vmatprep.subr.bf16.mxu0 %v11151_v55  ;;  %7516 = vmatprep.subr.bf16.mxu1 %v11153_v37  ;;  %v553_v55 = vld [vmem:[#allocation7 + $0xaf8] sm:$0xff]  ;;  %v11198_v37 = vcombine.low %v540_v43, %v544_v44  ;;  %v11207_v57 = vcombine.high %v548_v58, %v552_v52 }
 0x335   :  { %v11209_v60 = vcombine.high %v549_v54, %v553_v55  ;;  %v11208_v2 = vcombine.low %v549_v54, %v553_v55  ;;  %v604_v55 = vld [vmem:[#allocation7 + $0xc90] sm:$0xff] }
 0x337   :  { %7173 = vmatpush1.bf16.msra.mxu0 %v11150_v62  ;;  %7517 = vmatpush1.bf16.msra.mxu1 %v11152_v63  ;;  %v560_v62 = vld [vmem:[#allocation7 + $0xb30] sm:$0xff]  ;;  %v557_v63 = vld [vmem:[#allocation7 + $0xb18] sm:$0xff] }
 0x338   :  { %7174 = vmatprep.subr.bf16.mxu0 %v11159_v0  ;;  %7518 = vmatprep.subr.bf16.mxu1 %v11161_v1  ;;  %v561_v0 = vld [vmem:[#allocation7 + $0xb38] sm:$0xff]  ;;  %v11206_v1 = vcombine.low %v548_v58, %v552_v52  ;;  %v11215_v4 = vcombine.high %v556_v61, %v560_v62 }
 0x339   :  { %v11217_v5 = vcombine.high %v557_v63, %v561_v0  ;;  %v11216_v15 = vcombine.low %v557_v63, %v561_v0  ;;  %v612_v0 = vld [vmem:[#allocation7 + $0xcd0] sm:$0xff] }
 0x33b   :  { %7175 = vmatpush1.bf16.msra.mxu0 %v11158_v8  ;;  %7519 = vmatpush1.bf16.msra.mxu1 %v11160_v9  ;;  %v568_v8 = vld [vmem:[#allocation7 + $0xb70] sm:$0xff]  ;;  %v565_v9 = vld [vmem:[#allocation7 + $0xb58] sm:$0xff] }
 0x33c   :  { %7176 = vmatprep.subr.bf16.mxu0 %v11167_v11  ;;  %7520 = vmatprep.subr.bf16.mxu1 %v11169_v12  ;;  %v569_v11 = vld [vmem:[#allocation7 + $0xb78] sm:$0xff]  ;;  %v11214_v12 = vcombine.low %v556_v61, %v560_v62  ;;  %v11223_v14 = vcombine.high %v564_v7, %v568_v8 }
 0x33d   :  { %v11225_v16 = vcombine.high %v565_v9, %v569_v11  ;;  %v11224_v22 = vcombine.low %v565_v9, %v569_v11  ;;  %v620_v11 = vld [vmem:[#allocation7 + $0xd10] sm:$0xff] }
 0x33f   :  { %7177 = vmatpush1.bf16.msra.mxu0 %v11166_v18  ;;  %7521 = vmatpush1.bf16.msra.mxu1 %v11168_v19  ;;  %v576_v18 = vld [vmem:[#allocation7 + $0xbb0] sm:$0xff]  ;;  %v573_v19 = vld [vmem:[#allocation7 + $0xb98] sm:$0xff] }
 0x340   :  { %7178 = vmatprep.subr.bf16.mxu0 %v11175_v20  ;;  %7522 = vmatprep.subr.bf16.mxu1 %v11177_v21  ;;  %v577_v20 = vld [vmem:[#allocation7 + $0xbb8] sm:$0xff]  ;;  %v11222_v21 = vcombine.low %v564_v7, %v568_v8  ;;  %v11231_v23 = vcombine.high %v572_v17, %v576_v18 }
 0x341   :  { %v11233_v25 = vcombine.high %v573_v19, %v577_v20  ;;  %v11232_v32 = vcombine.low %v573_v19, %v577_v20  ;;  %v1227_v19 = vld [vmem:[#allocation5] ss:$8 sm:$0xf0] }
 0x343   :  { %7179 = vmatpush1.bf16.msra.mxu0 %v11174_v27  ;;  %7523 = vmatpush1.bf16.msra.mxu1 %v11176_v28  ;;  %v584_v27 = vld [vmem:[#allocation7 + $0xbf0] sm:$0xff]  ;;  %v581_v28 = vld [vmem:[#allocation7 + $0xbd8] sm:$0xff] }
 0x344   :  { %7180 = vmatprep.subr.bf16.mxu0 %v11183_v29  ;;  %7524 = vmatprep.subr.bf16.mxu1 %v11185_v31  ;;  %v585_v29 = vld [vmem:[#allocation7 + $0xbf8] sm:$0xff]  ;;  %v11230_v31 = vcombine.low %v572_v17, %v576_v18  ;;  %v11239_v34 = vcombine.high %v580_v24, %v584_v27 }
 0x345   :  { %v11241_v35 = vcombine.high %v581_v28, %v585_v29  ;;  %v11240_v43 = vcombine.low %v581_v28, %v585_v29  ;;  %v1226_v18 = vld [vmem:[#allocation5] ss:$8 sm:$0xf] }
 0x346   :  { %v633_v28 = vld [vmem:[#allocation7 + $0xd78] sm:$0xff] }
 0x347   :  { %7181 = vmatpush1.bf16.msra.mxu0 %v11182_v39  ;;  %7525 = vmatpush1.bf16.msra.mxu1 %v11184_v40  ;;  %v592_v39 = vld [vmem:[#allocation7 + $0xc30] sm:$0xff]  ;;  %v589_v40 = vld [vmem:[#allocation7 + $0xc18] sm:$0xff] }
 0x348   :  { %7182 = vmatprep.subr.bf16.mxu0 %v11191_v41  ;;  %7526 = vmatprep.subr.bf16.mxu1 %v11193_v42  ;;  %v593_v41 = vld [vmem:[#allocation7 + $0xc38] sm:$0xff]  ;;  %v11238_v42 = vcombine.low %v580_v24, %v584_v27  ;;  %v11247_v44 = vcombine.high %v588_v36, %v592_v39 }
 0x349   :  { %v11249_v30 = vcombine.high %v589_v40, %v593_v41  ;;  %v11248_v58 = vcombine.low %v589_v40, %v593_v41  ;;  %v629_v27 = vld [vmem:[#allocation7 + $0xd58] sm:$0xff]  ;;  %v636_v40 = vld [vmem:[#allocation7 + $0xd90] sm:$0xff] }
 0x34a   :  { %v640_v41 = vld [vmem:[#allocation7 + $0xdb0] sm:$0xff] }
 0x34b   :  { %7183 = vmatpush1.bf16.msra.mxu0 %v11190_v48  ;;  %7527 = vmatpush1.bf16.msra.mxu1 %v11192_v49  ;;  %v600_v48 = vld [vmem:[#allocation7 + $0xc70] sm:$0xff]  ;;  %v597_v49 = vld [vmem:[#allocation7 + $0xc58] sm:$0xff] }
 0x34c   :  { %7184 = vmatprep.subr.bf16.mxu0 %v11199_v50  ;;  %7528 = vmatprep.subr.bf16.mxu1 %v11201_v51  ;;  %v601_v50 = vld [vmem:[#allocation7 + $0xc78] sm:$0xff]  ;;  %v11246_v51 = vcombine.low %v588_v36, %v592_v39  ;;  %v11255_v52 = vcombine.high %v596_v47, %v600_v48  ;;  %v11289_v39 = vcombine.high %v629_v27, %v633_v28 }
 0x34d   :  { %v11257_v54 = vcombine.high %v597_v49, %v601_v50  ;;  %v11256_v61 = vcombine.low %v597_v49, %v601_v50  ;;  %v11288_v50 = vcombine.low %v629_v27, %v633_v28 }
 0x34f   :  { %7185 = vmatpush1.bf16.msra.mxu0 %v11198_v37  ;;  %7529 = vmatpush1.bf16.msra.mxu1 %v11200_v56  ;;  %v608_v37 = vld [vmem:[#allocation7 + $0xcb0] sm:$0xff]  ;;  %v605_v56 = vld [vmem:[#allocation7 + $0xc98] sm:$0xff] }
 0x350   :  { %7186 = vmatprep.subr.bf16.mxu0 %v11207_v57  ;;  %7530 = vmatprep.subr.bf16.mxu1 %v11209_v60  ;;  %v609_v57 = vld [vmem:[#allocation7 + $0xcb8] sm:$0xff]  ;;  %v11254_v60 = vcombine.low %v596_v47, %v600_v48  ;;  %v11263_v62 = vcombine.high %v604_v55, %v608_v37  ;;  %v11262_v7 = vcombine.low %v604_v55, %v608_v37  ;;  %v648_v55 = vld [vmem:[#allocation7 + $0xdf0] sm:$0xff] }
 0x351   :  { %v11265_v63 = vcombine.high %v605_v56, %v609_v57 }
 0x353   :  { %7187 = vmatpush1.bf16.msra.mxu0 %v11206_v1  ;;  %7531 = vmatpush1.bf16.msra.mxu1 %v11208_v2  ;;  %v616_v1 = vld [vmem:[#allocation7 + $0xcf0] sm:$0xff]  ;;  %v613_v2 = vld [vmem:[#allocation7 + $0xcd8] sm:$0xff] }
 0x354   :  { %7188 = vmatprep.subr.bf16.mxu0 %v11215_v4  ;;  %7532 = vmatprep.subr.bf16.mxu1 %v11217_v5  ;;  %v617_v4 = vld [vmem:[#allocation7 + $0xcf8] sm:$0xff]  ;;  %v1230_v5 = vlaneseq  ;;  %v11271_v8 = vcombine.high %v612_v0, %v616_v1  ;;  %v11270_v17 = vcombine.low %v612_v0, %v616_v1 }
 0x355   :  { %v11273_v9 = vcombine.high %v613_v2, %v617_v4 }
 0x357   :  { %7189 = vmatpush1.bf16.msra.mxu0 %v11214_v12  ;;  %7533 = vmatpush1.bf16.msra.mxu1 %v11216_v15  ;;  %v624_v12 = vld [vmem:[#allocation7 + $0xd30] sm:$0xff]  ;;  %v621_v15 = vld [vmem:[#allocation7 + $0xd18] sm:$0xff] }
 0x358   :  { %7190 = vmatprep.subr.bf16.mxu0 %v11223_v14  ;;  %7534 = vmatprep.subr.bf16.mxu1 %v11225_v16  ;;  %v625_v14 = vld [vmem:[#allocation7 + $0xd38] sm:$0xff]  ;;  %v13648_v16 = vshrl.u32 %v1230_v5, 7  ;;  %v11279_v20 = vcombine.high %v620_v11, %v624_v12  ;;  %v11278_v29 = vcombine.low %v620_v11, %v624_v12 }
 0x35a   :  { %v13653_v24 = vsub.s32 0, %v13648_v16 }
 0x35b   :  { %7191 = vmatpush1.bf16.msra.mxu0 %v11222_v21  ;;  %7535 = vmatpush1.bf16.msra.mxu1 %v11224_v22  ;;  %v11281_v21 = vcombine.high %v621_v15, %v625_v14  ;;  %v628_v22 = vld [vmem:[#allocation7 + $0xd50] sm:$0xff] }
 0x35c   :  { %7192 = vmatprep.subr.bf16.mxu0 %v11231_v23  ;;  %7536 = vmatprep.subr.bf16.mxu1 %v11233_v25  ;;  %v632_v23 = vld [vmem:[#allocation7 + $0xd70] sm:$0xff]  ;;  %v13650_v25 = vor.u32 %v1227_v19, %v1226_v18 }
 0x35d   :  { %v11287_v36 = vcombine.high %v628_v22, %v632_v23  ;;  %v11286_v48 = vcombine.low %v628_v22, %v632_v23  ;;  %v656_v18 = vld [vmem:[#allocation7 + $0xe30] sm:$0xff]  ;;  %v657_v22 = vld [vmem:[#allocation7 + $0xe38] sm:$0xff] }
 0x35f   :  { %7193 = vmatpush1.bf16.msra.mxu0 %v11230_v31  ;;  %7537 = vmatpush1.bf16.msra.mxu1 %v11232_v32  ;;  %v1240_v31 = vsub.s32 2, %v13648_v16  ;;  %v13657_v32 = vsub.s32 1, %v13648_v16 }
 0x360   :  { %7194 = vmatprep.subr.bf16.mxu0 %v11239_v34  ;;  %7538 = vmatprep.subr.bf16.mxu1 %v11241_v35  ;;  %v11280_v34 = vcombine.low %v621_v15, %v625_v14  ;;  %v1244_v35 = vsub.s32 3, %v13648_v16 }
 0x361   :  { %v1237_v47 = vrot.slane %v13650_v25, %v13657_v32 }
 0x362   :  { %v1245_v49 = vrot.slane %v13650_v25, %v1244_v35 }
 0x363   :  { %7195 = vmatpush1.bf16.msra.mxu0 %v11238_v42  ;;  %7539 = vmatpush1.bf16.msra.mxu1 %v11240_v43  ;;  %v1233_v42 = vrot.slane %v13650_v25, %v13653_v24  ;;  %v637_v43 = vld [vmem:[#allocation7 + $0xd98] sm:$0xff] }
 0x364   :  { %7207 = vmatprep.subr.bf16.mxu0 %v11247_v44  ;;  %7551 = vmatprep.subr.bf16.mxu1 %v11249_v30  ;;  %v641_v44 = vld [vmem:[#allocation7 + $0xdb8] sm:$0xff]  ;;  %v1241_v30 = vrot.slane %v13650_v25, %v1240_v31 }
 0x366   :  { %7197 = vmatmul.mubr.bf16.vlgmr.msra.gmra.mrb[4].mxu0 %v13590_v46  ;;  %7541 = vmatmul.mubr.bf16.vlgmr.msra.gmra.mrb[4].mxu1 %v13590_v46  ;;  %v11264_v46 = vcombine.low %v605_v56, %v609_v57 }
 0x367   :  { %7208 = vmatpush1.bf16.msra.mxu0 %v11246_v51  ;;  %7552 = vmatpush1.bf16.msra.mxu1 %v11248_v58  ;;  %v11295_v51 = vcombine.high %v636_v40, %v640_v41 }
 0x368   :  { %7209 = vmatprep.subr.bf16.mxu0 %v11255_v52  ;;  %7553 = vmatprep.subr.bf16.mxu1 %v11257_v54  ;;  %v11297_v52 = vcombine.high %v637_v43, %v641_v44  ;;  %v644_v54 = vld [vmem:[#allocation7 + $0xdd0] sm:$0xff] }
 0x369   :  { %7239 = vmatprep.mubr.bf16.mxu0 %v13592_v53  ;;  %7583 = vmatprep.mubr.bf16.mxu1 %v13592_v53  ;;  %v11272_v53 = vcombine.low %v613_v2, %v617_v4  ;;  %v11294_v2 = vcombine.low %v636_v40, %v640_v41  ;;  %v11296_v4 = vcombine.low %v637_v43, %v641_v44  ;;  %v660_v41 = vld [vmem:[#allocation7 + $0xe50] sm:$0xff] }
 0x36a   :  { %v11303_v11 = vcombine.high %v644_v54, %v648_v55 }
 0x36b   :  { %7210 = vmatpush1.bf16.msra.mxu0 %v11254_v60  ;;  %7554 = vmatpush1.bf16.msra.mxu1 %v11256_v61  ;;  %v645_v60 = vld [vmem:[#allocation7 + $0xdd8] sm:$0xff] }
 0x36c   :  { %7211 = vmatprep.subr.bf16.mxu0 %v11263_v62  ;;  %7555 = vmatprep.subr.bf16.mxu1 %v11265_v63  ;;  %v649_v61 = vld [vmem:[#allocation7 + $0xdf8] sm:$0xff] }
 0x36d   :  { %v11305_v14 = vcombine.high %v645_v60, %v649_v61 }
 0x36f   :  { %7212 = vmatpush1.bf16.msra.mxu0 %v11262_v7  ;;  %7556 = vmatpush1.bf16.msra.mxu1 %v11264_v46 }
 0x370   :  { %7213 = vmatprep.subr.bf16.mxu0 %v11271_v8  ;;  %7557 = vmatprep.subr.bf16.mxu1 %v11273_v9 }
 0x373   :  { %7214 = vmatpush1.bf16.msra.mxu0 %v11270_v17  ;;  %7558 = vmatpush1.bf16.msra.mxu1 %v11272_v53  ;;  %v652_v17 = vld [vmem:[#allocation7 + $0xe10] sm:$0xff] }
 0x374   :  { %7215 = vmatprep.subr.bf16.mxu0 %v11279_v20  ;;  %7559 = vmatprep.subr.bf16.mxu1 %v11281_v21  ;;  %v11302_v20 = vcombine.low %v644_v54, %v648_v55  ;;  %v653_v21 = vld [vmem:[#allocation7 + $0xe18] sm:$0xff] }
 0x375   :  { %v11313_v40 = vcombine.high %v653_v21, %v657_v22  ;;  %v669_v54 = vld [vmem:[#allocation7 + $0xe98] sm:$0xff] }
 0x376   :  { %v673_v55 = vld [vmem:[#allocation7 + $0xeb8] sm:$0xff] }
 0x377   :  { %7216 = vmatpush1.bf16.msra.mxu0 %v11278_v29  ;;  %7560 = vmatpush1.bf16.msra.mxu1 %v11280_v34  ;;  %v11304_v34 = vcombine.low %v645_v60, %v649_v61  ;;  %v13696_v60 = vld [vmem:[#allocation7 + $0xef0] sm:$0xff] }
 0x378   :  { %7217 = vmatprep.subr.bf16.mxu0 %v11287_v36  ;;  %7561 = vmatprep.subr.bf16.mxu1 %v11289_v39  ;;  %v11311_v36 = vcombine.high %v652_v17, %v656_v18 }
 0x379   :  { %v6725_v58 = vpop.f32.mrb[0].mxu0  ;;  %v7069_v56 = vpop.f32.mrb[0].mxu1 }
 0x37a   :  { %v13670_v37 = vadd.f32 %v6725_v58, %v1233_v42  ;;  %v6727_v57 = vpop.f32.mrb[1].mxu0  ;;  %v13672_v62 = vadd.f32 %v7069_v56, %v1241_v30  ;;  %v7071_v0 = vpop.f32.mrb[1].mxu1  ;;  %v668_v58 = vld [vmem:[#allocation7 + $0xe90] sm:$0xff] }
 0x37b   :  { %v13674_v63 = vadd.f32 %v6727_v57, %v1237_v47  ;;  %v6729_v1 = vpop.f32.mrb[2].mxu0  ;;  %7218 = vmatpush1.bf16.msra.mxu0 %v11286_v48  ;;  %v13677_v7 = vadd.f32 %v7071_v0, %v1245_v49  ;;  %v7073_v8 = vpop.f32.mrb[2].mxu1  ;;  %7562 = vmatpush1.bf16.msra.mxu1 %v11288_v50  ;;  %v11310_v48 = vcombine.low %v652_v17, %v656_v18  ;;  %v13694_v57 = vld [vmem:[#allocation7 + $0xed0] sm:$0xff] }
 0x37c   :  { %v7782_v5 = vmul.f32 0.70710677, %v13670_v37  ;;  %v13679_v46 = vadd.f32 %v6729_v1, %v1233_v42  ;;  %v6731_v9 = vpop.f32.mrb[3].mxu0  ;;  %7219 = vmatprep.subr.bf16.mxu0 %v11295_v51  ;;  %v7784_v12 = vmul.f32 0.70710677, %v13672_v62  ;;  %7563 = vmatprep.subr.bf16.mxu1 %v11297_v52  ;;  %v7075_v53 = vpop.f32.mrb[3].mxu1  ;;  %v13685_v27 = vadd.f32 %v7073_v8, %v1241_v30 }
 0x37d   :  { %v7783_v15 = vmul.f32 0.70710677, %v13674_v63  ;;  %v7785_v19 = vmul.f32 0.70710677, %v13677_v7  ;;  %v13687_v28 = vadd.f32 %v6731_v9, %v1237_v47  ;;  %v13689_v29 = vadd.f32 %v7075_v53, %v1245_v49  ;;  %v664_v42 = vld [vmem:[#allocation7 + $0xe70] sm:$0xff]  ;;  %v661_v30 = vld [vmem:[#allocation7 + $0xe58] sm:$0xff] }
 0x37e   :  { %13069 = verf.f32 %v7782_v5  ;;  %v7790_v23 = vmul.f32 0.70710677, %v13679_v46  ;;  %v7792_v39 = vmul.f32 0.70710677, %v13685_v27  ;;  %v665_v47 = vld [vmem:[#allocation7 + $0xe78] sm:$0xff]  ;;  %v11312_v49 = vcombine.low %v653_v21, %v657_v22  ;;  %v672_v52 = vld [vmem:[#allocation7 + $0xeb0] sm:$0xff] }
 0x37f   :  { %13071 = verf.f32 %v7784_v12  ;;  %7220 = vmatpush1.bf16.msra.mxu0 %v11294_v2  ;;  %7564 = vmatpush1.bf16.msra.mxu1 %v11296_v4  ;;  %v7791_v43 = vmul.f32 0.70710677, %v13687_v28  ;;  %v7793_v44 = vmul.f32 0.70710677, %v13689_v29  ;;  %v11319_v50 = vcombine.high %v660_v41, %v664_v42  ;;  %v13698_v2 = vld [vmem:[#allocation7 + $0xed8] sm:$0xff]  ;;  %v13702_v9 = vld [vmem:[#allocation7 + $0xf10] sm:$0xff] }
 0x380   :  { %13073 = verf.f32 %v7783_v15  ;;  %7221 = vmatprep.subr.bf16.mxu0 %v11303_v11  ;;  %7565 = vmatprep.subr.bf16.mxu1 %v11305_v14  ;;  %v11321_v51 = vcombine.high %v661_v30, %v665_v47  ;;  %v11318_v56 = vcombine.low %v660_v41, %v664_v42  ;;  %v11320_v0 = vcombine.low %v661_v30, %v665_v47  ;;  %v13700_v4 = vld [vmem:[#allocation7 + $0xef8] sm:$0xff]  ;;  %v13704_v11 = vld [vmem:[#allocation7 + $0xf30] sm:$0xff] }
 0x381   :  { %13075 = verf.f32 %v7785_v19  ;;  %v11327_v1 = vcombine.high %v668_v58, %v672_v52  ;;  %v11329_v8 = vcombine.high %v669_v54, %v673_v55  ;;  %v11326_v15 = vcombine.low %v668_v58, %v672_v52 }
 0x382   :  { %13077 = verf.f32 %v7790_v23  ;;  %v11328_v14 = vcombine.low %v669_v54, %v673_v55  ;;  %v11334_v17 = vcombine.low %v13694_v57, %v13696_v60  ;;  %v11335_v53 = vcombine.high %v13694_v57, %v13696_v60 }
 0x383   :  { %13079 = verf.f32 %v7792_v39  ;;  %7222 = vmatpush1.bf16.msra.mxu0 %v11302_v20  ;;  %7566 = vmatpush1.bf16.msra.mxu1 %v11304_v34  ;;  %v11336_v20 = vcombine.low %v13698_v2, %v13700_v4  ;;  %v11337_v21 = vcombine.high %v13698_v2, %v13700_v4  ;;  %v7766_v23 = vmul.f32 0.5, %v13670_v37 }
 0x384   :  { %13081 = verf.f32 %v7791_v43  ;;  %7223 = vmatprep.subr.bf16.mxu0 %v11311_v36  ;;  %7567 = vmatprep.subr.bf16.mxu1 %v11313_v40  ;;  %v7768_v34 = vmul.f32 0.5, %v13672_v62  ;;  %v11343_v39 = vcombine.high %v13702_v9, %v13704_v11  ;;  %v7767_v41 = vmul.f32 0.5, %v13674_v63 }
 0x385   :  { %13083 = verf.f32 %v7793_v44  ;;  %v7774_v43 = vmul.f32 0.5, %v13679_v46  ;;  %v7769_v47 = vmul.f32 0.5, %v13677_v7  ;;  %v7776_v62 = vmul.f32 0.5, %v13685_v27 }
 0x386   :  { %v7775_v54 = vmul.f32 0.5, %v13687_v28 }
 0x387   :  { %7224 = vmatpush1.bf16.msra.mxu0 %v11310_v48  ;;  %7568 = vmatpush1.bf16.msra.mxu1 %v11312_v49  ;;  %v685_v49 = vld [vmem:[#allocation7 + $0xf18] sm:$0xff] }
 0x388   :  { %v13070_v61 = vpop.eup %13069  ;;  %7225 = vmatprep.subr.bf16.mxu0 %v11319_v50  ;;  %7569 = vmatprep.subr.bf16.mxu1 %v11321_v51  ;;  %v689_v50 = vld [vmem:[#allocation7 + $0xf38] sm:$0xff] }
 0x389   :  { %v13072_v5 = vpop.eup %13071  ;;  %v7814_v19 = vadd.f32 1.0, %v13070_v61  ;;  %v11345_v61 = vcombine.high %v685_v49, %v689_v50 }
 0x38a   :  { %v13074_v12 = vpop.eup %13073  ;;  %v7816_v36 = vadd.f32 1.0, %v13072_v5  ;;  %v693_v5 = vld [vmem:[#allocation7 + $0xf58] sm:$0xff] }
 0x38b   :  { %v13076_v18 = vpop.eup %13075  ;;  %7226 = vmatpush1.bf16.msra.mxu0 %v11318_v56  ;;  %7570 = vmatpush1.bf16.msra.mxu1 %v11320_v0  ;;  %v7815_v42 = vadd.f32 1.0, %v13074_v12  ;;  %v7830_v58 = vmul.f32 %v7814_v19, %v7766_v23  ;;  %v7777_v56 = vmul.f32 0.5, %v13689_v29  ;;  %v692_v0 = vld [vmem:[#allocation7 + $0xf50] sm:$0xff]  ;;  %v11342_v29 = vcombine.low %v13702_v9, %v13704_v11  ;;  %v705_v23 = vld [vmem:[#allocation7 + $0xfb8] sm:$0xff] }
 0x38c   :  { %v13078_v22 = vpop.eup %13077  ;;  %7227 = vmatprep.subr.bf16.mxu0 %v11327_v1  ;;  %7571 = vmatprep.subr.bf16.mxu1 %v11329_v8  ;;  %v7817_v37 = vadd.f32 1.0, %v13076_v18  ;;  %v7832_v55 = vmul.f32 %v7816_v36, %v7768_v34  ;;  %v696_v1 = vld [vmem:[#allocation7 + $0xf70] sm:$0xff]  ;;  %v697_v8 = vld [vmem:[#allocation7 + $0xf78] sm:$0xff] }
 0x38d   :  { %v13080_v40 = vpop.eup %13079  ;;  %v7822_v44 = vadd.f32 1.0, %v13078_v22  ;;  %v7831_v7 = vmul.f32 %v7815_v42, %v7767_v41  ;;  %v11353_v19 = vcombine.high %v693_v5, %v697_v8  ;;  %v701_v22 = vld [vmem:[#allocation7 + $0xf98] sm:$0xff]  ;;  %v11350_v34 = vcombine.low %v692_v0, %v696_v1  ;;  %v712_v36 = vld [vmem:[#allocation7 + $0xff0] sm:$0xff] }
 0x38e   :  { %v13082_v30 = vpop.eup %13081  ;;  %v7824_v48 = vadd.f32 1.0, %v13080_v40  ;;  %v7833_v2 = vmul.f32 %v7817_v37, %v7769_v47  ;;  %v11361_v11 = vcombine.high %v701_v22, %v705_v23  ;;  %v713_v40 = vld [vmem:[#allocation7 + $0xff8] sm:$0xff]  ;;  %v11360_v42 = vcombine.low %v701_v22, %v705_v23  ;;  %v720_v47 = vld [vmem:[#allocation7 + $0x1030] sm:$0xff] }
 0x38f   :  { %v13084_v51 = vpop.eup %13083  ;;  %v7838_v52 = vmul.f32 %v7822_v44, %v7774_v43  ;;  %v7823_v63 = vadd.f32 1.0, %v13082_v30  ;;  %7228 = vmatpush1.bf16.msra.mxu0 %v11326_v15  ;;  %7572 = vmatpush1.bf16.msra.mxu1 %v11328_v14  ;;  %v11344_v15 = vcombine.low %v685_v49, %v689_v50  ;;  %v11351_v14 = vcombine.high %v692_v0, %v696_v1  ;;  %v716_v30 = vld [vmem:[#allocation7 + $0x1010] sm:$0xff]  ;;  %v717_v37 = vld [vmem:[#allocation7 + $0x1018] sm:$0xff] }
 0x390   :  { %v7840_v46 = vmul.f32 %v7824_v48, %v7776_v62  ;;  %v7825_v57 = vadd.f32 1.0, %v13084_v51  ;;  %7229 = vmatprep.subr.bf16.mxu0 %v11335_v53  ;;  %7573 = vmatprep.subr.bf16.mxu1 %v11337_v21  ;;  %v700_v53 = vld [vmem:[#allocation7 + $0xf90] sm:$0xff]  ;;  %v721_v62 = vld [vmem:[#allocation7 + $0x1038] sm:$0xff]  ;;  %v11375_v50 = vcombine.high %v716_v30, %v720_v47 }
 0x391   :  { %v13724_v60 = vpack.c.bf16 %v7838_v52, %v7830_v58  ;;  %v7839_v27 = vmul.f32 %v7823_v63, %v7775_v54  ;;  %v704_v21 = vld [vmem:[#allocation7 + $0xfb0] sm:$0xff]  ;;  %v11377_v51 = vcombine.high %v717_v37, %v721_v62  ;;  %v725_v54 = vld [vmem:[#allocation7 + $0x1058] sm:$0xff] }
 0x392   :  { %v13726_v4 = vpack.c.bf16 %v7840_v46, %v7832_v55  ;;  %v7841_v28 = vmul.f32 %v7825_v57, %v7777_v56  ;;  %v11359_v9 = vcombine.high %v700_v53, %v704_v21  ;;  %v11358_v41 = vcombine.low %v700_v53, %v704_v21  ;;  %v724_v58 = vld [vmem:[#allocation7 + $0x1050] sm:$0xff]  ;;  %v729_v63 = vld [vmem:[#allocation7 + $0x1078] sm:$0xff] }
 0x393   :  { %7230 = vmatpush1.bf16.msra.mxu0 %v11334_v17  ;;  %v13730_v12 = vpack.c.bf16 %v7839_v27, %v7831_v7  ;;  %7574 = vmatpush1.bf16.msra.mxu1 %v11336_v20  ;;  %v11352_v17 = vcombine.low %v693_v5, %v697_v8  ;;  %v708_v20 = vld [vmem:[#allocation7 + $0xfd0] sm:$0xff]  ;;  %v11374_v55 = vcombine.low %v716_v30, %v720_v47  ;;  %v737_v0 = vld [vmem:[#allocation7 + $0x10b8] sm:$0xff] }
 0x394   :  { %7231 = vmatprep.subr.bf16.mxu0 %v11343_v39  ;;  %v13732_v18 = vpack.c.bf16 %v7841_v28, %v7833_v2  ;;  %7575 = vmatprep.subr.bf16.mxu1 %v11345_v61  ;;  %v709_v39 = vld [vmem:[#allocation7 + $0xfd8] sm:$0xff]  ;;  %v11367_v43 = vcombine.high %v708_v20, %v712_v36  ;;  %v11366_v48 = vcombine.low %v708_v20, %v712_v36  ;;  %v728_v52 = vld [vmem:[#allocation7 + $0x1070] sm:$0xff] }
 0x395   :  { %v11369_v44 = vcombine.high %v709_v39, %v713_v40  ;;  %v11368_v49 = vcombine.low %v709_v39, %v713_v40  ;;  %v11376_v46 = vcombine.low %v717_v37, %v721_v62  ;;  %v11383_v56 = vcombine.high %v724_v58, %v728_v52  ;;  %v732_v7 = vld [vmem:[#allocation7 + $0x1090] sm:$0xff]  ;;  %v733_v61 = vld [vmem:[#allocation7 + $0x1098] sm:$0xff] }
 0x396   :  { %v11385_v57 = vcombine.high %v725_v54, %v729_v63  ;;  %v736_v27 = vld [vmem:[#allocation7 + $0x10b0] sm:$0xff]  ;;  %v11382_v1 = vcombine.low %v724_v58, %v728_v52  ;;  %v11384_v2 = vcombine.low %v725_v54, %v729_v63  ;;  %v11393_v5 = vcombine.high %v733_v61, %v737_v0  ;;  %v757_v40 = vld [vmem:[#allocation7 + $0x1158] sm:$0xff] }
 0x397   :  { %7232 = vmatpush1.bf16.msra.mxu0 %v11342_v29  ;;  %7576 = vmatpush1.bf16.msra.mxu1 %v11344_v15  ;;  %v11391_v28 = vcombine.high %v732_v7, %v736_v27  ;;  %v740_v8 = vld [vmem:[#allocation7 + $0x10d0] sm:$0xff]  ;;  %v741_v15 = vld [vmem:[#allocation7 + $0x10d8] sm:$0xff] }
 0x398   :  { %7233 = vmatprep.subr.bf16.mxu0 %v11351_v14  ;;  %7577 = vmatprep.subr.bf16.mxu1 %v11353_v19  ;;  %v744_v29 = vld [vmem:[#allocation7 + $0x10f0] sm:$0xff]  ;;  %v745_v14 = vld [vmem:[#allocation7 + $0x10f8] sm:$0xff]  ;;  %v11390_v19 = vcombine.low %v732_v7, %v736_v27 }
 0x399   :  { %v11399_v53 = vcombine.high %v740_v8, %v744_v29  ;;  %v11401_v21 = vcombine.high %v741_v15, %v745_v14  ;;  %v748_v22 = vld [vmem:[#allocation7 + $0x1110] sm:$0xff]  ;;  %v765_v62 = vld [vmem:[#allocation7 + $0x1198] sm:$0xff] }
 0x39a   :  { %v752_v23 = vld [vmem:[#allocation7 + $0x1130] sm:$0xff]  ;;  %v773_v63 = vld [vmem:[#allocation7 + $0x11d8] sm:$0xff] }
 0x39b   :  { %7234 = vmatpush1.bf16.msra.mxu0 %v11350_v34  ;;  %7578 = vmatpush1.bf16.msra.mxu1 %v11352_v17  ;;  %v749_v34 = vld [vmem:[#allocation7 + $0x1118] sm:$0xff]  ;;  %v11407_v20 = vcombine.high %v748_v22, %v752_v23  ;;  %v756_v36 = vld [vmem:[#allocation7 + $0x1150] sm:$0xff] }
 0x39c   :  { %7235 = vmatprep.subr.bf16.mxu0 %v11359_v9  ;;  %7579 = vmatprep.subr.bf16.mxu1 %v11361_v11  ;;  %v753_v17 = vld [vmem:[#allocation7 + $0x1138] sm:$0xff]  ;;  %v11398_v9 = vcombine.low %v740_v8, %v744_v29  ;;  %v11400_v11 = vcombine.low %v741_v15, %v745_v14  ;;  %v760_v39 = vld [vmem:[#allocation7 + $0x1170] sm:$0xff] }
 0x39d   :  { %v764_v47 = vld [vmem:[#allocation7 + $0x1190] sm:$0xff]  ;;  %v789_v14 = vld [vmem:[#allocation7 + $0x1258] sm:$0xff] }
 0x39e   :  { %v768_v37 = vld [vmem:[#allocation7 + $0x11b0] sm:$0xff] }
 0x39f   :  { %7236 = vmatpush1.bf16.msra.mxu0 %v11358_v41  ;;  %7580 = vmatpush1.bf16.msra.mxu1 %v11360_v42  ;;  %v761_v41 = vld [vmem:[#allocation7 + $0x1178] sm:$0xff]  ;;  %v11406_v42 = vcombine.low %v748_v22, %v752_v23  ;;  %v772_v52 = vld [vmem:[#allocation7 + $0x11d0] sm:$0xff] }
 0x3a0   :  { %7237 = vmatprep.subr.bf16.mxu0 %v11367_v43  ;;  %7581 = vmatprep.subr.bf16.mxu1 %v11369_v44  ;;  %v11408_v43 = vcombine.low %v749_v34, %v753_v17  ;;  %v11415_v44 = vcombine.high %v756_v36, %v760_v39  ;;  %v11417_v30 = vcombine.high %v757_v40, %v761_v41  ;;  %v776_v54 = vld [vmem:[#allocation7 + $0x11f0] sm:$0xff] }
 0x3a1   :  { %v780_v27 = vld [vmem:[#allocation7 + $0x1210] sm:$0xff] }
 0x3a2   :  { %v788_v29 = vld [vmem:[#allocation7 + $0x1250] sm:$0xff] }
 0x3a3   :  { %7238 = vmatpush1.bf16.msra.mxu0 %v11366_v48  ;;  %7582 = vmatpush1.bf16.msra.mxu1 %v11368_v49  ;;  %v769_v48 = vld [vmem:[#allocation7 + $0x11b8] sm:$0xff]  ;;  %v11414_v49 = vcombine.low %v756_v36, %v760_v39  ;;  %v792_v15 = vld [vmem:[#allocation7 + $0x1270] sm:$0xff] }
 0x3a4   :  { %7250 = vmatprep.subr.bf16.mxu0 %v11375_v50  ;;  %7594 = vmatprep.subr.bf16.mxu1 %v11377_v51  ;;  %v11416_v50 = vcombine.low %v757_v40, %v761_v41  ;;  %v11423_v51 = vcombine.high %v764_v47, %v768_v37  ;;  %v11425_v58 = vcombine.high %v765_v62, %v769_v48  ;;  %v796_v23 = vld [vmem:[#allocation7 + $0x1290] sm:$0xff]  ;;  %v805_v41 = vld [vmem:[#allocation7 + $0x12d8] sm:$0xff] }
 0x3a5   :  { %v804_v39 = vld [vmem:[#allocation7 + $0x12d0] sm:$0xff] }
 0x3a6   :  { %7240 = vmatmul.mubr.bf16.vlgmr.msra.gmra.mrb[4].mxu0 %v13598_v3  ;;  %7584 = vmatmul.mubr.bf16.vlgmr.msra.gmra.mrb[4].mxu1 %v13598_v3  ;;  %v11392_v3 = vcombine.low %v733_v61, %v737_v0  ;;  %v784_v61 = vld [vmem:[#allocation7 + $0x1230] sm:$0xff]  ;;  %v781_v0 = vld [vmem:[#allocation7 + $0x1218] sm:$0xff] }
 0x3a7   :  { %7251 = vmatpush1.bf16.msra.mxu0 %v11374_v55  ;;  %7595 = vmatpush1.bf16.msra.mxu1 %v11376_v46  ;;  %v777_v55 = vld [vmem:[#allocation7 + $0x11f8] sm:$0xff]  ;;  %v11422_v46 = vcombine.low %v764_v47, %v768_v37  ;;  %v808_v40 = vld [vmem:[#allocation7 + $0x12f0] sm:$0xff] }
 0x3a8   :  { %7252 = vmatprep.subr.bf16.mxu0 %v11383_v56  ;;  %7596 = vmatprep.subr.bf16.mxu1 %v11385_v57  ;;  %v11424_v56 = vcombine.low %v765_v62, %v769_v48  ;;  %v11431_v57 = vcombine.high %v772_v52, %v776_v54  ;;  %v11433_v7 = vcombine.high %v773_v63, %v777_v55  ;;  %v812_v37 = vld [vmem:[#allocation7 + $0x1310] sm:$0xff]  ;;  %v813_v48 = vld [vmem:[#allocation7 + $0x1318] sm:$0xff] }
 0x3a9   :  { %7282 = vmatprep.mubr.bf16.mxu0 %v13600_v10  ;;  %7626 = vmatprep.mubr.bf16.mxu1 %v13600_v10  ;;  %v11409_v10 = vcombine.high %v749_v34, %v753_v17  ;;  %v800_v34 = vld [vmem:[#allocation7 + $0x12b0] sm:$0xff]  ;;  %v797_v17 = vld [vmem:[#allocation7 + $0x1298] sm:$0xff] }
 0x3aa   :  { %v816_v62 = vld [vmem:[#allocation7 + $0x1330] sm:$0xff] }
 0x3ab   :  { %7253 = vmatpush1.bf16.msra.mxu0 %v11382_v1  ;;  %7597 = vmatpush1.bf16.msra.mxu1 %v11384_v2  ;;  %v785_v1 = vld [vmem:[#allocation7 + $0x1238] sm:$0xff]  ;;  %v11430_v2 = vcombine.low %v772_v52, %v776_v54  ;;  %v820_v54 = vld [vmem:[#allocation7 + $0x1350] sm:$0xff] }
 0x3ac   :  { %7254 = vmatprep.subr.bf16.mxu0 %v11391_v28  ;;  %7598 = vmatprep.subr.bf16.mxu1 %v11393_v5  ;;  %v11432_v28 = vcombine.low %v773_v63, %v777_v55  ;;  %v11439_v5 = vcombine.high %v780_v27, %v784_v61  ;;  %v11441_v8 = vcombine.high %v781_v0, %v785_v1  ;;  %v824_v63 = vld [vmem:[#allocation7 + $0x1370] sm:$0xff]  ;;  %v821_v55 = vld [vmem:[#allocation7 + $0x1358] sm:$0xff] }
 0x3af   :  { %7255 = vmatpush1.bf16.msra.mxu0 %v11390_v19  ;;  %7599 = vmatpush1.bf16.msra.mxu1 %v11392_v3  ;;  %v793_v19 = vld [vmem:[#allocation7 + $0x1278] sm:$0xff]  ;;  %v11438_v3 = vcombine.low %v780_v27, %v784_v61  ;;  %v828_v61 = vld [vmem:[#allocation7 + $0x1390] sm:$0xff] }
 0x3b0   :  { %7256 = vmatprep.subr.bf16.mxu0 %v11399_v53  ;;  %7600 = vmatprep.subr.bf16.mxu1 %v11401_v21  ;;  %v11440_v53 = vcombine.low %v781_v0, %v785_v1  ;;  %v11447_v21 = vcombine.high %v788_v29, %v792_v15  ;;  %v11449_v22 = vcombine.high %v789_v14, %v793_v19  ;;  %v832_v0 = vld [vmem:[#allocation7 + $0x13b0] sm:$0xff]  ;;  %v829_v1 = vld [vmem:[#allocation7 + $0x1398] sm:$0xff] }
 0x3b3   :  { %7257 = vmatpush1.bf16.msra.mxu0 %v11398_v9  ;;  %7601 = vmatpush1.bf16.msra.mxu1 %v11400_v11  ;;  %v801_v9 = vld [vmem:[#allocation7 + $0x12b8] sm:$0xff]  ;;  %v11446_v11 = vcombine.low %v788_v29, %v792_v15  ;;  %v836_v15 = vld [vmem:[#allocation7 + $0x13d0] sm:$0xff] }
 0x3b4   :  { %7258 = vmatprep.subr.bf16.mxu0 %v11407_v20  ;;  %7602 = vmatprep.subr.bf16.mxu1 %v11409_v10  ;;  %v11448_v20 = vcombine.low %v789_v14, %v793_v19  ;;  %v11455_v10 = vcombine.high %v796_v23, %v800_v34  ;;  %v11457_v36 = vcombine.high %v797_v17, %v801_v9  ;;  %v840_v14 = vld [vmem:[#allocation7 + $0x13f0] sm:$0xff]  ;;  %v837_v19 = vld [vmem:[#allocation7 + $0x13d8] sm:$0xff] }
 0x3b7   :  { %7259 = vmatpush1.bf16.msra.mxu0 %v11406_v42  ;;  %7603 = vmatpush1.bf16.msra.mxu1 %v11408_v43  ;;  %v809_v42 = vld [vmem:[#allocation7 + $0x12f8] sm:$0xff]  ;;  %v11454_v43 = vcombine.low %v796_v23, %v800_v34  ;;  %v844_v34 = vld [vmem:[#allocation7 + $0x1410] sm:$0xff] }
 0x3b8   :  { %7260 = vmatprep.subr.bf16.mxu0 %v11415_v44  ;;  %7604 = vmatprep.subr.bf16.mxu1 %v11417_v30  ;;  %v11456_v44 = vcombine.low %v797_v17, %v801_v9  ;;  %v11463_v30 = vcombine.high %v804_v39, %v808_v40  ;;  %v11465_v47 = vcombine.high %v805_v41, %v809_v42  ;;  %v848_v17 = vld [vmem:[#allocation7 + $0x1430] sm:$0xff]  ;;  %v845_v9 = vld [vmem:[#allocation7 + $0x1418] sm:$0xff] }
 0x3bb   :  { %7261 = vmatpush1.bf16.msra.mxu0 %v11414_v49  ;;  %7605 = vmatpush1.bf16.msra.mxu1 %v11416_v50  ;;  %v817_v49 = vld [vmem:[#allocation7 + $0x1338] sm:$0xff]  ;;  %v11462_v50 = vcombine.low %v804_v39, %v808_v40  ;;  %v852_v40 = vld [vmem:[#allocation7 + $0x1450] sm:$0xff] }
 0x3bc   :  { %7262 = vmatprep.subr.bf16.mxu0 %v11423_v51  ;;  %7606 = vmatprep.subr.bf16.mxu1 %v11425_v58  ;;  %v11464_v51 = vcombine.low %v805_v41, %v809_v42  ;;  %v11471_v58 = vcombine.high %v812_v37, %v816_v62  ;;  %v11473_v52 = vcombine.high %v813_v48, %v817_v49  ;;  %v856_v41 = vld [vmem:[#allocation7 + $0x1470] sm:$0xff]  ;;  %v853_v42 = vld [vmem:[#allocation7 + $0x1458] sm:$0xff] }
 0x3bf   :  { %7263 = vmatpush1.bf16.msra.mxu0 %v11422_v46  ;;  %7607 = vmatpush1.bf16.msra.mxu1 %v11424_v56  ;;  %v825_v46 = vld [vmem:[#allocation7 + $0x1378] sm:$0xff]  ;;  %v11470_v56 = vcombine.low %v812_v37, %v816_v62  ;;  %v860_v62 = vld [vmem:[#allocation7 + $0x1490] sm:$0xff] }
 0x3c0   :  { %7264 = vmatprep.subr.bf16.mxu0 %v11431_v57  ;;  %7608 = vmatprep.subr.bf16.mxu1 %v11433_v7  ;;  %v11472_v57 = vcombine.low %v813_v48, %v817_v49  ;;  %v11479_v7 = vcombine.high %v820_v54, %v824_v63  ;;  %v11481_v27 = vcombine.high %v821_v55, %v825_v46  ;;  %v864_v48 = vld [vmem:[#allocation7 + $0x14b0] sm:$0xff]  ;;  %v861_v49 = vld [vmem:[#allocation7 + $0x1498] sm:$0xff] }
 0x3c3   :  { %7265 = vmatpush1.bf16.msra.mxu0 %v11430_v2  ;;  %7609 = vmatpush1.bf16.msra.mxu1 %v11432_v28  ;;  %v833_v2 = vld [vmem:[#allocation7 + $0x13b8] sm:$0xff]  ;;  %v11478_v28 = vcombine.low %v820_v54, %v824_v63  ;;  %v868_v63 = vld [vmem:[#allocation7 + $0x14d0] sm:$0xff] }
 0x3c4   :  { %7266 = vmatprep.subr.bf16.mxu0 %v11439_v5  ;;  %7610 = vmatprep.subr.bf16.mxu1 %v11441_v8  ;;  %v11480_v5 = vcombine.low %v821_v55, %v825_v46  ;;  %v11487_v8 = vcombine.high %v828_v61, %v832_v0  ;;  %v11489_v29 = vcombine.high %v829_v1, %v833_v2  ;;  %v872_v55 = vld [vmem:[#allocation7 + $0x14f0] sm:$0xff]  ;;  %v869_v46 = vld [vmem:[#allocation7 + $0x14d8] sm:$0xff] }
 0x3c7   :  { %7267 = vmatpush1.bf16.msra.mxu0 %v11438_v3  ;;  %7611 = vmatpush1.bf16.msra.mxu1 %v11440_v53  ;;  %v841_v3 = vld [vmem:[#allocation7 + $0x13f8] sm:$0xff]  ;;  %v11486_v53 = vcombine.low %v828_v61, %v832_v0  ;;  %v876_v61 = vld [vmem:[#allocation7 + $0x1510] sm:$0xff] }
 0x3c8   :  { %7268 = vmatprep.subr.bf16.mxu0 %v11447_v21  ;;  %7612 = vmatprep.subr.bf16.mxu1 %v11449_v22  ;;  %v11488_v21 = vcombine.low %v829_v1, %v833_v2  ;;  %v11495_v22 = vcombine.high %v836_v15, %v840_v14  ;;  %v11497_v23 = vcombine.high %v837_v19, %v841_v3  ;;  %v880_v0 = vld [vmem:[#allocation7 + $0x1530] sm:$0xff]  ;;  %v877_v1 = vld [vmem:[#allocation7 + $0x1518] sm:$0xff] }
 0x3c9   :  { %v881_v2 = vld [vmem:[#allocation7 + $0x1538] sm:$0xff] }
 0x3cb   :  { %7269 = vmatpush1.bf16.msra.mxu0 %v11446_v11  ;;  %7613 = vmatpush1.bf16.msra.mxu1 %v11448_v20  ;;  %v849_v11 = vld [vmem:[#allocation7 + $0x1438] sm:$0xff]  ;;  %v11494_v20 = vcombine.low %v836_v15, %v840_v14  ;;  %v888_v15 = vld [vmem:[#allocation7 + $0x1570] sm:$0xff] }
 0x3cc   :  { %7270 = vmatprep.subr.bf16.mxu0 %v11455_v10  ;;  %7614 = vmatprep.subr.bf16.mxu1 %v11457_v36  ;;  %v11496_v10 = vcombine.low %v837_v19, %v841_v3  ;;  %v11503_v36 = vcombine.high %v844_v34, %v848_v17  ;;  %v11505_v39 = vcombine.high %v845_v9, %v849_v11  ;;  %v885_v14 = vld [vmem:[#allocation7 + $0x1558] sm:$0xff] }
 0x3cd   :  { %v889_v19 = vld [vmem:[#allocation7 + $0x1578] sm:$0xff]  ;;  %v11534_v3 = vcombine.low %v876_v61, %v880_v0 }
 0x3cf   :  { %7271 = vmatpush1.bf16.msra.mxu0 %v11454_v43  ;;  %7615 = vmatpush1.bf16.msra.mxu1 %v11456_v44  ;;  %v857_v43 = vld [vmem:[#allocation7 + $0x1478] sm:$0xff]  ;;  %v11502_v44 = vcombine.low %v844_v34, %v848_v17  ;;  %v896_v34 = vld [vmem:[#allocation7 + $0x15b0] sm:$0xff] }
 0x3d0   :  { %7272 = vmatprep.subr.bf16.mxu0 %v11463_v30  ;;  %7616 = vmatprep.subr.bf16.mxu1 %v11465_v47  ;;  %v11504_v30 = vcombine.low %v845_v9, %v849_v11  ;;  %v11511_v47 = vcombine.high %v852_v40, %v856_v41  ;;  %v11513_v37 = vcombine.high %v853_v42, %v857_v43  ;;  %v893_v17 = vld [vmem:[#allocation7 + $0x1598] sm:$0xff] }
 0x3d1   :  { %v897_v9 = vld [vmem:[#allocation7 + $0x15b8] sm:$0xff] }
 0x3d3   :  { %7273 = vmatpush1.bf16.msra.mxu0 %v11462_v50  ;;  %7617 = vmatpush1.bf16.msra.mxu1 %v11464_v51  ;;  %v865_v50 = vld [vmem:[#allocation7 + $0x14b8] sm:$0xff]  ;;  %v11510_v51 = vcombine.low %v852_v40, %v856_v41  ;;  %v904_v40 = vld [vmem:[#allocation7 + $0x15f0] sm:$0xff] }
 0x3d4   :  { %7274 = vmatprep.subr.bf16.mxu0 %v11471_v58  ;;  %7618 = vmatprep.subr.bf16.mxu1 %v11473_v52  ;;  %v11512_v58 = vcombine.low %v853_v42, %v857_v43  ;;  %v11519_v52 = vcombine.high %v860_v62, %v864_v48  ;;  %v11521_v54 = vcombine.high %v861_v49, %v865_v50  ;;  %v901_v41 = vld [vmem:[#allocation7 + $0x15d8] sm:$0xff] }
 0x3d5   :  { %v905_v42 = vld [vmem:[#allocation7 + $0x15f8] sm:$0xff] }
 0x3d7   :  { %7275 = vmatpush1.bf16.msra.mxu0 %v11470_v56  ;;  %7619 = vmatpush1.bf16.msra.mxu1 %v11472_v57  ;;  %v873_v56 = vld [vmem:[#allocation7 + $0x14f8] sm:$0xff]  ;;  %v11518_v57 = vcombine.low %v860_v62, %v864_v48  ;;  %v912_v62 = vld [vmem:[#allocation7 + $0x1630] sm:$0xff] }
 0x3d8   :  { %7276 = vmatprep.subr.bf16.mxu0 %v11479_v7  ;;  %7620 = vmatprep.subr.bf16.mxu1 %v11481_v27  ;;  %v11527_v7 = vcombine.high %v868_v63, %v872_v55  ;;  %v11529_v27 = vcombine.high %v869_v46, %v873_v56  ;;  %v909_v48 = vld [vmem:[#allocation7 + $0x1618] sm:$0xff] }
 0x3db   :  { %7277 = vmatpush1.bf16.msra.mxu0 %v11478_v28  ;;  %7621 = vmatpush1.bf16.msra.mxu1 %v11480_v5  ;;  %v11526_v28 = vcombine.low %v868_v63, %v872_v55  ;;  %v11528_v5 = vcombine.low %v869_v46, %v873_v56  ;;  %v920_v63 = vld [vmem:[#allocation7 + $0x1670] sm:$0xff]  ;;  %v917_v55 = vld [vmem:[#allocation7 + $0x1658] sm:$0xff] }
 0x3dc   :  { %7278 = vmatprep.subr.bf16.mxu0 %v11487_v8  ;;  %7622 = vmatprep.subr.bf16.mxu1 %v11489_v29  ;;  %v11535_v8 = vcombine.high %v876_v61, %v880_v0  ;;  %v884_v29 = vld [vmem:[#allocation7 + $0x1550] sm:$0xff]  ;;  %v921_v46 = vld [vmem:[#allocation7 + $0x1678] sm:$0xff] }
 0x3dd   :  { %v11542_v11 = vcombine.low %v884_v29, %v888_v15  ;;  %v928_v61 = vld [vmem:[#allocation7 + $0x16b0] sm:$0xff]  ;;  %v925_v0 = vld [vmem:[#allocation7 + $0x1698] sm:$0xff] }
 0x3df   :  { %7279 = vmatpush1.bf16.msra.mxu0 %v11486_v53  ;;  %7623 = vmatpush1.bf16.msra.mxu1 %v11488_v21  ;;  %v11536_v53 = vcombine.low %v877_v1, %v881_v2  ;;  %v11543_v21 = vcombine.high %v884_v29, %v888_v15  ;;  %v936_v29 = vld [vmem:[#allocation7 + $0x16f0] sm:$0xff]  ;;  %v933_v15 = vld [vmem:[#allocation7 + $0x16d8] sm:$0xff] }
 0x3e0   :  { %7280 = vmatprep.subr.bf16.mxu0 %v11495_v22  ;;  %7624 = vmatprep.subr.bf16.mxu1 %v11497_v23  ;;  %v11545_v22 = vcombine.high %v885_v14, %v889_v19  ;;  %v892_v23 = vld [vmem:[#allocation7 + $0x1590] sm:$0xff] }
 0x3e1   :  { %v11550_v43 = vcombine.low %v892_v23, %v896_v34 }
 0x3e3   :  { %7281 = vmatpush1.bf16.msra.mxu0 %v11494_v20  ;;  %7625 = vmatpush1.bf16.msra.mxu1 %v11496_v10  ;;  %v11544_v20 = vcombine.low %v885_v14, %v889_v19  ;;  %v11551_v10 = vcombine.high %v892_v23, %v896_v34  ;;  %v937_v14 = vld [vmem:[#allocation7 + $0x16f8] sm:$0xff]  ;;  %v944_v23 = vld [vmem:[#allocation7 + $0x1730] sm:$0xff] }
 0x3e4   :  { %7293 = vmatprep.subr.bf16.mxu0 %v11503_v36  ;;  %7637 = vmatprep.subr.bf16.mxu1 %v11505_v39  ;;  %v11553_v36 = vcombine.high %v893_v17, %v897_v9  ;;  %v900_v39 = vld [vmem:[#allocation7 + $0x15d0] sm:$0xff]  ;;  %v941_v34 = vld [vmem:[#allocation7 + $0x1718] sm:$0xff] }
 0x3e6   :  { %7283 = vmatmul.mubr.bf16.vlgmr.msra.gmra.mrb[4].mxu0 %v13606_v26  ;;  %7627 = vmatmul.mubr.bf16.vlgmr.msra.gmra.mrb[4].mxu1 %v13606_v26  ;;  %v11520_v26 = vcombine.low %v861_v49, %v865_v50  ;;  %v913_v49 = vld [vmem:[#allocation7 + $0x1638] sm:$0xff]  ;;  %v11558_v50 = vcombine.low %v900_v39, %v904_v40 }
 0x3e7   :  { %7294 = vmatpush1.bf16.msra.mxu0 %v11502_v44  ;;  %7638 = vmatpush1.bf16.msra.mxu1 %v11504_v30  ;;  %v11552_v44 = vcombine.low %v893_v17, %v897_v9  ;;  %v11559_v30 = vcombine.high %v900_v39, %v904_v40  ;;  %v945_v17 = vld [vmem:[#allocation7 + $0x1738] sm:$0xff]  ;;  %v952_v39 = vld [vmem:[#allocation7 + $0x1770] sm:$0xff] }
 0x3e8   :  { %7295 = vmatprep.subr.bf16.mxu0 %v11511_v47  ;;  %7639 = vmatprep.subr.bf16.mxu1 %v11513_v37  ;;  %v11561_v47 = vcombine.high %v901_v41, %v905_v42  ;;  %v908_v37 = vld [vmem:[#allocation7 + $0x1610] sm:$0xff]  ;;  %v949_v40 = vld [vmem:[#allocation7 + $0x1758] sm:$0xff] }
 0x3e9   :  { %7325 = vmatprep.mubr.bf16.mxu0 %v13608_v38  ;;  %7669 = vmatprep.mubr.bf16.mxu1 %v13608_v38  ;;  %v11537_v38 = vcombine.high %v877_v1, %v881_v2  ;;  %v11566_v56 = vcombine.low %v908_v37, %v912_v62  ;;  %v929_v1 = vld [vmem:[#allocation7 + $0x16b8] sm:$0xff] }
 0x3eb   :  { %7296 = vmatpush1.bf16.msra.mxu0 %v11510_v51  ;;  %7640 = vmatpush1.bf16.msra.mxu1 %v11512_v58  ;;  %v11560_v51 = vcombine.low %v901_v41, %v905_v42  ;;  %v11567_v58 = vcombine.high %v908_v37, %v912_v62  ;;  %v953_v41 = vld [vmem:[#allocation7 + $0x1778] sm:$0xff]  ;;  %v960_v37 = vld [vmem:[#allocation7 + $0x17b0] sm:$0xff] }
 0x3ec   :  { %7297 = vmatprep.subr.bf16.mxu0 %v11519_v52  ;;  %7641 = vmatprep.subr.bf16.mxu1 %v11521_v54  ;;  %v11569_v52 = vcombine.high %v909_v48, %v913_v49  ;;  %v916_v54 = vld [vmem:[#allocation7 + $0x1650] sm:$0xff]  ;;  %v957_v62 = vld [vmem:[#allocation7 + $0x1798] sm:$0xff] }
 0x3ed   :  { %v11574_v2 = vcombine.low %v916_v54, %v920_v63 }
 0x3ef   :  { %7298 = vmatpush1.bf16.msra.mxu0 %v11518_v57  ;;  %7642 = vmatpush1.bf16.msra.mxu1 %v11520_v26  ;;  %v11568_v57 = vcombine.low %v909_v48, %v913_v49  ;;  %v11575_v26 = vcombine.high %v916_v54, %v920_v63  ;;  %v961_v48 = vld [vmem:[#allocation7 + $0x17b8] sm:$0xff]  ;;  %v968_v54 = vld [vmem:[#allocation7 + $0x17f0] sm:$0xff] }
 0x3f0   :  { %7299 = vmatprep.subr.bf16.mxu0 %v11527_v7  ;;  %7643 = vmatprep.subr.bf16.mxu1 %v11529_v27  ;;  %v11577_v7 = vcombine.high %v917_v55, %v921_v46  ;;  %v924_v27 = vld [vmem:[#allocation7 + $0x1690] sm:$0xff]  ;;  %v965_v63 = vld [vmem:[#allocation7 + $0x17d8] sm:$0xff] }
 0x3f1   :  { %v11582_v19 = vcombine.low %v924_v27, %v928_v61 }
 0x3f3   :  { %7300 = vmatpush1.bf16.msra.mxu0 %v11526_v28  ;;  %7644 = vmatpush1.bf16.msra.mxu1 %v11528_v5  ;;  %v11576_v28 = vcombine.low %v917_v55, %v921_v46  ;;  %v11583_v5 = vcombine.high %v924_v27, %v928_v61  ;;  %v969_v55 = vld [vmem:[#allocation7 + $0x17f8] sm:$0xff]  ;;  %v976_v27 = vld [vmem:[#allocation7 + $0x1830] sm:$0xff] }
 0x3f4   :  { %7301 = vmatprep.subr.bf16.mxu0 %v11535_v8  ;;  %7645 = vmatprep.subr.bf16.mxu1 %v11537_v38  ;;  %v11585_v8 = vcombine.high %v925_v0, %v929_v1  ;;  %v932_v38 = vld [vmem:[#allocation7 + $0x16d0] sm:$0xff]  ;;  %v973_v61 = vld [vmem:[#allocation7 + $0x1818] sm:$0xff] }
 0x3f5   :  { %v11590_v9 = vcombine.low %v932_v38, %v936_v29 }
 0x3f7   :  { %7302 = vmatpush1.bf16.msra.mxu0 %v11534_v3  ;;  %7646 = vmatpush1.bf16.msra.mxu1 %v11536_v53  ;;  %v11584_v3 = vcombine.low %v925_v0, %v929_v1  ;;  %v11591_v53 = vcombine.high %v932_v38, %v936_v29  ;;  %v977_v0 = vld [vmem:[#allocation7 + $0x1838] sm:$0xff]  ;;  %v984_v38 = vld [vmem:[#allocation7 + $0x1870] sm:$0xff] }
 0x3f8   :  { %7303 = vmatprep.subr.bf16.mxu0 %v11543_v21  ;;  %7647 = vmatprep.subr.bf16.mxu1 %v11545_v22  ;;  %v11593_v21 = vcombine.high %v933_v15, %v937_v14  ;;  %v940_v22 = vld [vmem:[#allocation7 + $0x1710] sm:$0xff]  ;;  %v981_v29 = vld [vmem:[#allocation7 + $0x1858] sm:$0xff] }
 0x3f9   :  { %v11598_v42 = vcombine.low %v940_v22, %v944_v23 }
 0x3fb   :  { %7304 = vmatpush1.bf16.msra.mxu0 %v11542_v11  ;;  %7648 = vmatpush1.bf16.msra.mxu1 %v11544_v20  ;;  %v11592_v11 = vcombine.low %v933_v15, %v937_v14  ;;  %v11599_v20 = vcombine.high %v940_v22, %v944_v23  ;;  %v985_v15 = vld [vmem:[#allocation7 + $0x1878] sm:$0xff]  ;;  %v992_v22 = vld [vmem:[#allocation7 + $0x18b0] sm:$0xff] }
 0x3fc   :  { %7305 = vmatprep.subr.bf16.mxu0 %v11551_v10  ;;  %7649 = vmatprep.subr.bf16.mxu1 %v11553_v36  ;;  %v11601_v10 = vcombine.high %v941_v34, %v945_v17  ;;  %v948_v36 = vld [vmem:[#allocation7 + $0x1750] sm:$0xff]  ;;  %v989_v23 = vld [vmem:[#allocation7 + $0x1898] sm:$0xff] }
 0x3fd   :  { %v11606_v49 = vcombine.low %v948_v36, %v952_v39 }
 0x3ff   :  { %7306 = vmatpush1.bf16.msra.mxu0 %v11550_v43  ;;  %7650 = vmatpush1.bf16.msra.mxu1 %v11552_v44  ;;  %v11600_v43 = vcombine.low %v941_v34, %v945_v17  ;;  %v11607_v44 = vcombine.high %v948_v36, %v952_v39  ;;  %v993_v34 = vld [vmem:[#allocation7 + $0x18b8] sm:$0xff]  ;;  %v1000_v36 = vld [vmem:[#allocation7 + $0x18f0] sm:$0xff] }
 0x400   :  { %7307 = vmatprep.subr.bf16.mxu0 %v11559_v30  ;;  %7651 = vmatprep.subr.bf16.mxu1 %v11561_v47  ;;  %v11609_v30 = vcombine.high %v949_v40, %v953_v41  ;;  %v956_v47 = vld [vmem:[#allocation7 + $0x1790] sm:$0xff]  ;;  %v997_v39 = vld [vmem:[#allocation7 + $0x18d8] sm:$0xff] }
 0x401   :  { %v11614_v46 = vcombine.low %v956_v47, %v960_v37 }
 0x403   :  { %7308 = vmatpush1.bf16.msra.mxu0 %v11558_v50  ;;  %7652 = vmatpush1.bf16.msra.mxu1 %v11560_v51  ;;  %v11608_v50 = vcombine.low %v949_v40, %v953_v41  ;;  %v11615_v51 = vcombine.high %v956_v47, %v960_v37  ;;  %v1001_v40 = vld [vmem:[#allocation7 + $0x18f8] sm:$0xff] }
 0x404   :  { %7309 = vmatprep.subr.bf16.mxu0 %v11567_v58  ;;  %7653 = vmatprep.subr.bf16.mxu1 %v11569_v52  ;;  %v11617_v58 = vcombine.high %v957_v62, %v961_v48  ;;  %v964_v52 = vld [vmem:[#allocation7 + $0x17d0] sm:$0xff]  ;;  %v1005_v47 = vld [vmem:[#allocation7 + $0x1918] sm:$0xff] }
 0x405   :  { %v11622_v1 = vcombine.low %v964_v52, %v968_v54  ;;  %v1009_v37 = vld [vmem:[#allocation7 + $0x1938] sm:$0xff] }
 0x407   :  { %7310 = vmatpush1.bf16.msra.mxu0 %v11566_v56  ;;  %7654 = vmatpush1.bf16.msra.mxu1 %v11568_v57  ;;  %v11616_v56 = vcombine.low %v957_v62, %v961_v48  ;;  %v11623_v57 = vcombine.high %v964_v52, %v968_v54  ;;  %v11656_v48 = vcombine.low %v997_v39, %v1001_v40  ;;  %v1017_v52 = vld [vmem:[#allocation7 + $0x1978] sm:$0xff] }
 0x408   :  { %7311 = vmatprep.subr.bf16.mxu0 %v11575_v26  ;;  %7655 = vmatprep.subr.bf16.mxu1 %v11577_v7  ;;  %v11625_v26 = vcombine.high %v965_v63, %v969_v55  ;;  %v972_v7 = vld [vmem:[#allocation7 + $0x1810] sm:$0xff] }
 0x409   :  { %v11630_v14 = vcombine.low %v972_v7, %v976_v27 }
 0x40b   :  { %7312 = vmatpush1.bf16.msra.mxu0 %v11574_v2  ;;  %7656 = vmatpush1.bf16.msra.mxu1 %v11576_v28  ;;  %v11624_v2 = vcombine.low %v965_v63, %v969_v55  ;;  %v11631_v28 = vcombine.high %v972_v7, %v976_v27  ;;  %v11664_v63 = vcombine.low %v1005_v47, %v1009_v37  ;;  %v1025_v7 = vld [vmem:[#allocation7 + $0x19b8] sm:$0xff] }
 0x40c   :  { %7313 = vmatprep.subr.bf16.mxu0 %v11583_v5  ;;  %7657 = vmatprep.subr.bf16.mxu1 %v11585_v8  ;;  %v11633_v5 = vcombine.high %v973_v61, %v977_v0  ;;  %v980_v8 = vld [vmem:[#allocation7 + $0x1850] sm:$0xff] }
 0x40d   :  { %v11638_v17 = vcombine.low %v980_v8, %v984_v38 }
 0x40f   :  { %7314 = vmatpush1.bf16.msra.mxu0 %v11582_v19  ;;  %7658 = vmatpush1.bf16.msra.mxu1 %v11584_v3  ;;  %v11632_v19 = vcombine.low %v973_v61, %v977_v0  ;;  %v11639_v3 = vcombine.high %v980_v8, %v984_v38  ;;  %v1033_v8 = vld [vmem:[#allocation7 + $0x19f8] sm:$0xff] }
 0x410   :  { %7315 = vmatprep.subr.bf16.mxu0 %v11591_v53  ;;  %7659 = vmatprep.subr.bf16.mxu1 %v11593_v21  ;;  %v11641_v53 = vcombine.high %v981_v29, %v985_v15  ;;  %v988_v21 = vld [vmem:[#allocation7 + $0x1890] sm:$0xff] }
 0x411   :  { %v11646_v41 = vcombine.low %v988_v21, %v992_v22 }
 0x413   :  { %7316 = vmatpush1.bf16.msra.mxu0 %v11590_v9  ;;  %7660 = vmatpush1.bf16.msra.mxu1 %v11592_v11  ;;  %v11640_v9 = vcombine.low %v981_v29, %v985_v15  ;;  %v11647_v11 = vcombine.high %v988_v21, %v992_v22  ;;  %v1041_v21 = vld [vmem:[#allocation7 + $0x1a38] sm:$0xff] }
 0x414   :  { %7317 = vmatprep.subr.bf16.mxu0 %v11599_v20  ;;  %7661 = vmatprep.subr.bf16.mxu1 %v11601_v10  ;;  %v11649_v20 = vcombine.high %v989_v23, %v993_v34  ;;  %v996_v10 = vld [vmem:[#allocation7 + $0x18d0] sm:$0xff] }
 0x415   :  { %v11654_v62 = vcombine.low %v996_v10, %v1000_v36 }
 0x417   :  { %7318 = vmatpush1.bf16.msra.mxu0 %v11598_v42  ;;  %7662 = vmatpush1.bf16.msra.mxu1 %v11600_v43  ;;  %v11655_v42 = vcombine.high %v996_v10, %v1000_v36  ;;  %v11657_v43 = vcombine.high %v997_v39, %v1001_v40  ;;  %v1049_v10 = vld [vmem:[#allocation7 + $0x1a78] sm:$0xff] }
 0x418   :  { %7319 = vmatprep.subr.bf16.mxu0 %v11607_v44  ;;  %7663 = vmatprep.subr.bf16.mxu1 %v11609_v30  ;;  %v1004_v44 = vld [vmem:[#allocation7 + $0x1910] sm:$0xff] }
 0x419   :  { %v1008_v30 = vld [vmem:[#allocation7 + $0x1930] sm:$0xff] }
 0x41a   :  { %v11662_v54 = vcombine.low %v1004_v44, %v1008_v30 }
 0x41b   :  { %7320 = vmatpush1.bf16.msra.mxu0 %v11606_v49  ;;  %7664 = vmatpush1.bf16.msra.mxu1 %v11608_v50  ;;  %v11663_v49 = vcombine.high %v1004_v44, %v1008_v30  ;;  %v1012_v50 = vld [vmem:[#allocation7 + $0x1950] sm:$0xff]  ;;  %v1057_v44 = vld [vmem:[#allocation7 + $0x1ab8] sm:$0xff] }
 0x41c   :  { %7321 = vmatprep.subr.bf16.mxu0 %v11615_v51  ;;  %7665 = vmatprep.subr.bf16.mxu1 %v11617_v58  ;;  %v1016_v51 = vld [vmem:[#allocation7 + $0x1970] sm:$0xff]  ;;  %v1013_v58 = vld [vmem:[#allocation7 + $0x1958] sm:$0xff] }
 0x41d   :  { %v11671_v55 = vcombine.high %v1012_v50, %v1016_v51  ;;  %v11670_v27 = vcombine.low %v1012_v50, %v1016_v51  ;;  %v11672_v61 = vcombine.low %v1013_v58, %v1017_v52  ;;  %v1065_v50 = vld [vmem:[#allocation7 + $0x1af8] sm:$0xff] }
 0x41f   :  { %7322 = vmatpush1.bf16.msra.mxu0 %v11614_v46  ;;  %7666 = vmatpush1.bf16.msra.mxu1 %v11616_v56  ;;  %v11673_v46 = vcombine.high %v1013_v58, %v1017_v52  ;;  %v1020_v56 = vld [vmem:[#allocation7 + $0x1990] sm:$0xff] }
 0x420   :  { %7323 = vmatprep.subr.bf16.mxu0 %v11623_v57  ;;  %7667 = vmatprep.subr.bf16.mxu1 %v11625_v26  ;;  %v1024_v57 = vld [vmem:[#allocation7 + $0x19b0] sm:$0xff]  ;;  %v1021_v26 = vld [vmem:[#allocation7 + $0x1998] sm:$0xff] }
 0x421   :  { %v11679_v0 = vcombine.high %v1020_v56, %v1024_v57  ;;  %v11678_v38 = vcombine.low %v1020_v56, %v1024_v57  ;;  %v11680_v29 = vcombine.low %v1021_v26, %v1025_v7  ;;  %v1073_v56 = vld [vmem:[#allocation7 + $0x1b38] sm:$0xff] }
 0x423   :  { %7324 = vmatpush1.bf16.msra.mxu0 %v11622_v1  ;;  %7668 = vmatpush1.bf16.msra.mxu1 %v11624_v2  ;;  %v11681_v1 = vcombine.high %v1021_v26, %v1025_v7  ;;  %v1028_v2 = vld [vmem:[#allocation7 + $0x19d0] sm:$0xff] }
 0x424   :  { %7336 = vmatprep.subr.bf16.mxu0 %v11631_v28  ;;  %7680 = vmatprep.subr.bf16.mxu1 %v11633_v5  ;;  %v1032_v28 = vld [vmem:[#allocation7 + $0x19f0] sm:$0xff]  ;;  %v1029_v5 = vld [vmem:[#allocation7 + $0x19d8] sm:$0xff] }
 0x425   :  { %v11687_v15 = vcombine.high %v1028_v2, %v1032_v28  ;;  %v11686_v22 = vcombine.low %v1028_v2, %v1032_v28  ;;  %v1081_v2 = vld [vmem:[#allocation7 + $0x1b78] sm:$0xff] }
 0x426   :  { %7326 = vmatmul.mubr.bf16.vlgmr.msra.gmra.mrb[4].mxu0 %v13614_v59  ;;  %7670 = vmatmul.mubr.bf16.vlgmr.msra.gmra.mrb[4].mxu1 %v13614_v59  ;;  %v11648_v59 = vcombine.low %v989_v23, %v993_v34  ;;  %v11688_v23 = vcombine.low %v1029_v5, %v1033_v8 }
 0x427   :  { %7337 = vmatpush1.bf16.msra.mxu0 %v11630_v14  ;;  %7681 = vmatpush1.bf16.msra.mxu1 %v11632_v19  ;;  %v11689_v14 = vcombine.high %v1029_v5, %v1033_v8  ;;  %v1036_v19 = vld [vmem:[#allocation7 + $0x1a10] sm:$0xff] }
 0x428   :  { %7338 = vmatprep.subr.bf16.mxu0 %v11639_v3  ;;  %7682 = vmatprep.subr.bf16.mxu1 %v11641_v53  ;;  %v1040_v3 = vld [vmem:[#allocation7 + $0x1a30] sm:$0xff]  ;;  %v1037_v53 = vld [vmem:[#allocation7 + $0x1a18] sm:$0xff] }
 0x429   :  { %7368 = vmatprep.mubr.bf16.mxu0 %v13616_v6  ;;  %7712 = vmatprep.mubr.bf16.mxu1 %v13616_v6  ;;  %v11665_v6 = vcombine.high %v1005_v47, %v1009_v37  ;;  %v11695_v34 = vcombine.high %v1036_v19, %v1040_v3  ;;  %v11694_v36 = vcombine.low %v1036_v19, %v1040_v3  ;;  %v1089_v19 = vld [vmem:[#allocation7 + $0x1bb8] sm:$0xff] }
 0x42a   :  { %v11696_v39 = vcombine.low %v1037_v53, %v1041_v21 }
 0x42b   :  { %7339 = vmatpush1.bf16.msra.mxu0 %v11638_v17  ;;  %7683 = vmatpush1.bf16.msra.mxu1 %v11640_v9  ;;  %v11697_v17 = vcombine.high %v1037_v53, %v1041_v21  ;;  %v1044_v9 = vld [vmem:[#allocation7 + $0x1a50] sm:$0xff] }
 0x42c   :  { %7340 = vmatprep.subr.bf16.mxu0 %v11647_v11  ;;  %7684 = vmatprep.subr.bf16.mxu1 %v11649_v20  ;;  %v1048_v11 = vld [vmem:[#allocation7 + $0x1a70] sm:$0xff]  ;;  %v1045_v20 = vld [vmem:[#allocation7 + $0x1a58] sm:$0xff] }
 0x42d   :  { %v11703_v40 = vcombine.high %v1044_v9, %v1048_v11  ;;  %v11702_v30 = vcombine.low %v1044_v9, %v1048_v11  ;;  %v11704_v47 = vcombine.low %v1045_v20, %v1049_v10  ;;  %v1097_v9 = vld [vmem:[#allocation7 + $0x1bf8] sm:$0xff] }
 0x42f   :  { %7341 = vmatpush1.bf16.msra.mxu0 %v11646_v41  ;;  %7685 = vmatpush1.bf16.msra.mxu1 %v11648_v59  ;;  %v11705_v41 = vcombine.high %v1045_v20, %v1049_v10  ;;  %v1052_v59 = vld [vmem:[#allocation7 + $0x1a90] sm:$0xff] }
 0x430   :  { %7342 = vmatprep.subr.bf16.mxu0 %v11655_v42  ;;  %7686 = vmatprep.subr.bf16.mxu1 %v11657_v43  ;;  %v1056_v42 = vld [vmem:[#allocation7 + $0x1ab0] sm:$0xff]  ;;  %v1053_v43 = vld [vmem:[#allocation7 + $0x1a98] sm:$0xff] }
 0x431   :  { %v11711_v37 = vcombine.high %v1052_v59, %v1056_v42  ;;  %v11710_v51 = vcombine.low %v1052_v59, %v1056_v42  ;;  %v11712_v58 = vcombine.low %v1053_v43, %v1057_v44  ;;  %v1105_v59 = vld [vmem:[#allocation7 + $0x1c38] sm:$0xff] }
 0x433   :  { %7343 = vmatpush1.bf16.msra.mxu0 %v11654_v62  ;;  %7687 = vmatpush1.bf16.msra.mxu1 %v11656_v48  ;;  %v11713_v62 = vcombine.high %v1053_v43, %v1057_v44  ;;  %v1060_v48 = vld [vmem:[#allocation7 + $0x1ad0] sm:$0xff] }
 0x434   :  { %7344 = vmatprep.subr.bf16.mxu0 %v11663_v49  ;;  %7688 = vmatprep.subr.bf16.mxu1 %v11665_v6  ;;  %v1064_v49 = vld [vmem:[#allocation7 + $0x1af0] sm:$0xff]  ;;  %v1061_v6 = vld [vmem:[#allocation7 + $0x1ad8] sm:$0xff] }
 0x435   :  { %v11719_v52 = vcombine.high %v1060_v48, %v1064_v49  ;;  %v11718_v57 = vcombine.low %v1060_v48, %v1064_v49  ;;  %v11720_v26 = vcombine.low %v1061_v6, %v1065_v50  ;;  %v1113_v48 = vld [vmem:[#allocation7 + $0x1c78] sm:$0xff] }
 0x437   :  { %7345 = vmatpush1.bf16.msra.mxu0 %v11662_v54  ;;  %7689 = vmatpush1.bf16.msra.mxu1 %v11664_v63  ;;  %v11721_v54 = vcombine.high %v1061_v6, %v1065_v50  ;;  %v1068_v63 = vld [vmem:[#allocation7 + $0x1b10] sm:$0xff] }
 0x438   :  { %7346 = vmatprep.subr.bf16.mxu0 %v11671_v55  ;;  %7690 = vmatprep.subr.bf16.mxu1 %v11673_v46  ;;  %v1072_v55 = vld [vmem:[#allocation7 + $0x1b30] sm:$0xff]  ;;  %v1069_v46 = vld [vmem:[#allocation7 + $0x1b18] sm:$0xff] }
 0x439   :  { %v11727_v7 = vcombine.high %v1068_v63, %v1072_v55  ;;  %v11726_v28 = vcombine.low %v1068_v63, %v1072_v55  ;;  %v11728_v5 = vcombine.low %v1069_v46, %v1073_v56  ;;  %v1121_v63 = vld [vmem:[#allocation7 + $0x1cb8] sm:$0xff] }
 0x43b   :  { %7347 = vmatpush1.bf16.msra.mxu0 %v11670_v27  ;;  %7691 = vmatpush1.bf16.msra.mxu1 %v11672_v61  ;;  %v11729_v27 = vcombine.high %v1069_v46, %v1073_v56  ;;  %v1076_v61 = vld [vmem:[#allocation7 + $0x1b50] sm:$0xff] }
 0x43c   :  { %7348 = vmatprep.subr.bf16.mxu0 %v11679_v0  ;;  %7692 = vmatprep.subr.bf16.mxu1 %v11681_v1  ;;  %v1080_v0 = vld [vmem:[#allocation7 + $0x1b70] sm:$0xff]  ;;  %v1077_v1 = vld [vmem:[#allocation7 + $0x1b58] sm:$0xff] }
 0x43d   :  { %v11735_v8 = vcombine.high %v1076_v61, %v1080_v0  ;;  %v11734_v3 = vcombine.low %v1076_v61, %v1080_v0  ;;  %v11736_v53 = vcombine.low %v1077_v1, %v1081_v2  ;;  %v1129_v61 = vld [vmem:[#allocation7 + $0x1cf8] sm:$0xff] }
 0x43f   :  { %7349 = vmatpush1.bf16.msra.mxu0 %v11678_v38  ;;  %7693 = vmatpush1.bf16.msra.mxu1 %v11680_v29  ;;  %v11737_v38 = vcombine.high %v1077_v1, %v1081_v2  ;;  %v1084_v29 = vld [vmem:[#allocation7 + $0x1b90] sm:$0xff] }
 0x440   :  { %7350 = vmatprep.subr.bf16.mxu0 %v11687_v15  ;;  %7694 = vmatprep.subr.bf16.mxu1 %v11689_v14  ;;  %v1088_v15 = vld [vmem:[#allocation7 + $0x1bb0] sm:$0xff]  ;;  %v1085_v14 = vld [vmem:[#allocation7 + $0x1b98] sm:$0xff] }
 0x441   :  { %v11743_v21 = vcombine.high %v1084_v29, %v1088_v15  ;;  %v11742_v11 = vcombine.low %v1084_v29, %v1088_v15  ;;  %v11744_v20 = vcombine.low %v1085_v14, %v1089_v19 }
 0x443   :  { %7351 = vmatpush1.bf16.msra.mxu0 %v11686_v22  ;;  %7695 = vmatpush1.bf16.msra.mxu1 %v11688_v23  ;;  %v11745_v22 = vcombine.high %v1085_v14, %v1089_v19  ;;  %v1092_v23 = vld [vmem:[#allocation7 + $0x1bd0] sm:$0xff] }
 0x444   :  { %7352 = vmatprep.subr.bf16.mxu0 %v11695_v34  ;;  %7696 = vmatprep.subr.bf16.mxu1 %v11697_v17  ;;  %v1096_v34 = vld [vmem:[#allocation7 + $0x1bf0] sm:$0xff]  ;;  %v1093_v17 = vld [vmem:[#allocation7 + $0x1bd8] sm:$0xff] }
 0x445   :  { %v11751_v10 = vcombine.high %v1092_v23, %v1096_v34  ;;  %v11750_v42 = vcombine.low %v1092_v23, %v1096_v34  ;;  %v11752_v43 = vcombine.low %v1093_v17, %v1097_v9  ;;  %v1140_v19 = vld [vmem:[#allocation7 + $0x1d50] sm:$0xff] }
 0x447   :  { %7353 = vmatpush1.bf16.msra.mxu0 %v11694_v36  ;;  %7697 = vmatpush1.bf16.msra.mxu1 %v11696_v39  ;;  %v11753_v36 = vcombine.high %v1093_v17, %v1097_v9  ;;  %v1100_v39 = vld [vmem:[#allocation7 + $0x1c10] sm:$0xff] }
 0x448   :  { %7354 = vmatprep.subr.bf16.mxu0 %v11703_v40  ;;  %7698 = vmatprep.subr.bf16.mxu1 %v11705_v41  ;;  %v1104_v40 = vld [vmem:[#allocation7 + $0x1c30] sm:$0xff]  ;;  %v1101_v41 = vld [vmem:[#allocation7 + $0x1c18] sm:$0xff] }
 0x449   :  { %v11759_v44 = vcombine.high %v1100_v39, %v1104_v40  ;;  %v11758_v49 = vcombine.low %v1100_v39, %v1104_v40  ;;  %v11760_v6 = vcombine.low %v1101_v41, %v1105_v59  ;;  %v1148_v9 = vld [vmem:[#allocation7 + $0x1d90] sm:$0xff] }
 0x44b   :  { %7355 = vmatpush1.bf16.msra.mxu0 %v11702_v30  ;;  %7699 = vmatpush1.bf16.msra.mxu1 %v11704_v47  ;;  %v11761_v30 = vcombine.high %v1101_v41, %v1105_v59  ;;  %v1108_v47 = vld [vmem:[#allocation7 + $0x1c50] sm:$0xff] }
 0x44c   :  { %7356 = vmatprep.subr.bf16.mxu0 %v11711_v37  ;;  %7700 = vmatprep.subr.bf16.mxu1 %v11713_v62  ;;  %v1112_v37 = vld [vmem:[#allocation7 + $0x1c70] sm:$0xff]  ;;  %v1109_v62 = vld [vmem:[#allocation7 + $0x1c58] sm:$0xff] }
 0x44d   :  { %v11767_v50 = vcombine.high %v1108_v47, %v1112_v37  ;;  %v11766_v55 = vcombine.low %v1108_v47, %v1112_v37  ;;  %v11768_v46 = vcombine.low %v1109_v62, %v1113_v48  ;;  %v1156_v59 = vld [vmem:[#allocation7 + $0x1dd0] sm:$0xff] }
 0x44f   :  { %7357 = vmatpush1.bf16.msra.mxu0 %v11710_v51  ;;  %7701 = vmatpush1.bf16.msra.mxu1 %v11712_v58  ;;  %v11769_v51 = vcombine.high %v1109_v62, %v1113_v48  ;;  %v1116_v58 = vld [vmem:[#allocation7 + $0x1c90] sm:$0xff] }
 0x450   :  { %7358 = vmatprep.subr.bf16.mxu0 %v11719_v52  ;;  %7702 = vmatprep.subr.bf16.mxu1 %v11721_v54  ;;  %v1120_v52 = vld [vmem:[#allocation7 + $0x1cb0] sm:$0xff]  ;;  %v1117_v54 = vld [vmem:[#allocation7 + $0x1c98] sm:$0xff] }
 0x451   :  { %v11775_v56 = vcombine.high %v1116_v58, %v1120_v52  ;;  %v11774_v0 = vcombine.low %v1116_v58, %v1120_v52  ;;  %v1164_v48 = vld [vmem:[#allocation7 + $0x1e10] sm:$0xff] }
 0x453   :  { %7359 = vmatpush1.bf16.msra.mxu0 %v11718_v57  ;;  %7703 = vmatpush1.bf16.msra.mxu1 %v11720_v26  ;;  %v11777_v57 = vcombine.high %v1117_v54, %v1121_v63  ;;  %v1124_v26 = vld [vmem:[#allocation7 + $0x1cd0] sm:$0xff] }
 0x454   :  { %7360 = vmatprep.subr.bf16.mxu0 %v11727_v7  ;;  %7704 = vmatprep.subr.bf16.mxu1 %v11729_v27  ;;  %v1128_v7 = vld [vmem:[#allocation7 + $0x1cf0] sm:$0xff]  ;;  %v1125_v27 = vld [vmem:[#allocation7 + $0x1cd8] sm:$0xff] }
 0x455   :  { %v11783_v1 = vcombine.high %v1124_v26, %v1128_v7  ;;  %v11785_v2 = vcombine.high %v1125_v27, %v1129_v61  ;;  %v11782_v29 = vcombine.low %v1124_v26, %v1128_v7  ;;  %v11784_v15 = vcombine.low %v1125_v27, %v1129_v61  ;;  %v1180_v61 = vld [vmem:[#allocation7 + $0x1e90] sm:$0xff] }
 0x457   :  { %7361 = vmatpush1.bf16.msra.mxu0 %v11726_v28  ;;  %7705 = vmatpush1.bf16.msra.mxu1 %v11728_v5  ;;  %v1132_v28 = vld [vmem:[#allocation7 + $0x1d10] sm:$0xff] }
 0x458   :  { %7362 = vmatprep.subr.bf16.mxu0 %v11735_v8  ;;  %7706 = vmatprep.subr.bf16.mxu1 %v11737_v38  ;;  %v1136_v5 = vld [vmem:[#allocation7 + $0x1d30] sm:$0xff]  ;;  %v1133_v8 = vld [vmem:[#allocation7 + $0x1d18] sm:$0xff] }
 0x459   :  { %v1137_v38 = vld [vmem:[#allocation7 + $0x1d38] sm:$0xff]  ;;  %v11791_v14 = vcombine.high %v1132_v28, %v1136_v5 }
 0x45a   :  { %v11792_v23 = vcombine.low %v1133_v8, %v1137_v38 }
 0x45b   :  { %7363 = vmatpush1.bf16.msra.mxu0 %v11734_v3  ;;  %7707 = vmatpush1.bf16.msra.mxu1 %v11736_v53  ;;  %v1144_v3 = vld [vmem:[#allocation7 + $0x1d70] sm:$0xff]  ;;  %v1141_v53 = vld [vmem:[#allocation7 + $0x1d58] sm:$0xff] }
 0x45c   :  { %7364 = vmatprep.subr.bf16.mxu0 %v11743_v21  ;;  %7708 = vmatprep.subr.bf16.mxu1 %v11745_v22  ;;  %v1145_v21 = vld [vmem:[#allocation7 + $0x1d78] sm:$0xff]  ;;  %v11790_v22 = vcombine.low %v1132_v28, %v1136_v5  ;;  %v11799_v34 = vcombine.high %v1140_v19, %v1144_v3 }
 0x45d   :  { %v11801_v17 = vcombine.high %v1141_v53, %v1145_v21  ;;  %v11800_v39 = vcombine.low %v1141_v53, %v1145_v21  ;;  %v1196_v21 = vld [vmem:[#allocation7 + $0x1f10] sm:$0xff] }
 0x45f   :  { %7365 = vmatpush1.bf16.msra.mxu0 %v11742_v11  ;;  %7709 = vmatpush1.bf16.msra.mxu1 %v11744_v20  ;;  %v1152_v11 = vld [vmem:[#allocation7 + $0x1db0] sm:$0xff]  ;;  %v1149_v20 = vld [vmem:[#allocation7 + $0x1d98] sm:$0xff] }
 0x460   :  { %7366 = vmatprep.subr.bf16.mxu0 %v11751_v10  ;;  %7710 = vmatprep.subr.bf16.mxu1 %v11753_v36  ;;  %v1153_v10 = vld [vmem:[#allocation7 + $0x1db8] sm:$0xff]  ;;  %v11798_v36 = vcombine.low %v1140_v19, %v1144_v3  ;;  %v11807_v40 = vcombine.high %v1148_v9, %v1152_v11 }
 0x461   :  { %v11809_v41 = vcombine.high %v1149_v20, %v1153_v10  ;;  %v11808_v47 = vcombine.low %v1149_v20, %v1153_v10  ;;  %v1204_v10 = vld [vmem:[#allocation7 + $0x1f50] sm:$0xff] }
 0x463   :  { %7367 = vmatpush1.bf16.msra.mxu0 %v11750_v42  ;;  %7711 = vmatpush1.bf16.msra.mxu1 %v11752_v43  ;;  %v1160_v42 = vld [vmem:[#allocation7 + $0x1df0] sm:$0xff]  ;;  %v1157_v43 = vld [vmem:[#allocation7 + $0x1dd8] sm:$0xff] }
 0x464   :  { %7379 = vmatprep.subr.bf16.mxu0 %v11759_v44  ;;  %7723 = vmatprep.subr.bf16.mxu1 %v11761_v30  ;;  %v1161_v44 = vld [vmem:[#allocation7 + $0x1df8] sm:$0xff]  ;;  %v11806_v30 = vcombine.low %v1148_v9, %v1152_v11  ;;  %v11815_v37 = vcombine.high %v1156_v59, %v1160_v42 }
 0x465   :  { %v11817_v62 = vcombine.high %v1157_v43, %v1161_v44  ;;  %v11816_v58 = vcombine.low %v1157_v43, %v1161_v44  ;;  %v1212_v44 = vld [vmem:[#allocation7 + $0x1f90] sm:$0xff] }
 0x466   :  { %7369 = vmatmul.mubr.bf16.vlgmr.msra.gmra.mrb[4].mxu0 %v13622_v33  ;;  %7713 = vmatmul.mubr.bf16.vlgmr.msra.gmra.mrb[4].mxu1 %v13622_v33  ;;  %v11776_v33 = vcombine.low %v1117_v54, %v1121_v63  ;;  %v1172_v63 = vld [vmem:[#allocation7 + $0x1e50] sm:$0xff] }
 0x467   :  { %7380 = vmatpush1.bf16.msra.mxu0 %v11758_v49  ;;  %7724 = vmatpush1.bf16.msra.mxu1 %v11760_v6  ;;  %v1168_v49 = vld [vmem:[#allocation7 + $0x1e30] sm:$0xff]  ;;  %v1165_v6 = vld [vmem:[#allocation7 + $0x1e18] sm:$0xff] }
 0x468   :  { %7381 = vmatprep.subr.bf16.mxu0 %v11767_v50  ;;  %7725 = vmatprep.subr.bf16.mxu1 %v11769_v51  ;;  %v1169_v50 = vld [vmem:[#allocation7 + $0x1e38] sm:$0xff]  ;;  %v11814_v51 = vcombine.low %v1156_v59, %v1160_v42  ;;  %v11823_v52 = vcombine.high %v1164_v48, %v1168_v49 }
 0x469   :  { %7411 = vmatprep.mubr.bf16.mxu0 %v13624_v45  ;;  %7755 = vmatprep.mubr.bf16.mxu1 %v13624_v45  ;;  %v11793_v45 = vcombine.high %v1133_v8, %v1137_v38  ;;  %v11825_v54 = vcombine.high %v1165_v6, %v1169_v50  ;;  %v11824_v26 = vcombine.low %v1165_v6, %v1169_v50  ;;  %v1188_v38 = vld [vmem:[#allocation7 + $0x1ed0] sm:$0xff] }
 0x46a   :  { %v1220_v50 = vld [vmem:[#allocation7 + $0x1fd0] sm:$0xff] }
 0x46b   :  { %7382 = vmatpush1.bf16.msra.mxu0 %v11766_v55  ;;  %7726 = vmatpush1.bf16.msra.mxu1 %v11768_v46  ;;  %v1176_v55 = vld [vmem:[#allocation7 + $0x1e70] sm:$0xff]  ;;  %v1173_v46 = vld [vmem:[#allocation7 + $0x1e58] sm:$0xff] }
 0x46c   :  { %7383 = vmatprep.subr.bf16.mxu0 %v11775_v56  ;;  %7727 = vmatprep.subr.bf16.mxu1 %v11777_v57  ;;  %v1177_v56 = vld [vmem:[#allocation7 + $0x1e78] sm:$0xff]  ;;  %v11822_v57 = vcombine.low %v1164_v48, %v1168_v49  ;;  %v11831_v7 = vcombine.high %v1172_v63, %v1176_v55 }
 0x46d   :  { %v11833_v27 = vcombine.high %v1173_v46, %v1177_v56  ;;  %v11832_v28 = vcombine.low %v1173_v46, %v1177_v56 }
 0x46f   :  { %7384 = vmatpush1.bf16.msra.mxu0 %v11774_v0  ;;  %7728 = vmatpush1.bf16.msra.mxu1 %v11776_v33  ;;  %v1184_v0 = vld [vmem:[#allocation7 + $0x1eb0] sm:$0xff]  ;;  %v1181_v33 = vld [vmem:[#allocation7 + $0x1e98] sm:$0xff] }
 0x470   :  { %7385 = vmatprep.subr.bf16.mxu0 %v11783_v1  ;;  %7729 = vmatprep.subr.bf16.mxu1 %v11785_v2  ;;  %v1185_v1 = vld [vmem:[#allocation7 + $0x1eb8] sm:$0xff]  ;;  %v11830_v2 = vcombine.low %v1172_v63, %v1176_v55  ;;  %v11839_v5 = vcombine.high %v1180_v61, %v1184_v0 }
 0x471   :  { %v11841_v8 = vcombine.high %v1181_v33, %v1185_v1  ;;  %v11840_v19 = vcombine.low %v1181_v33, %v1185_v1  ;;  %v12560_v33 = vld [vmem:[#allocation8 + $0x2c] ss:$16 sps:$4 sm:$0xff]   ;;  %v12555_v1 = vld [vmem:[#allocation8 + $0x20] ss:$16 sps:$4 sm:$0xff]  }
 0x473   :  { %7386 = vmatpush1.bf16.msra.mxu0 %v11782_v29  ;;  %7730 = vmatpush1.bf16.msra.mxu1 %v11784_v15  ;;  %v1192_v29 = vld [vmem:[#allocation7 + $0x1ef0] sm:$0xff]  ;;  %v1189_v15 = vld [vmem:[#allocation7 + $0x1ed8] sm:$0xff] }
 0x474   :  { %7387 = vmatprep.subr.bf16.mxu0 %v11791_v14  ;;  %7731 = vmatprep.subr.bf16.mxu1 %v11793_v45  ;;  %v1193_v14 = vld [vmem:[#allocation7 + $0x1ef8] sm:$0xff]  ;;  %v11838_v45 = vcombine.low %v1180_v61, %v1184_v0  ;;  %v11847_v3 = vcombine.high %v1188_v38, %v1192_v29  ;;  %v12557_v0 = vld [vmem:[#allocation8 + $0x24] ss:$16 sps:$4 sm:$0xff]  }
 0x475   :  { %v11849_v53 = vcombine.high %v1189_v15, %v1193_v14  ;;  %v11848_v9 = vcombine.low %v1189_v15, %v1193_v14  ;;  %v12552_v61 = vld [vmem:[#allocation8 + $0x8] ss:$16 sps:$4 sm:$0xff]   ;;  %v12567_v15 = vld [vmem:[#allocation8 + $0x60] ss:$16 sps:$4 sm:$0xff]  }
 0x476   :  { %v12570_v14 = vld [vmem:[#allocation8 + $0x68] ss:$16 sps:$4 sm:$0xff]  }
 0x477   :  { %7388 = vmatpush1.bf16.msra.mxu0 %v11790_v22  ;;  %7732 = vmatpush1.bf16.msra.mxu1 %v11792_v23  ;;  %v1200_v22 = vld [vmem:[#allocation7 + $0x1f30] sm:$0xff]  ;;  %v1197_v23 = vld [vmem:[#allocation7 + $0x1f18] sm:$0xff] }
 0x478   :  { %7389 = vmatprep.subr.bf16.mxu0 %v11799_v34  ;;  %7733 = vmatprep.subr.bf16.mxu1 %v11801_v17  ;;  %v1201_v34 = vld [vmem:[#allocation7 + $0x1f38] sm:$0xff]  ;;  %v11846_v17 = vcombine.low %v1188_v38, %v1192_v29  ;;  %v11855_v11 = vcombine.high %v1196_v21, %v1200_v22  ;;  %v12569_v29 = vld [vmem:[#allocation8 + $0x64] ss:$16 sps:$4 sm:$0xff]  }
 0x479   :  { %v11857_v20 = vcombine.high %v1197_v23, %v1201_v34  ;;  %v11856_v59 = vcombine.low %v1197_v23, %v1201_v34  ;;  %v12564_v38 = vld [vmem:[#allocation8 + $0x48] ss:$16 sps:$4 sm:$0xff]   ;;  %v12587_v34 = vld [vmem:[#allocation8 + $0xc4] ss:$16 sps:$4 sm:$0xff]  }
 0x47a   :  { %v12582_v23 = vld [vmem:[#allocation8 + $0xa8] ss:$16 sps:$4 sm:$0xff]  }
 0x47b   :  { %7390 = vmatpush1.bf16.msra.mxu0 %v11798_v36  ;;  %7734 = vmatpush1.bf16.msra.mxu1 %v11800_v39  ;;  %v1208_v36 = vld [vmem:[#allocation7 + $0x1f70] sm:$0xff]  ;;  %v1205_v39 = vld [vmem:[#allocation7 + $0x1f58] sm:$0xff] }
 0x47c   :  { %7391 = vmatprep.subr.bf16.mxu0 %v11807_v40  ;;  %7735 = vmatprep.subr.bf16.mxu1 %v11809_v41  ;;  %v1209_v40 = vld [vmem:[#allocation7 + $0x1f78] sm:$0xff]  ;;  %v11854_v41 = vcombine.low %v1196_v21, %v1200_v22  ;;  %v11863_v42 = vcombine.high %v1204_v10, %v1208_v36  ;;  %v12579_v22 = vld [vmem:[#allocation8 + $0xa0] ss:$16 sps:$4 sm:$0xff]  }
 0x47d   :  { %v11865_v43 = vcombine.high %v1205_v39, %v1209_v40  ;;  %v11864_v48 = vcombine.low %v1205_v39, %v1209_v40  ;;  %v12584_v21 = vld [vmem:[#allocation8 + $0xac] ss:$16 sps:$4 sm:$0xff]   ;;  %v12594_v39 = vld [vmem:[#allocation8 + $0xe8] ss:$16 sps:$4 sm:$0xff]   ;;  %v12599_v40 = vld [vmem:[#allocation8 + $0x104] ss:$16 sps:$4 sm:$0xff]  }
 0x47f   :  { %7392 = vmatpush1.bf16.msra.mxu0 %v11806_v30  ;;  %7736 = vmatpush1.bf16.msra.mxu1 %v11808_v47  ;;  %v1216_v30 = vld [vmem:[#allocation7 + $0x1fb0] sm:$0xff]  ;;  %v1213_v47 = vld [vmem:[#allocation7 + $0x1f98] sm:$0xff] }
 0x480   :  { %7393 = vmatprep.subr.bf16.mxu0 %v11815_v37  ;;  %7737 = vmatprep.subr.bf16.mxu1 %v11817_v62  ;;  %v1217_v37 = vld [vmem:[#allocation7 + $0x1fb8] sm:$0xff]  ;;  %v11862_v62 = vcombine.low %v1204_v10, %v1208_v36  ;;  %v11871_v49 = vcombine.high %v1212_v44, %v1216_v30  ;;  %v12591_v36 = vld [vmem:[#allocation8 + $0xe0] ss:$16 sps:$4 sm:$0xff]  }
 0x481   :  { %v11873_v6 = vcombine.high %v1213_v47, %v1217_v37  ;;  %v11872_v63 = vcombine.low %v1213_v47, %v1217_v37  ;;  %v12596_v10 = vld [vmem:[#allocation8 + $0xec] ss:$16 sps:$4 sm:$0xff]   ;;  %v12606_v47 = vld [vmem:[#allocation8 + $0x128] ss:$16 sps:$4 sm:$0xff]   ;;  %v12611_v37 = vld [vmem:[#allocation8 + $0x144] ss:$16 sps:$4 sm:$0xff]  }
 0x483   :  { %7394 = vmatpush1.bf16.msra.mxu0 %v11814_v51  ;;  %7738 = vmatpush1.bf16.msra.mxu1 %v11816_v58  ;;  %v1224_v51 = vld [vmem:[#allocation7 + $0x1ff0] sm:$0xff]  ;;  %v1221_v58 = vld [vmem:[#allocation7 + $0x1fd8] sm:$0xff] }
 0x484   :  { %7395 = vmatprep.subr.bf16.mxu0 %v11823_v52  ;;  %7739 = vmatprep.subr.bf16.mxu1 %v11825_v54  ;;  %v1225_v52 = vld [vmem:[#allocation7 + $0x1ff8] sm:$0xff]  ;;  %v11870_v54 = vcombine.low %v1212_v44, %v1216_v30  ;;  %v11879_v55 = vcombine.high %v1220_v50, %v1224_v51  ;;  %v11878_v56 = vcombine.low %v1220_v50, %v1224_v51  ;;  %v12603_v30 = vld [vmem:[#allocation8 + $0x120] ss:$16 sps:$4 sm:$0xff]  }
 0x485   :  { %v11881_v46 = vcombine.high %v1221_v58, %v1225_v52  ;;  %v12608_v44 = vld [vmem:[#allocation8 + $0x12c] ss:$16 sps:$4 sm:$0xff]   ;;  %v12615_v51 = vld [vmem:[#allocation8 + $0x160] ss:$16 sps:$4 sm:$0xff]  }
 0x486   :  { %v12620_v50 = vld [vmem:[#allocation8 + $0x16c] ss:$16 sps:$4 sm:$0xff]  }
 0x487   :  { %7396 = vmatpush1.bf16.msra.mxu0 %v11822_v57  ;;  %7740 = vmatpush1.bf16.msra.mxu1 %v11824_v26  ;;  %v11880_v57 = vcombine.low %v1221_v58, %v1225_v52  ;;  %v12551_v26 = vld [vmem:[#allocation8 + $0x4] ss:$16 sps:$4 sm:$0xff]   ;;  %v12618_v58 = vld [vmem:[#allocation8 + $0x168] ss:$16 sps:$4 sm:$0xff]  }
 0x488   :  { %7397 = vmatprep.subr.bf16.mxu0 %v11831_v7  ;;  %7741 = vmatprep.subr.bf16.mxu1 %v11833_v27  ;;  %v12554_v7 = vld [vmem:[#allocation8 + $0xc] ss:$16 sps:$4 sm:$0xff]   ;;  %v12549_v27 = vld [vmem:[#allocation8] ss:$16 sps:$4 sm:$0xff]   ;;  %v12623_v52 = vld [vmem:[#allocation8 + $0x184] ss:$16 sps:$4 sm:$0xff]  }
 0x48b   :  { %7398 = vmatpush1.bf16.msra.mxu0 %v11830_v2  ;;  %7742 = vmatpush1.bf16.msra.mxu1 %v11832_v28  ;;  %v12558_v2 = vld [vmem:[#allocation8 + $0x28] ss:$16 sps:$4 sm:$0xff]   ;;  %v12563_v28 = vld [vmem:[#allocation8 + $0x44] ss:$16 sps:$4 sm:$0xff]  }
 0x48c   :  { %7399 = vmatprep.subr.bf16.mxu0 %v11839_v5  ;;  %7743 = vmatprep.subr.bf16.mxu1 %v11841_v8  ;;  %v12566_v5 = vld [vmem:[#allocation8 + $0x4c] ss:$16 sps:$4 sm:$0xff]   ;;  %v12561_v8 = vld [vmem:[#allocation8 + $0x40] ss:$16 sps:$4 sm:$0xff]  }
 0x48f   :  { %7400 = vmatpush1.bf16.msra.mxu0 %v11838_v45  ;;  %7744 = vmatpush1.bf16.msra.mxu1 %v11840_v19  ;;  %v12575_v45 = vld [vmem:[#allocation8 + $0x84] ss:$16 sps:$4 sm:$0xff]   ;;  %v12578_v19 = vld [vmem:[#allocation8 + $0x8c] ss:$16 sps:$4 sm:$0xff]  }
 0x490   :  { %7401 = vmatprep.subr.bf16.mxu0 %v11847_v3  ;;  %7745 = vmatprep.subr.bf16.mxu1 %v11849_v53  ;;  %v12576_v3 = vld [vmem:[#allocation8 + $0x88] ss:$16 sps:$4 sm:$0xff]   ;;  %v12581_v53 = vld [vmem:[#allocation8 + $0xa4] ss:$16 sps:$4 sm:$0xff]  }
 0x493   :  { %7402 = vmatpush1.bf16.msra.mxu0 %v11846_v17  ;;  %7746 = vmatpush1.bf16.msra.mxu1 %v11848_v9  ;;  %v12590_v17 = vld [vmem:[#allocation8 + $0xcc] ss:$16 sps:$4 sm:$0xff]   ;;  %v12585_v9 = vld [vmem:[#allocation8 + $0xc0] ss:$16 sps:$4 sm:$0xff]  }
 0x494   :  { %7403 = vmatprep.subr.bf16.mxu0 %v11855_v11  ;;  %7747 = vmatprep.subr.bf16.mxu1 %v11857_v20  ;;  %v12588_v11 = vld [vmem:[#allocation8 + $0xc8] ss:$16 sps:$4 sm:$0xff]   ;;  %v12593_v20 = vld [vmem:[#allocation8 + $0xe4] ss:$16 sps:$4 sm:$0xff]  }
 0x497   :  { %7404 = vmatpush1.bf16.msra.mxu0 %v11854_v41  ;;  %7748 = vmatpush1.bf16.msra.mxu1 %v11856_v59  ;;  %v12602_v41 = vld [vmem:[#allocation8 + $0x10c] ss:$16 sps:$4 sm:$0xff]   ;;  %v12597_v59 = vld [vmem:[#allocation8 + $0x100] ss:$16 sps:$4 sm:$0xff]  }
 0x498   :  { %7405 = vmatprep.subr.bf16.mxu0 %v11863_v42  ;;  %7749 = vmatprep.subr.bf16.mxu1 %v11865_v43  ;;  %v12600_v42 = vld [vmem:[#allocation8 + $0x108] ss:$16 sps:$4 sm:$0xff]   ;;  %v12605_v43 = vld [vmem:[#allocation8 + $0x124] ss:$16 sps:$4 sm:$0xff]  }
 0x49b   :  { %7406 = vmatpush1.bf16.msra.mxu0 %v11862_v62  ;;  %7750 = vmatpush1.bf16.msra.mxu1 %v11864_v48  ;;  %v12614_v62 = vld [vmem:[#allocation8 + $0x14c] ss:$16 sps:$4 sm:$0xff]   ;;  %v12609_v48 = vld [vmem:[#allocation8 + $0x140] ss:$16 sps:$4 sm:$0xff]  }
 0x49c   :  { %7407 = vmatprep.subr.bf16.mxu0 %v11871_v49  ;;  %7751 = vmatprep.subr.bf16.mxu1 %v11873_v6  ;;  %v12612_v49 = vld [vmem:[#allocation8 + $0x148] ss:$16 sps:$4 sm:$0xff]   ;;  %v12617_v6 = vld [vmem:[#allocation8 + $0x164] ss:$16 sps:$4 sm:$0xff]  }
 0x49f   :  { %7408 = vmatpush1.bf16.msra.mxu0 %v11870_v54  ;;  %7752 = vmatpush1.bf16.msra.mxu1 %v11872_v63  ;;  %v12626_v54 = vld [vmem:[#allocation8 + $0x18c] ss:$16 sps:$4 sm:$0xff]   ;;  %v12621_v63 = vld [vmem:[#allocation8 + $0x180] ss:$16 sps:$4 sm:$0xff]  }
 0x4a0   :  { %7409 = vmatprep.subr.bf16.mxu0 %v11879_v55  ;;  %7753 = vmatprep.subr.bf16.mxu1 %v11881_v46  ;;  %v12624_v55 = vld [vmem:[#allocation8 + $0x188] ss:$16 sps:$4 sm:$0xff]   ;;  %v12629_v46 = vld [vmem:[#allocation8 + $0x1a4] ss:$16 sps:$4 sm:$0xff]  }
 0x4a3   :  { %7410 = vmatpush1.bf16.msra.mxu0 %v11878_v56  ;;  %7754 = vmatpush1.bf16.msra.mxu1 %v11880_v57  ;;  %v12632_v56 = vld [vmem:[#allocation8 + $0x1ac] ss:$16 sps:$4 sm:$0xff]   ;;  %v12627_v57 = vld [vmem:[#allocation8 + $0x1a0] ss:$16 sps:$4 sm:$0xff]  }
 0x4a4   :  { %9413 = vmatprep.subr.bf16.mxu0 %v12551_v26  ;;  %9585 = vmatprep.subr.bf16.mxu1 %v12554_v7  ;;  %v12630_v26 = vld [vmem:[#allocation8 + $0x1a8] ss:$16 sps:$4 sm:$0xff]   ;;  %v12635_v7 = vld [vmem:[#allocation8 + $0x1c4] ss:$16 sps:$4 sm:$0xff]  }
 0x4a6   :  { %7412 = vmatmul.mubr.bf16.vlgmr.msra.gmra.mrb[4].mxu0 %v13630_v13  ;;  %7756 = vmatmul.mubr.bf16.vlgmr.msra.gmra.mrb[4].mxu1 %v13630_v13  ;;  %v12572_v13 = vld [vmem:[#allocation8 + $0x6c] ss:$16 sps:$4 sm:$0xff]  }
 0x4a7   :  { %9414 = vmatpush1.bf16.msra.mxu0 %v12549_v27  ;;  %9445 = vmatprep.mubr.bf16.mxu0 %v13730_v12  ;;  %v12638_v27 = vld [vmem:[#allocation8 + $0x1cc] ss:$16 sps:$4 sm:$0xff]  }
 0x4a8   :  { %9586 = vmatpush1.bf16.msra.mxu1 %v12552_v61  ;;  %9617 = vmatprep.mubr.bf16.mxu1 %v13730_v12  ;;  %v12573_v12 = vld [vmem:[#allocation8 + $0x80] ss:$16 sps:$4 sm:$0xff]  }
 0x4a9   :  { %9415 = vmatprep.subr.bf16.mxu0 %v12557_v0  ;;  %9587 = vmatprep.subr.bf16.mxu1 %v12560_v33  ;;  %v12633_v61 = vld [vmem:[#allocation8 + $0x1c0] ss:$16 sps:$4 sm:$0xff]   ;;  %v12636_v0 = vld [vmem:[#allocation8 + $0x1c8] ss:$16 sps:$4 sm:$0xff]   ;;  %v12641_v33 = vld [vmem:[#allocation8 + $0x1e4] ss:$16 sps:$4 sm:$0xff]  }
 0x4ab   :  { %9416 = vmatpush1.bf16.msra.mxu0 %v12555_v1  ;;  %v12644_v1 = vld [vmem:[#allocation8 + $0x1ec] ss:$16 sps:$4 sm:$0xff]  }
 0x4ac   :  { %9588 = vmatpush1.bf16.msra.mxu1 %v12558_v2  ;;  %9417 = vmatprep.subr.bf16.mxu0 %v12563_v28  ;;  %v12639_v2 = vld [vmem:[#allocation8 + $0x1e0] ss:$16 sps:$4 sm:$0xff]   ;;  %v12642_v28 = vld [vmem:[#allocation8 + $0x1e8] ss:$16 sps:$4 sm:$0xff]  }
 0x4ad   :  { %9589 = vmatprep.subr.bf16.mxu1 %v12566_v5  ;;  %v12647_v5 = vld [vmem:[#allocation8 + $0x204] ss:$16 sps:$4 sm:$0xff]  }
 0x4af   :  { %9418 = vmatpush1.bf16.msra.mxu0 %v12561_v8  ;;  %v12650_v8 = vld [vmem:[#allocation8 + $0x20c] ss:$16 sps:$4 sm:$0xff]  }
 0x4b0   :  { %9590 = vmatpush1.bf16.msra.mxu1 %v12564_v38  ;;  %9419 = vmatprep.subr.bf16.mxu0 %v12569_v29  ;;  %v12645_v38 = vld [vmem:[#allocation8 + $0x200] ss:$16 sps:$4 sm:$0xff]   ;;  %v12648_v29 = vld [vmem:[#allocation8 + $0x208] ss:$16 sps:$4 sm:$0xff]  }
 0x4b1   :  { %9591 = vmatprep.subr.bf16.mxu1 %v12572_v13  ;;  %v12653_v13 = vld [vmem:[#allocation8 + $0x224] ss:$16 sps:$4 sm:$0xff]  }
 0x4b3   :  { %9420 = vmatpush1.bf16.msra.mxu0 %v12567_v15  ;;  %v12656_v15 = vld [vmem:[#allocation8 + $0x22c] ss:$16 sps:$4 sm:$0xff]  }
 0x4b4   :  { %9592 = vmatpush1.bf16.msra.mxu1 %v12570_v14  ;;  %9421 = vmatprep.subr.bf16.mxu0 %v12575_v45  ;;  %v12651_v14 = vld [vmem:[#allocation8 + $0x220] ss:$16 sps:$4 sm:$0xff]   ;;  %v12654_v45 = vld [vmem:[#allocation8 + $0x228] ss:$16 sps:$4 sm:$0xff]  }
 0x4b5   :  { %9593 = vmatprep.subr.bf16.mxu1 %v12578_v19  ;;  %v12659_v19 = vld [vmem:[#allocation8 + $0x244] ss:$16 sps:$4 sm:$0xff]  }
 0x4b7   :  { %9422 = vmatpush1.bf16.msra.mxu0 %v12573_v12  ;;  %v12662_v12 = vld [vmem:[#allocation8 + $0x24c] ss:$16 sps:$4 sm:$0xff]  }
 0x4b8   :  { %9594 = vmatpush1.bf16.msra.mxu1 %v12576_v3  ;;  %9423 = vmatprep.subr.bf16.mxu0 %v12581_v53  ;;  %v12657_v3 = vld [vmem:[#allocation8 + $0x240] ss:$16 sps:$4 sm:$0xff]   ;;  %v12660_v53 = vld [vmem:[#allocation8 + $0x248] ss:$16 sps:$4 sm:$0xff]  }
 0x4b9   :  { %9595 = vmatprep.subr.bf16.mxu1 %v12584_v21  ;;  %v12665_v21 = vld [vmem:[#allocation8 + $0x264] ss:$16 sps:$4 sm:$0xff]  }
 0x4bb   :  { %9424 = vmatpush1.bf16.msra.mxu0 %v12579_v22  ;;  %v12663_v22 = vld [vmem:[#allocation8 + $0x260] ss:$16 sps:$4 sm:$0xff]  }
 0x4bc   :  { %9596 = vmatpush1.bf16.msra.mxu1 %v12582_v23  ;;  %9425 = vmatprep.subr.bf16.mxu0 %v12587_v34  ;;  %v12666_v23 = vld [vmem:[#allocation8 + $0x268] ss:$16 sps:$4 sm:$0xff]   ;;  %v12671_v34 = vld [vmem:[#allocation8 + $0x284] ss:$16 sps:$4 sm:$0xff]  }
 0x4bd   :  { %9597 = vmatprep.subr.bf16.mxu1 %v12590_v17  ;;  %v12674_v17 = vld [vmem:[#allocation8 + $0x28c] ss:$16 sps:$4 sm:$0xff]  }
 0x4bf   :  { %9426 = vmatpush1.bf16.msra.mxu0 %v12585_v9  ;;  %v12672_v9 = vld [vmem:[#allocation8 + $0x288] ss:$16 sps:$4 sm:$0xff]  }
 0x4c0   :  { %9598 = vmatpush1.bf16.msra.mxu1 %v12588_v11  ;;  %9427 = vmatprep.subr.bf16.mxu0 %v12593_v20  ;;  %v12677_v11 = vld [vmem:[#allocation8 + $0x2a4] ss:$16 sps:$4 sm:$0xff]   ;;  %v12680_v20 = vld [vmem:[#allocation8 + $0x2ac] ss:$16 sps:$4 sm:$0xff]  }
 0x4c1   :  { %9599 = vmatprep.subr.bf16.mxu1 %v12596_v10  ;;  %v12675_v10 = vld [vmem:[#allocation8 + $0x2a0] ss:$16 sps:$4 sm:$0xff]  }
 0x4c3   :  { %9428 = vmatpush1.bf16.msra.mxu0 %v12591_v36  ;;  %v12678_v36 = vld [vmem:[#allocation8 + $0x2a8] ss:$16 sps:$4 sm:$0xff]  }
 0x4c4   :  { %9600 = vmatpush1.bf16.msra.mxu1 %v12594_v39  ;;  %9429 = vmatprep.subr.bf16.mxu0 %v12599_v40  ;;  %v12683_v39 = vld [vmem:[#allocation8 + $0x2c4] ss:$16 sps:$4 sm:$0xff]   ;;  %v12686_v40 = vld [vmem:[#allocation8 + $0x2cc] ss:$16 sps:$4 sm:$0xff]  }
 0x4c5   :  { %9601 = vmatprep.subr.bf16.mxu1 %v12602_v41  ;;  %v12681_v41 = vld [vmem:[#allocation8 + $0x2c0] ss:$16 sps:$4 sm:$0xff]  }
 0x4c7   :  { %9430 = vmatpush1.bf16.msra.mxu0 %v12597_v59  ;;  %v12684_v59 = vld [vmem:[#allocation8 + $0x2c8] ss:$16 sps:$4 sm:$0xff]  }
 0x4c8   :  { %9602 = vmatpush1.bf16.msra.mxu1 %v12600_v42  ;;  %9431 = vmatprep.subr.bf16.mxu0 %v12605_v43  ;;  %v12689_v42 = vld [vmem:[#allocation8 + $0x2e4] ss:$16 sps:$4 sm:$0xff]   ;;  %v12692_v43 = vld [vmem:[#allocation8 + $0x2ec] ss:$16 sps:$4 sm:$0xff]  }
 0x4c9   :  { %9603 = vmatprep.subr.bf16.mxu1 %v12608_v44  ;;  %v12687_v44 = vld [vmem:[#allocation8 + $0x2e0] ss:$16 sps:$4 sm:$0xff]  }
 0x4cb   :  { %9432 = vmatpush1.bf16.msra.mxu0 %v12603_v30  ;;  %v12690_v30 = vld [vmem:[#allocation8 + $0x2e8] ss:$16 sps:$4 sm:$0xff]  }
 0x4cc   :  { %9604 = vmatpush1.bf16.msra.mxu1 %v12606_v47  ;;  %9433 = vmatprep.subr.bf16.mxu0 %v12611_v37  ;;  %v12695_v47 = vld [vmem:[#allocation8 + $0x304] ss:$16 sps:$4 sm:$0xff]   ;;  %v12698_v37 = vld [vmem:[#allocation8 + $0x30c] ss:$16 sps:$4 sm:$0xff]  }
 0x4cd   :  { %9605 = vmatprep.subr.bf16.mxu1 %v12614_v62  ;;  %v12693_v62 = vld [vmem:[#allocation8 + $0x300] ss:$16 sps:$4 sm:$0xff]  }
 0x4cf   :  { %9434 = vmatpush1.bf16.msra.mxu0 %v12609_v48  ;;  %v12696_v48 = vld [vmem:[#allocation8 + $0x308] ss:$16 sps:$4 sm:$0xff]  }
 0x4d0   :  { %9606 = vmatpush1.bf16.msra.mxu1 %v12612_v49  ;;  %9435 = vmatprep.subr.bf16.mxu0 %v12617_v6  ;;  %v12701_v49 = vld [vmem:[#allocation8 + $0x324] ss:$16 sps:$4 sm:$0xff]   ;;  %v12704_v6 = vld [vmem:[#allocation8 + $0x32c] ss:$16 sps:$4 sm:$0xff]  }
 0x4d1   :  { %9607 = vmatprep.subr.bf16.mxu1 %v12620_v50  ;;  %v12699_v50 = vld [vmem:[#allocation8 + $0x320] ss:$16 sps:$4 sm:$0xff]  }
 0x4d3   :  { %9436 = vmatpush1.bf16.msra.mxu0 %v12615_v51  ;;  %v12702_v51 = vld [vmem:[#allocation8 + $0x328] ss:$16 sps:$4 sm:$0xff]  }
 0x4d4   :  { %9608 = vmatpush1.bf16.msra.mxu1 %v12618_v58  ;;  %9437 = vmatprep.subr.bf16.mxu0 %v12623_v52  ;;  %v12707_v58 = vld [vmem:[#allocation8 + $0x344] ss:$16 sps:$4 sm:$0xff]   ;;  %v12710_v52 = vld [vmem:[#allocation8 + $0x34c] ss:$16 sps:$4 sm:$0xff]  }
 0x4d5   :  { %9609 = vmatprep.subr.bf16.mxu1 %v12626_v54  ;;  %v12705_v54 = vld [vmem:[#allocation8 + $0x340] ss:$16 sps:$4 sm:$0xff]  }
 0x4d7   :  { %9438 = vmatpush1.bf16.msra.mxu0 %v12621_v63  ;;  %v12708_v63 = vld [vmem:[#allocation8 + $0x348] ss:$16 sps:$4 sm:$0xff]  }
 0x4d8   :  { %9610 = vmatpush1.bf16.msra.mxu1 %v12624_v55  ;;  %9439 = vmatprep.subr.bf16.mxu0 %v12629_v46  ;;  %v12713_v55 = vld [vmem:[#allocation8 + $0x364] ss:$16 sps:$4 sm:$0xff]   ;;  %v12716_v46 = vld [vmem:[#allocation8 + $0x36c] ss:$16 sps:$4 sm:$0xff]  }
 0x4d9   :  { %9611 = vmatprep.subr.bf16.mxu1 %v12632_v56  ;;  %v12711_v56 = vld [vmem:[#allocation8 + $0x360] ss:$16 sps:$4 sm:$0xff]  }
 0x4db   :  { %9440 = vmatpush1.bf16.msra.mxu0 %v12627_v57  ;;  %v12714_v57 = vld [vmem:[#allocation8 + $0x368] ss:$16 sps:$4 sm:$0xff]  }
 0x4dc   :  { %9612 = vmatpush1.bf16.msra.mxu1 %v12630_v26  ;;  %9441 = vmatprep.subr.bf16.mxu0 %v12635_v7  ;;  %v12719_v26 = vld [vmem:[#allocation8 + $0x384] ss:$16 sps:$4 sm:$0xff]   ;;  %v12722_v7 = vld [vmem:[#allocation8 + $0x38c] ss:$16 sps:$4 sm:$0xff]  }
 0x4dd   :  { %9613 = vmatprep.subr.bf16.mxu1 %v12638_v27  ;;  %v12717_v27 = vld [vmem:[#allocation8 + $0x380] ss:$16 sps:$4 sm:$0xff]  }
 0x4df   :  { %9442 = vmatpush1.bf16.msra.mxu0 %v12633_v61  ;;  %v12720_v61 = vld [vmem:[#allocation8 + $0x388] ss:$16 sps:$4 sm:$0xff]  }
 0x4e0   :  { %9614 = vmatpush1.bf16.msra.mxu1 %v12636_v0  ;;  %9443 = vmatprep.subr.bf16.mxu0 %v12641_v33  ;;  %v12725_v0 = vld [vmem:[#allocation8 + $0x3a4] ss:$16 sps:$4 sm:$0xff]   ;;  %v12728_v33 = vld [vmem:[#allocation8 + $0x3ac] ss:$16 sps:$4 sm:$0xff]  }
 0x4e1   :  { %9615 = vmatprep.subr.bf16.mxu1 %v12644_v1  ;;  %v12723_v1 = vld [vmem:[#allocation8 + $0x3a0] ss:$16 sps:$4 sm:$0xff]  }
 0x4e3   :  { %9444 = vmatpush1.bf16.msra.mxu0 %v12639_v2  ;;  %v12726_v2 = vld [vmem:[#allocation8 + $0x3a8] ss:$16 sps:$4 sm:$0xff]  }
 0x4e4   :  { %9616 = vmatpush1.bf16.msra.mxu1 %v12642_v28  ;;  %9456 = vmatprep.subr.bf16.mxu0 %v12647_v5  ;;  %v12731_v28 = vld [vmem:[#allocation8 + $0x3c4] ss:$16 sps:$4 sm:$0xff]   ;;  %v12734_v5 = vld [vmem:[#allocation8 + $0x3cc] ss:$16 sps:$4 sm:$0xff]  }
 0x4e5   :  { %9628 = vmatprep.subr.bf16.mxu1 %v12650_v8  ;;  %v12729_v8 = vld [vmem:[#allocation8 + $0x3c0] ss:$16 sps:$4 sm:$0xff]  }
 0x4e6   :  { %9446 = vmatmul.mubr.bf16.vlgmr.msra.gmra.mrb[8].mxu0 %v13724_v60 }
 0x4e7   :  { %9618 = vmatmul.mubr.bf16.vlgmr.msra.gmra.mrb[8].mxu1 %v13724_v60  ;;  %9457 = vmatpush1.bf16.msra.mxu0 %v12645_v38  ;;  %v12668_v60 = vld [vmem:[#allocation8 + $0x26c] ss:$16 sps:$4 sm:$0xff]   ;;  %v12732_v38 = vld [vmem:[#allocation8 + $0x3c8] ss:$16 sps:$4 sm:$0xff]  }
 0x4e8   :  { %9488 = vmatprep.mubr.bf16.mxu0 %v13732_v18  ;;  %9629 = vmatpush1.bf16.msra.mxu1 %v12648_v29  ;;  %v12737_v29 = vld [vmem:[#allocation8 + $0x3e4] ss:$16 sps:$4 sm:$0xff]  }
 0x4e9   :  { %9660 = vmatprep.mubr.bf16.mxu1 %v13732_v18  ;;  %9458 = vmatprep.subr.bf16.mxu0 %v12653_v13  ;;  %v12669_v18 = vld [vmem:[#allocation8 + $0x280] ss:$16 sps:$4 sm:$0xff]   ;;  %v12740_v13 = vld [vmem:[#allocation8 + $0x3ec] ss:$16 sps:$4 sm:$0xff]  }
 0x4ea   :  { %9630 = vmatprep.subr.bf16.mxu1 %v12656_v15  ;;  %v12735_v15 = vld [vmem:[#allocation8 + $0x3e0] ss:$16 sps:$4 sm:$0xff]  }
 0x4eb   :  { %9459 = vmatpush1.bf16.msra.mxu0 %v12651_v14  ;;  %v12738_v14 = vld [vmem:[#allocation8 + $0x3e8] ss:$16 sps:$4 sm:$0xff]  }
 0x4ec   :  { %9631 = vmatpush1.bf16.msra.mxu1 %v12654_v45  ;;  %9460 = vmatprep.subr.bf16.mxu0 %v12659_v19  ;;  %v12743_v45 = vld [vmem:[#allocation8 + $0x404] ss:$16 sps:$4 sm:$0xff]   ;;  %v12746_v19 = vld [vmem:[#allocation8 + $0x40c] ss:$16 sps:$4 sm:$0xff]  }
 0x4ed   :  { %9632 = vmatprep.subr.bf16.mxu1 %v12662_v12  ;;  %v12741_v12 = vld [vmem:[#allocation8 + $0x400] ss:$16 sps:$4 sm:$0xff]  }
 0x4ef   :  { %9461 = vmatpush1.bf16.msra.mxu0 %v12657_v3  ;;  %v12744_v3 = vld [vmem:[#allocation8 + $0x408] ss:$16 sps:$4 sm:$0xff]  }
 0x4f0   :  { %9633 = vmatpush1.bf16.msra.mxu1 %v12660_v53  ;;  %9462 = vmatprep.subr.bf16.mxu0 %v12665_v21  ;;  %v12749_v53 = vld [vmem:[#allocation8 + $0x424] ss:$16 sps:$4 sm:$0xff]   ;;  %v12752_v21 = vld [vmem:[#allocation8 + $0x42c] ss:$16 sps:$4 sm:$0xff]  }
 0x4f1   :  { %9634 = vmatprep.subr.bf16.mxu1 %v12668_v60  ;;  %v12747_v60 = vld [vmem:[#allocation8 + $0x420] ss:$16 sps:$4 sm:$0xff]  }
 0x4f3   :  { %9463 = vmatpush1.bf16.msra.mxu0 %v12663_v22  ;;  %v12750_v22 = vld [vmem:[#allocation8 + $0x428] ss:$16 sps:$4 sm:$0xff]  }
 0x4f4   :  { %9635 = vmatpush1.bf16.msra.mxu1 %v12666_v23  ;;  %9464 = vmatprep.subr.bf16.mxu0 %v12671_v34  ;;  %v12755_v23 = vld [vmem:[#allocation8 + $0x444] ss:$16 sps:$4 sm:$0xff]   ;;  %v12758_v34 = vld [vmem:[#allocation8 + $0x44c] ss:$16 sps:$4 sm:$0xff]  }
 0x4f5   :  { %9636 = vmatprep.subr.bf16.mxu1 %v12674_v17  ;;  %v12753_v17 = vld [vmem:[#allocation8 + $0x440] ss:$16 sps:$4 sm:$0xff]  }
 0x4f7   :  { %9465 = vmatpush1.bf16.msra.mxu0 %v12669_v18  ;;  %v12756_v18 = vld [vmem:[#allocation8 + $0x448] ss:$16 sps:$4 sm:$0xff]  }
 0x4f8   :  { %9637 = vmatpush1.bf16.msra.mxu1 %v12672_v9  ;;  %9466 = vmatprep.subr.bf16.mxu0 %v12677_v11  ;;  %v12761_v9 = vld [vmem:[#allocation8 + $0x464] ss:$16 sps:$4 sm:$0xff]   ;;  %v12764_v11 = vld [vmem:[#allocation8 + $0x46c] ss:$16 sps:$4 sm:$0xff]  }
 0x4f9   :  { %9638 = vmatprep.subr.bf16.mxu1 %v12680_v20  ;;  %v12759_v20 = vld [vmem:[#allocation8 + $0x460] ss:$16 sps:$4 sm:$0xff]  }
 0x4fb   :  { %9467 = vmatpush1.bf16.msra.mxu0 %v12675_v10  ;;  %v12767_v10 = vld [vmem:[#allocation8 + $0x484] ss:$16 sps:$4 sm:$0xff]  }
 0x4fc   :  { %9639 = vmatpush1.bf16.msra.mxu1 %v12678_v36  ;;  %9468 = vmatprep.subr.bf16.mxu0 %v12683_v39  ;;  %v12770_v36 = vld [vmem:[#allocation8 + $0x48c] ss:$16 sps:$4 sm:$0xff]   ;;  %v12765_v39 = vld [vmem:[#allocation8 + $0x480] ss:$16 sps:$4 sm:$0xff]  }
 0x4fd   :  { %9640 = vmatprep.subr.bf16.mxu1 %v12686_v40  ;;  %v12768_v40 = vld [vmem:[#allocation8 + $0x488] ss:$16 sps:$4 sm:$0xff]  }
 0x4ff   :  { %9469 = vmatpush1.bf16.msra.mxu0 %v12681_v41  ;;  %v12773_v41 = vld [vmem:[#allocation8 + $0x4a4] ss:$16 sps:$4 sm:$0xff]  }
 0x500   :  { %9641 = vmatpush1.bf16.msra.mxu1 %v12684_v59  ;;  %9470 = vmatprep.subr.bf16.mxu0 %v12689_v42  ;;  %v12776_v59 = vld [vmem:[#allocation8 + $0x4ac] ss:$16 sps:$4 sm:$0xff]   ;;  %v12771_v42 = vld [vmem:[#allocation8 + $0x4a0] ss:$16 sps:$4 sm:$0xff]  }
 0x501   :  { %9642 = vmatprep.subr.bf16.mxu1 %v12692_v43  ;;  %v12774_v43 = vld [vmem:[#allocation8 + $0x4a8] ss:$16 sps:$4 sm:$0xff]  }
 0x503   :  { %9471 = vmatpush1.bf16.msra.mxu0 %v12687_v44  ;;  %v12779_v44 = vld [vmem:[#allocation8 + $0x4c4] ss:$16 sps:$4 sm:$0xff]  }
 0x504   :  { %9643 = vmatpush1.bf16.msra.mxu1 %v12690_v30  ;;  %9472 = vmatprep.subr.bf16.mxu0 %v12695_v47  ;;  %v12782_v30 = vld [vmem:[#allocation8 + $0x4cc] ss:$16 sps:$4 sm:$0xff]   ;;  %v12777_v47 = vld [vmem:[#allocation8 + $0x4c0] ss:$16 sps:$4 sm:$0xff]  }
 0x505   :  { %9644 = vmatprep.subr.bf16.mxu1 %v12698_v37  ;;  %v12780_v37 = vld [vmem:[#allocation8 + $0x4c8] ss:$16 sps:$4 sm:$0xff]  }
 0x507   :  { %9473 = vmatpush1.bf16.msra.mxu0 %v12693_v62  ;;  %v12785_v62 = vld [vmem:[#allocation8 + $0x4e4] ss:$16 sps:$4 sm:$0xff]  }
 0x508   :  { %9645 = vmatpush1.bf16.msra.mxu1 %v12696_v48  ;;  %9474 = vmatprep.subr.bf16.mxu0 %v12701_v49  ;;  %v12788_v48 = vld [vmem:[#allocation8 + $0x4ec] ss:$16 sps:$4 sm:$0xff]   ;;  %v12783_v49 = vld [vmem:[#allocation8 + $0x4e0] ss:$16 sps:$4 sm:$0xff]  }
 0x509   :  { %9646 = vmatprep.subr.bf16.mxu1 %v12704_v6  ;;  %v12786_v6 = vld [vmem:[#allocation8 + $0x4e8] ss:$16 sps:$4 sm:$0xff]  }
 0x50b   :  { %9475 = vmatpush1.bf16.msra.mxu0 %v12699_v50  ;;  %v12791_v50 = vld [vmem:[#allocation8 + $0x504] ss:$16 sps:$4 sm:$0xff]  }
 0x50c   :  { %9647 = vmatpush1.bf16.msra.mxu1 %v12702_v51  ;;  %9476 = vmatprep.subr.bf16.mxu0 %v12707_v58  ;;  %v12794_v51 = vld [vmem:[#allocation8 + $0x50c] ss:$16 sps:$4 sm:$0xff]   ;;  %v12789_v58 = vld [vmem:[#allocation8 + $0x500] ss:$16 sps:$4 sm:$0xff]  }
 0x50d   :  { %9648 = vmatprep.subr.bf16.mxu1 %v12710_v52  ;;  %v12792_v52 = vld [vmem:[#allocation8 + $0x508] ss:$16 sps:$4 sm:$0xff]  }
 0x50f   :  { %9477 = vmatpush1.bf16.msra.mxu0 %v12705_v54  ;;  %v12797_v54 = vld [vmem:[#allocation8 + $0x524] ss:$16 sps:$4 sm:$0xff]  }
 0x510   :  { %9649 = vmatpush1.bf16.msra.mxu1 %v12708_v63  ;;  %9478 = vmatprep.subr.bf16.mxu0 %v12713_v55  ;;  %v12800_v63 = vld [vmem:[#allocation8 + $0x52c] ss:$16 sps:$4 sm:$0xff]   ;;  %v12795_v55 = vld [vmem:[#allocation8 + $0x520] ss:$16 sps:$4 sm:$0xff]  }
 0x511   :  { %9650 = vmatprep.subr.bf16.mxu1 %v12716_v46  ;;  %v12798_v46 = vld [vmem:[#allocation8 + $0x528] ss:$16 sps:$4 sm:$0xff]  }
 0x513   :  { %9479 = vmatpush1.bf16.msra.mxu0 %v12711_v56  ;;  %v12803_v56 = vld [vmem:[#allocation8 + $0x544] ss:$16 sps:$4 sm:$0xff]  }
 0x514   :  { %9651 = vmatpush1.bf16.msra.mxu1 %v12714_v57  ;;  %9480 = vmatprep.subr.bf16.mxu0 %v12719_v26  ;;  %v12806_v57 = vld [vmem:[#allocation8 + $0x54c] ss:$16 sps:$4 sm:$0xff]   ;;  %v12801_v26 = vld [vmem:[#allocation8 + $0x540] ss:$16 sps:$4 sm:$0xff]  }
 0x515   :  { %9652 = vmatprep.subr.bf16.mxu1 %v12722_v7  ;;  %v12804_v7 = vld [vmem:[#allocation8 + $0x548] ss:$16 sps:$4 sm:$0xff]  }
 0x517   :  { %9481 = vmatpush1.bf16.msra.mxu0 %v12717_v27  ;;  %v12809_v27 = vld [vmem:[#allocation8 + $0x564] ss:$16 sps:$4 sm:$0xff]  }
 0x518   :  { %9653 = vmatpush1.bf16.msra.mxu1 %v12720_v61  ;;  %9482 = vmatprep.subr.bf16.mxu0 %v12725_v0  ;;  %v12812_v61 = vld [vmem:[#allocation8 + $0x56c] ss:$16 sps:$4 sm:$0xff]   ;;  %v12807_v0 = vld [vmem:[#allocation8 + $0x560] ss:$16 sps:$4 sm:$0xff]  }
 0x519   :  { %9654 = vmatprep.subr.bf16.mxu1 %v12728_v33  ;;  %v12810_v33 = vld [vmem:[#allocation8 + $0x568] ss:$16 sps:$4 sm:$0xff]  }
 0x51b   :  { %9483 = vmatpush1.bf16.msra.mxu0 %v12723_v1  ;;  %v12815_v1 = vld [vmem:[#allocation8 + $0x584] ss:$16 sps:$4 sm:$0xff]  }
 0x51c   :  { %9655 = vmatpush1.bf16.msra.mxu1 %v12726_v2  ;;  %9484 = vmatprep.subr.bf16.mxu0 %v12731_v28  ;;  %v12818_v2 = vld [vmem:[#allocation8 + $0x58c] ss:$16 sps:$4 sm:$0xff]   ;;  %v12813_v28 = vld [vmem:[#allocation8 + $0x580] ss:$16 sps:$4 sm:$0xff]  }
 0x51d   :  { %9656 = vmatprep.subr.bf16.mxu1 %v12734_v5  ;;  %v12816_v5 = vld [vmem:[#allocation8 + $0x588] ss:$16 sps:$4 sm:$0xff]  }
 0x51f   :  { %9485 = vmatpush1.bf16.msra.mxu0 %v12729_v8  ;;  %v12821_v8 = vld [vmem:[#allocation8 + $0x5a4] ss:$16 sps:$4 sm:$0xff]  }
 0x520   :  { %9657 = vmatpush1.bf16.msra.mxu1 %v12732_v38  ;;  %9486 = vmatprep.subr.bf16.mxu0 %v12737_v29  ;;  %v12824_v38 = vld [vmem:[#allocation8 + $0x5ac] ss:$16 sps:$4 sm:$0xff]   ;;  %v12819_v29 = vld [vmem:[#allocation8 + $0x5a0] ss:$16 sps:$4 sm:$0xff]  }
 0x521   :  { %9658 = vmatprep.subr.bf16.mxu1 %v12740_v13  ;;  %v12822_v13 = vld [vmem:[#allocation8 + $0x5a8] ss:$16 sps:$4 sm:$0xff]  }
 0x523   :  { %9487 = vmatpush1.bf16.msra.mxu0 %v12735_v15  ;;  %v12827_v15 = vld [vmem:[#allocation8 + $0x5c4] ss:$16 sps:$4 sm:$0xff]  }
 0x524   :  { %9659 = vmatpush1.bf16.msra.mxu1 %v12738_v14  ;;  %9499 = vmatprep.subr.bf16.mxu0 %v12743_v45  ;;  %v12830_v14 = vld [vmem:[#allocation8 + $0x5cc] ss:$16 sps:$4 sm:$0xff]   ;;  %v12825_v45 = vld [vmem:[#allocation8 + $0x5c0] ss:$16 sps:$4 sm:$0xff]  }
 0x525   :  { %9671 = vmatprep.subr.bf16.mxu1 %v12746_v19  ;;  %v12828_v19 = vld [vmem:[#allocation8 + $0x5c8] ss:$16 sps:$4 sm:$0xff]  }
 0x526   :  { %9489 = vmatmul.mubr.bf16.vlgmr.msra.gmra.mrb[8].mxu0 %v13726_v4 }
 0x527   :  { %9661 = vmatmul.mubr.bf16.vlgmr.msra.gmra.mrb[8].mxu1 %v13726_v4  ;;  %9500 = vmatpush1.bf16.msra.mxu0 %v12741_v12  ;;  %v12762_v4 = vld [vmem:[#allocation8 + $0x468] ss:$16 sps:$4 sm:$0xff]   ;;  %v12833_v12 = vld [vmem:[#allocation8 + $0x5e4] ss:$16 sps:$4 sm:$0xff]  }
 0x528   :  { %9672 = vmatpush1.bf16.msra.mxu1 %v12744_v3  ;;  %9501 = vmatprep.subr.bf16.mxu0 %v12749_v53  ;;  %v12836_v3 = vld [vmem:[#allocation8 + $0x5ec] ss:$16 sps:$4 sm:$0xff]   ;;  %v12831_v53 = vld [vmem:[#allocation8 + $0x5e0] ss:$16 sps:$4 sm:$0xff]  }
 0x529   :  { %9673 = vmatprep.subr.bf16.mxu1 %v12752_v21  ;;  %v12834_v21 = vld [vmem:[#allocation8 + $0x5e8] ss:$16 sps:$4 sm:$0xff]  }
 0x52b   :  { %9502 = vmatpush1.bf16.msra.mxu0 %v12747_v60  ;;  %v12839_v60 = vld [vmem:[#allocation8 + $0x604] ss:$16 sps:$4 sm:$0xff]  }
 0x52c   :  { %9674 = vmatpush1.bf16.msra.mxu1 %v12750_v22  ;;  %9503 = vmatprep.subr.bf16.mxu0 %v12755_v23  ;;  %v12842_v22 = vld [vmem:[#allocation8 + $0x60c] ss:$16 sps:$4 sm:$0xff]   ;;  %v1248_v23 = vsub.s32 4, %v13648_v16 }
 0x52d   :  { %9675 = vmatprep.subr.bf16.mxu1 %v12758_v34  ;;  %v1256_v34 = vsub.s32 6, %v13648_v16 }
 0x52f   :  { %9504 = vmatpush1.bf16.msra.mxu0 %v12753_v17  ;;  %v1252_v17 = vsub.s32 5, %v13648_v16 }
 0x530   :  { %9676 = vmatpush1.bf16.msra.mxu1 %v12756_v18  ;;  %9505 = vmatprep.subr.bf16.mxu0 %v12761_v9  ;;  %v1260_v18 = vsub.s32 7, %v13648_v16  ;;  %v1249_v9 = vrot.slane %v13650_v25, %v1248_v23 }
 0x531   :  { %9677 = vmatprep.subr.bf16.mxu1 %v12764_v11  ;;  %v1257_v11 = vrot.slane %v13650_v25, %v1256_v34 }
 0x533   :  { %9506 = vmatpush1.bf16.msra.mxu0 %v12759_v20  ;;  %v1253_v20 = vrot.slane %v13650_v25, %v1252_v17 }
 0x534   :  { %9678 = vmatpush1.bf16.msra.mxu1 %v12762_v4  ;;  %9507 = vmatprep.subr.bf16.mxu0 %v12767_v10  ;;  %v1261_v4 = vrot.slane %v13650_v25, %v1260_v18 }
 0x535   :  { %9679 = vmatprep.subr.bf16.mxu1 %v12770_v36 }
 0x537   :  { %9508 = vmatpush1.bf16.msra.mxu0 %v12765_v39 }
 0x538   :  { %9680 = vmatpush1.bf16.msra.mxu1 %v12768_v40  ;;  %9509 = vmatprep.subr.bf16.mxu0 %v12773_v41 }
 0x539   :  { %9681 = vmatprep.subr.bf16.mxu1 %v12776_v59 }
 0x53b   :  { %9510 = vmatpush1.bf16.msra.mxu0 %v12771_v42 }
 0x53c   :  { %9682 = vmatpush1.bf16.msra.mxu1 %v12774_v43  ;;  %9511 = vmatprep.subr.bf16.mxu0 %v12779_v44 }
 0x53d   :  { %9683 = vmatprep.subr.bf16.mxu1 %v12782_v30 }
 0x53f   :  { %9512 = vmatpush1.bf16.msra.mxu0 %v12777_v47 }
 0x540   :  { %9684 = vmatpush1.bf16.msra.mxu1 %v12780_v37  ;;  %9513 = vmatprep.subr.bf16.mxu0 %v12785_v62 }
 0x541   :  { %9685 = vmatprep.subr.bf16.mxu1 %v12788_v48 }
 0x543   :  { %9514 = vmatpush1.bf16.msra.mxu0 %v12783_v49 }
 0x544   :  { %9686 = vmatpush1.bf16.msra.mxu1 %v12786_v6  ;;  %9515 = vmatprep.subr.bf16.mxu0 %v12791_v50 }
 0x545   :  { %9687 = vmatprep.subr.bf16.mxu1 %v12794_v51 }
 0x547   :  { %9516 = vmatpush1.bf16.msra.mxu0 %v12789_v58 }
 0x548   :  { %9688 = vmatpush1.bf16.msra.mxu1 %v12792_v52  ;;  %9517 = vmatprep.subr.bf16.mxu0 %v12797_v54 }
 0x549   :  { %9689 = vmatprep.subr.bf16.mxu1 %v12800_v63 }
 0x54b   :  { %9518 = vmatpush1.bf16.msra.mxu0 %v12795_v55 }
 0x54c   :  { %9690 = vmatpush1.bf16.msra.mxu1 %v12798_v46  ;;  %9519 = vmatprep.subr.bf16.mxu0 %v12803_v56 }
 0x54d   :  { %9691 = vmatprep.subr.bf16.mxu1 %v12806_v57 }
 0x54f   :  { %9520 = vmatpush1.bf16.msra.mxu0 %v12801_v26 }
 0x550   :  { %9692 = vmatpush1.bf16.msra.mxu1 %v12804_v7  ;;  %9521 = vmatprep.subr.bf16.mxu0 %v12809_v27 }
 0x551   :  { %9693 = vmatprep.subr.bf16.mxu1 %v12812_v61 }
 0x553   :  { %9522 = vmatpush1.bf16.msra.mxu0 %v12807_v0 }
 0x554   :  { %9694 = vmatpush1.bf16.msra.mxu1 %v12810_v33  ;;  %9523 = vmatprep.subr.bf16.mxu0 %v12815_v1 }
 0x555   :  { %9695 = vmatprep.subr.bf16.mxu1 %v12818_v2 }
 0x557   :  { %9524 = vmatpush1.bf16.msra.mxu0 %v12813_v28 }
 0x558   :  { %9696 = vmatpush1.bf16.msra.mxu1 %v12816_v5  ;;  %9525 = vmatprep.subr.bf16.mxu0 %v12821_v8 }
 0x559   :  { %9697 = vmatprep.subr.bf16.mxu1 %v12824_v38 }
 0x55b   :  { %9526 = vmatpush1.bf16.msra.mxu0 %v12819_v29 }
 0x55c   :  { %9698 = vmatpush1.bf16.msra.mxu1 %v12822_v13  ;;  %9527 = vmatprep.subr.bf16.mxu0 %v12827_v15 }
 0x55d   :  { %9699 = vmatprep.subr.bf16.mxu1 %v12830_v14 }
 0x55f   :  { %9528 = vmatpush1.bf16.msra.mxu0 %v12825_v45 }
 0x560   :  { %9700 = vmatpush1.bf16.msra.mxu1 %v12828_v19  ;;  %9529 = vmatprep.subr.bf16.mxu0 %v12833_v12 }
 0x561   :  { %9701 = vmatprep.subr.bf16.mxu1 %v12836_v3 }
 0x563   :  { %9530 = vmatpush1.bf16.msra.mxu0 %v12831_v53 }
 0x564   :  { %9702 = vmatpush1.bf16.msra.mxu1 %v12834_v21  ;;  %9542 = vmatprep.subr.bf16.mxu0 %v12839_v60 }
 0x565   :  { %9714 = vmatprep.subr.bf16.mxu1 %v12842_v22 }
 0x579   :  { %v7413_v10 = vpop.f32.mrb[4].mxu0  ;;  %v7757_v39 = vpop.f32.mrb[4].mxu1 }
 0x57a   :  { %v12368_v36 = vadd.f32 %v7413_v10, %v1249_v9  ;;  %v7415_v40 = vpop.f32.mrb[5].mxu0  ;;  %v12372_v41 = vadd.f32 %v7757_v39, %v1257_v11  ;;  %v7759_v42 = vpop.f32.mrb[5].mxu1  ;;  %v12837_v10 = vld [vmem:[#allocation8 + $0x600] ss:$16 sps:$4 sm:$0xff]  }
 0x57b   :  { %v12369_v59 = vadd.f32 %v7415_v40, %v1253_v20  ;;  %v7417_v43 = vpop.f32.mrb[6].mxu0  ;;  %v12373_v30 = vadd.f32 %v7759_v42, %v1261_v4  ;;  %v7761_v37 = vpop.f32.mrb[6].mxu1  ;;  %v12845_v40 = vld [vmem:[#allocation8 + $0x624] ss:$16 sps:$4 sm:$0xff]   ;;  %v12846_v42 = vld [vmem:[#allocation8 + $0x628] ss:$16 sps:$4 sm:$0xff]  }
 0x57c   :  { %v7786_v44 = vmul.f32 0.70710677, %v12368_v36  ;;  %v12370_v47 = vadd.f32 %v7417_v43, %v1249_v9  ;;  %v7419_v62 = vpop.f32.mrb[7].mxu0  ;;  %v7788_v48 = vmul.f32 0.70710677, %v12372_v41  ;;  %v7763_v50 = vpop.f32.mrb[7].mxu1  ;;  %v12374_v51 = vadd.f32 %v7761_v37, %v1257_v11 }
 0x57d   :  { %v7787_v49 = vmul.f32 0.70710677, %v12369_v59  ;;  %v7789_v6 = vmul.f32 0.70710677, %v12373_v30  ;;  %v12371_v58 = vadd.f32 %v7419_v62, %v1253_v20  ;;  %v12375_v52 = vadd.f32 %v7763_v50, %v1261_v4  ;;  %v12851_v43 = vld [vmem:[#allocation8 + $0x644] ss:$16 sps:$4 sm:$0xff]  }
 0x57e   :  { %13085 = verf.f32 %v7786_v44  ;;  %v7794_v25 = vmul.f32 0.70710677, %v12370_v47  ;;  %v7796_v54 = vmul.f32 0.70710677, %v12374_v51  ;;  %v7770_v61 = vmul.f32 0.5, %v12368_v36 }
 0x57f   :  { %13087 = verf.f32 %v7788_v48  ;;  %v7795_v63 = vmul.f32 0.70710677, %v12371_v58  ;;  %v7797_v55 = vmul.f32 0.70710677, %v12375_v52  ;;  %v7772_v0 = vmul.f32 0.5, %v12372_v41 }
 0x580   :  { %13089 = verf.f32 %v7787_v49  ;;  %v7771_v2 = vmul.f32 0.5, %v12369_v59  ;;  %v7778_v5 = vmul.f32 0.5, %v12370_v47  ;;  %v7773_v29 = vmul.f32 0.5, %v12373_v30  ;;  %v12840_v36 = vld [vmem:[#allocation8 + $0x608] ss:$16 sps:$4 sm:$0xff]  }
 0x581   :  { %13091 = verf.f32 %v7789_v6  ;;  %v7780_v15 = vmul.f32 0.5, %v12374_v51  ;;  %v7779_v3 = vmul.f32 0.5, %v12371_v58  ;;  %v7781_v22 = vmul.f32 0.5, %v12375_v52  ;;  %v12848_v41 = vld [vmem:[#allocation8 + $0x62c] ss:$16 sps:$4 sm:$0xff]  }
 0x582   :  { %13093 = verf.f32 %v7794_v25  ;;  %v12843_v59 = vld [vmem:[#allocation8 + $0x620] ss:$16 sps:$4 sm:$0xff]   ;;  %v12854_v44 = vld [vmem:[#allocation8 + $0x64c] ss:$16 sps:$4 sm:$0xff]   ;;  %v12852_v47 = vld [vmem:[#allocation8 + $0x648] ss:$16 sps:$4 sm:$0xff]  }
 0x583   :  { %13095 = verf.f32 %v7796_v54  ;;  %v12849_v30 = vld [vmem:[#allocation8 + $0x640] ss:$16 sps:$4 sm:$0xff]   ;;  %v12857_v37 = vld [vmem:[#allocation8 + $0x664] ss:$16 sps:$4 sm:$0xff]   ;;  %v12860_v62 = vld [vmem:[#allocation8 + $0x66c] ss:$16 sps:$4 sm:$0xff]  }
 0x584   :  { %13097 = verf.f32 %v7795_v63  ;;  %v12855_v48 = vld [vmem:[#allocation8 + $0x660] ss:$16 sps:$4 sm:$0xff]   ;;  %v12858_v49 = vld [vmem:[#allocation8 + $0x668] ss:$16 sps:$4 sm:$0xff]   ;;  %v12863_v6 = vld [vmem:[#allocation8 + $0x684] ss:$16 sps:$4 sm:$0xff]  }
 0x585   :  { %13099 = verf.f32 %v7797_v55  ;;  %v12866_v50 = vld [vmem:[#allocation8 + $0x68c] ss:$16 sps:$4 sm:$0xff]   ;;  %v12861_v25 = vld [vmem:[#allocation8 + $0x680] ss:$16 sps:$4 sm:$0xff]   ;;  %v12864_v51 = vld [vmem:[#allocation8 + $0x688] ss:$16 sps:$4 sm:$0xff]  }
 0x586   :  { %v12869_v58 = vld [vmem:[#allocation8 + $0x6a4] ss:$16 sps:$4 sm:$0xff]   ;;  %v12872_v52 = vld [vmem:[#allocation8 + $0x6ac] ss:$16 sps:$4 sm:$0xff]   ;;  %v12867_v54 = vld [vmem:[#allocation8 + $0x6a0] ss:$16 sps:$4 sm:$0xff]  }
 0x587   :  { %v12870_v63 = vld [vmem:[#allocation8 + $0x6a8] ss:$16 sps:$4 sm:$0xff]   ;;  %v12875_v55 = vld [vmem:[#allocation8 + $0x6c4] ss:$16 sps:$4 sm:$0xff]  }
 0x588   :  { %v13086_v46 = vpop.eup %13085 }
 0x589   :  { %v13088_v56 = vpop.eup %13087  ;;  %v7818_v7 = vadd.f32 1.0, %v13086_v46  ;;  %v12878_v46 = vld [vmem:[#allocation8 + $0x6cc] ss:$16 sps:$4 sm:$0xff]  }
 0x58a   :  { %v13090_v57 = vpop.eup %13089  ;;  %v7820_v33 = vadd.f32 1.0, %v13088_v56  ;;  %v12873_v56 = vld [vmem:[#allocation8 + $0x6c0] ss:$16 sps:$4 sm:$0xff]  }
 0x58b   :  { %v13092_v26 = vpop.eup %13091  ;;  %v7819_v28 = vadd.f32 1.0, %v13090_v57  ;;  %v7834_v19 = vmul.f32 %v7818_v7, %v7770_v61  ;;  %v12876_v57 = vld [vmem:[#allocation8 + $0x6c8] ss:$16 sps:$4 sm:$0xff]   ;;  %v12884_v7 = vld [vmem:[#allocation8 + $0x6ec] ss:$16 sps:$4 sm:$0xff]  }
 0x58c   :  { %v13094_v27 = vpop.eup %13093  ;;  %v7821_v13 = vadd.f32 1.0, %v13092_v26  ;;  %v7836_v21 = vmul.f32 %v7820_v33, %v7772_v0  ;;  %v12881_v26 = vld [vmem:[#allocation8 + $0x6e4] ss:$16 sps:$4 sm:$0xff]   ;;  %v12882_v61 = vld [vmem:[#allocation8 + $0x6e8] ss:$16 sps:$4 sm:$0xff]  }
 0x58d   :  { %v13096_v1 = vpop.eup %13095  ;;  %v7826_v8 = vadd.f32 1.0, %v13094_v27  ;;  %v7835_v34 = vmul.f32 %v7819_v28, %v7771_v2  ;;  %v12879_v27 = vld [vmem:[#allocation8 + $0x6e0] ss:$16 sps:$4 sm:$0xff]   ;;  %v12887_v0 = vld [vmem:[#allocation8 + $0x704] ss:$16 sps:$4 sm:$0xff]  }
 0x58e   :  { %v13098_v38 = vpop.eup %13097  ;;  %v7828_v14 = vadd.f32 1.0, %v13096_v1  ;;  %v7837_v9 = vmul.f32 %v7821_v13, %v7773_v29  ;;  %v12890_v33 = vld [vmem:[#allocation8 + $0x70c] ss:$16 sps:$4 sm:$0xff]   ;;  %v12885_v1 = vld [vmem:[#allocation8 + $0x700] ss:$16 sps:$4 sm:$0xff]  }
 0x58f   :  { %v13100_v45 = vpop.eup %13099  ;;  %v7842_v12 = vmul.f32 %v7826_v8, %v7778_v5  ;;  %v7827_v53 = vadd.f32 1.0, %v13098_v38  ;;  %v12888_v2 = vld [vmem:[#allocation8 + $0x708] ss:$16 sps:$4 sm:$0xff]   ;;  %v12893_v28 = vld [vmem:[#allocation8 + $0x724] ss:$16 sps:$4 sm:$0xff]  }
 0x590   :  { %v7844_v60 = vmul.f32 %v7828_v14, %v7780_v15  ;;  %v7829_v23 = vadd.f32 1.0, %v13100_v45  ;;  %v12896_v5 = vld [vmem:[#allocation8 + $0x72c] ss:$16 sps:$4 sm:$0xff]   ;;  %v12891_v8 = vld [vmem:[#allocation8 + $0x720] ss:$16 sps:$4 sm:$0xff]  }
 0x591   :  { %v7850_v17 = vpack.c.bf16 %v7842_v12, %v7834_v19  ;;  %v7843_v18 = vmul.f32 %v7827_v53, %v7779_v3  ;;  %v12894_v38 = vld [vmem:[#allocation8 + $0x728] ss:$16 sps:$4 sm:$0xff]   ;;  %v12899_v29 = vld [vmem:[#allocation8 + $0x744] ss:$16 sps:$4 sm:$0xff]   ;;  %v12902_v13 = vld [vmem:[#allocation8 + $0x74c] ss:$16 sps:$4 sm:$0xff]  }
 0x592   :  { %v13768_v11 = vpack.c.bf16 %v7844_v60, %v7836_v21  ;;  %v7845_v20 = vmul.f32 %v7829_v23, %v7781_v22  ;;  %v12897_v15 = vld [vmem:[#allocation8 + $0x740] ss:$16 sps:$4 sm:$0xff]   ;;  %v12900_v14 = vld [vmem:[#allocation8 + $0x748] ss:$16 sps:$4 sm:$0xff]   ;;  %v12905_v45 = vld [vmem:[#allocation8 + $0x764] ss:$16 sps:$4 sm:$0xff]  }
 0x593   :  { %v7851_v4 = vpack.c.bf16 %v7843_v18, %v7835_v34  ;;  %v12908_v19 = vld [vmem:[#allocation8 + $0x76c] ss:$16 sps:$4 sm:$0xff]   ;;  %v12903_v12 = vld [vmem:[#allocation8 + $0x760] ss:$16 sps:$4 sm:$0xff]   ;;  %v12906_v3 = vld [vmem:[#allocation8 + $0x768] ss:$16 sps:$4 sm:$0xff]  }
 0x594   :  { %v7853_v39 = vpack.c.bf16 %v7845_v20, %v7837_v9  ;;  %v12911_v53 = vld [vmem:[#allocation8 + $0x784] ss:$16 sps:$4 sm:$0xff]   ;;  %v12914_v21 = vld [vmem:[#allocation8 + $0x78c] ss:$16 sps:$4 sm:$0xff]   ;;  %v12909_v60 = vld [vmem:[#allocation8 + $0x780] ss:$16 sps:$4 sm:$0xff]  }
 0x595   :  { %9531 = vmatprep.mubr.bf16.mxu0 %v7851_v4  ;;  %9703 = vmatprep.mubr.bf16.mxu1 %v7851_v4  ;;  %v12912_v22 = vld [vmem:[#allocation8 + $0x788] ss:$16 sps:$4 sm:$0xff]   ;;  %v12917_v23 = vld [vmem:[#allocation8 + $0x7a4] ss:$16 sps:$4 sm:$0xff]   ;;  %v12920_v34 = vld [vmem:[#allocation8 + $0x7ac] ss:$16 sps:$4 sm:$0xff]  }
 0x596   :  { %9532 = vmatmul.mubr.bf16.vlgmr.msra.gmra.mrb[8].mxu0 %v7850_v17  ;;  %9704 = vmatmul.mubr.bf16.vlgmr.msra.gmra.mrb[8].mxu1 %v7850_v17  ;;  %v12915_v17 = vld [vmem:[#allocation8 + $0x7a0] ss:$16 sps:$4 sm:$0xff]   ;;  %v12918_v18 = vld [vmem:[#allocation8 + $0x7a8] ss:$16 sps:$4 sm:$0xff]   ;;  %v12923_v9 = vld [vmem:[#allocation8 + $0x7c4] ss:$16 sps:$4 sm:$0xff]  }
 0x597   :  { %9543 = vmatpush1.bf16.msra.mxu0 %v12837_v10  ;;  %9715 = vmatpush1.bf16.msra.mxu1 %v12840_v36  ;;  %v12926_v20 = vld [vmem:[#allocation8 + $0x7cc] ss:$16 sps:$4 sm:$0xff]   ;;  %v12921_v4 = vld [vmem:[#allocation8 + $0x7c0] ss:$16 sps:$4 sm:$0xff]   ;;  %v12924_v10 = vld [vmem:[#allocation8 + $0x7c8] ss:$16 sps:$4 sm:$0xff]  }
 0x598   :  { %9574 = vmatprep.mubr.bf16.mxu0 %v7853_v39  ;;  %9746 = vmatprep.mubr.bf16.mxu1 %v7853_v39  ;;  %v12929_v36 = vld [vmem:[#allocation8 + $0x7e4] ss:$16 sps:$4 sm:$0xff]   ;;  %v12932_v39 = vld [vmem:[#allocation8 + $0x7ec] ss:$16 sps:$4 sm:$0xff]  }
 0x599   :  { %9544 = vmatprep.subr.bf16.mxu0 %v12845_v40  ;;  %9716 = vmatprep.subr.bf16.mxu1 %v12848_v41  ;;  %v12927_v40 = vld [vmem:[#allocation8 + $0x7e0] ss:$16 sps:$4 sm:$0xff]   ;;  %v12930_v41 = vld [vmem:[#allocation8 + $0x7e8] ss:$16 sps:$4 sm:$0xff]  }
 0x59b   :  { %9545 = vmatpush1.bf16.msra.mxu0 %v12843_v59  ;;  %9717 = vmatpush1.bf16.msra.mxu1 %v12846_v42  ;;  %v12935_v59 = vld [vmem:[#allocation10 + $0x4] ss:$8 sps:$4 sm:$0xff]   ;;  %v12933_v42 = vld [vmem:[#allocation10] ss:$8 sps:$4 sm:$0xff]  }
 0x59c   :  { %9546 = vmatprep.subr.bf16.mxu0 %v12851_v43  ;;  %9718 = vmatprep.subr.bf16.mxu1 %v12854_v44  ;;  %v12938_v43 = vld [vmem:[#allocation10 + $0x14] ss:$8 sps:$4 sm:$0xff]   ;;  %v12936_v44 = vld [vmem:[#allocation10 + $0x10] ss:$8 sps:$4 sm:$0xff]  }
 0x59f   :  { %9547 = vmatpush1.bf16.msra.mxu0 %v12849_v30  ;;  %9719 = vmatpush1.bf16.msra.mxu1 %v12852_v47  ;;  %v12941_v30 = vld [vmem:[#allocation10 + $0x24] ss:$8 sps:$4 sm:$0xff]   ;;  %v12939_v47 = vld [vmem:[#allocation10 + $0x20] ss:$8 sps:$4 sm:$0xff]  }
 0x5a0   :  { %9548 = vmatprep.subr.bf16.mxu0 %v12857_v37  ;;  %9720 = vmatprep.subr.bf16.mxu1 %v12860_v62  ;;  %v12944_v37 = vld [vmem:[#allocation10 + $0x34] ss:$8 sps:$4 sm:$0xff]   ;;  %v12942_v62 = vld [vmem:[#allocation10 + $0x30] ss:$8 sps:$4 sm:$0xff]  }
 0x5a3   :  { %9549 = vmatpush1.bf16.msra.mxu0 %v12855_v48  ;;  %9721 = vmatpush1.bf16.msra.mxu1 %v12858_v49  ;;  %v12947_v48 = vld [vmem:[#allocation10 + $0x44] ss:$8 sps:$4 sm:$0xff]   ;;  %v12945_v49 = vld [vmem:[#allocation10 + $0x40] ss:$8 sps:$4 sm:$0xff]  }
 0x5a4   :  { %9550 = vmatprep.subr.bf16.mxu0 %v12863_v6  ;;  %9722 = vmatprep.subr.bf16.mxu1 %v12866_v50  ;;  %v12950_v6 = vld [vmem:[#allocation10 + $0x54] ss:$8 sps:$4 sm:$0xff]   ;;  %v12948_v50 = vld [vmem:[#allocation10 + $0x50] ss:$8 sps:$4 sm:$0xff]  }
 0x5a7   :  { %9551 = vmatpush1.bf16.msra.mxu0 %v12861_v25  ;;  %9723 = vmatpush1.bf16.msra.mxu1 %v12864_v51  ;;  %v12951_v25 = vld [vmem:[#allocation10 + $0x60] ss:$8 sps:$4 sm:$0xff]   ;;  %v12956_v51 = vld [vmem:[#allocation10 + $0x74] ss:$8 sps:$4 sm:$0xff]  }
 0x5a8   :  { %9552 = vmatprep.subr.bf16.mxu0 %v12869_v58  ;;  %9724 = vmatprep.subr.bf16.mxu1 %v12872_v52  ;;  %v12954_v58 = vld [vmem:[#allocation10 + $0x70] ss:$8 sps:$4 sm:$0xff]   ;;  %v12959_v52 = vld [vmem:[#allocation10 + $0x84] ss:$8 sps:$4 sm:$0xff]  }
 0x5ab   :  { %9553 = vmatpush1.bf16.msra.mxu0 %v12867_v54  ;;  %9725 = vmatpush1.bf16.msra.mxu1 %v12870_v63  ;;  %v12957_v54 = vld [vmem:[#allocation10 + $0x80] ss:$8 sps:$4 sm:$0xff]   ;;  %v12962_v63 = vld [vmem:[#allocation10 + $0x94] ss:$8 sps:$4 sm:$0xff]  }
 0x5ac   :  { %9554 = vmatprep.subr.bf16.mxu0 %v12875_v55  ;;  %9726 = vmatprep.subr.bf16.mxu1 %v12878_v46  ;;  %v12960_v55 = vld [vmem:[#allocation10 + $0x90] ss:$8 sps:$4 sm:$0xff]   ;;  %v12965_v46 = vld [vmem:[#allocation10 + $0xa4] ss:$8 sps:$4 sm:$0xff]  }
 0x5af   :  { %9555 = vmatpush1.bf16.msra.mxu0 %v12873_v56  ;;  %9727 = vmatpush1.bf16.msra.mxu1 %v12876_v57  ;;  %v12963_v56 = vld [vmem:[#allocation10 + $0xa0] ss:$8 sps:$4 sm:$0xff]   ;;  %v12968_v57 = vld [vmem:[#allocation10 + $0xb4] ss:$8 sps:$4 sm:$0xff]  }
 0x5b0   :  { %9556 = vmatprep.subr.bf16.mxu0 %v12881_v26  ;;  %9728 = vmatprep.subr.bf16.mxu1 %v12884_v7  ;;  %v12966_v26 = vld [vmem:[#allocation10 + $0xb0] ss:$8 sps:$4 sm:$0xff]   ;;  %v12971_v7 = vld [vmem:[#allocation10 + $0xc4] ss:$8 sps:$4 sm:$0xff]  }
 0x5b3   :  { %9557 = vmatpush1.bf16.msra.mxu0 %v12879_v27  ;;  %9729 = vmatpush1.bf16.msra.mxu1 %v12882_v61  ;;  %v12969_v27 = vld [vmem:[#allocation10 + $0xc0] ss:$8 sps:$4 sm:$0xff]   ;;  %v12974_v61 = vld [vmem:[#allocation10 + $0xd4] ss:$8 sps:$4 sm:$0xff]  }
 0x5b4   :  { %9558 = vmatprep.subr.bf16.mxu0 %v12887_v0  ;;  %9730 = vmatprep.subr.bf16.mxu1 %v12890_v33  ;;  %v12972_v0 = vld [vmem:[#allocation10 + $0xd0] ss:$8 sps:$4 sm:$0xff]   ;;  %v12977_v33 = vld [vmem:[#allocation10 + $0xe4] ss:$8 sps:$4 sm:$0xff]  }
 0x5b7   :  { %9559 = vmatpush1.bf16.msra.mxu0 %v12885_v1  ;;  %9731 = vmatpush1.bf16.msra.mxu1 %v12888_v2  ;;  %v12975_v1 = vld [vmem:[#allocation10 + $0xe0] ss:$8 sps:$4 sm:$0xff]   ;;  %v12980_v2 = vld [vmem:[#allocation10 + $0xf4] ss:$8 sps:$4 sm:$0xff]  }
 0x5b8   :  { %9560 = vmatprep.subr.bf16.mxu0 %v12893_v28  ;;  %9732 = vmatprep.subr.bf16.mxu1 %v12896_v5  ;;  %v12978_v28 = vld [vmem:[#allocation10 + $0xf0] ss:$8 sps:$4 sm:$0xff]   ;;  %v12983_v5 = vld [vmem:[#allocation10 + $0x104] ss:$8 sps:$4 sm:$0xff]  }
 0x5bb   :  { %9561 = vmatpush1.bf16.msra.mxu0 %v12891_v8  ;;  %9733 = vmatpush1.bf16.msra.mxu1 %v12894_v38  ;;  %v13029_v8 = vld [vmem:[#allocation11 + $0x40] sm:$0xff]  }
 0x5bc   :  { %9562 = vmatprep.subr.bf16.mxu0 %v12899_v29  ;;  %9734 = vmatprep.subr.bf16.mxu1 %v12902_v13  ;;  %v13030_v38 = vld [vmem:[#allocation11] sm:$0xff]   ;;  %v13031_v29 = vld [vmem:[#allocation11 + $0x48] sm:$0xff]  }
 0x5bd   :  { %v13032_v13 = vld [vmem:[#allocation11 + $0x8] sm:$0xff]  }
 0x5bf   :  { %9563 = vmatpush1.bf16.msra.mxu0 %v12897_v15  ;;  %9735 = vmatpush1.bf16.msra.mxu1 %v12900_v14  ;;  %v8111_v15 = vld [vmem:[#allocation5 + $0x1] ss:$8 sm:$0xf] }
 0x5c0   :  { %9564 = vmatprep.subr.bf16.mxu0 %v12905_v45  ;;  %9736 = vmatprep.subr.bf16.mxu1 %v12908_v19  ;;  %v8116_v14 = vrot.slane %v8111_v15, %v13653_v24  ;;  %v8124_v45 = vrot.slane %v8111_v15, %v1240_v31  ;;  %v8120_v19 = vrot.slane %v8111_v15, %v13657_v32 }
 0x5c3   :  { %9565 = vmatpush1.bf16.msra.mxu0 %v12903_v12  ;;  %9737 = vmatpush1.bf16.msra.mxu1 %v12906_v3  ;;  %v8128_v12 = vrot.slane %v8111_v15, %v1244_v35 }
 0x5c4   :  { %9566 = vmatprep.subr.bf16.mxu0 %v12911_v53  ;;  %9738 = vmatprep.subr.bf16.mxu1 %v12914_v21 }
 0x5c7   :  { %9567 = vmatpush1.bf16.msra.mxu0 %v12909_v60  ;;  %9739 = vmatpush1.bf16.msra.mxu1 %v12912_v22 }
 0x5c8   :  { %9568 = vmatprep.subr.bf16.mxu0 %v12917_v23  ;;  %9740 = vmatprep.subr.bf16.mxu1 %v12920_v34 }
 0x5cb   :  { %9569 = vmatpush1.bf16.msra.mxu0 %v12915_v17  ;;  %9741 = vmatpush1.bf16.msra.mxu1 %v12918_v18 }
 0x5cc   :  { %9570 = vmatprep.subr.bf16.mxu0 %v12923_v9  ;;  %9742 = vmatprep.subr.bf16.mxu1 %v12926_v20 }
 0x5cf   :  { %9571 = vmatpush1.bf16.msra.mxu0 %v12921_v4  ;;  %9743 = vmatpush1.bf16.msra.mxu1 %v12924_v10 }
 0x5d0   :  { %9572 = vmatprep.subr.bf16.mxu0 %v12929_v36  ;;  %9744 = vmatprep.subr.bf16.mxu1 %v12932_v39 }
 0x5d3   :  { %9573 = vmatpush1.bf16.msra.mxu0 %v12927_v40  ;;  %9745 = vmatpush1.bf16.msra.mxu1 %v12930_v41 }
 0x5d4   :  { %10198 = vmatprep.subr.bf16.mxu0 %v12935_v59  ;;  %12251 = vmatprep.subr.bf16.mxu1 %v13029_v8 }
 0x5d6   :  { %9575 = vmatmul.mubr.bf16.vlgmr.msra.gmra.mrb[8].mxu0 %v13768_v11  ;;  %9747 = vmatmul.mubr.bf16.vlgmr.msra.gmra.mrb[8].mxu1 %v13768_v11  ;;  %v12953_v11 = vld [vmem:[#allocation10 + $0x64] ss:$8 sps:$4 sm:$0xff]  }
 0x5d7   :  { %10199 = vmatpush1.bf16.msra.mxu0 %v12933_v42  ;;  %12252 = vmatpush3.bf16.msra.mxu1 %v13030_v38 }
 0x5d8   :  { %10200 = vmatprep.subr.bf16.mxu0 %v12938_v43  ;;  %12253 = vmatprep.subr.bf16.mxu1 %v13031_v29 }
 0x5db   :  { %10201 = vmatpush1.bf16.msra.mxu0 %v12936_v44  ;;  %12254 = vmatpush3.bf16.msra.mxu1 %v13032_v13 }
 0x5dc   :  { %10202 = vmatprep.subr.bf16.mxu0 %v12941_v30 }
 0x5df   :  { %10203 = vmatpush1.bf16.msra.mxu0 %v12939_v47 }
 0x5e0   :  { %10204 = vmatprep.subr.bf16.mxu0 %v12944_v37 }
 0x5e3   :  { %10205 = vmatpush1.bf16.msra.mxu0 %v12942_v62 }
 0x5e4   :  { %10206 = vmatprep.subr.bf16.mxu0 %v12947_v48 }
 0x5e7   :  { %10207 = vmatpush1.bf16.msra.mxu0 %v12945_v49 }
 0x5e8   :  { %10208 = vmatprep.subr.bf16.mxu0 %v12950_v6 }
 0x5eb   :  { %10209 = vmatpush1.bf16.msra.mxu0 %v12948_v50 }
 0x5ec   :  { %10210 = vmatprep.subr.bf16.mxu0 %v12953_v11 }
 0x5ef   :  { %10211 = vmatpush1.bf16.msra.mxu0 %v12951_v25 }
 0x5f0   :  { %10212 = vmatprep.subr.bf16.mxu0 %v12956_v51 }
 0x5f3   :  { %10213 = vmatpush1.bf16.msra.mxu0 %v12954_v58 }
 0x5f4   :  { %10214 = vmatprep.subr.bf16.mxu0 %v12959_v52 }
 0x5f7   :  { %10215 = vmatpush1.bf16.msra.mxu0 %v12957_v54 }
 0x5f8   :  { %10216 = vmatprep.subr.bf16.mxu0 %v12962_v63 }
 0x5fb   :  { %10217 = vmatpush1.bf16.msra.mxu0 %v12960_v55 }
 0x5fc   :  { %10218 = vmatprep.subr.bf16.mxu0 %v12965_v46 }
 0x5ff   :  { %10219 = vmatpush1.bf16.msra.mxu0 %v12963_v56 }
 0x600   :  { %10220 = vmatprep.subr.bf16.mxu0 %v12968_v57 }
 0x603   :  { %10221 = vmatpush1.bf16.msra.mxu0 %v12966_v26 }
 0x604   :  { %10222 = vmatprep.subr.bf16.mxu0 %v12971_v7 }
 0x607   :  { %10223 = vmatpush1.bf16.msra.mxu0 %v12969_v27 }
 0x608   :  { %10224 = vmatprep.subr.bf16.mxu0 %v12974_v61 }
 0x60b   :  { %10225 = vmatpush1.bf16.msra.mxu0 %v12972_v0 }
 0x60c   :  { %10226 = vmatprep.subr.bf16.mxu0 %v12977_v33 }
 0x60f   :  { %10227 = vmatpush1.bf16.msra.mxu0 %v12975_v1 }
 0x610   :  { %10228 = vmatprep.subr.bf16.mxu0 %v12980_v2 }
 0x613   :  { %10229 = vmatpush1.bf16.msra.mxu0 %v12978_v28 }
 0x614   :  { %10241 = vmatprep.subr.bf16.mxu0 %v12983_v5 }
 0x6a9   :  { %v9576_v3 = vpop.f32.mrb[8].mxu0  ;;  %v9748_v53 = vpop.f32.mrb[8].mxu1 }
 0x6aa   :  { %v12376_v21 = vadd.f32 %v9576_v3, %v8116_v14  ;;  %v12380_v60 = vadd.f32 %v9748_v53, %v8124_v45  ;;  %v9578_v22 = vpop.f32.mrb[9].mxu0  ;;  %v9750_v23 = vpop.f32.mrb[9].mxu1  ;;  %v12984_v3 = vld [vmem:[#allocation10 + $0x110] ss:$8 sps:$4 sm:$0xff]   ;;  %v12989_v53 = vld [vmem:[#allocation10 + $0x124] ss:$8 sps:$4 sm:$0xff]  }
 0x6ab   :  { %v12377_v34 = vadd.f32 %v9578_v22, %v8120_v19  ;;  %v12381_v17 = vadd.f32 %v9750_v23, %v8128_v12  ;;  %v9580_v18 = vpop.f32.mrb[10].mxu0  ;;  %v9752_v9 = vpop.f32.mrb[10].mxu1  ;;  %v12990_v22 = vld [vmem:[#allocation10 + $0x130] ss:$8 sps:$4 sm:$0xff]   ;;  %v12995_v23 = vld [vmem:[#allocation10 + $0x144] ss:$8 sps:$4 sm:$0xff]  }
 0x6ac   :  { %v9765_v20 = vmul.f32 0.70710677, %v12376_v21  ;;  %v9767_v4 = vmul.f32 0.70710677, %v12380_v60  ;;  %v12378_v31 = vadd.f32 %v9580_v18, %v8116_v14  ;;  %v12382_v39 = vadd.f32 %v9752_v9, %v8124_v45  ;;  %v9582_v40 = vpop.f32.mrb[11].mxu0  ;;  %v9754_v16 = vpop.f32.mrb[11].mxu1 }
 0x6ad   :  { %v9766_v10 = vmul.f32 0.70710677, %v12377_v34  ;;  %v9768_v36 = vmul.f32 0.70710677, %v12381_v17  ;;  %v12379_v35 = vadd.f32 %v9582_v40, %v8120_v19  ;;  %v12383_v41 = vadd.f32 %v9754_v16, %v8128_v12  ;;  %v12981_v45 = vld [vmem:[#allocation10 + $0x100] ss:$8 sps:$4 sm:$0xff]  }
 0x6ae   :  { %13101 = verf.f32 %v9765_v20  ;;  %v9769_v59 = vmul.f32 0.70710677, %v12378_v31  ;;  %v9771_v42 = vmul.f32 0.70710677, %v12382_v39  ;;  %v9757_v6 = vmul.f32 0.5, %v12376_v21 }
 0x6af   :  { %13103 = verf.f32 %v9767_v4  ;;  %v9770_v43 = vmul.f32 0.70710677, %v12379_v35  ;;  %v9772_v44 = vmul.f32 0.70710677, %v12383_v41  ;;  %v9759_v50 = vmul.f32 0.5, %v12380_v60 }
 0x6b0   :  { %13105 = verf.f32 %v9766_v10  ;;  %v9758_v51 = vmul.f32 0.5, %v12377_v34  ;;  %v9761_v52 = vmul.f32 0.5, %v12378_v31  ;;  %v9760_v55 = vmul.f32 0.5, %v12381_v17  ;;  %v12986_v12 = vld [vmem:[#allocation10 + $0x114] ss:$8 sps:$4 sm:$0xff]  }
 0x6b1   :  { %13107 = verf.f32 %v9768_v36  ;;  %v9763_v56 = vmul.f32 0.5, %v12382_v39  ;;  %v9762_v61 = vmul.f32 0.5, %v12379_v35  ;;  %v9764_v2 = vmul.f32 0.5, %v12383_v41  ;;  %v12987_v21 = vld [vmem:[#allocation10 + $0x120] ss:$8 sps:$4 sm:$0xff]  }
 0x6b2   :  { %13109 = verf.f32 %v9769_v59  ;;  %v12992_v60 = vld [vmem:[#allocation10 + $0x134] ss:$8 sps:$4 sm:$0xff]   ;;  %v12993_v34 = vld [vmem:[#allocation10 + $0x140] ss:$8 sps:$4 sm:$0xff]   ;;  %v12996_v18 = vld [vmem:[#allocation10 + $0x150] ss:$8 sps:$4 sm:$0xff]  }
 0x6b3   :  { %13111 = verf.f32 %v9771_v42  ;;  %v12998_v17 = vld [vmem:[#allocation10 + $0x154] ss:$8 sps:$4 sm:$0xff]   ;;  %v13001_v9 = vld [vmem:[#allocation10 + $0x164] ss:$8 sps:$4 sm:$0xff]   ;;  %v12999_v20 = vld [vmem:[#allocation10 + $0x160] ss:$8 sps:$4 sm:$0xff]  }
 0x6b4   :  { %13113 = verf.f32 %v9770_v43  ;;  %v13004_v4 = vld [vmem:[#allocation10 + $0x174] ss:$8 sps:$4 sm:$0xff]   ;;  %v13002_v10 = vld [vmem:[#allocation10 + $0x170] ss:$8 sps:$4 sm:$0xff]   ;;  %v13007_v36 = vld [vmem:[#allocation10 + $0x184] ss:$8 sps:$4 sm:$0xff]  }
 0x6b5   :  { %13115 = verf.f32 %v9772_v44  ;;  %v13005_v31 = vld [vmem:[#allocation10 + $0x180] ss:$8 sps:$4 sm:$0xff]   ;;  %v13010_v39 = vld [vmem:[#allocation10 + $0x194] ss:$8 sps:$4 sm:$0xff]   ;;  %v13008_v40 = vld [vmem:[#allocation10 + $0x190] ss:$8 sps:$4 sm:$0xff]  }
 0x6b6   :  { %v13013_v16 = vld [vmem:[#allocation10 + $0x1a4] ss:$8 sps:$4 sm:$0xff]   ;;  %v13011_v35 = vld [vmem:[#allocation10 + $0x1a0] ss:$8 sps:$4 sm:$0xff]   ;;  %v13016_v41 = vld [vmem:[#allocation10 + $0x1b4] ss:$8 sps:$4 sm:$0xff]  }
 0x6b7   :  { %v13014_v59 = vld [vmem:[#allocation10 + $0x1b0] ss:$8 sps:$4 sm:$0xff]   ;;  %v13019_v42 = vld [vmem:[#allocation10 + $0x1c4] ss:$8 sps:$4 sm:$0xff]   ;;  %v13017_v43 = vld [vmem:[#allocation10 + $0x1c0] ss:$8 sps:$4 sm:$0xff]  }
 0x6b8   :  { %v13102_v30 = vpop.eup %13101  ;;  %v13022_v44 = vld [vmem:[#allocation10 + $0x1d4] ss:$8 sps:$4 sm:$0xff]  }
 0x6b9   :  { %v13104_v47 = vpop.eup %13103  ;;  %v9781_v48 = vadd.f32 1.0, %v13102_v30  ;;  %v13020_v30 = vld [vmem:[#allocation10 + $0x1d0] ss:$8 sps:$4 sm:$0xff]  }
 0x6ba   :  { %v13106_v37 = vpop.eup %13105  ;;  %v9783_v11 = vadd.f32 1.0, %v13104_v47  ;;  %v13025_v47 = vld [vmem:[#allocation10 + $0x1e4] ss:$8 sps:$4 sm:$0xff]  }
 0x6bb   :  { %v13108_v62 = vpop.eup %13107  ;;  %v9782_v58 = vadd.f32 1.0, %v13106_v37  ;;  %v9789_v7 = vmul.f32 %v9781_v48, %v9757_v6  ;;  %v13023_v37 = vld [vmem:[#allocation10 + $0x1e0] ss:$8 sps:$4 sm:$0xff]   ;;  %v13026_v48 = vld [vmem:[#allocation10 + $0x1f0] ss:$8 sps:$4 sm:$0xff]  }
 0x6bc   :  { %v13110_v49 = vpop.eup %13109  ;;  %v9784_v46 = vadd.f32 1.0, %v13108_v62  ;;  %v13778_v33 = vmul.f32 %v9783_v11, %v9759_v50  ;;  %v13028_v62 = vld [vmem:[#allocation10 + $0x1f4] ss:$8 sps:$4 sm:$0xff]  }
 0x6bd   :  { %v13112_v25 = vpop.eup %13111  ;;  %v9785_v54 = vadd.f32 1.0, %v13110_v49  ;;  %v9790_v5 = vmul.f32 %v9782_v58, %v9758_v51  ;;  %v13033_v49 = vld [vmem:[#allocation11 + $0x50] sm:$0xff]   ;;  %v13035_v50 = vld [vmem:[#allocation11 + $0x58] sm:$0xff]   ;;  %v13038_v51 = vld [vmem:[#allocation11 + $0x20] sm:$0xff]  }
 0x6be   :  { %v13114_v63 = vpop.eup %13113  ;;  %v9787_v57 = vadd.f32 1.0, %v13112_v25  ;;  %v9792_v29 = vmul.f32 %v9784_v46, %v9760_v55  ;;  %v13034_v6 = vld [vmem:[#allocation11 + $0x10] sm:$0xff]   ;;  %12255 = vmatprep.subr.bf16.mxu1 %v13033_v49  ;;  %v13036_v11 = vld [vmem:[#allocation11 + $0x18] sm:$0xff]   ;;  %v13037_v25 = vld [vmem:[#allocation11 + $0x60] sm:$0xff]  }
 0x6bf   :  { %v13116_v26 = vpop.eup %13115  ;;  %v9793_v27 = vmul.f32 %v9785_v54, %v9761_v52  ;;  %v9786_v0 = vadd.f32 1.0, %v13114_v63  ;;  %12256 = vmatpush3.bf16.msra.mxu1 %v13034_v6  ;;  %v13039_v58 = vld [vmem:[#allocation11 + $0x68] sm:$0xff]   ;;  %v13041_v54 = vld [vmem:[#allocation11 + $0x70] sm:$0xff]   ;;  %v13043_v55 = vld [vmem:[#allocation11 + $0x78] sm:$0xff]  }
 0x6c0   :  { %v13780_v1 = vmul.f32 %v9787_v57, %v9763_v56  ;;  %v9788_v28 = vadd.f32 1.0, %v13116_v26  ;;  %12257 = vmatprep.subr.bf16.mxu1 %v13035_v50  ;;  %v13040_v52 = vld [vmem:[#allocation11 + $0x28] sm:$0xff]   ;;  %v13042_v63 = vld [vmem:[#allocation11 + $0x30] sm:$0xff]   ;;  %v13044_v46 = vld [vmem:[#allocation11 + $0x38] sm:$0xff]   ;;  %v13387_v56 = vmov 0.0  }
 0x6c1   :  { %v9797_v8 = vpack.c.bf16 %v9793_v27, %v9789_v7  ;;  %v9794_v38 = vmul.f32 %v9786_v0, %v9762_v61  ;;  %v9866_v57 = vld [vmem:[#allocation5 + $0x2] ss:$8 sm:$0x3] }
 0x6c2   :  { %v9799_v13 = vpack.c.bf16 %v13780_v1, %v13778_v33  ;;  %v9796_v15 = vmul.f32 %v9788_v28, %v9764_v2  ;;  %v9871_v26 = vrot.slane %v9866_v57, %v13653_v24  ;;  %v9875_v7 = vrot.slane %v9866_v57, %v13657_v32  ;;  %v13055_v57 = vld [vmem:[#allocation14 + $0x10] sm:$0xff]  }
 0x6c3   :  { %v9798_v14 = vpack.c.bf16 %v9794_v38, %v9790_v5  ;;  %12258 = vmatpush3.bf16.msra.mxu1 %v13036_v11 }
 0x6c4   :  { %v9800_v19 = vpack.c.bf16 %v9796_v15, %v9792_v29  ;;  %12259 = vmatprep.subr.bf16.mxu1 %v13037_v25 }
 0x6c5   :  { %10230 = vmatprep.mubr.bf16.mxu0 %v9798_v14 }
 0x6c6   :  { %10231 = vmatmul.mubr.bf16.vlgmr.msra.gmra.mrb[12].mxu0 %v9797_v8 }
 0x6c7   :  { %10242 = vmatpush1.bf16.msra.mxu0 %v12981_v45  ;;  %10273 = vmatprep.mubr.bf16.mxu0 %v9800_v19 }
 0x6c8   :  { %10243 = vmatprep.subr.bf16.mxu0 %v12986_v12  ;;  %12260 = vmatpush3.bf16.msra.mxu1 %v13038_v51 }
 0x6c9   :  { %12261 = vmatprep.subr.bf16.mxu1 %v13039_v58 }
 0x6cb   :  { %10244 = vmatpush1.bf16.msra.mxu0 %v12984_v3 }
 0x6cc   :  { %10245 = vmatprep.subr.bf16.mxu0 %v12989_v53  ;;  %12262 = vmatpush3.bf16.msra.mxu1 %v13040_v52 }
 0x6cd   :  { %12263 = vmatprep.subr.bf16.mxu1 %v13041_v54 }
 0x6cf   :  { %10246 = vmatpush1.bf16.msra.mxu0 %v12987_v21 }
 0x6d0   :  { %10247 = vmatprep.subr.bf16.mxu0 %v12992_v60  ;;  %12264 = vmatpush3.bf16.msra.mxu1 %v13042_v63  ;;  %v13053_v63 = vld [vmem:[#allocation14] sm:$0xff]  }
 0x6d1   :  { %12265 = vmatprep.subr.bf16.mxu1 %v13043_v55 }
 0x6d3   :  { %10248 = vmatpush1.bf16.msra.mxu0 %v12990_v22 }
 0x6d4   :  { %10249 = vmatprep.subr.bf16.mxu0 %v12995_v23  ;;  %12266 = vmatpush3.bf16.msra.mxu1 %v13044_v46  ;;  %v13054_v46 = vld [vmem:[#allocation14 + $0x8] sm:$0xff]  }
 0x6d5   :  { %12300 = vmatprep.subr.bf16.mxu1 %v13387_v56 }
 0x6d7   :  { %10250 = vmatpush1.bf16.msra.mxu0 %v12993_v34 }
 0x6d8   :  { %10251 = vmatprep.subr.bf16.mxu0 %v12998_v17 }
 0x6db   :  { %10252 = vmatpush1.bf16.msra.mxu0 %v12996_v18 }
 0x6dc   :  { %10253 = vmatprep.subr.bf16.mxu0 %v13001_v9 }
 0x6df   :  { %10254 = vmatpush1.bf16.msra.mxu0 %v12999_v20 }
 0x6e0   :  { %10255 = vmatprep.subr.bf16.mxu0 %v13004_v4  ;;  %v13045_v4 = vld [vmem:[#allocation13] sm:$0xff]  }
 0x6e3   :  { %10256 = vmatpush1.bf16.msra.mxu0 %v13002_v10  ;;  %v13046_v10 = vld [vmem:[#allocation13 + $0x8] sm:$0xff]  }
 0x6e4   :  { %10257 = vmatprep.subr.bf16.mxu0 %v13007_v36  ;;  %v13047_v36 = vld [vmem:[#allocation13 + $0x10] sm:$0xff]  }
 0x6e7   :  { %10258 = vmatpush1.bf16.msra.mxu0 %v13005_v31  ;;  %v13048_v31 = vld [vmem:[#allocation13 + $0x18] sm:$0xff]  }
 0x6e8   :  { %10259 = vmatprep.subr.bf16.mxu0 %v13010_v39  ;;  %v13049_v39 = vld [vmem:[#allocation13 + $0x20] sm:$0xff]  }
 0x6eb   :  { %10260 = vmatpush1.bf16.msra.mxu0 %v13008_v40  ;;  %v13050_v40 = vld [vmem:[#allocation13 + $0x28] sm:$0xff]  }
 0x6ec   :  { %10261 = vmatprep.subr.bf16.mxu0 %v13013_v16  ;;  %v13051_v16 = vld [vmem:[#allocation13 + $0x30] sm:$0xff]  }
 0x6ef   :  { %10262 = vmatpush1.bf16.msra.mxu0 %v13011_v35  ;;  %v13052_v35 = vld [vmem:[#allocation13 + $0x38] sm:$0xff]  }
 0x6f0   :  { %10263 = vmatprep.subr.bf16.mxu0 %v13016_v41 }
 0x6f3   :  { %10264 = vmatpush1.bf16.msra.mxu0 %v13014_v59  ;;  %v10338_v59 = vld [vmem:[#allocation5 + $0x3] ss:$0 sm:$0xff] }
 0x6f4   :  { %10265 = vmatprep.subr.bf16.mxu0 %v13019_v42 }
 0x6f7   :  { %10266 = vmatpush1.bf16.msra.mxu0 %v13017_v43 }
 0x6f8   :  { %10267 = vmatprep.subr.bf16.mxu0 %v13022_v44 }
 0x6fb   :  { %10268 = vmatpush1.bf16.msra.mxu0 %v13020_v30 }
 0x6fc   :  { %10269 = vmatprep.subr.bf16.mxu0 %v13025_v47 }
 0x6ff   :  { %10270 = vmatpush1.bf16.msra.mxu0 %v13023_v37 }
 0x700   :  { %10271 = vmatprep.subr.bf16.mxu0 %v13028_v62 }
 0x703   :  { %10272 = vmatpush1.bf16.msra.mxu0 %v13026_v48 }
 0x706   :  { %10274 = vmatmul.mubr.bf16.vlgmr.msra.gmra.mrb[12].mxu0 %v9799_v13 }
 0x7d9   :  { %v10275_v27 = vpop.f32.mrb[12].mxu0 }
 0x7da   :  { %v12384_v61 = vadd.f32 %v10275_v27, %v9871_v26  ;;  %v10277_v0 = vpop.f32.mrb[13].mxu0  ;;  %v13058_v27 = vld [vmem:[#allocation14 + $0x28] sm:$0xff]  }
 0x7db   :  { %v12385_v33 = vadd.f32 %v10277_v0, %v9875_v7  ;;  %v10279_v1 = vpop.f32.mrb[14].mxu0  ;;  %v13060_v0 = vld [vmem:[#allocation14 + $0x38] sm:$0xff]  }
 0x7dc   :  { %v10288_v2 = vmul.f32 0.70710677, %v12384_v61  ;;  %v12386_v28 = vadd.f32 %v10279_v1, %v9871_v26  ;;  %v10281_v5 = vpop.f32.mrb[15].mxu0  ;;  %v10284_v12 = vmul.f32 0.5, %v12384_v61  ;;  %v13056_v26 = vld [vmem:[#allocation14 + $0x18] sm:$0xff]   ;;  %v13059_v61 = vld [vmem:[#allocation14 + $0x30] sm:$0xff]  }
 0x7dd   :  { %v10289_v8 = vmul.f32 0.70710677, %v12385_v33  ;;  %v12387_v38 = vadd.f32 %v10281_v5, %v9875_v7  ;;  %v10285_v21 = vmul.f32 0.5, %v12385_v33  ;;  %v13057_v7 = vld [vmem:[#allocation14 + $0x20] sm:$0xff]  }
 0x7de   :  { %13117 = verf.f32 %v10288_v2  ;;  %v10290_v29 = vmul.f32 0.70710677, %v12386_v28  ;;  %v10286_v3 = vmul.f32 0.5, %v12386_v28  ;;  %v10503_v33 = vld [vmem:[#allocation5 + $0x4] ss:$0 sm:$0xff] }
 0x7df   :  { %13119 = verf.f32 %v10289_v8  ;;  %v10291_v13 = vmul.f32 0.70710677, %v12387_v38  ;;  %v10287_v60 = vmul.f32 0.5, %v12387_v38 }
 0x7e0   :  { %13121 = verf.f32 %v10290_v29 }
 0x7e1   :  { %13123 = verf.f32 %v10291_v13 }
 0x7e8   :  { %v13118_v15 = vpop.eup %13117 }
 0x7e9   :  { %v13120_v24 = vpop.eup %13119  ;;  %v10296_v14 = vadd.f32 1.0, %v13118_v15 }
 0x7ea   :  { %v13122_v32 = vpop.eup %13121  ;;  %v10297_v45 = vadd.f32 1.0, %v13120_v24 }
 0x7eb   :  { %v13124_v19 = vpop.eup %13123  ;;  %v10298_v53 = vadd.f32 1.0, %v13122_v32  ;;  %v10300_v23 = vmul.f32 %v10296_v14, %v10284_v12 }
 0x7ec   :  { %v10299_v22 = vadd.f32 1.0, %v13124_v19  ;;  %v10301_v17 = vmul.f32 %v10297_v45, %v10285_v21 }
 0x7ed   :  { %v10302_v34 = vmul.f32 %v10298_v53, %v10286_v3  ;;  %v13061_v53 = vld [vmem:[#allocation16] sm:$0xff]  }
 0x7ee   :  { %v10303_v18 = vmul.f32 %v10299_v22, %v10287_v60  ;;  %v13062_v60 = vld [vmem:[#allocation16 + $0x8] sm:$0xff]   ;;  %v13063_v22 = vld [vmem:[#allocation16 + $0x10] sm:$0xff]  }
 0x7ef   :  { %v10304_v9 = vpack.c.bf16 %v10302_v34, %v10300_v23  ;;  %v13064_v23 = vld [vmem:[#allocation16 + $0x18] sm:$0xff]   ;;  %v13065_v34 = vld [vmem:[#allocation16 + $0x20] sm:$0xff]  }
 0x7f0   :  { %v10305_v20 = vpack.c.bf16 %v10303_v18, %v10301_v17  ;;  %v13066_v17 = vld [vmem:[#allocation16 + $0x28] sm:$0xff]   ;;  %v13067_v18 = vld [vmem:[#allocation16 + $0x30] sm:$0xff]  }
 0x7f2   :  { %10467 = vmatprep.mubr.bf16.mxu1 %v10305_v20  ;;  %v10620_v20 = vld [vmem:[#allocation5 + $0x5] ss:$0 sm:$0xff] }
 0x7f3   :  { %10468 = vmatmul.mubr.bf16.vlgmr.msra.gmra.mrb[12].mxu1 %v10304_v9  ;;  %v13068_v9 = vld [vmem:[#allocation16 + $0x38] sm:$0xff]  }
 0x7f4   :  { %12301 = vmatpush3.bf16.msra.mxu1 %v13045_v4  ;;  %12316 = vmatprep.mubr.msk.bf16.mxu1 %vm13388_vm0, %v13387_v56 }
 0x7f5   :  { %12302 = vmatprep.subr.bf16.mxu1 %v13387_v56 }
 0x7f8   :  { %12303 = vmatpush3.bf16.msra.mxu1 %v13046_v10 }
 0x7f9   :  { %12304 = vmatprep.subr.bf16.mxu1 %v13387_v56 }
 0x7fc   :  { %12305 = vmatpush3.bf16.msra.mxu1 %v13047_v36 }
 0x7fd   :  { %12306 = vmatprep.subr.bf16.mxu1 %v13387_v56 }
 0x800   :  { %12307 = vmatpush3.bf16.msra.mxu1 %v13048_v31 }
 0x801   :  { %12308 = vmatprep.subr.bf16.mxu1 %v13387_v56 }
 0x804   :  { %12309 = vmatpush3.bf16.msra.mxu1 %v13049_v39 }
 0x805   :  { %12310 = vmatprep.subr.bf16.mxu1 %v13387_v56 }
 0x808   :  { %12311 = vmatpush3.bf16.msra.mxu1 %v13050_v40 }
 0x809   :  { %12312 = vmatprep.subr.bf16.mxu1 %v13387_v56 }
 0x80c   :  { %12313 = vmatpush3.bf16.msra.mxu1 %v13051_v16 }
 0x80d   :  { %12314 = vmatprep.subr.bf16.mxu1 %v13387_v56 }
 0x810   :  { %12315 = vmatpush3.bf16.msra.mxu1 %v13052_v35 }
 0x811   :  { %12320 = vmatprep.subr.bf16.mxu1 %v13387_v56 }
 0x8c6   :  { %v12267_v41 = vpop.f32.mrb[12].mxu1 }
 0x8c7   :  { %v12268_v42 = vpop.f32.mrb[13].mxu1 }
 0x8c8   :  { %v12269_v43 = vadd.f32 %v12268_v42, %v12267_v41  ;;  %v12270_v44 = vpop.f32.mrb[14].mxu1 }
 0x8c9   :  { %v12271_v30 = vpop.f32.mrb[15].mxu1 }
 0x8ca   :  { %v10470_v47 = vadd.f32 %v12269_v43, %v10338_v59  ;;  %v12272_v37 = vadd.f32 %v12271_v30, %v12270_v44 }
 0x8cc   :  { %v10478_v62 = vmul.f32 0.70710677, %v10470_v47  ;;  %v10473_v48 = vadd.f32 %v12272_v37, %v10338_v59  ;;  %v10476_v25 = vmul.f32 0.5, %v10470_v47 }
 0x8ce   :  { %13125 = verf.f32 %v10478_v62  ;;  %v10479_v49 = vmul.f32 0.70710677, %v10473_v48  ;;  %v10477_v51 = vmul.f32 0.5, %v10473_v48  ;;  %v10737_v62 = vld [vmem:[#allocation5 + $0x6] ss:$0 sm:$0xff] }
 0x8d0   :  { %13127 = verf.f32 %v10479_v49 }
 0x8d8   :  { %v13126_v6 = vpop.eup %13125 }
 0x8d9   :  { %v10482_v50 = vadd.f32 1.0, %v13126_v6 }
 0x8da   :  { %v13128_v11 = vpop.eup %13127 }
 0x8db   :  { %v10483_v58 = vadd.f32 1.0, %v13128_v11  ;;  %v10484_v52 = vmul.f32 %v10482_v50, %v10476_v25 }
 0x8dd   :  { %v10485_v54 = vmul.f32 %v10483_v58, %v10477_v51 }
 0x8df   :  { %v10486_v55 = vpack.c.bf16 %v10485_v54, %v10484_v52 }
 0x8e1   :  { %12317 = vmatmul.mubr.bf16.vlgmr.msra.gmra.mrb[16].mxu1 %v10486_v55 }
 0x8e2   :  { %12321 = vmatpush3.bf16.msra.mxu1 %v13053_v63  ;;  %12336 = vmatprep.mubr.msk.bf16.mxu1 %vm13388_vm0, %v13387_v56 }
 0x8e3   :  { %12322 = vmatprep.subr.bf16.mxu1 %v13387_v56 }
 0x8e6   :  { %12323 = vmatpush3.bf16.msra.mxu1 %v13054_v46 }
 0x8e7   :  { %12324 = vmatprep.subr.bf16.mxu1 %v13387_v56 }
 0x8ea   :  { %12325 = vmatpush3.bf16.msra.mxu1 %v13055_v57 }
 0x8eb   :  { %12326 = vmatprep.subr.bf16.mxu1 %v13387_v56 }
 0x8ee   :  { %12327 = vmatpush3.bf16.msra.mxu1 %v13056_v26 }
 0x8ef   :  { %12328 = vmatprep.subr.bf16.mxu1 %v13387_v56 }
 0x8f2   :  { %12329 = vmatpush3.bf16.msra.mxu1 %v13057_v7 }
 0x8f3   :  { %12330 = vmatprep.subr.bf16.mxu1 %v13387_v56 }
 0x8f6   :  { %12331 = vmatpush3.bf16.msra.mxu1 %v13058_v27 }
 0x8f7   :  { %12332 = vmatprep.subr.bf16.mxu1 %v13387_v56 }
 0x8fa   :  { %12333 = vmatpush3.bf16.msra.mxu1 %v13059_v61 }
 0x8fb   :  { %12334 = vmatprep.subr.bf16.mxu1 %v13387_v56 }
 0x8fe   :  { %12335 = vmatpush3.bf16.msra.mxu1 %v13060_v0 }
 0x8ff   :  { %12340 = vmatprep.subr.bf16.mxu1 %v13387_v56 }
 0x9b4   :  { %v10586_v1 = vpop.f32.mrb[16].mxu1 }
 0x9b5   :  { %v10587_v2 = vadd.f32 %v10586_v1, %v10503_v33  ;;  %v12318_v28 = vpop.f32.mrb[17].mxu1 }
 0x9b6   :  { %v10589_v5 = vpop.f32.mrb[18].mxu1 }
 0x9b7   :  { %v10595_v8 = vmul.f32 0.70710677, %v10587_v2  ;;  %v10590_v38 = vadd.f32 %v10589_v5, %v10503_v33  ;;  %v12319_v29 = vpop.f32.mrb[19].mxu1  ;;  %v10593_v32 = vmul.f32 0.5, %v10587_v2 }
 0x9b9   :  { %13129 = verf.f32 %v10595_v8  ;;  %v10596_v13 = vmul.f32 0.70710677, %v10590_v38  ;;  %v10594_v45 = vmul.f32 0.5, %v10590_v38 }
 0x9bb   :  { %13131 = verf.f32 %v10596_v13 }
 0x9c3   :  { %v13130_v15 = vpop.eup %13129 }
 0x9c4   :  { %v10599_v24 = vadd.f32 1.0, %v13130_v15 }
 0x9c5   :  { %v13132_v14 = vpop.eup %13131 }
 0x9c6   :  { %v10600_v19 = vadd.f32 1.0, %v13132_v14  ;;  %v10601_v12 = vmul.f32 %v10599_v24, %v10593_v32 }
 0x9c8   :  { %v10602_v3 = vmul.f32 %v10600_v19, %v10594_v45 }
 0x9ca   :  { %v10603_v21 = vpack.c.bf16 %v10602_v3, %v10601_v12 }
 0x9cc   :  { %12337 = vmatmul.mubr.bf16.vlgmr.msra.gmra.mrb[20].mxu1 %v10603_v21 }
 0x9cd   :  { %12341 = vmatpush3.bf16.msra.mxu1 %v13061_v53  ;;  %12356 = vmatprep.mubr.msk.bf16.mxu1 %vm13388_vm0, %v13387_v56 }
 0x9ce   :  { %12342 = vmatprep.subr.bf16.mxu1 %v13387_v56 }
 0x9d1   :  { %12343 = vmatpush3.bf16.msra.mxu1 %v13062_v60 }
 0x9d2   :  { %12344 = vmatprep.subr.bf16.mxu1 %v13387_v56 }
 0x9d5   :  { %12345 = vmatpush3.bf16.msra.mxu1 %v13063_v22 }
 0x9d6   :  { %12346 = vmatprep.subr.bf16.mxu1 %v13387_v56 }
 0x9d9   :  { %12347 = vmatpush3.bf16.msra.mxu1 %v13064_v23 }
 0x9da   :  { %12348 = vmatprep.subr.bf16.mxu1 %v13387_v56 }
 0x9dd   :  { %12349 = vmatpush3.bf16.msra.mxu1 %v13065_v34 }
 0x9de   :  { %12350 = vmatprep.subr.bf16.mxu1 %v13387_v56 }
 0x9e1   :  { %12351 = vmatpush3.bf16.msra.mxu1 %v13066_v17 }
 0x9e2   :  { %12352 = vmatprep.subr.bf16.mxu1 %v13387_v56 }
 0x9e5   :  { %12353 = vmatpush3.bf16.msra.mxu1 %v13067_v18 }
 0x9e6   :  { %12354 = vmatprep.subr.bf16.mxu1 %v13387_v56 }
 0x9e9   :  { %12355 = vmatpush3.bf16.msra.mxu1 %v13068_v9 }
 0xa9f   :  { %v10703_v4 = vpop.f32.mrb[20].mxu1 }
 0xaa0   :  { %v10704_v10 = vadd.f32 %v10703_v4, %v10620_v20  ;;  %v12338_v36 = vpop.f32.mrb[21].mxu1 }
 0xaa1   :  { %v10706_v31 = vpop.f32.mrb[22].mxu1 }
 0xaa2   :  { %v10712_v39 = vmul.f32 0.70710677, %v10704_v10  ;;  %v10707_v40 = vadd.f32 %v10706_v31, %v10620_v20  ;;  %v12339_v16 = vpop.f32.mrb[23].mxu1  ;;  %v10710_v43 = vmul.f32 0.5, %v10704_v10 }
 0xaa4   :  { %13133 = verf.f32 %v10712_v39  ;;  %v10713_v35 = vmul.f32 0.70710677, %v10707_v40  ;;  %v10711_v44 = vmul.f32 0.5, %v10707_v40 }
 0xaa6   :  { %13135 = verf.f32 %v10713_v35 }
 0xaae   :  { %v13134_v41 = vpop.eup %13133 }
 0xaaf   :  { %v10716_v59 = vadd.f32 1.0, %v13134_v41 }
 0xab0   :  { %v13136_v42 = vpop.eup %13135 }
 0xab1   :  { %v10717_v30 = vadd.f32 1.0, %v13136_v42  ;;  %v10718_v56 = vmul.f32 %v10716_v59, %v10710_v43 }
 0xab3   :  { %v10719_v47 = vmul.f32 %v10717_v30, %v10711_v44 }
 0xab5   :  { %v10720_v37 = vpack.c.bf16 %v10719_v47, %v10718_v56 }
 0xab7   :  { %12357 = vmatmul.mubr.bf16.vlgmr.msra.gmra.mrb[24].mxu1 %v10720_v37 }
 0xb8a   :  { %v10820_v48 = vpop.f32.mrb[24].mxu1 }
 0xb8b   :  { %v12358_v49 = vpop.f32.mrb[25].mxu1  ;;  %v10821_v50 = vadd.f32 %v10820_v48, %v10737_v62 }
 0xb8c   :  { %v10823_v6 = vpop.f32.mrb[26].mxu1 }
 0xb8d   :  { %v10824_v11 = vadd.f32 %v10823_v6, %v10737_v62  ;;  %v12359_v25 = vpop.f32.mrb[27].mxu1 }
 0xb8f   :  { %v12249_v51 = vpack.c.bf16 %v10824_v11, %v10821_v50 }
 0xb91   :  { %12250 = vst [vmem:[#allocation17] sm:$0xff] %v12249_v51  }
 0xb92   :  { %13346 = shalt.err (!%p13343_p6)
}
 0xb93   :  { %s13347_s13 = scalar_lea.hbm %s13843_s9, 128 }
 0xb94   :  { %p13348_p7 = scmp.ne.s32.totalorder %s13843_s9, %s13347_s13  ;;  %p13351_p8 = scmp.lt.u32.totalorder %s13347_s13, %s13843_s9 }
 0xb96   :  { %p13353_p9 = pnand %p13351_p8, %p13348_p7 }
 0xb98   :  { %13356 = shalt.err (!%p13353_p9)
}
 0xb99   :  { %10848 = dma.vmem_to_hbm [thread:$0]  %s10843_s10, 128, %s13843_s9, [#allocation4], %s13374_s3, %s13374_s3, %s13375_s12  }
 0xb9a   :  { %13367 = dma.done.wait [#allocation4], 128  }
 0xb9b   :  { %13368 = vsyncadd [#allocation4], 4294967168 }
 0xb9c   :  { %10852 = vsyncpa [#allocation3], 1 }
 0xb9d   :  { %10853 = vsyncpa [#allocation6], 1 }
 0xb9e   :  { %10854 = vsyncpa [#allocation9], 1 }
 0xb9f   :  { %10855 = vsyncpa [#allocation12], 1 }
 0xba0   :  { %10856 = vsyncpa [#allocation15], 1 }
 0xba1   :  { %10857 = vsyncpa [#allocation4], 1 }

</bundles_post_ra>
